<compile_context>
chip_gen: v6e
topology: v6e:2x2x1
jax: 0.10.0
libtpu: 0.0.40
codegen_flags: <defaults>
</compile_context>

<pallas_src>
import functools

import jax
import jax.numpy as jnp
from jax.experimental import pallas as pl
from jax.experimental.pallas import tpu as pltpu


# ---------------------------------------------------------------------------
# Hardware-aware budgets
# ---------------------------------------------------------------------------
def _vmem_capacity_bytes():
    try:
        return int(pltpu.get_tpu_info().vmem_capacity_bytes)
    except Exception:
        return 64 * 1024 * 1024          # conservative fallback (v7x per-TC VMEM)


def _vmem_limit_bytes():
    # Headroom for compiler-internal scratch.  Raises the default scoped limit on
    # v5e/v6e (128 MiB VMEM) while staying below physical on v7x (64 MiB).
    return int(_vmem_capacity_bytes() * 0.85)


def _pick_tile_h(H, W, cin, cout, act_itemsize, param_itemsize, weight_bytes,
                 out_mult=1):
    """Largest divisor of H whose per-grid-step working set (double-buffered
    inputs/outputs + resident weights + in-kernel temporaries) fits the budget."""
    budget = max(int(_vmem_capacity_bytes() * 0.6) - 2 * int(weight_bytes), 1 << 20)
    best = 1
    for th in range(1, H + 1):
        if H % th:
            continue
        per_in = 2 * (th + 2) * W * cin * act_itemsize          # main + halos, 2x buffered
        per_res = 2 * th * W * max(cin, cout) * act_itemsize    # residual input (worst case)
        per_out = 2 * out_mult * th * W * cout * act_itemsize   # output, 2x buffered
        tmp = ((th + 2) * (W + 2) * cin * param_itemsize        # padded norm buffer
               + 2 * th * (W + 2) * 3 * cin * param_itemsize    # im2col slab + one slice
               + out_mult * th * W * cout * 4)                  # f32 accumulator(s)
        if per_in + per_res + per_out + tmp <= budget:
            best = th
    return best


# ---------------------------------------------------------------------------
# Standalone per-channel sum / sum-of-squares (only needed for the first GN,
# whose input is produced outside this block).
# ---------------------------------------------------------------------------
def _channel_stats_kernel(x_ref, sum_ref, sq_ref):
    r = pl.program_id(1)

    @pl.when(r == 0)
    def _():
        sum_ref[...] = jnp.zeros_like(sum_ref)
        sq_ref[...] = jnp.zeros_like(sq_ref)

    x = x_ref[0].astype(jnp.float32)                   # (TH, W, C)
    xf = x.reshape(-1, x.shape[-1])
    sum_ref[...] += jnp.sum(xf, axis=0).reshape(1, 1, -1)
    sq_ref[...] += jnp.sum(xf * xf, axis=0).reshape(1, 1, -1)


def channel_stats(x, *, tile_h):
    B, H, W, C = x.shape
    assert H % tile_h == 0
    R = H // tile_h
    return pl.pallas_call(
        _channel_stats_kernel,
        out_shape=(jax.ShapeDtypeStruct((B, 1, C), jnp.float32),
                   jax.ShapeDtypeStruct((B, 1, C), jnp.float32)),
        grid=(B, R),
        in_specs=[pl.BlockSpec((1, tile_h, W, C), lambda b, r: (b, r, 0, 0))],
        out_specs=(pl.BlockSpec((1, 1, C), lambda b, r: (b, 0, 0)),
                   pl.BlockSpec((1, 1, C), lambda b, r: (b, 0, 0))),
        # NOTE: the stats accumulation relies on the row axis iterating innermost
        # (last grid dim) while its output block index is constant -> mark it
        # "arbitrary".  Do not reorder the grid or mark it "parallel".
        compiler_params=pltpu.CompilerParams(
            dimension_semantics=("parallel", "arbitrary"),
            vmem_limit_bytes=_vmem_limit_bytes()),
        cost_estimate=pl.CostEstimate(
            flops=int(3 * B * H * W * C), transcendentals=0,
            bytes_accessed=int(x.size * x.dtype.itemsize)),
    )(x)


def _stats_to_scale_shift(s, q, gamma, beta, *, groups, eps, count):
    """Fold GroupNorm (gamma, beta, mean, inv-std) into per-channel scale/shift.
    s, q are per-(batch, channel) sum and sum-of-squares; tiny (B,C) JAX ops.
    NOTE: var = E[x^2] - mean^2 in f32 (clamped >= 0); adequate for decoder
    activations; switch to a shifted/Welford accumulation if tighter precision
    is ever required."""
    B, _, C = s.shape
    cg = C // groups
    n = float(count * cg)
    sg = s.reshape(B, groups, cg).sum(axis=-1)
    qg = q.reshape(B, groups, cg).sum(axis=-1)
    mean = sg / n
    var = jnp.maximum(qg / n - mean * mean, 0.0)
    inv = jax.lax.rsqrt(var + eps)
    mean_c = jnp.repeat(mean, cg, axis=-1)             # (B, C)
    inv_c = jnp.repeat(inv, cg, axis=-1)
    scale = gamma.reshape(1, C).astype(jnp.float32) * inv_c
    shift = beta.reshape(1, C).astype(jnp.float32) - mean_c * scale
    return scale.reshape(B, 1, C), shift.reshape(B, 1, C)


# ---------------------------------------------------------------------------
# Shared helpers for the row-tiled conv kernels
# ---------------------------------------------------------------------------
def _halo_specs(H, W, C, tile_h):
    """Main row tile plus 1-row top/bottom halos (indices clamped at the image
    edges; out-of-image halo rows are zeroed inside the kernels)."""
    main = pl.BlockSpec((1, tile_h, W, C), lambda b, r: (b, r, 0, 0))
    top = pl.BlockSpec((1, 1, W, C),
                       lambda b, r: (b, jnp.maximum(r * tile_h - 1, 0), 0, 0))
    bot = pl.BlockSpec((1, 1, W, C),
                       lambda b, r: (b, jnp.minimum(r * tile_h + tile_h, H - 1), 0, 0))
    return top, main, bot


# ---------------------------------------------------------------------------
# Fused GroupNorm-apply + SiLU + 3x3 conv
#   (+ optional 1x1 shortcut / residual add / output scale, + optional per-
#    channel stats of the conv OUTPUT for the next GroupNorm)
# ---------------------------------------------------------------------------
def _resnet_conv3x3_kernel(*refs, tile_h, shortcut, inv_scale, emit_stats):
    it = iter(refs)
    xt_ref = next(it); xm_ref = next(it); xb_ref = next(it)
    scale_ref = next(it); shift_ref = next(it)
    w_ref = next(it); b_ref = next(it)
    res_ref = scw_ref = scb_ref = None
    if shortcut != "none":
        res_ref = next(it)
    if shortcut == "proj":
        scw_ref = next(it); scb_ref = next(it)
    o_ref = next(it)
    sum_ref = sq_ref = None
    if emit_stats:
        sum_ref = next(it); sq_ref = next(it)

    TH = tile_h
    W = xm_ref.shape[2]
    cin = xm_ref.shape[3]
    cout = w_ref.shape[-1]
    n = TH * W
    cdt = w_ref.dtype                                  # MXU compute dtype (bf16-friendly)
    r = pl.program_id(1)
    nr = pl.num_programs(1)

    scale = scale_ref[0].reshape(1, 1, cin).astype(jnp.float32)
    shift = shift_ref[0].reshape(1, 1, cin).astype(jnp.float32)

    def norm_act(v):                                   # GN apply + SiLU, f32 then cast
        y = v.astype(jnp.float32) * scale + shift
        return (y * jax.nn.sigmoid(y)).astype(cdt)

    # Conv zero-padding applies to the *normalized* activations -> normalize the
    # halo pieces first, then zero the rows that fall outside the image.
    zrow = jnp.zeros((1, W, cin), cdt)
    top = jnp.where(r > 0, norm_act(xt_ref[0]), zrow)
    mid = norm_act(xm_ref[0])
    bot = jnp.where(r < nr - 1, norm_act(xb_ref[0]), zrow)
    xn = jnp.concatenate([top, mid, bot], axis=0)      # (TH+2, W, cin)

    # Zero-pad columns once, then im2col the three row slabs along channels.
    zc = jnp.zeros((TH + 2, 1, cin), cdt)
    xnp_ = jnp.concatenate([zc, xn, zc], axis=1)       # (TH+2, W+2, cin)
    xcat = jnp.concatenate(
        [xnp_[0:TH], xnp_[1:TH + 1], xnp_[2:TH + 2]], axis=-1)   # (TH, W+2, 3*cin)

    acc = None
    for dw in range(3):                                # 3 matmuls, K = 3*cin
        lhs = xcat[:, dw:dw + W, :].reshape(n, 3 * cin)
        t = jnp.dot(lhs, w_ref[dw], preferred_element_type=jnp.float32)
        acc = t if acc is None else acc + t
    acc = acc + b_ref[...].astype(jnp.float32)         # (n, cout)

    if shortcut == "identity":
        acc = (acc + res_ref[0].reshape(n, cout).astype(jnp.float32)) * inv_scale
    elif shortcut == "proj":
        cres = res_ref.shape[-1]
        res = res_ref[0].reshape(n, cres).astype(cdt)
        sc = jnp.dot(res, scw_ref[...], preferred_element_type=jnp.float32)
        acc = (acc + sc + scb_ref[...].astype(jnp.float32)) * inv_scale

    if emit_stats:
        # Per-channel sum / sumsq of the OUTPUT, accumulated across row tiles in
        # the revisited (1,1,cout) output block (row axis is "arbitrary").
        @pl.when(r == 0)
        def _():
            sum_ref[...] = jnp.zeros_like(sum_ref)
            sq_ref[...] = jnp.zeros_like(sq_ref)
        sum_ref[...] += jnp.sum(acc, axis=0).reshape(1, 1, cout)
        sq_ref[...] += jnp.sum(acc * acc, axis=0).reshape(1, 1, cout)

    o_ref[0] = acc.reshape(TH, W, cout).astype(o_ref.dtype)


def resnet_conv3x3(x, scale, shift, w, b, *, tile_h, residual=None,
                   shortcut_w=None, shortcut_b=None, output_scale_factor=1.0,
                   emit_stats=False, param_dtype=jnp.bfloat16):
    B, H, W, cin = x.shape
    cout = w.shape[-1]
    assert H % tile_h == 0
    R = H // tile_h

    # im2col weight layout: (dw, dh*cin, cout), cast to the MXU compute dtype.
    w_r = jnp.transpose(w, (1, 0, 2, 3)).reshape(3, 3 * cin, cout).astype(param_dtype)
    b2 = b.reshape(1, cout).astype(jnp.float32)

    top, main, bot = _halo_specs(H, W, cin, tile_h)
    const = lambda a: pl.BlockSpec(a.shape, lambda *_: (0,) * a.ndim)
    per_b = lambda c: pl.BlockSpec((1, 1, c), lambda b_, r_: (b_, 0, 0))

    in_specs = [top, main, bot, per_b(cin), per_b(cin), const(w_r), const(b2)]
    args = [x, x, x, scale, shift, w_r, b2]

    if residual is not None and shortcut_w is not None:
        mode = "proj"
        scw = shortcut_w.astype(param_dtype)
        scb = shortcut_b.reshape(1, cout).astype(jnp.float32)
        in_specs += [pl.BlockSpec((1, tile_h, W, residual.shape[-1]),
                                  lambda b_, r_: (b_, r_, 0, 0)),
                     const(scw), const(scb)]
        args += [residual, scw, scb]
    elif residual is not None:
        mode = "identity"
        in_specs += [pl.BlockSpec((1, tile_h, W, residual.shape[-1]),
                                  lambda b_, r_: (b_, r_, 0, 0))]
        args += [residual]
    else:
        mode = "none"

    out_shape = [jax.ShapeDtypeStruct((B, H, W, cout), x.dtype)]
    out_specs = [pl.BlockSpec((1, tile_h, W, cout), lambda b_, r_: (b_, r_, 0, 0))]
    if emit_stats:
        out_shape += [jax.ShapeDtypeStruct((B, 1, cout), jnp.float32)] * 2
        out_specs += [pl.BlockSpec((1, 1, cout), lambda b_, r_: (b_, 0, 0))] * 2

    flops = 2 * B * H * W * 9 * cin * cout
    if mode == "proj":
        flops += 2 * B * H * W * cin * cout
    bytes_acc = (x.size * x.dtype.itemsize + B * H * W * cout * x.dtype.itemsize
                 + w_r.size * jnp.dtype(param_dtype).itemsize
                 + (residual.size * residual.dtype.itemsize if residual is not None else 0))

    kernel = functools.partial(_resnet_conv3x3_kernel, tile_h=tile_h, shortcut=mode,
                               inv_scale=1.0 / float(output_scale_factor),
                               emit_stats=emit_stats)
    out = pl.pallas_call(
        kernel,
        out_shape=tuple(out_shape),
        grid=(B, R),
        in_specs=in_specs,
        out_specs=tuple(out_specs),
        # Row axis must stay "arbitrary": the (optional) stats outputs are
        # revisited/accumulated across it.  Batch axis is safe to megacore-split.
        compiler_params=pltpu.CompilerParams(
            dimension_semantics=("parallel", "arbitrary"),
            vmem_limit_bytes=_vmem_limit_bytes()),
        cost_estimate=pl.CostEstimate(flops=int(flops),
                                      transcendentals=int(B * H * W * cin),
                                      bytes_accessed=int(bytes_acc)),
    )(*args)
    if emit_stats:
        return out[0], out[1], out[2]
    return out[0]


# ---------------------------------------------------------------------------
# Fused nearest-2x upsample + 3x3 conv as a 4-phase polyphase conv
# ---------------------------------------------------------------------------
def _phase_weights(w):
    """Combine 3x3 taps into per-phase 2x2 taps for the nearest-2x polyphase
    conv: out(2t+a, 2u+c) = sum_{ri,ci} x[t+a+ri-1, u+c+ci-1] @ wp[a,c,ri*2+ci]."""
    rg = [((0,), (1, 2)), ((0, 1), (2,))]
    phases = []
    for a in range(2):
        per_c = []
        for c in range(2):
            taps = []
            for ri in range(2):
                for ci in range(2):
                    acc = None
                    for dh in rg[a][ri]:
                        for dw in rg[c][ci]:
                            acc = w[dh, dw] if acc is None else acc + w[dh, dw]
                    taps.append(acc)
            per_c.append(jnp.stack(taps))
        phases.append(jnp.stack(per_c))
    return jnp.stack(phases)                           # (2, 2, 4, Cin, Cout)


def _upsample_conv3x3_kernel(xt_ref, xm_ref, xb_ref, w_ref, b_ref, o_ref, *, tile_h):
    TH = tile_h
    W = xm_ref.shape[2]
    cin = xm_ref.shape[3]
    cout = w_ref.shape[-1]
    n = TH * W
    cdt = w_ref.dtype
    r = pl.program_id(1)
    nr = pl.num_programs(1)

    # Raw (un-normalized) input with zeroed out-of-image halo rows/cols == the
    # conv's zero padding in the upsampled domain.
    zrow = jnp.zeros((1, W, cin), cdt)
    top = jnp.where(r > 0, xt_ref[0].astype(cdt), zrow)
    mid = xm_ref[0].astype(cdt)
    bot = jnp.where(r < nr - 1, xb_ref[0].astype(cdt), zrow)
    xz = jnp.concatenate([top, mid, bot], axis=0)      # (TH+2, W, cin)
    zc = jnp.zeros((TH + 2, 1, cin), cdt)
    xzp = jnp.concatenate([zc, xz, zc], axis=1)        # (TH+2, W+2, cin)

    bias = b_ref[...].astype(jnp.float32)              # (1, cout)
    for a in range(2):
        # im2col over the 2 row taps of this vertical phase: K = 2*cin.
        rc = jnp.concatenate([xzp[a:a + TH], xzp[a + 1:a + 1 + TH]], axis=-1)
        for c in range(2):
            acc = None
            for ci in range(2):
                lhs = rc[:, c + ci:c + ci + W, :].reshape(n, 2 * cin)
                t = jnp.dot(lhs, w_ref[a, c, ci], preferred_element_type=jnp.float32)
                acc = t if acc is None else acc + t
            out = (acc + bias).reshape(TH, W, cout).astype(o_ref.dtype)
            # Interleaved phase store: (B, H, 2, W, 2*cout) -> a plain reshape in
            # the wrapper yields (B, 2H, 2W, cout).
            o_ref[0, :, a, :, c * cout:(c + 1) * cout] = out


def upsample2x_conv3x3(x, w, b, *, tile_h, param_dtype=jnp.bfloat16):
    B, H, W, cin = x.shape
    cout = w.shape[-1]
    assert H % tile_h == 0
    R = H // tile_h

    wp = _phase_weights(w)                                         # (2,2,4,cin,cout)
    wpc = jnp.transpose(wp.reshape(2, 2, 2, 2, cin, cout),
                        (0, 1, 3, 2, 4, 5)).reshape(2, 2, 2, 2 * cin, cout)
    wpc = wpc.astype(param_dtype)                                  # (a, c, ci, 2*cin, cout)
    b2 = b.reshape(1, cout).astype(jnp.float32)

    top, main, bot = _halo_specs(H, W, cin, tile_h)
    const = lambda a: pl.BlockSpec(a.shape, lambda *_: (0,) * a.ndim)
    in_specs = [top, main, bot, const(wpc), const(b2)]
    out_spec = pl.BlockSpec((1, tile_h, 2, W, 2 * cout),
                            lambda b_, r_: (b_, r_, 0, 0, 0))

    flops = 2 * B * H * W * 16 * cin * cout
    bytes_acc = (x.size * x.dtype.itemsize + 4 * B * H * W * cout * x.dtype.itemsize
                 + wpc.size * jnp.dtype(param_dtype).itemsize)
    return pl.pallas_call(
        functools.partial(_upsample_conv3x3_kernel, tile_h=tile_h),
        out_shape=jax.ShapeDtypeStruct((B, H, 2, W, 2 * cout), x.dtype),
        grid=(B, R),
        in_specs=in_specs,
        out_specs=out_spec,
        compiler_params=pltpu.CompilerParams(
            dimension_semantics=("parallel", "parallel"),
            vmem_limit_bytes=_vmem_limit_bytes()),
        cost_estimate=pl.CostEstimate(flops=int(flops), transcendentals=0,
                                      bytes_accessed=int(bytes_acc)),
    )(x, x, x, wpc, b2)


# ---------------------------------------------------------------------------
# Module glue
# ---------------------------------------------------------------------------
def init_params(key, in_channels, out_channels, *, num_layers, add_upsample):
    """Deterministic synthetic parameters.  Conv weights stored HWIO (f32)."""
    def nrm(k, shape, scale=0.1):
        return scale * jax.random.normal(k, shape, jnp.float32)

    params = {"resnets": [], "upsample": None}
    for i in range(num_layers):
        cin = in_channels if i == 0 else out_channels
        key, *ks = jax.random.split(key, 11)
        rp = {
            "gn1_gamma": 1.0 + nrm(ks[0], (cin,)),
            "gn1_beta": nrm(ks[1], (cin,)),
            "conv1_w": nrm(ks[2], (3, 3, cin, out_channels)),
            "conv1_b": nrm(ks[3], (out_channels,)),
            "gn2_gamma": 1.0 + nrm(ks[4], (out_channels,)),
            "gn2_beta": nrm(ks[5], (out_channels,)),
            "conv2_w": nrm(ks[6], (3, 3, out_channels, out_channels)),
            "conv2_b": nrm(ks[7], (out_channels,)),
        }
        if cin != out_channels:
            rp["shortcut_w"] = nrm(ks[8], (cin, out_channels))
            rp["shortcut_b"] = nrm(ks[9], (out_channels,))
        params["resnets"].append(rp)
    if add_upsample:
        key, k1, k2 = jax.random.split(key, 3)
        params["upsample"] = {"w": nrm(k1, (3, 3, out_channels, out_channels)),
                              "b": nrm(k2, (out_channels,))}
    return params


def up_decoder_block_2d(x_nchw, params, *, groups, eps=1e-6,
                        output_scale_factor=1.0, tile_h=None,
                        param_dtype=jnp.bfloat16):
    """Forward pass.  Input/output are NCHW to match the PyTorch module.
    Activations keep the input dtype (pass bf16 input for bf16 activations)."""
    x = jnp.transpose(x_nchw, (0, 2, 3, 1))                 # NCHW -> NHWC
    B, H, W, _ = x.shape

    if tile_h is None:
        cin_max = max([x.shape[-1]]
                      + [rp["conv1_w"].shape[-1] for rp in params["resnets"]])
        cout_max = max(rp["conv1_w"].shape[-1] for rp in params["resnets"])
        p_item = jnp.dtype(param_dtype).itemsize
        w_bytes = max(rp["conv1_w"].size for rp in params["resnets"]) * p_item
        out_mult = 1
        if params["upsample"] is not None:
            w_bytes = max(w_bytes,
                          16 * params["upsample"]["w"].shape[2]
                          * params["upsample"]["w"].shape[3] * p_item)
            out_mult = 4
        tile_h = _pick_tile_h(H, W, cin_max, cout_max,
                              act_itemsize=x.dtype.itemsize,
                              param_itemsize=p_item,
                              weight_bytes=int(w_bytes), out_mult=out_mult)

    n_res = len(params["resnets"])
    carried_stats = None
    for i, rp in enumerate(params["resnets"]):
        if carried_stats is None:
            s_x, q_x = channel_stats(x, tile_h=tile_h)      # only for the block input
        else:
            s_x, q_x = carried_stats                        # fused from previous conv2
        s1, t1 = _stats_to_scale_shift(s_x, q_x, rp["gn1_gamma"], rp["gn1_beta"],
                                       groups=groups, eps=eps, count=H * W)
        # conv1 also emits the stats needed by gn2 (no extra HBM read of h).
        h, s_h, q_h = resnet_conv3x3(x, s1, t1, rp["conv1_w"], rp["conv1_b"],
                                     tile_h=tile_h, emit_stats=True,
                                     param_dtype=param_dtype)
        # temb is None and dropout p=0 (eval): both are identities here.
        s2, t2 = _stats_to_scale_shift(s_h, q_h, rp["gn2_gamma"], rp["gn2_beta"],
                                       groups=groups, eps=eps, count=H * W)
        need_next = i + 1 < n_res
        out = resnet_conv3x3(h, s2, t2, rp["conv2_w"], rp["conv2_b"], tile_h=tile_h,
                             residual=x,
                             shortcut_w=rp.get("shortcut_w"),
                             shortcut_b=rp.get("shortcut_b"),
                             output_scale_factor=output_scale_factor,
                             emit_stats=need_next, param_dtype=param_dtype)
        if need_next:
            x, s_nx, q_nx = out
            carried_stats = (s_nx, q_nx)                    # gn1 stats of the next resnet
        else:
            x = out
            carried_stats = None

    if params["upsample"] is not None:
        cout = x.shape[-1]
        y = upsample2x_conv3x3(x, params["upsample"]["w"], params["upsample"]["b"],
                               tile_h=tile_h, param_dtype=param_dtype)
        y = y.reshape(B, 2 * H, 2 * W, cout)                # contiguous fold of the phases
        return jnp.transpose(y, (0, 3, 1, 2))               # NHWC -> NCHW
    return jnp.transpose(x, (0, 3, 1, 2))                   # NHWC -> NCHW


# ---------------------------------------------------------------------------
# Pure-JAX reference (for correctness checks in the demo)
# ---------------------------------------------------------------------------
def reference_forward(x_nchw, params, *, groups, eps=1e-6, output_scale_factor=1.0):
    def gn(x, gamma, beta):
        B, C, H, W = x.shape
        xg = x.reshape(B, groups, C // groups, H, W)
        m = xg.mean(axis=(2, 3, 4), keepdims=True)
        v = ((xg - m) ** 2).mean(axis=(2, 3, 4), keepdims=True)
        xn = ((xg - m) / jnp.sqrt(v + eps)).reshape(B, C, H, W)
        return xn * gamma.reshape(1, C, 1, 1) + beta.reshape(1, C, 1, 1)

    def conv3(x, w_hwio, b):
        w_oihw = jnp.transpose(w_hwio, (3, 2, 0, 1))
        y = jax.lax.conv_general_dilated(
            x, w_oihw, window_strides=(1, 1), padding=((1, 1), (1, 1)),
            dimension_numbers=("NCHW", "OIHW", "NCHW"))
        return y + b.reshape(1, -1, 1, 1)

    silu = lambda v: v * jax.nn.sigmoid(v)
    x = x_nchw
    for rp in params["resnets"]:
        h = conv3(silu(gn(x, rp["gn1_gamma"], rp["gn1_beta"])), rp["conv1_w"], rp["conv1_b"])
        h = conv3(silu(gn(h, rp["gn2_gamma"], rp["gn2_beta"])), rp["conv2_w"], rp["conv2_b"])
        if "shortcut_w" in rp:
            sc = (jnp.einsum("bchw,co->bohw", x, rp["shortcut_w"])
                  + rp["shortcut_b"].reshape(1, -1, 1, 1))
        else:
            sc = x
        x = (sc + h) / output_scale_factor
    if params["upsample"] is not None:
        x = jnp.repeat(jnp.repeat(x, 2, axis=2), 2, axis=3)
        x = conv3(x, params["upsample"]["w"], params["upsample"]["b"])
    return x


# ---------------------------------------------------------------------------
# Demo
# ---------------------------------------------------------------------------
if __name__ == "__main__":
    key = jax.random.PRNGKey(0)
    B, H, W, groups, eps, osf = 2, 16, 16, 4, 1e-6, 1.0
    configs = [
        # proj shortcut, 2 resnets (exercises fused next-resnet GN stats)
        dict(cin=8, cout=4, num_layers=2, tile_h=8,
             dtypes=((jnp.float32, 2e-3), (jnp.bfloat16, 4e-2))),
        # identity shortcut, auto tile picker
        dict(cin=8, cout=8, num_layers=1, tile_h=None,
             dtypes=((jnp.float32, 2e-3),)),
    ]

    for cfg in configs:
        key, kx, kp = jax.random.split(key, 3)
        x = jax.random.normal(kx, (B, cfg["cin"], H, W), jnp.float32)
        params = init_params(kp, cfg["cin"], cfg["cout"],
                             num_layers=cfg["num_layers"], add_upsample=True)
        y_ref = reference_forward(x, params, groups=groups, eps=eps,
                                  output_scale_factor=osf)

        for pdt, tol in cfg["dtypes"]:
            fwd = jax.jit(functools.partial(
                up_decoder_block_2d, groups=groups, eps=eps,
                output_scale_factor=osf, tile_h=cfg["tile_h"], param_dtype=pdt))
            y = jax.block_until_ready(fwd(x, params))

            assert y.shape == (B, cfg["cout"], 2 * H, 2 * W), y.shape
            assert bool(jnp.all(jnp.isfinite(y)))
            err = float(jnp.max(jnp.abs(y - y_ref)) / (jnp.max(jnp.abs(y_ref)) + 1e-6))
            assert err < tol, f"mismatch vs reference: dtype={pdt} rel_max_err={err}"

    print("KERNEL_OK")
</pallas_src>

<mosaic_0001>
module attributes {stable_mosaic.version = 11 : i64} {
  func.func @_channel_stats_kernel(%arg0: i32, %arg1: i32, %arg2: memref<1x8x16x8xf32, #tpu.memory_space<vmem>>, %arg3: memref<1x1x8xf32, #tpu.memory_space<vmem>>, %arg4: memref<1x1x8xf32, #tpu.memory_space<vmem>>) attributes {dimension_semantics = [#tpu.dimension_semantics<parallel>, #tpu.dimension_semantics<arbitrary>], iteration_bounds = array<i64: 2, 2>, scalar_prefetch = 0 : i64, scratch_operands = 0 : i64, tpu.core_type = #tpu.core_type<tc>, window_params = [{transform_indices = @transform_0, window_bounds = array<i64: 1, 8, 16, 8>}, {transform_indices = @transform_1, window_bounds = array<i64: 1, 1, 8>}, {transform_indices = @transform_2, window_bounds = array<i64: 1, 1, 8>}]} {
    %c0_i32 = arith.constant 0 : i32
    %0 = arith.cmpi eq, %arg1, %c0_i32 : i32
    %1 = arith.extui %0 : i1 to i32
    %c0_i32_0 = arith.constant 0 : i32
    %2 = arith.cmpi ne, %1, %c0_i32_0 : i32
    scf.if %2 {
      %cst_17 = arith.constant 0.000000e+00 : f32
      %17 = vector.broadcast %cst_17 : f32 to vector<1x1x8xf32>
      %c0_18 = arith.constant 0 : index
      %c0_19 = arith.constant 0 : index
      %c0_20 = arith.constant 0 : index
      %18 = vector.load %arg3[%c0_18, %c0_19, %c0_20] : memref<1x1x8xf32, #tpu.memory_space<vmem>>, vector<1x1x8xf32>
      tpu.vector_store %arg3[%c0_18, %c0_19, %c0_20], %17 {strides = array<i32>} : memref<1x1x8xf32, #tpu.memory_space<vmem>>, vector<1x1x8xf32>,
      %cst_21 = arith.constant 0.000000e+00 : f32
      %19 = vector.broadcast %cst_21 : f32 to vector<1x1x8xf32>
      %c0_22 = arith.constant 0 : index
      %c0_23 = arith.constant 0 : index
      %c0_24 = arith.constant 0 : index
      %20 = vector.load %arg4[%c0_22, %c0_23, %c0_24] : memref<1x1x8xf32, #tpu.memory_space<vmem>>, vector<1x1x8xf32>
      tpu.vector_store %arg4[%c0_22, %c0_23, %c0_24], %19 {strides = array<i32>} : memref<1x1x8xf32, #tpu.memory_space<vmem>>, vector<1x1x8xf32>,
    } else {
    }
    %c0 = arith.constant 0 : index
    %c0_1 = arith.constant 0 : index
    %c0_2 = arith.constant 0 : index
    %c0_3 = arith.constant 0 : index
    %3 = vector.load %arg2[%c0, %c0_1, %c0_2, %c0_3] : memref<1x8x16x8xf32, #tpu.memory_space<vmem>>, vector<1x8x16x8xf32>
    %4 = vector.shape_cast %3 : vector<1x8x16x8xf32> to vector<8x16x8xf32>
    %5 = vector.shape_cast %4 : vector<8x16x8xf32> to vector<128x8xf32>
    %c0_4 = arith.constant 0 : index
    %c0_5 = arith.constant 0 : index
    %c0_6 = arith.constant 0 : index
    %6 = vector.load %arg3[%c0_4, %c0_5, %c0_6] : memref<1x1x8xf32, #tpu.memory_space<vmem>>, vector<1x1x8xf32>
    %cst = arith.constant dense<0.000000e+00> : vector<8xf32>
    %7 = vector.multi_reduction <add>, %5, %cst [0] : vector<128x8xf32> to vector<8xf32>
    %8 = vector.shape_cast %7 : vector<8xf32> to vector<1x1x8xf32>
    %9 = arith.addf %6, %8 : vector<1x1x8xf32>
    %c0_7 = arith.constant 0 : index
    %c0_8 = arith.constant 0 : index
    %c0_9 = arith.constant 0 : index
    %10 = vector.load %arg3[%c0_7, %c0_8, %c0_9] : memref<1x1x8xf32, #tpu.memory_space<vmem>>, vector<1x1x8xf32>
    tpu.vector_store %arg3[%c0_7, %c0_8, %c0_9], %9 {strides = array<i32>} : memref<1x1x8xf32, #tpu.memory_space<vmem>>, vector<1x1x8xf32>,
    %c0_10 = arith.constant 0 : index
    %c0_11 = arith.constant 0 : index
    %c0_12 = arith.constant 0 : index
    %11 = vector.load %arg4[%c0_10, %c0_11, %c0_12] : memref<1x1x8xf32, #tpu.memory_space<vmem>>, vector<1x1x8xf32>
    %12 = arith.mulf %5, %5 : vector<128x8xf32>
    %cst_13 = arith.constant dense<0.000000e+00> : vector<8xf32>
    %13 = vector.multi_reduction <add>, %12, %cst_13 [0] : vector<128x8xf32> to vector<8xf32>
    %14 = vector.shape_cast %13 : vector<8xf32> to vector<1x1x8xf32>
    %15 = arith.addf %11, %14 : vector<1x1x8xf32>
    %c0_14 = arith.constant 0 : index
    %c0_15 = arith.constant 0 : index
    %c0_16 = arith.constant 0 : index
    %16 = vector.load %arg4[%c0_14, %c0_15, %c0_16] : memref<1x1x8xf32, #tpu.memory_space<vmem>>, vector<1x1x8xf32>
    tpu.vector_store %arg4[%c0_14, %c0_15, %c0_16], %15 {strides = array<i32>} : memref<1x1x8xf32, #tpu.memory_space<vmem>>, vector<1x1x8xf32>,
    return
  }
  func.func @transform_0(%arg0: i32, %arg1: i32) -> (i32, i32, i32, i32) {
    %c0_i32 = arith.constant 0 : i32
    %c0_i32_0 = arith.constant 0 : i32
    %c0_i32_1 = arith.constant 0 : i32
    return %arg0, %arg1, %c0_i32, %c0_i32_0 : i32, i32, i32, i32
  }
  func.func @transform_1(%arg0: i32, %arg1: i32) -> (i32, i32, i32) {
    %c0_i32 = arith.constant 0 : i32
    %c0_i32_0 = arith.constant 0 : i32
    %c0_i32_1 = arith.constant 0 : i32
    return %arg0, %c0_i32, %c0_i32_0 : i32, i32, i32
  }
  func.func @transform_2(%arg0: i32, %arg1: i32) -> (i32, i32, i32) {
    %c0_i32 = arith.constant 0 : i32
    %c0_i32_0 = arith.constant 0 : i32
    %c0_i32_1 = arith.constant 0 : i32
    return %arg0, %c0_i32, %c0_i32_0 : i32, i32, i32
  }
}

module attributes {stable_mosaic.version = 11 : i64} {
  func.func @_resnet_conv3x3_kernel(%arg0: i32, %arg1: i32, %arg2: memref<1x1x16x8xf32, #tpu.memory_space<vmem>>, %arg3: memref<1x8x16x8xf32, #tpu.memory_space<vmem>>, %arg4: memref<1x1x16x8xf32, #tpu.memory_space<vmem>>, %arg5: memref<1x1x8xf32, #tpu.memory_space<vmem>>, %arg6: memref<1x1x8xf32, #tpu.memory_space<vmem>>, %arg7: memref<3x24x4xf32, #tpu.memory_space<vmem>>, %arg8: memref<1x4xf32, #tpu.memory_space<vmem>>, %arg9: memref<1x8x16x4xf32, #tpu.memory_space<vmem>>, %arg10: memref<1x1x4xf32, #tpu.memory_space<vmem>>, %arg11: memref<1x1x4xf32, #tpu.memory_space<vmem>>) attributes {dimension_semantics = [#tpu.dimension_semantics<parallel>, #tpu.dimension_semantics<arbitrary>], iteration_bounds = array<i64: 2, 2>, scalar_prefetch = 0 : i64, scratch_operands = 0 : i64, tpu.core_type = #tpu.core_type<tc>, window_params = [{transform_indices = @transform_0, window_bounds = array<i64: 1, 1, 16, 8>}, {transform_indices = @transform_1, window_bounds = array<i64: 1, 8, 16, 8>}, {transform_indices = @transform_2, window_bounds = array<i64: 1, 1, 16, 8>}, {transform_indices = @transform_3, window_bounds = array<i64: 1, 1, 8>}, {transform_indices = @transform_4, window_bounds = array<i64: 1, 1, 8>}, {pipeline_mode = #tpu.pipeline_mode<synchronous>, transform_indices = @transform_5, window_bounds = array<i64: 3, 24, 4>}, {pipeline_mode = #tpu.pipeline_mode<synchronous>, transform_indices = @transform_6, window_bounds = array<i64: 1, 4>}, {transform_indices = @transform_7, window_bounds = array<i64: 1, 8, 16, 4>}, {transform_indices = @transform_8, window_bounds = array<i64: 1, 1, 4>}, {transform_indices = @transform_9, window_bounds = array<i64: 1, 1, 4>}]} {
    %c0 = arith.constant 0 : index
    %c0_0 = arith.constant 0 : index
    %c0_1 = arith.constant 0 : index
    %0 = vector.load %arg5[%c0, %c0_0, %c0_1] : memref<1x1x8xf32, #tpu.memory_space<vmem>>, vector<1x1x8xf32>
    %1 = vector.shape_cast %0 : vector<1x1x8xf32> to vector<1x8xf32>
    %2 = vector.shape_cast %1 : vector<1x8xf32> to vector<1x1x8xf32>
    %c0_2 = arith.constant 0 : index
    %c0_3 = arith.constant 0 : index
    %c0_4 = arith.constant 0 : index
    %3 = vector.load %arg6[%c0_2, %c0_3, %c0_4] : memref<1x1x8xf32, #tpu.memory_space<vmem>>, vector<1x1x8xf32>
    %4 = vector.shape_cast %3 : vector<1x1x8xf32> to vector<1x8xf32>
    %5 = vector.shape_cast %4 : vector<1x8xf32> to vector<1x1x8xf32>
    %cst = arith.constant 0.000000e+00 : f32
    %6 = vector.broadcast %cst : f32 to vector<1x16x8xf32>
    %c0_i32 = arith.constant 0 : i32
    %7 = arith.cmpi sgt, %arg1, %c0_i32 : i32
    %c0_5 = arith.constant 0 : index
    %c0_6 = arith.constant 0 : index
    %c0_7 = arith.constant 0 : index
    %c0_8 = arith.constant 0 : index
    %8 = vector.load %arg2[%c0_5, %c0_6, %c0_7, %c0_8] : memref<1x1x16x8xf32, #tpu.memory_space<vmem>>, vector<1x1x16x8xf32>
    %9 = vector.shape_cast %8 : vector<1x1x16x8xf32> to vector<1x16x8xf32>
    %10 = vector.broadcast %2 : vector<1x1x8xf32> to vector<1x16x8xf32>
    %11 = arith.mulf %9, %10 : vector<1x16x8xf32>
    %12 = vector.broadcast %5 : vector<1x1x8xf32> to vector<1x16x8xf32>
    %13 = arith.addf %11, %12 : vector<1x16x8xf32>
    %14 = arith.negf %13 : vector<1x16x8xf32>
    %15 = math.exp %14 : vector<1x16x8xf32>
    %cst_9 = arith.constant 1.000000e+00 : f32
    %16 = vector.broadcast %cst_9 : f32 to vector<1x16x8xf32>
    %17 = arith.addf %16, %15 : vector<1x16x8xf32>
    %18 = arith.divf %16, %17 : vector<1x16x8xf32>
    %19 = arith.mulf %13, %18 : vector<1x16x8xf32>
    %20 = arith.select %7, %19, %6 : vector<1x16x8xf32>
    %c0_10 = arith.constant 0 : index
    %c0_11 = arith.constant 0 : index
    %c0_12 = arith.constant 0 : index
    %c0_13 = arith.constant 0 : index
    %21 = vector.load %arg3[%c0_10, %c0_11, %c0_12, %c0_13] : memref<1x8x16x8xf32, #tpu.memory_space<vmem>>, vector<1x8x16x8xf32>
    %22 = vector.shape_cast %21 : vector<1x8x16x8xf32> to vector<8x16x8xf32>
    %23 = vector.broadcast %2 : vector<1x1x8xf32> to vector<8x16x8xf32>
    %24 = arith.mulf %22, %23 : vector<8x16x8xf32>
    %25 = vector.broadcast %5 : vector<1x1x8xf32> to vector<8x16x8xf32>
    %26 = arith.addf %24, %25 : vector<8x16x8xf32>
    %27 = arith.negf %26 : vector<8x16x8xf32>
    %28 = math.exp %27 : vector<8x16x8xf32>
    %cst_14 = arith.constant 1.000000e+00 : f32
    %29 = vector.broadcast %cst_14 : f32 to vector<8x16x8xf32>
    %30 = arith.addf %29, %28 : vector<8x16x8xf32>
    %31 = arith.divf %29, %30 : vector<8x16x8xf32>
    %32 = arith.mulf %26, %31 : vector<8x16x8xf32>
    %c1_i32 = arith.constant 1 : i32
    %33 = arith.cmpi slt, %arg1, %c1_i32 : i32
    %c0_15 = arith.constant 0 : index
    %c0_16 = arith.constant 0 : index
    %c0_17 = arith.constant 0 : index
    %c0_18 = arith.constant 0 : index
    %34 = vector.load %arg4[%c0_15, %c0_16, %c0_17, %c0_18] : memref<1x1x16x8xf32, #tpu.memory_space<vmem>>, vector<1x1x16x8xf32>
    %35 = vector.shape_cast %34 : vector<1x1x16x8xf32> to vector<1x16x8xf32>
    %36 = vector.broadcast %2 : vector<1x1x8xf32> to vector<1x16x8xf32>
    %37 = arith.mulf %35, %36 : vector<1x16x8xf32>
    %38 = vector.broadcast %5 : vector<1x1x8xf32> to vector<1x16x8xf32>
    %39 = arith.addf %37, %38 : vector<1x16x8xf32>
    %40 = arith.negf %39 : vector<1x16x8xf32>
    %41 = math.exp %40 : vector<1x16x8xf32>
    %cst_19 = arith.constant 1.000000e+00 : f32
    %42 = vector.broadcast %cst_19 : f32 to vector<1x16x8xf32>
    %43 = arith.addf %42, %41 : vector<1x16x8xf32>
    %44 = arith.divf %42, %43 : vector<1x16x8xf32>
    %45 = arith.mulf %39, %44 : vector<1x16x8xf32>
    %46 = arith.select %33, %45, %6 : vector<1x16x8xf32>
    %47 = tpu.concatenate %20, %32, %46 in 0 : vector<1x16x8xf32>, vector<8x16x8xf32>, vector<1x16x8xf32> -> vector<10x16x8xf32>
    %cst_20 = arith.constant 0.000000e+00 : f32
    %48 = vector.broadcast %cst_20 : f32 to vector<10x1x8xf32>
    %49 = tpu.concatenate %48, %47, %48 in 1 : vector<10x1x8xf32>, vector<10x16x8xf32>, vector<10x1x8xf32> -> vector<10x18x8xf32>
    %50 = vector.extract_strided_slice %49 {offsets = [0, 0, 0], sizes = [8, 18, 8], strides = [1, 1, 1]} : vector<10x18x8xf32> to vector<8x18x8xf32>
    %51 = vector.extract_strided_slice %49 {offsets = [1, 0, 0], sizes = [8, 18, 8], strides = [1, 1, 1]} : vector<10x18x8xf32> to vector<8x18x8xf32>
    %52 = vector.extract_strided_slice %49 {offsets = [2, 0, 0], sizes = [8, 18, 8], strides = [1, 1, 1]} : vector<10x18x8xf32> to vector<8x18x8xf32>
    %53 = tpu.concatenate %50, %51, %52 in 2 : vector<8x18x8xf32>, vector<8x18x8xf32>, vector<8x18x8xf32> -> vector<8x18x24xf32>
    %54 = vector.extract_strided_slice %53 {offsets = [0, 0, 0], sizes = [8, 16, 24], strides = [1, 1, 1]} : vector<8x18x24xf32> to vector<8x16x24xf32>
    %55 = vector.shape_cast %54 : vector<8x16x24xf32> to vector<128x24xf32>
    %c0_21 = arith.constant 0 : index
    %c0_22 = arith.constant 0 : index
    %c0_23 = arith.constant 0 : index
    %56 = vector.load %arg7[%c0_21, %c0_22, %c0_23] : memref<3x24x4xf32, #tpu.memory_space<vmem>>, vector<1x24x4xf32>
    %57 = vector.shape_cast %56 : vector<1x24x4xf32> to vector<24x4xf32>
    %cst_24 = arith.constant dense<0.000000e+00> : vector<128x4xf32>
    %58 = tpu.matmul %55, %57, %cst_24 {dimension_numbers = #tpu.dot_dimension_numbers<[1], [0], [0], [1], [0, 0, 1, 1], [], []>} : vector<128x24xf32>, vector<24x4xf32>, vector<128x4xf32> -> vector<128x4xf32>
    %59 = vector.extract_strided_slice %53 {offsets = [0, 1, 0], sizes = [8, 16, 24], strides = [1, 1, 1]} : vector<8x18x24xf32> to vector<8x16x24xf32>
    %60 = vector.shape_cast %59 : vector<8x16x24xf32> to vector<128x24xf32>
    %c1 = arith.constant 1 : index
    %c0_25 = arith.constant 0 : index
    %c0_26 = arith.constant 0 : index
    %61 = vector.load %arg7[%c1, %c0_25, %c0_26] : memref<3x24x4xf32, #tpu.memory_space<vmem>>, vector<1x24x4xf32>
    %62 = vector.shape_cast %61 : vector<1x24x4xf32> to vector<24x4xf32>
    %cst_27 = arith.constant dense<0.000000e+00> : vector<128x4xf32>
    %63 = tpu.matmul %60, %62, %cst_27 {dimension_numbers = #tpu.dot_dimension_numbers<[1], [0], [0], [1], [0, 0, 1, 1], [], []>} : vector<128x24xf32>, vector<24x4xf32>, vector<128x4xf32> -> vector<128x4xf32>
    %64 = arith.addf %58, %63 : vector<128x4xf32>
    %65 = vector.extract_strided_slice %53 {offsets = [0, 2, 0], sizes = [8, 16, 24], strides = [1, 1, 1]} : vector<8x18x24xf32> to vector<8x16x24xf32>
    %66 = vector.shape_cast %65 : vector<8x16x24xf32> to vector<128x24xf32>
    %c2 = arith.constant 2 : index
    %c0_28 = arith.constant 0 : index
    %c0_29 = arith.constant 0 : index
    %67 = vector.load %arg7[%c2, %c0_28, %c0_29] : memref<3x24x4xf32, #tpu.memory_space<vmem>>, vector<1x24x4xf32>
    %68 = vector.shape_cast %67 : vector<1x24x4xf32> to vector<24x4xf32>
    %cst_30 = arith.constant dense<0.000000e+00> : vector<128x4xf32>
    %69 = tpu.matmul %66, %68, %cst_30 {dimension_numbers = #tpu.dot_dimension_numbers<[1], [0], [0], [1], [0, 0, 1, 1], [], []>} : vector<128x24xf32>, vector<24x4xf32>, vector<128x4xf32> -> vector<128x4xf32>
    %70 = arith.addf %64, %69 : vector<128x4xf32>
    %c0_31 = arith.constant 0 : index
    %c0_32 = arith.constant 0 : index
    %71 = vector.load %arg8[%c0_31, %c0_32] : memref<1x4xf32, #tpu.memory_space<vmem>>, vector<1x4xf32>
    %72 = vector.broadcast %71 : vector<1x4xf32> to vector<128x4xf32>
    %73 = arith.addf %70, %72 : vector<128x4xf32>
    %c0_i32_33 = arith.constant 0 : i32
    %74 = arith.cmpi eq, %arg1, %c0_i32_33 : i32
    %75 = arith.extui %74 : i1 to i32
    %c0_i32_34 = arith.constant 0 : i32
    %76 = arith.cmpi ne, %75, %c0_i32_34 : i32
    scf.if %76 {
      %cst_53 = arith.constant 0.000000e+00 : f32
      %92 = vector.broadcast %cst_53 : f32 to vector<1x1x4xf32>
      %c0_54 = arith.constant 0 : index
      %c0_55 = arith.constant 0 : index
      %c0_56 = arith.constant 0 : index
      %93 = vector.load %arg10[%c0_54, %c0_55, %c0_56] : memref<1x1x4xf32, #tpu.memory_space<vmem>>, vector<1x1x4xf32>
      tpu.vector_store %arg10[%c0_54, %c0_55, %c0_56], %92 {strides = array<i32>} : memref<1x1x4xf32, #tpu.memory_space<vmem>>, vector<1x1x4xf32>,
      %cst_57 = arith.constant 0.000000e+00 : f32
      %94 = vector.broadcast %cst_57 : f32 to vector<1x1x4xf32>
      %c0_58 = arith.constant 0 : index
      %c0_59 = arith.constant 0 : index
      %c0_60 = arith.constant 0 : index
      %95 = vector.load %arg11[%c0_58, %c0_59, %c0_60] : memref<1x1x4xf32, #tpu.memory_space<vmem>>, vector<1x1x4xf32>
      tpu.vector_store %arg11[%c0_58, %c0_59, %c0_60], %94 {strides = array<i32>} : memref<1x1x4xf32, #tpu.memory_space<vmem>>, vector<1x1x4xf32>,
    } else {
    }
    %c0_35 = arith.constant 0 : index
    %c0_36 = arith.constant 0 : index
    %c0_37 = arith.constant 0 : index
    %77 = vector.load %arg10[%c0_35, %c0_36, %c0_37] : memref<1x1x4xf32, #tpu.memory_space<vmem>>, vector<1x1x4xf32>
    %cst_38 = arith.constant dense<0.000000e+00> : vector<4xf32>
    %78 = vector.multi_reduction <add>, %73, %cst_38 [0] : vector<128x4xf32> to vector<4xf32>
    %79 = vector.shape_cast %78 : vector<4xf32> to vector<1x1x4xf32>
    %80 = arith.addf %77, %79 : vector<1x1x4xf32>
    %c0_39 = arith.constant 0 : index
    %c0_40 = arith.constant 0 : index
    %c0_41 = arith.constant 0 : index
    %81 = vector.load %arg10[%c0_39, %c0_40, %c0_41] : memref<1x1x4xf32, #tpu.memory_space<vmem>>, vector<1x1x4xf32>
    tpu.vector_store %arg10[%c0_39, %c0_40, %c0_41], %80 {strides = array<i32>} : memref<1x1x4xf32, #tpu.memory_space<vmem>>, vector<1x1x4xf32>,
    %c0_42 = arith.constant 0 : index
    %c0_43 = arith.constant 0 : index
    %c0_44 = arith.constant 0 : index
    %82 = vector.load %arg11[%c0_42, %c0_43, %c0_44] : memref<1x1x4xf32, #tpu.memory_space<vmem>>, vector<1x1x4xf32>
    %83 = arith.mulf %73, %73 : vector<128x4xf32>
    %cst_45 = arith.constant dense<0.000000e+00> : vector<4xf32>
    %84 = vector.multi_reduction <add>, %83, %cst_45 [0] : vector<128x4xf32> to vector<4xf32>
    %85 = vector.shape_cast %84 : vector<4xf32> to vector<1x1x4xf32>
    %86 = arith.addf %82, %85 : vector<1x1x4xf32>
    %c0_46 = arith.constant 0 : index
    %c0_47 = arith.constant 0 : index
    %c0_48 = arith.constant 0 : index
    %87 = vector.load %arg11[%c0_46, %c0_47, %c0_48] : memref<1x1x4xf32, #tpu.memory_space<vmem>>, vector<1x1x4xf32>
    tpu.vector_store %arg11[%c0_46, %c0_47, %c0_48], %86 {strides = array<i32>} : memref<1x1x4xf32, #tpu.memory_space<vmem>>, vector<1x1x4xf32>,
    %88 = vector.shape_cast %73 : vector<128x4xf32> to vector<8x16x4xf32>
    %c0_49 = arith.constant 0 : index
    %c0_50 = arith.constant 0 : index
    %c0_51 = arith.constant 0 : index
    %c0_52 = arith.constant 0 : index
    %89 = vector.load %arg9[%c0_49, %c0_50, %c0_51, %c0_52] : memref<1x8x16x4xf32, #tpu.memory_space<vmem>>, vector<1x8x16x4xf32>
    %90 = vector.shape_cast %89 : vector<1x8x16x4xf32> to vector<8x16x4xf32>
    %91 = vector.shape_cast %88 : vector<8x16x4xf32> to vector<1x8x16x4xf32>
    tpu.vector_store %arg9[%c0_49, %c0_50, %c0_51, %c0_52], %91 {strides = array<i32>} : memref<1x8x16x4xf32, #tpu.memory_space<vmem>>, vector<1x8x16x4xf32>,
    return
  }
  func.func @transform_0(%arg0: i32, %arg1: i32) -> (i32, i32, i32, i32) {
    %c8_i32 = arith.constant 8 : i32
    %0 = arith.muli %arg1, %c8_i32 : i32
    %c1_i32 = arith.constant 1 : i32
    %1 = arith.subi %0, %c1_i32 : i32
    %c0_i32 = arith.constant 0 : i32
    %2 = arith.maxsi %1, %c0_i32 : i32
    %c0_i32_0 = arith.constant 0 : i32
    %c0_i32_1 = arith.constant 0 : i32
    %c0_i32_2 = arith.constant 0 : i32
    return %arg0, %2, %c0_i32_0, %c0_i32_1 : i32, i32, i32, i32
  }
  func.func @transform_1(%arg0: i32, %arg1: i32) -> (i32, i32, i32, i32) {
    %c0_i32 = arith.constant 0 : i32
    %c0_i32_0 = arith.constant 0 : i32
    %c0_i32_1 = arith.constant 0 : i32
    return %arg0, %arg1, %c0_i32, %c0_i32_0 : i32, i32, i32, i32
  }
  func.func @transform_2(%arg0: i32, %arg1: i32) -> (i32, i32, i32, i32) {
    %c8_i32 = arith.constant 8 : i32
    %0 = arith.muli %arg1, %c8_i32 : i32
    %c8_i32_0 = arith.constant 8 : i32
    %1 = arith.addi %0, %c8_i32_0 : i32
    %c15_i32 = arith.constant 15 : i32
    %2 = arith.minsi %1, %c15_i32 : i32
    %c0_i32 = arith.constant 0 : i32
    %c0_i32_1 = arith.constant 0 : i32
    %c0_i32_2 = arith.constant 0 : i32
    return %arg0, %2, %c0_i32, %c0_i32_1 : i32, i32, i32, i32
  }
  func.func @transform_3(%arg0: i32, %arg1: i32) -> (i32, i32, i32) {
    %c0_i32 = arith.constant 0 : i32
    %c0_i32_0 = arith.constant 0 : i32
    %c0_i32_1 = arith.constant 0 : i32
    return %arg0, %c0_i32, %c0_i32_0 : i32, i32, i32
  }
  func.func @transform_4(%arg0: i32, %arg1: i32) -> (i32, i32, i32) {
    %c0_i32 = arith.constant 0 : i32
    %c0_i32_0 = arith.constant 0 : i32
    %c0_i32_1 = arith.constant 0 : i32
    return %arg0, %c0_i32, %c0_i32_0 : i32, i32, i32
  }
  func.func @transform_5(%arg0: i32, %arg1: i32) -> (i32, i32, i32) {
    %c0_i32 = arith.constant 0 : i32
    %c0_i32_0 = arith.constant 0 : i32
    %c0_i32_1 = arith.constant 0 : i32
    %c0_i32_2 = arith.constant 0 : i32
    return %c0_i32, %c0_i32_0, %c0_i32_1 : i32, i32, i32
  }
  func.func @transform_6(%arg0: i32, %arg1: i32) -> (i32, i32) {
    %c0_i32 = arith.constant 0 : i32
    %c0_i32_0 = arith.constant 0 : i32
    %c0_i32_1 = arith.constant 0 : i32
    return %c0_i32, %c0_i32_0 : i32, i32
  }
  func.func @transform_7(%arg0: i32, %arg1: i32) -> (i32, i32, i32, i32) {
    %c0_i32 = arith.constant 0 : i32
    %c0_i32_0 = arith.constant 0 : i32
    %c0_i32_1 = arith.constant 0 : i32
    return %arg0, %arg1, %c0_i32, %c0_i32_0 : i32, i32, i32, i32
  }
  func.func @transform_8(%arg0: i32, %arg1: i32) -> (i32, i32, i32) {
    %c0_i32 = arith.constant 0 : i32
    %c0_i32_0 = arith.constant 0 : i32
    %c0_i32_1 = arith.constant 0 : i32
    return %arg0, %c0_i32, %c0_i32_0 : i32, i32, i32
  }
  func.func @transform_9(%arg0: i32, %arg1: i32) -> (i32, i32, i32) {
    %c0_i32 = arith.constant 0 : i32
    %c0_i32_0 = arith.constant 0 : i32
    %c0_i32_1 = arith.constant 0 : i32
    return %arg0, %c0_i32, %c0_i32_0 : i32, i32, i32
  }
}

module attributes {stable_mosaic.version = 11 : i64} {
  func.func @_resnet_conv3x3_kernel(%arg0: i32, %arg1: i32, %arg2: memref<1x1x16x4xf32, #tpu.memory_space<vmem>>, %arg3: memref<1x8x16x4xf32, #tpu.memory_space<vmem>>, %arg4: memref<1x1x16x4xf32, #tpu.memory_space<vmem>>, %arg5: memref<1x1x4xf32, #tpu.memory_space<vmem>>, %arg6: memref<1x1x4xf32, #tpu.memory_space<vmem>>, %arg7: memref<3x12x4xf32, #tpu.memory_space<vmem>>, %arg8: memref<1x4xf32, #tpu.memory_space<vmem>>, %arg9: memref<1x8x16x8xf32, #tpu.memory_space<vmem>>, %arg10: memref<8x4xf32, #tpu.memory_space<vmem>>, %arg11: memref<1x4xf32, #tpu.memory_space<vmem>>, %arg12: memref<1x8x16x4xf32, #tpu.memory_space<vmem>>, %arg13: memref<1x1x4xf32, #tpu.memory_space<vmem>>, %arg14: memref<1x1x4xf32, #tpu.memory_space<vmem>>) attributes {dimension_semantics = [#tpu.dimension_semantics<parallel>, #tpu.dimension_semantics<arbitrary>], iteration_bounds = array<i64: 2, 2>, scalar_prefetch = 0 : i64, scratch_operands = 0 : i64, tpu.core_type = #tpu.core_type<tc>, window_params = [{transform_indices = @transform_0, window_bounds = array<i64: 1, 1, 16, 4>}, {transform_indices = @transform_1, window_bounds = array<i64: 1, 8, 16, 4>}, {transform_indices = @transform_2, window_bounds = array<i64: 1, 1, 16, 4>}, {transform_indices = @transform_3, window_bounds = array<i64: 1, 1, 4>}, {transform_indices = @transform_4, window_bounds = array<i64: 1, 1, 4>}, {pipeline_mode = #tpu.pipeline_mode<synchronous>, transform_indices = @transform_5, window_bounds = array<i64: 3, 12, 4>}, {pipeline_mode = #tpu.pipeline_mode<synchronous>, transform_indices = @transform_6, window_bounds = array<i64: 1, 4>}, {transform_indices = @transform_7, window_bounds = array<i64: 1, 8, 16, 8>}, {pipeline_mode = #tpu.pipeline_mode<synchronous>, transform_indices = @transform_8, window_bounds = array<i64: 8, 4>}, {pipeline_mode = #tpu.pipeline_mode<synchronous>, transform_indices = @transform_9, window_bounds = array<i64: 1, 4>}, {transform_indices = @transform_10, window_bounds = array<i64: 1, 8, 16, 4>}, {transform_indices = @transform_11, window_bounds = array<i64: 1, 1, 4>}, {transform_indices = @transform_12, window_bounds = array<i64: 1, 1, 4>}]} {
    %c0 = arith.constant 0 : index
    %c0_0 = arith.constant 0 : index
    %c0_1 = arith.constant 0 : index
    %0 = vector.load %arg5[%c0, %c0_0, %c0_1] : memref<1x1x4xf32, #tpu.memory_space<vmem>>, vector<1x1x4xf32>
    %1 = vector.shape_cast %0 : vector<1x1x4xf32> to vector<1x4xf32>
    %2 = vector.shape_cast %1 : vector<1x4xf32> to vector<1x1x4xf32>
    %c0_2 = arith.constant 0 : index
    %c0_3 = arith.constant 0 : index
    %c0_4 = arith.constant 0 : index
    %3 = vector.load %arg6[%c0_2, %c0_3, %c0_4] : memref<1x1x4xf32, #tpu.memory_space<vmem>>, vector<1x1x4xf32>
    %4 = vector.shape_cast %3 : vector<1x1x4xf32> to vector<1x4xf32>
    %5 = vector.shape_cast %4 : vector<1x4xf32> to vector<1x1x4xf32>
    %cst = arith.constant 0.000000e+00 : f32
    %6 = vector.broadcast %cst : f32 to vector<1x16x4xf32>
    %c0_i32 = arith.constant 0 : i32
    %7 = arith.cmpi sgt, %arg1, %c0_i32 : i32
    %c0_5 = arith.constant 0 : index
    %c0_6 = arith.constant 0 : index
    %c0_7 = arith.constant 0 : index
    %c0_8 = arith.constant 0 : index
    %8 = vector.load %arg2[%c0_5, %c0_6, %c0_7, %c0_8] : memref<1x1x16x4xf32, #tpu.memory_space<vmem>>, vector<1x1x16x4xf32>
    %9 = vector.shape_cast %8 : vector<1x1x16x4xf32> to vector<1x16x4xf32>
    %10 = vector.broadcast %2 : vector<1x1x4xf32> to vector<1x16x4xf32>
    %11 = arith.mulf %9, %10 : vector<1x16x4xf32>
    %12 = vector.broadcast %5 : vector<1x1x4xf32> to vector<1x16x4xf32>
    %13 = arith.addf %11, %12 : vector<1x16x4xf32>
    %14 = arith.negf %13 : vector<1x16x4xf32>
    %15 = math.exp %14 : vector<1x16x4xf32>
    %cst_9 = arith.constant 1.000000e+00 : f32
    %16 = vector.broadcast %cst_9 : f32 to vector<1x16x4xf32>
    %17 = arith.addf %16, %15 : vector<1x16x4xf32>
    %18 = arith.divf %16, %17 : vector<1x16x4xf32>
    %19 = arith.mulf %13, %18 : vector<1x16x4xf32>
    %20 = arith.select %7, %19, %6 : vector<1x16x4xf32>
    %c0_10 = arith.constant 0 : index
    %c0_11 = arith.constant 0 : index
    %c0_12 = arith.constant 0 : index
    %c0_13 = arith.constant 0 : index
    %21 = vector.load %arg3[%c0_10, %c0_11, %c0_12, %c0_13] : memref<1x8x16x4xf32, #tpu.memory_space<vmem>>, vector<1x8x16x4xf32>
    %22 = vector.shape_cast %21 : vector<1x8x16x4xf32> to vector<8x16x4xf32>
    %23 = vector.broadcast %2 : vector<1x1x4xf32> to vector<8x16x4xf32>
    %24 = arith.mulf %22, %23 : vector<8x16x4xf32>
    %25 = vector.broadcast %5 : vector<1x1x4xf32> to vector<8x16x4xf32>
    %26 = arith.addf %24, %25 : vector<8x16x4xf32>
    %27 = arith.negf %26 : vector<8x16x4xf32>
    %28 = math.exp %27 : vector<8x16x4xf32>
    %cst_14 = arith.constant 1.000000e+00 : f32
    %29 = vector.broadcast %cst_14 : f32 to vector<8x16x4xf32>
    %30 = arith.addf %29, %28 : vector<8x16x4xf32>
    %31 = arith.divf %29, %30 : vector<8x16x4xf32>
    %32 = arith.mulf %26, %31 : vector<8x16x4xf32>
    %c1_i32 = arith.constant 1 : i32
    %33 = arith.cmpi slt, %arg1, %c1_i32 : i32
    %c0_15 = arith.constant 0 : index
    %c0_16 = arith.constant 0 : index
    %c0_17 = arith.constant 0 : index
    %c0_18 = arith.constant 0 : index
    %34 = vector.load %arg4[%c0_15, %c0_16, %c0_17, %c0_18] : memref<1x1x16x4xf32, #tpu.memory_space<vmem>>, vector<1x1x16x4xf32>
    %35 = vector.shape_cast %34 : vector<1x1x16x4xf32> to vector<1x16x4xf32>
    %36 = vector.broadcast %2 : vector<1x1x4xf32> to vector<1x16x4xf32>
    %37 = arith.mulf %35, %36 : vector<1x16x4xf32>
    %38 = vector.broadcast %5 : vector<1x1x4xf32> to vector<1x16x4xf32>
    %39 = arith.addf %37, %38 : vector<1x16x4xf32>
    %40 = arith.negf %39 : vector<1x16x4xf32>
    %41 = math.exp %40 : vector<1x16x4xf32>
    %cst_19 = arith.constant 1.000000e+00 : f32
    %42 = vector.broadcast %cst_19 : f32 to vector<1x16x4xf32>
    %43 = arith.addf %42, %41 : vector<1x16x4xf32>
    %44 = arith.divf %42, %43 : vector<1x16x4xf32>
    %45 = arith.mulf %39, %44 : vector<1x16x4xf32>
    %46 = arith.select %33, %45, %6 : vector<1x16x4xf32>
    %47 = tpu.concatenate %20, %32, %46 in 0 : vector<1x16x4xf32>, vector<8x16x4xf32>, vector<1x16x4xf32> -> vector<10x16x4xf32>
    %cst_20 = arith.constant 0.000000e+00 : f32
    %48 = vector.broadcast %cst_20 : f32 to vector<10x1x4xf32>
    %49 = tpu.concatenate %48, %47, %48 in 1 : vector<10x1x4xf32>, vector<10x16x4xf32>, vector<10x1x4xf32> -> vector<10x18x4xf32>
    %50 = vector.extract_strided_slice %49 {offsets = [0, 0, 0], sizes = [8, 18, 4], strides = [1, 1, 1]} : vector<10x18x4xf32> to vector<8x18x4xf32>
    %51 = vector.extract_strided_slice %49 {offsets = [1, 0, 0], sizes = [8, 18, 4], strides = [1, 1, 1]} : vector<10x18x4xf32> to vector<8x18x4xf32>
    %52 = vector.extract_strided_slice %49 {offsets = [2, 0, 0], sizes = [8, 18, 4], strides = [1, 1, 1]} : vector<10x18x4xf32> to vector<8x18x4xf32>
    %53 = tpu.concatenate %50, %51, %52 in 2 : vector<8x18x4xf32>, vector<8x18x4xf32>, vector<8x18x4xf32> -> vector<8x18x12xf32>
    %54 = vector.extract_strided_slice %53 {offsets = [0, 0, 0], sizes = [8, 16, 12], strides = [1, 1, 1]} : vector<8x18x12xf32> to vector<8x16x12xf32>
    %55 = vector.shape_cast %54 : vector<8x16x12xf32> to vector<128x12xf32>
    %c0_21 = arith.constant 0 : index
    %c0_22 = arith.constant 0 : index
    %c0_23 = arith.constant 0 : index
    %56 = vector.load %arg7[%c0_21, %c0_22, %c0_23] : memref<3x12x4xf32, #tpu.memory_space<vmem>>, vector<1x12x4xf32>
    %57 = vector.shape_cast %56 : vector<1x12x4xf32> to vector<12x4xf32>
    %cst_24 = arith.constant dense<0.000000e+00> : vector<128x4xf32>
    %58 = tpu.matmul %55, %57, %cst_24 {dimension_numbers = #tpu.dot_dimension_numbers<[1], [0], [0], [1], [0, 0, 1, 1], [], []>} : vector<128x12xf32>, vector<12x4xf32>, vector<128x4xf32> -> vector<128x4xf32>
    %59 = vector.extract_strided_slice %53 {offsets = [0, 1, 0], sizes = [8, 16, 12], strides = [1, 1, 1]} : vector<8x18x12xf32> to vector<8x16x12xf32>
    %60 = vector.shape_cast %59 : vector<8x16x12xf32> to vector<128x12xf32>
    %c1 = arith.constant 1 : index
    %c0_25 = arith.constant 0 : index
    %c0_26 = arith.constant 0 : index
    %61 = vector.load %arg7[%c1, %c0_25, %c0_26] : memref<3x12x4xf32, #tpu.memory_space<vmem>>, vector<1x12x4xf32>
    %62 = vector.shape_cast %61 : vector<1x12x4xf32> to vector<12x4xf32>
    %cst_27 = arith.constant dense<0.000000e+00> : vector<128x4xf32>
    %63 = tpu.matmul %60, %62, %cst_27 {dimension_numbers = #tpu.dot_dimension_numbers<[1], [0], [0], [1], [0, 0, 1, 1], [], []>} : vector<128x12xf32>, vector<12x4xf32>, vector<128x4xf32> -> vector<128x4xf32>
    %64 = arith.addf %58, %63 : vector<128x4xf32>
    %65 = vector.extract_strided_slice %53 {offsets = [0, 2, 0], sizes = [8, 16, 12], strides = [1, 1, 1]} : vector<8x18x12xf32> to vector<8x16x12xf32>
    %66 = vector.shape_cast %65 : vector<8x16x12xf32> to vector<128x12xf32>
    %c2 = arith.constant 2 : index
    %c0_28 = arith.constant 0 : index
    %c0_29 = arith.constant 0 : index
    %67 = vector.load %arg7[%c2, %c0_28, %c0_29] : memref<3x12x4xf32, #tpu.memory_space<vmem>>, vector<1x12x4xf32>
    %68 = vector.shape_cast %67 : vector<1x12x4xf32> to vector<12x4xf32>
    %cst_30 = arith.constant dense<0.000000e+00> : vector<128x4xf32>
    %69 = tpu.matmul %66, %68, %cst_30 {dimension_numbers = #tpu.dot_dimension_numbers<[1], [0], [0], [1], [0, 0, 1, 1], [], []>} : vector<128x12xf32>, vector<12x4xf32>, vector<128x4xf32> -> vector<128x4xf32>
    %70 = arith.addf %64, %69 : vector<128x4xf32>
    %c0_31 = arith.constant 0 : index
    %c0_32 = arith.constant 0 : index
    %71 = vector.load %arg8[%c0_31, %c0_32] : memref<1x4xf32, #tpu.memory_space<vmem>>, vector<1x4xf32>
    %72 = vector.broadcast %71 : vector<1x4xf32> to vector<128x4xf32>
    %73 = arith.addf %70, %72 : vector<128x4xf32>
    %c0_33 = arith.constant 0 : index
    %c0_34 = arith.constant 0 : index
    %c0_35 = arith.constant 0 : index
    %c0_36 = arith.constant 0 : index
    %74 = vector.load %arg9[%c0_33, %c0_34, %c0_35, %c0_36] : memref<1x8x16x8xf32, #tpu.memory_space<vmem>>, vector<1x8x16x8xf32>
    %75 = vector.shape_cast %74 : vector<1x8x16x8xf32> to vector<8x16x8xf32>
    %76 = vector.shape_cast %75 : vector<8x16x8xf32> to vector<128x8xf32>
    %c0_37 = arith.constant 0 : index
    %c0_38 = arith.constant 0 : index
    %77 = vector.load %arg10[%c0_37, %c0_38] : memref<8x4xf32, #tpu.memory_space<vmem>>, vector<8x4xf32>
    %cst_39 = arith.constant dense<0.000000e+00> : vector<128x4xf32>
    %78 = tpu.matmul %76, %77, %cst_39 {dimension_numbers = #tpu.dot_dimension_numbers<[1], [0], [0], [1], [0, 0, 1, 1], [], []>} : vector<128x8xf32>, vector<8x4xf32>, vector<128x4xf32> -> vector<128x4xf32>
    %79 = arith.addf %73, %78 : vector<128x4xf32>
    %c0_40 = arith.constant 0 : index
    %c0_41 = arith.constant 0 : index
    %80 = vector.load %arg11[%c0_40, %c0_41] : memref<1x4xf32, #tpu.memory_space<vmem>>, vector<1x4xf32>
    %81 = vector.broadcast %80 : vector<1x4xf32> to vector<128x4xf32>
    %82 = arith.addf %79, %81 : vector<128x4xf32>
    %cst_42 = arith.constant 1.000000e+00 : f32
    %83 = vector.broadcast %cst_42 : f32 to vector<128x4xf32>
    %84 = arith.mulf %82, %83 : vector<128x4xf32>
    %c0_i32_43 = arith.constant 0 : i32
    %85 = arith.cmpi eq, %arg1, %c0_i32_43 : i32
    %86 = arith.extui %85 : i1 to i32
    %c0_i32_44 = arith.constant 0 : i32
    %87 = arith.cmpi ne, %86, %c0_i32_44 : i32
    scf.if %87 {
      %cst_63 = arith.constant 0.000000e+00 : f32
      %103 = vector.broadcast %cst_63 : f32 to vector<1x1x4xf32>
      %c0_64 = arith.constant 0 : index
      %c0_65 = arith.constant 0 : index
      %c0_66 = arith.constant 0 : index
      %104 = vector.load %arg13[%c0_64, %c0_65, %c0_66] : memref<1x1x4xf32, #tpu.memory_space<vmem>>, vector<1x1x4xf32>
      tpu.vector_store %arg13[%c0_64, %c0_65, %c0_66], %103 {strides = array<i32>} : memref<1x1x4xf32, #tpu.memory_space<vmem>>, vector<1x1x4xf32>,
      %cst_67 = arith.constant 0.000000e+00 : f32
      %105 = vector.broadcast %cst_67 : f32 to vector<1x1x4xf32>
      %c0_68 = arith.constant 0 : index
      %c0_69 = arith.constant 0 : index
      %c0_70 = arith.constant 0 : index
      %106 = vector.load %arg14[%c0_68, %c0_69, %c0_70] : memref<1x1x4xf32, #tpu.memory_space<vmem>>, vector<1x1x4xf32>
      tpu.vector_store %arg14[%c0_68, %c0_69, %c0_70], %105 {strides = array<i32>} : memref<1x1x4xf32, #tpu.memory_space<vmem>>, vector<1x1x4xf32>,
    } else {
    }
    %c0_45 = arith.constant 0 : index
    %c0_46 = arith.constant 0 : index
    %c0_47 = arith.constant 0 : index
    %88 = vector.load %arg13[%c0_45, %c0_46, %c0_47] : memref<1x1x4xf32, #tpu.memory_space<vmem>>, vector<1x1x4xf32>
    %cst_48 = arith.constant dense<0.000000e+00> : vector<4xf32>
    %89 = vector.multi_reduction <add>, %84, %cst_48 [0] : vector<128x4xf32> to vector<4xf32>
    %90 = vector.shape_cast %89 : vector<4xf32> to vector<1x1x4xf32>
    %91 = arith.addf %88, %90 : vector<1x1x4xf32>
    %c0_49 = arith.constant 0 : index
    %c0_50 = arith.constant 0 : index
    %c0_51 = arith.constant 0 : index
    %92 = vector.load %arg13[%c0_49, %c0_50, %c0_51] : memref<1x1x4xf32, #tpu.memory_space<vmem>>, vector<1x1x4xf32>
    tpu.vector_store %arg13[%c0_49, %c0_50, %c0_51], %91 {strides = array<i32>} : memref<1x1x4xf32, #tpu.memory_space<vmem>>, vector<1x1x4xf32>,
    %c0_52 = arith.constant 0 : index
    %c0_53 = arith.constant 0 : index
    %c0_54 = arith.constant 0 : index
    %93 = vector.load %arg14[%c0_52, %c0_53, %c0_54] : memref<1x1x4xf32, #tpu.memory_space<vmem>>, vector<1x1x4xf32>
    %94 = arith.mulf %84, %84 : vector<128x4xf32>
    %cst_55 = arith.constant dense<0.000000e+00> : vector<4xf32>
    %95 = vector.multi_reduction <add>, %94, %cst_55 [0] : vector<128x4xf32> to vector<4xf32>
    %96 = vector.shape_cast %95 : vector<4xf32> to vector<1x1x4xf32>
    %97 = arith.addf %93, %96 : vector<1x1x4xf32>
    %c0_56 = arith.constant 0 : index
    %c0_57 = arith.constant 0 : index
    %c0_58 = arith.constant 0 : index
    %98 = vector.load %arg14[%c0_56, %c0_57, %c0_58] : memref<1x1x4xf32, #tpu.memory_space<vmem>>, vector<1x1x4xf32>
    tpu.vector_store %arg14[%c0_56, %c0_57, %c0_58], %97 {strides = array<i32>} : memref<1x1x4xf32, #tpu.memory_space<vmem>>, vector<1x1x4xf32>,
    %99 = vector.shape_cast %84 : vector<128x4xf32> to vector<8x16x4xf32>
    %c0_59 = arith.constant 0 : index
    %c0_60 = arith.constant 0 : index
    %c0_61 = arith.constant 0 : index
    %c0_62 = arith.constant 0 : index
    %100 = vector.load %arg12[%c0_59, %c0_60, %c0_61, %c0_62] : memref<1x8x16x4xf32, #tpu.memory_space<vmem>>, vector<1x8x16x4xf32>
    %101 = vector.shape_cast %100 : vector<1x8x16x4xf32> to vector<8x16x4xf32>
    %102 = vector.shape_cast %99 : vector<8x16x4xf32> to vector<1x8x16x4xf32>
    tpu.vector_store %arg12[%c0_59, %c0_60, %c0_61, %c0_62], %102 {strides = array<i32>} : memref<1x8x16x4xf32, #tpu.memory_space<vmem>>, vector<1x8x16x4xf32>,
    return
  }
  func.func @transform_0(%arg0: i32, %arg1: i32) -> (i32, i32, i32, i32) {
    %c8_i32 = arith.constant 8 : i32
    %0 = arith.muli %arg1, %c8_i32 : i32
    %c1_i32 = arith.constant 1 : i32
    %1 = arith.subi %0, %c1_i32 : i32
    %c0_i32 = arith.constant 0 : i32
    %2 = arith.maxsi %1, %c0_i32 : i32
    %c0_i32_0 = arith.constant 0 : i32
    %c0_i32_1 = arith.constant 0 : i32
    %c0_i32_2 = arith.constant 0 : i32
    return %arg0, %2, %c0_i32_0, %c0_i32_1 : i32, i32, i32, i32
  }
  func.func @transform_1(%arg0: i32, %arg1: i32) -> (i32, i32, i32, i32) {
    %c0_i32 = arith.constant 0 : i32
    %c0_i32_0 = arith.constant 0 : i32
    %c0_i32_1 = arith.constant 0 : i32
    return %arg0, %arg1, %c0_i32, %c0_i32_0 : i32, i32, i32, i32
  }
  func.func @transform_2(%arg0: i32, %arg1: i32) -> (i32, i32, i32, i32) {
    %c8_i32 = arith.constant 8 : i32
    %0 = arith.muli %arg1, %c8_i32 : i32
    %c8_i32_0 = arith.constant 8 : i32
    %1 = arith.addi %0, %c8_i32_0 : i32
    %c15_i32 = arith.constant 15 : i32
    %2 = arith.minsi %1, %c15_i32 : i32
    %c0_i32 = arith.constant 0 : i32
    %c0_i32_1 = arith.constant 0 : i32
    %c0_i32_2 = arith.constant 0 : i32
    return %arg0, %2, %c0_i32, %c0_i32_1 : i32, i32, i32, i32
  }
  func.func @transform_3(%arg0: i32, %arg1: i32) -> (i32, i32, i32) {
    %c0_i32 = arith.constant 0 : i32
    %c0_i32_0 = arith.constant 0 : i32
    %c0_i32_1 = arith.constant 0 : i32
    return %arg0, %c0_i32, %c0_i32_0 : i32, i32, i32
  }
  func.func @transform_4(%arg0: i32, %arg1: i32) -> (i32, i32, i32) {
    %c0_i32 = arith.constant 0 : i32
    %c0_i32_0 = arith.constant 0 : i32
    %c0_i32_1 = arith.constant 0 : i32
    return %arg0, %c0_i32, %c0_i32_0 : i32, i32, i32
  }
  func.func @transform_5(%arg0: i32, %arg1: i32) -> (i32, i32, i32) {
    %c0_i32 = arith.constant 0 : i32
    %c0_i32_0 = arith.constant 0 : i32
    %c0_i32_1 = arith.constant 0 : i32
    %c0_i32_2 = arith.constant 0 : i32
    return %c0_i32, %c0_i32_0, %c0_i32_1 : i32, i32, i32
  }
  func.func @transform_6(%arg0: i32, %arg1: i32) -> (i32, i32) {
    %c0_i32 = arith.constant 0 : i32
    %c0_i32_0 = arith.constant 0 : i32
    %c0_i32_1 = arith.constant 0 : i32
    return %c0_i32, %c0_i32_0 : i32, i32
  }
  func.func @transform_7(%arg0: i32, %arg1: i32) -> (i32, i32, i32, i32) {
    %c0_i32 = arith.constant 0 : i32
    %c0_i32_0 = arith.constant 0 : i32
    %c0_i32_1 = arith.constant 0 : i32
    return %arg0, %arg1, %c0_i32, %c0_i32_0 : i32, i32, i32, i32
  }
  func.func @transform_8(%arg0: i32, %arg1: i32) -> (i32, i32) {
    %c0_i32 = arith.constant 0 : i32
    %c0_i32_0 = arith.constant 0 : i32
    %c0_i32_1 = arith.constant 0 : i32
    return %c0_i32, %c0_i32_0 : i32, i32
  }
  func.func @transform_9(%arg0: i32, %arg1: i32) -> (i32, i32) {
    %c0_i32 = arith.constant 0 : i32
    %c0_i32_0 = arith.constant 0 : i32
    %c0_i32_1 = arith.constant 0 : i32
    return %c0_i32, %c0_i32_0 : i32, i32
  }
  func.func @transform_10(%arg0: i32, %arg1: i32) -> (i32, i32, i32, i32) {
    %c0_i32 = arith.constant 0 : i32
    %c0_i32_0 = arith.constant 0 : i32
    %c0_i32_1 = arith.constant 0 : i32
    return %arg0, %arg1, %c0_i32, %c0_i32_0 : i32, i32, i32, i32
  }
  func.func @transform_11(%arg0: i32, %arg1: i32) -> (i32, i32, i32) {
    %c0_i32 = arith.constant 0 : i32
    %c0_i32_0 = arith.constant 0 : i32
    %c0_i32_1 = arith.constant 0 : i32
    return %arg0, %c0_i32, %c0_i32_0 : i32, i32, i32
  }
  func.func @transform_12(%arg0: i32, %arg1: i32) -> (i32, i32, i32) {
    %c0_i32 = arith.constant 0 : i32
    %c0_i32_0 = arith.constant 0 : i32
    %c0_i32_1 = arith.constant 0 : i32
    return %arg0, %c0_i32, %c0_i32_0 : i32, i32, i32
  }
}

module attributes {stable_mosaic.version = 11 : i64} {
  func.func @_resnet_conv3x3_kernel(%arg0: i32, %arg1: i32, %arg2: memref<1x1x16x4xf32, #tpu.memory_space<vmem>>, %arg3: memref<1x8x16x4xf32, #tpu.memory_space<vmem>>, %arg4: memref<1x1x16x4xf32, #tpu.memory_space<vmem>>, %arg5: memref<1x1x4xf32, #tpu.memory_space<vmem>>, %arg6: memref<1x1x4xf32, #tpu.memory_space<vmem>>, %arg7: memref<3x12x4xf32, #tpu.memory_space<vmem>>, %arg8: memref<1x4xf32, #tpu.memory_space<vmem>>, %arg9: memref<1x8x16x4xf32, #tpu.memory_space<vmem>>, %arg10: memref<1x1x4xf32, #tpu.memory_space<vmem>>, %arg11: memref<1x1x4xf32, #tpu.memory_space<vmem>>) attributes {dimension_semantics = [#tpu.dimension_semantics<parallel>, #tpu.dimension_semantics<arbitrary>], iteration_bounds = array<i64: 2, 2>, scalar_prefetch = 0 : i64, scratch_operands = 0 : i64, tpu.core_type = #tpu.core_type<tc>, window_params = [{transform_indices = @transform_0, window_bounds = array<i64: 1, 1, 16, 4>}, {transform_indices = @transform_1, window_bounds = array<i64: 1, 8, 16, 4>}, {transform_indices = @transform_2, window_bounds = array<i64: 1, 1, 16, 4>}, {transform_indices = @transform_3, window_bounds = array<i64: 1, 1, 4>}, {transform_indices = @transform_4, window_bounds = array<i64: 1, 1, 4>}, {pipeline_mode = #tpu.pipeline_mode<synchronous>, transform_indices = @transform_5, window_bounds = array<i64: 3, 12, 4>}, {pipeline_mode = #tpu.pipeline_mode<synchronous>, transform_indices = @transform_6, window_bounds = array<i64: 1, 4>}, {transform_indices = @transform_7, window_bounds = array<i64: 1, 8, 16, 4>}, {transform_indices = @transform_8, window_bounds = array<i64: 1, 1, 4>}, {transform_indices = @transform_9, window_bounds = array<i64: 1, 1, 4>}]} {
    %c0 = arith.constant 0 : index
    %c0_0 = arith.constant 0 : index
    %c0_1 = arith.constant 0 : index
    %0 = vector.load %arg5[%c0, %c0_0, %c0_1] : memref<1x1x4xf32, #tpu.memory_space<vmem>>, vector<1x1x4xf32>
    %1 = vector.shape_cast %0 : vector<1x1x4xf32> to vector<1x4xf32>
    %2 = vector.shape_cast %1 : vector<1x4xf32> to vector<1x1x4xf32>
    %c0_2 = arith.constant 0 : index
    %c0_3 = arith.constant 0 : index
    %c0_4 = arith.constant 0 : index
    %3 = vector.load %arg6[%c0_2, %c0_3, %c0_4] : memref<1x1x4xf32, #tpu.memory_space<vmem>>, vector<1x1x4xf32>
    %4 = vector.shape_cast %3 : vector<1x1x4xf32> to vector<1x4xf32>
    %5 = vector.shape_cast %4 : vector<1x4xf32> to vector<1x1x4xf32>
    %cst = arith.constant 0.000000e+00 : f32
    %6 = vector.broadcast %cst : f32 to vector<1x16x4xf32>
    %c0_i32 = arith.constant 0 : i32
    %7 = arith.cmpi sgt, %arg1, %c0_i32 : i32
    %c0_5 = arith.constant 0 : index
    %c0_6 = arith.constant 0 : index
    %c0_7 = arith.constant 0 : index
    %c0_8 = arith.constant 0 : index
    %8 = vector.load %arg2[%c0_5, %c0_6, %c0_7, %c0_8] : memref<1x1x16x4xf32, #tpu.memory_space<vmem>>, vector<1x1x16x4xf32>
    %9 = vector.shape_cast %8 : vector<1x1x16x4xf32> to vector<1x16x4xf32>
    %10 = vector.broadcast %2 : vector<1x1x4xf32> to vector<1x16x4xf32>
    %11 = arith.mulf %9, %10 : vector<1x16x4xf32>
    %12 = vector.broadcast %5 : vector<1x1x4xf32> to vector<1x16x4xf32>
    %13 = arith.addf %11, %12 : vector<1x16x4xf32>
    %14 = arith.negf %13 : vector<1x16x4xf32>
    %15 = math.exp %14 : vector<1x16x4xf32>
    %cst_9 = arith.constant 1.000000e+00 : f32
    %16 = vector.broadcast %cst_9 : f32 to vector<1x16x4xf32>
    %17 = arith.addf %16, %15 : vector<1x16x4xf32>
    %18 = arith.divf %16, %17 : vector<1x16x4xf32>
    %19 = arith.mulf %13, %18 : vector<1x16x4xf32>
    %20 = arith.select %7, %19, %6 : vector<1x16x4xf32>
    %c0_10 = arith.constant 0 : index
    %c0_11 = arith.constant 0 : index
    %c0_12 = arith.constant 0 : index
    %c0_13 = arith.constant 0 : index
    %21 = vector.load %arg3[%c0_10, %c0_11, %c0_12, %c0_13] : memref<1x8x16x4xf32, #tpu.memory_space<vmem>>, vector<1x8x16x4xf32>
    %22 = vector.shape_cast %21 : vector<1x8x16x4xf32> to vector<8x16x4xf32>
    %23 = vector.broadcast %2 : vector<1x1x4xf32> to vector<8x16x4xf32>
    %24 = arith.mulf %22, %23 : vector<8x16x4xf32>
    %25 = vector.broadcast %5 : vector<1x1x4xf32> to vector<8x16x4xf32>
    %26 = arith.addf %24, %25 : vector<8x16x4xf32>
    %27 = arith.negf %26 : vector<8x16x4xf32>
    %28 = math.exp %27 : vector<8x16x4xf32>
    %cst_14 = arith.constant 1.000000e+00 : f32
    %29 = vector.broadcast %cst_14 : f32 to vector<8x16x4xf32>
    %30 = arith.addf %29, %28 : vector<8x16x4xf32>
    %31 = arith.divf %29, %30 : vector<8x16x4xf32>
    %32 = arith.mulf %26, %31 : vector<8x16x4xf32>
    %c1_i32 = arith.constant 1 : i32
    %33 = arith.cmpi slt, %arg1, %c1_i32 : i32
    %c0_15 = arith.constant 0 : index
    %c0_16 = arith.constant 0 : index
    %c0_17 = arith.constant 0 : index
    %c0_18 = arith.constant 0 : index
    %34 = vector.load %arg4[%c0_15, %c0_16, %c0_17, %c0_18] : memref<1x1x16x4xf32, #tpu.memory_space<vmem>>, vector<1x1x16x4xf32>
    %35 = vector.shape_cast %34 : vector<1x1x16x4xf32> to vector<1x16x4xf32>
    %36 = vector.broadcast %2 : vector<1x1x4xf32> to vector<1x16x4xf32>
    %37 = arith.mulf %35, %36 : vector<1x16x4xf32>
    %38 = vector.broadcast %5 : vector<1x1x4xf32> to vector<1x16x4xf32>
    %39 = arith.addf %37, %38 : vector<1x16x4xf32>
    %40 = arith.negf %39 : vector<1x16x4xf32>
    %41 = math.exp %40 : vector<1x16x4xf32>
    %cst_19 = arith.constant 1.000000e+00 : f32
    %42 = vector.broadcast %cst_19 : f32 to vector<1x16x4xf32>
    %43 = arith.addf %42, %41 : vector<1x16x4xf32>
    %44 = arith.divf %42, %43 : vector<1x16x4xf32>
    %45 = arith.mulf %39, %44 : vector<1x16x4xf32>
    %46 = arith.select %33, %45, %6 : vector<1x16x4xf32>
    %47 = tpu.concatenate %20, %32, %46 in 0 : vector<1x16x4xf32>, vector<8x16x4xf32>, vector<1x16x4xf32> -> vector<10x16x4xf32>
    %cst_20 = arith.constant 0.000000e+00 : f32
    %48 = vector.broadcast %cst_20 : f32 to vector<10x1x4xf32>
    %49 = tpu.concatenate %48, %47, %48 in 1 : vector<10x1x4xf32>, vector<10x16x4xf32>, vector<10x1x4xf32> -> vector<10x18x4xf32>
    %50 = vector.extract_strided_slice %49 {offsets = [0, 0, 0], sizes = [8, 18, 4], strides = [1, 1, 1]} : vector<10x18x4xf32> to vector<8x18x4xf32>
    %51 = vector.extract_strided_slice %49 {offsets = [1, 0, 0], sizes = [8, 18, 4], strides = [1, 1, 1]} : vector<10x18x4xf32> to vector<8x18x4xf32>
    %52 = vector.extract_strided_slice %49 {offsets = [2, 0, 0], sizes = [8, 18, 4], strides = [1, 1, 1]} : vector<10x18x4xf32> to vector<8x18x4xf32>
    %53 = tpu.concatenate %50, %51, %52 in 2 : vector<8x18x4xf32>, vector<8x18x4xf32>, vector<8x18x4xf32> -> vector<8x18x12xf32>
    %54 = vector.extract_strided_slice %53 {offsets = [0, 0, 0], sizes = [8, 16, 12], strides = [1, 1, 1]} : vector<8x18x12xf32> to vector<8x16x12xf32>
    %55 = vector.shape_cast %54 : vector<8x16x12xf32> to vector<128x12xf32>
    %c0_21 = arith.constant 0 : index
    %c0_22 = arith.constant 0 : index
    %c0_23 = arith.constant 0 : index
    %56 = vector.load %arg7[%c0_21, %c0_22, %c0_23] : memref<3x12x4xf32, #tpu.memory_space<vmem>>, vector<1x12x4xf32>
    %57 = vector.shape_cast %56 : vector<1x12x4xf32> to vector<12x4xf32>
    %cst_24 = arith.constant dense<0.000000e+00> : vector<128x4xf32>
    %58 = tpu.matmul %55, %57, %cst_24 {dimension_numbers = #tpu.dot_dimension_numbers<[1], [0], [0], [1], [0, 0, 1, 1], [], []>} : vector<128x12xf32>, vector<12x4xf32>, vector<128x4xf32> -> vector<128x4xf32>
    %59 = vector.extract_strided_slice %53 {offsets = [0, 1, 0], sizes = [8, 16, 12], strides = [1, 1, 1]} : vector<8x18x12xf32> to vector<8x16x12xf32>
    %60 = vector.shape_cast %59 : vector<8x16x12xf32> to vector<128x12xf32>
    %c1 = arith.constant 1 : index
    %c0_25 = arith.constant 0 : index
    %c0_26 = arith.constant 0 : index
    %61 = vector.load %arg7[%c1, %c0_25, %c0_26] : memref<3x12x4xf32, #tpu.memory_space<vmem>>, vector<1x12x4xf32>
    %62 = vector.shape_cast %61 : vector<1x12x4xf32> to vector<12x4xf32>
    %cst_27 = arith.constant dense<0.000000e+00> : vector<128x4xf32>
    %63 = tpu.matmul %60, %62, %cst_27 {dimension_numbers = #tpu.dot_dimension_numbers<[1], [0], [0], [1], [0, 0, 1, 1], [], []>} : vector<128x12xf32>, vector<12x4xf32>, vector<128x4xf32> -> vector<128x4xf32>
    %64 = arith.addf %58, %63 : vector<128x4xf32>
    %65 = vector.extract_strided_slice %53 {offsets = [0, 2, 0], sizes = [8, 16, 12], strides = [1, 1, 1]} : vector<8x18x12xf32> to vector<8x16x12xf32>
    %66 = vector.shape_cast %65 : vector<8x16x12xf32> to vector<128x12xf32>
    %c2 = arith.constant 2 : index
    %c0_28 = arith.constant 0 : index
    %c0_29 = arith.constant 0 : index
    %67 = vector.load %arg7[%c2, %c0_28, %c0_29] : memref<3x12x4xf32, #tpu.memory_space<vmem>>, vector<1x12x4xf32>
    %68 = vector.shape_cast %67 : vector<1x12x4xf32> to vector<12x4xf32>
    %cst_30 = arith.constant dense<0.000000e+00> : vector<128x4xf32>
    %69 = tpu.matmul %66, %68, %cst_30 {dimension_numbers = #tpu.dot_dimension_numbers<[1], [0], [0], [1], [0, 0, 1, 1], [], []>} : vector<128x12xf32>, vector<12x4xf32>, vector<128x4xf32> -> vector<128x4xf32>
    %70 = arith.addf %64, %69 : vector<128x4xf32>
    %c0_31 = arith.constant 0 : index
    %c0_32 = arith.constant 0 : index
    %71 = vector.load %arg8[%c0_31, %c0_32] : memref<1x4xf32, #tpu.memory_space<vmem>>, vector<1x4xf32>
    %72 = vector.broadcast %71 : vector<1x4xf32> to vector<128x4xf32>
    %73 = arith.addf %70, %72 : vector<128x4xf32>
    %c0_i32_33 = arith.constant 0 : i32
    %74 = arith.cmpi eq, %arg1, %c0_i32_33 : i32
    %75 = arith.extui %74 : i1 to i32
    %c0_i32_34 = arith.constant 0 : i32
    %76 = arith.cmpi ne, %75, %c0_i32_34 : i32
    scf.if %76 {
      %cst_53 = arith.constant 0.000000e+00 : f32
      %92 = vector.broadcast %cst_53 : f32 to vector<1x1x4xf32>
      %c0_54 = arith.constant 0 : index
      %c0_55 = arith.constant 0 : index
      %c0_56 = arith.constant 0 : index
      %93 = vector.load %arg10[%c0_54, %c0_55, %c0_56] : memref<1x1x4xf32, #tpu.memory_space<vmem>>, vector<1x1x4xf32>
      tpu.vector_store %arg10[%c0_54, %c0_55, %c0_56], %92 {strides = array<i32>} : memref<1x1x4xf32, #tpu.memory_space<vmem>>, vector<1x1x4xf32>,
      %cst_57 = arith.constant 0.000000e+00 : f32
      %94 = vector.broadcast %cst_57 : f32 to vector<1x1x4xf32>
      %c0_58 = arith.constant 0 : index
      %c0_59 = arith.constant 0 : index
      %c0_60 = arith.constant 0 : index
      %95 = vector.load %arg11[%c0_58, %c0_59, %c0_60] : memref<1x1x4xf32, #tpu.memory_space<vmem>>, vector<1x1x4xf32>
      tpu.vector_store %arg11[%c0_58, %c0_59, %c0_60], %94 {strides = array<i32>} : memref<1x1x4xf32, #tpu.memory_space<vmem>>, vector<1x1x4xf32>,
    } else {
    }
    %c0_35 = arith.constant 0 : index
    %c0_36 = arith.constant 0 : index
    %c0_37 = arith.constant 0 : index
    %77 = vector.load %arg10[%c0_35, %c0_36, %c0_37] : memref<1x1x4xf32, #tpu.memory_space<vmem>>, vector<1x1x4xf32>
    %cst_38 = arith.constant dense<0.000000e+00> : vector<4xf32>
    %78 = vector.multi_reduction <add>, %73, %cst_38 [0] : vector<128x4xf32> to vector<4xf32>
    %79 = vector.shape_cast %78 : vector<4xf32> to vector<1x1x4xf32>
    %80 = arith.addf %77, %79 : vector<1x1x4xf32>
    %c0_39 = arith.constant 0 : index
    %c0_40 = arith.constant 0 : index
    %c0_41 = arith.constant 0 : index
    %81 = vector.load %arg10[%c0_39, %c0_40, %c0_41] : memref<1x1x4xf32, #tpu.memory_space<vmem>>, vector<1x1x4xf32>
    tpu.vector_store %arg10[%c0_39, %c0_40, %c0_41], %80 {strides = array<i32>} : memref<1x1x4xf32, #tpu.memory_space<vmem>>, vector<1x1x4xf32>,
    %c0_42 = arith.constant 0 : index
    %c0_43 = arith.constant 0 : index
    %c0_44 = arith.constant 0 : index
    %82 = vector.load %arg11[%c0_42, %c0_43, %c0_44] : memref<1x1x4xf32, #tpu.memory_space<vmem>>, vector<1x1x4xf32>
    %83 = arith.mulf %73, %73 : vector<128x4xf32>
    %cst_45 = arith.constant dense<0.000000e+00> : vector<4xf32>
    %84 = vector.multi_reduction <add>, %83, %cst_45 [0] : vector<128x4xf32> to vector<4xf32>
    %85 = vector.shape_cast %84 : vector<4xf32> to vector<1x1x4xf32>
    %86 = arith.addf %82, %85 : vector<1x1x4xf32>
    %c0_46 = arith.constant 0 : index
    %c0_47 = arith.constant 0 : index
    %c0_48 = arith.constant 0 : index
    %87 = vector.load %arg11[%c0_46, %c0_47, %c0_48] : memref<1x1x4xf32, #tpu.memory_space<vmem>>, vector<1x1x4xf32>
    tpu.vector_store %arg11[%c0_46, %c0_47, %c0_48], %86 {strides = array<i32>} : memref<1x1x4xf32, #tpu.memory_space<vmem>>, vector<1x1x4xf32>,
    %88 = vector.shape_cast %73 : vector<128x4xf32> to vector<8x16x4xf32>
    %c0_49 = arith.constant 0 : index
    %c0_50 = arith.constant 0 : index
    %c0_51 = arith.constant 0 : index
    %c0_52 = arith.constant 0 : index
    %89 = vector.load %arg9[%c0_49, %c0_50, %c0_51, %c0_52] : memref<1x8x16x4xf32, #tpu.memory_space<vmem>>, vector<1x8x16x4xf32>
    %90 = vector.shape_cast %89 : vector<1x8x16x4xf32> to vector<8x16x4xf32>
    %91 = vector.shape_cast %88 : vector<8x16x4xf32> to vector<1x8x16x4xf32>
    tpu.vector_store %arg9[%c0_49, %c0_50, %c0_51, %c0_52], %91 {strides = array<i32>} : memref<1x8x16x4xf32, #tpu.memory_space<vmem>>, vector<1x8x16x4xf32>,
    return
  }
  func.func @transform_0(%arg0: i32, %arg1: i32) -> (i32, i32, i32, i32) {
    %c8_i32 = arith.constant 8 : i32
    %0 = arith.muli %arg1, %c8_i32 : i32
    %c1_i32 = arith.constant 1 : i32
    %1 = arith.subi %0, %c1_i32 : i32
    %c0_i32 = arith.constant 0 : i32
    %2 = arith.maxsi %1, %c0_i32 : i32
    %c0_i32_0 = arith.constant 0 : i32
    %c0_i32_1 = arith.constant 0 : i32
    %c0_i32_2 = arith.constant 0 : i32
    return %arg0, %2, %c0_i32_0, %c0_i32_1 : i32, i32, i32, i32
  }
  func.func @transform_1(%arg0: i32, %arg1: i32) -> (i32, i32, i32, i32) {
    %c0_i32 = arith.constant 0 : i32
    %c0_i32_0 = arith.constant 0 : i32
    %c0_i32_1 = arith.constant 0 : i32
    return %arg0, %arg1, %c0_i32, %c0_i32_0 : i32, i32, i32, i32
  }
  func.func @transform_2(%arg0: i32, %arg1: i32) -> (i32, i32, i32, i32) {
    %c8_i32 = arith.constant 8 : i32
    %0 = arith.muli %arg1, %c8_i32 : i32
    %c8_i32_0 = arith.constant 8 : i32
    %1 = arith.addi %0, %c8_i32_0 : i32
    %c15_i32 = arith.constant 15 : i32
    %2 = arith.minsi %1, %c15_i32 : i32
    %c0_i32 = arith.constant 0 : i32
    %c0_i32_1 = arith.constant 0 : i32
    %c0_i32_2 = arith.constant 0 : i32
    return %arg0, %2, %c0_i32, %c0_i32_1 : i32, i32, i32, i32
  }
  func.func @transform_3(%arg0: i32, %arg1: i32) -> (i32, i32, i32) {
    %c0_i32 = arith.constant 0 : i32
    %c0_i32_0 = arith.constant 0 : i32
    %c0_i32_1 = arith.constant 0 : i32
    return %arg0, %c0_i32, %c0_i32_0 : i32, i32, i32
  }
  func.func @transform_4(%arg0: i32, %arg1: i32) -> (i32, i32, i32) {
    %c0_i32 = arith.constant 0 : i32
    %c0_i32_0 = arith.constant 0 : i32
    %c0_i32_1 = arith.constant 0 : i32
    return %arg0, %c0_i32, %c0_i32_0 : i32, i32, i32
  }
  func.func @transform_5(%arg0: i32, %arg1: i32) -> (i32, i32, i32) {
    %c0_i32 = arith.constant 0 : i32
    %c0_i32_0 = arith.constant 0 : i32
    %c0_i32_1 = arith.constant 0 : i32
    %c0_i32_2 = arith.constant 0 : i32
    return %c0_i32, %c0_i32_0, %c0_i32_1 : i32, i32, i32
  }
  func.func @transform_6(%arg0: i32, %arg1: i32) -> (i32, i32) {
    %c0_i32 = arith.constant 0 : i32
    %c0_i32_0 = arith.constant 0 : i32
    %c0_i32_1 = arith.constant 0 : i32
    return %c0_i32, %c0_i32_0 : i32, i32
  }
  func.func @transform_7(%arg0: i32, %arg1: i32) -> (i32, i32, i32, i32) {
    %c0_i32 = arith.constant 0 : i32
    %c0_i32_0 = arith.constant 0 : i32
    %c0_i32_1 = arith.constant 0 : i32
    return %arg0, %arg1, %c0_i32, %c0_i32_0 : i32, i32, i32, i32
  }
  func.func @transform_8(%arg0: i32, %arg1: i32) -> (i32, i32, i32) {
    %c0_i32 = arith.constant 0 : i32
    %c0_i32_0 = arith.constant 0 : i32
    %c0_i32_1 = arith.constant 0 : i32
    return %arg0, %c0_i32, %c0_i32_0 : i32, i32, i32
  }
  func.func @transform_9(%arg0: i32, %arg1: i32) -> (i32, i32, i32) {
    %c0_i32 = arith.constant 0 : i32
    %c0_i32_0 = arith.constant 0 : i32
    %c0_i32_1 = arith.constant 0 : i32
    return %arg0, %c0_i32, %c0_i32_0 : i32, i32, i32
  }
}

module attributes {stable_mosaic.version = 11 : i64} {
  func.func @_resnet_conv3x3_kernel(%arg0: i32, %arg1: i32, %arg2: memref<1x1x16x4xf32, #tpu.memory_space<vmem>>, %arg3: memref<1x8x16x4xf32, #tpu.memory_space<vmem>>, %arg4: memref<1x1x16x4xf32, #tpu.memory_space<vmem>>, %arg5: memref<1x1x4xf32, #tpu.memory_space<vmem>>, %arg6: memref<1x1x4xf32, #tpu.memory_space<vmem>>, %arg7: memref<3x12x4xf32, #tpu.memory_space<vmem>>, %arg8: memref<1x4xf32, #tpu.memory_space<vmem>>, %arg9: memref<1x8x16x4xf32, #tpu.memory_space<vmem>>, %arg10: memref<1x8x16x4xf32, #tpu.memory_space<vmem>>) attributes {dimension_semantics = [#tpu.dimension_semantics<parallel>, #tpu.dimension_semantics<arbitrary>], iteration_bounds = array<i64: 2, 2>, scalar_prefetch = 0 : i64, scratch_operands = 0 : i64, tpu.core_type = #tpu.core_type<tc>, window_params = [{transform_indices = @transform_0, window_bounds = array<i64: 1, 1, 16, 4>}, {transform_indices = @transform_1, window_bounds = array<i64: 1, 8, 16, 4>}, {transform_indices = @transform_2, window_bounds = array<i64: 1, 1, 16, 4>}, {transform_indices = @transform_3, window_bounds = array<i64: 1, 1, 4>}, {transform_indices = @transform_4, window_bounds = array<i64: 1, 1, 4>}, {pipeline_mode = #tpu.pipeline_mode<synchronous>, transform_indices = @transform_5, window_bounds = array<i64: 3, 12, 4>}, {pipeline_mode = #tpu.pipeline_mode<synchronous>, transform_indices = @transform_6, window_bounds = array<i64: 1, 4>}, {transform_indices = @transform_7, window_bounds = array<i64: 1, 8, 16, 4>}, {transform_indices = @transform_8, window_bounds = array<i64: 1, 8, 16, 4>}]} {
    %c0 = arith.constant 0 : index
    %c0_0 = arith.constant 0 : index
    %c0_1 = arith.constant 0 : index
    %0 = vector.load %arg5[%c0, %c0_0, %c0_1] : memref<1x1x4xf32, #tpu.memory_space<vmem>>, vector<1x1x4xf32>
    %1 = vector.shape_cast %0 : vector<1x1x4xf32> to vector<1x4xf32>
    %2 = vector.shape_cast %1 : vector<1x4xf32> to vector<1x1x4xf32>
    %c0_2 = arith.constant 0 : index
    %c0_3 = arith.constant 0 : index
    %c0_4 = arith.constant 0 : index
    %3 = vector.load %arg6[%c0_2, %c0_3, %c0_4] : memref<1x1x4xf32, #tpu.memory_space<vmem>>, vector<1x1x4xf32>
    %4 = vector.shape_cast %3 : vector<1x1x4xf32> to vector<1x4xf32>
    %5 = vector.shape_cast %4 : vector<1x4xf32> to vector<1x1x4xf32>
    %cst = arith.constant 0.000000e+00 : f32
    %6 = vector.broadcast %cst : f32 to vector<1x16x4xf32>
    %c0_i32 = arith.constant 0 : i32
    %7 = arith.cmpi sgt, %arg1, %c0_i32 : i32
    %c0_5 = arith.constant 0 : index
    %c0_6 = arith.constant 0 : index
    %c0_7 = arith.constant 0 : index
    %c0_8 = arith.constant 0 : index
    %8 = vector.load %arg2[%c0_5, %c0_6, %c0_7, %c0_8] : memref<1x1x16x4xf32, #tpu.memory_space<vmem>>, vector<1x1x16x4xf32>
    %9 = vector.shape_cast %8 : vector<1x1x16x4xf32> to vector<1x16x4xf32>
    %10 = vector.broadcast %2 : vector<1x1x4xf32> to vector<1x16x4xf32>
    %11 = arith.mulf %9, %10 : vector<1x16x4xf32>
    %12 = vector.broadcast %5 : vector<1x1x4xf32> to vector<1x16x4xf32>
    %13 = arith.addf %11, %12 : vector<1x16x4xf32>
    %14 = arith.negf %13 : vector<1x16x4xf32>
    %15 = math.exp %14 : vector<1x16x4xf32>
    %cst_9 = arith.constant 1.000000e+00 : f32
    %16 = vector.broadcast %cst_9 : f32 to vector<1x16x4xf32>
    %17 = arith.addf %16, %15 : vector<1x16x4xf32>
    %18 = arith.divf %16, %17 : vector<1x16x4xf32>
    %19 = arith.mulf %13, %18 : vector<1x16x4xf32>
    %20 = arith.select %7, %19, %6 : vector<1x16x4xf32>
    %c0_10 = arith.constant 0 : index
    %c0_11 = arith.constant 0 : index
    %c0_12 = arith.constant 0 : index
    %c0_13 = arith.constant 0 : index
    %21 = vector.load %arg3[%c0_10, %c0_11, %c0_12, %c0_13] : memref<1x8x16x4xf32, #tpu.memory_space<vmem>>, vector<1x8x16x4xf32>
    %22 = vector.shape_cast %21 : vector<1x8x16x4xf32> to vector<8x16x4xf32>
    %23 = vector.broadcast %2 : vector<1x1x4xf32> to vector<8x16x4xf32>
    %24 = arith.mulf %22, %23 : vector<8x16x4xf32>
    %25 = vector.broadcast %5 : vector<1x1x4xf32> to vector<8x16x4xf32>
    %26 = arith.addf %24, %25 : vector<8x16x4xf32>
    %27 = arith.negf %26 : vector<8x16x4xf32>
    %28 = math.exp %27 : vector<8x16x4xf32>
    %cst_14 = arith.constant 1.000000e+00 : f32
    %29 = vector.broadcast %cst_14 : f32 to vector<8x16x4xf32>
    %30 = arith.addf %29, %28 : vector<8x16x4xf32>
    %31 = arith.divf %29, %30 : vector<8x16x4xf32>
    %32 = arith.mulf %26, %31 : vector<8x16x4xf32>
    %c1_i32 = arith.constant 1 : i32
    %33 = arith.cmpi slt, %arg1, %c1_i32 : i32
    %c0_15 = arith.constant 0 : index
    %c0_16 = arith.constant 0 : index
    %c0_17 = arith.constant 0 : index
    %c0_18 = arith.constant 0 : index
    %34 = vector.load %arg4[%c0_15, %c0_16, %c0_17, %c0_18] : memref<1x1x16x4xf32, #tpu.memory_space<vmem>>, vector<1x1x16x4xf32>
    %35 = vector.shape_cast %34 : vector<1x1x16x4xf32> to vector<1x16x4xf32>
    %36 = vector.broadcast %2 : vector<1x1x4xf32> to vector<1x16x4xf32>
    %37 = arith.mulf %35, %36 : vector<1x16x4xf32>
    %38 = vector.broadcast %5 : vector<1x1x4xf32> to vector<1x16x4xf32>
    %39 = arith.addf %37, %38 : vector<1x16x4xf32>
    %40 = arith.negf %39 : vector<1x16x4xf32>
    %41 = math.exp %40 : vector<1x16x4xf32>
    %cst_19 = arith.constant 1.000000e+00 : f32
    %42 = vector.broadcast %cst_19 : f32 to vector<1x16x4xf32>
    %43 = arith.addf %42, %41 : vector<1x16x4xf32>
    %44 = arith.divf %42, %43 : vector<1x16x4xf32>
    %45 = arith.mulf %39, %44 : vector<1x16x4xf32>
    %46 = arith.select %33, %45, %6 : vector<1x16x4xf32>
    %47 = tpu.concatenate %20, %32, %46 in 0 : vector<1x16x4xf32>, vector<8x16x4xf32>, vector<1x16x4xf32> -> vector<10x16x4xf32>
    %cst_20 = arith.constant 0.000000e+00 : f32
    %48 = vector.broadcast %cst_20 : f32 to vector<10x1x4xf32>
    %49 = tpu.concatenate %48, %47, %48 in 1 : vector<10x1x4xf32>, vector<10x16x4xf32>, vector<10x1x4xf32> -> vector<10x18x4xf32>
    %50 = vector.extract_strided_slice %49 {offsets = [0, 0, 0], sizes = [8, 18, 4], strides = [1, 1, 1]} : vector<10x18x4xf32> to vector<8x18x4xf32>
    %51 = vector.extract_strided_slice %49 {offsets = [1, 0, 0], sizes = [8, 18, 4], strides = [1, 1, 1]} : vector<10x18x4xf32> to vector<8x18x4xf32>
    %52 = vector.extract_strided_slice %49 {offsets = [2, 0, 0], sizes = [8, 18, 4], strides = [1, 1, 1]} : vector<10x18x4xf32> to vector<8x18x4xf32>
    %53 = tpu.concatenate %50, %51, %52 in 2 : vector<8x18x4xf32>, vector<8x18x4xf32>, vector<8x18x4xf32> -> vector<8x18x12xf32>
    %54 = vector.extract_strided_slice %53 {offsets = [0, 0, 0], sizes = [8, 16, 12], strides = [1, 1, 1]} : vector<8x18x12xf32> to vector<8x16x12xf32>
    %55 = vector.shape_cast %54 : vector<8x16x12xf32> to vector<128x12xf32>
    %c0_21 = arith.constant 0 : index
    %c0_22 = arith.constant 0 : index
    %c0_23 = arith.constant 0 : index
    %56 = vector.load %arg7[%c0_21, %c0_22, %c0_23] : memref<3x12x4xf32, #tpu.memory_space<vmem>>, vector<1x12x4xf32>
    %57 = vector.shape_cast %56 : vector<1x12x4xf32> to vector<12x4xf32>
    %cst_24 = arith.constant dense<0.000000e+00> : vector<128x4xf32>
    %58 = tpu.matmul %55, %57, %cst_24 {dimension_numbers = #tpu.dot_dimension_numbers<[1], [0], [0], [1], [0, 0, 1, 1], [], []>} : vector<128x12xf32>, vector<12x4xf32>, vector<128x4xf32> -> vector<128x4xf32>
    %59 = vector.extract_strided_slice %53 {offsets = [0, 1, 0], sizes = [8, 16, 12], strides = [1, 1, 1]} : vector<8x18x12xf32> to vector<8x16x12xf32>
    %60 = vector.shape_cast %59 : vector<8x16x12xf32> to vector<128x12xf32>
    %c1 = arith.constant 1 : index
    %c0_25 = arith.constant 0 : index
    %c0_26 = arith.constant 0 : index
    %61 = vector.load %arg7[%c1, %c0_25, %c0_26] : memref<3x12x4xf32, #tpu.memory_space<vmem>>, vector<1x12x4xf32>
    %62 = vector.shape_cast %61 : vector<1x12x4xf32> to vector<12x4xf32>
    %cst_27 = arith.constant dense<0.000000e+00> : vector<128x4xf32>
    %63 = tpu.matmul %60, %62, %cst_27 {dimension_numbers = #tpu.dot_dimension_numbers<[1], [0], [0], [1], [0, 0, 1, 1], [], []>} : vector<128x12xf32>, vector<12x4xf32>, vector<128x4xf32> -> vector<128x4xf32>
    %64 = arith.addf %58, %63 : vector<128x4xf32>
    %65 = vector.extract_strided_slice %53 {offsets = [0, 2, 0], sizes = [8, 16, 12], strides = [1, 1, 1]} : vector<8x18x12xf32> to vector<8x16x12xf32>
    %66 = vector.shape_cast %65 : vector<8x16x12xf32> to vector<128x12xf32>
    %c2 = arith.constant 2 : index
    %c0_28 = arith.constant 0 : index
    %c0_29 = arith.constant 0 : index
    %67 = vector.load %arg7[%c2, %c0_28, %c0_29] : memref<3x12x4xf32, #tpu.memory_space<vmem>>, vector<1x12x4xf32>
    %68 = vector.shape_cast %67 : vector<1x12x4xf32> to vector<12x4xf32>
    %cst_30 = arith.constant dense<0.000000e+00> : vector<128x4xf32>
    %69 = tpu.matmul %66, %68, %cst_30 {dimension_numbers = #tpu.dot_dimension_numbers<[1], [0], [0], [1], [0, 0, 1, 1], [], []>} : vector<128x12xf32>, vector<12x4xf32>, vector<128x4xf32> -> vector<128x4xf32>
    %70 = arith.addf %64, %69 : vector<128x4xf32>
    %c0_31 = arith.constant 0 : index
    %c0_32 = arith.constant 0 : index
    %71 = vector.load %arg8[%c0_31, %c0_32] : memref<1x4xf32, #tpu.memory_space<vmem>>, vector<1x4xf32>
    %72 = vector.broadcast %71 : vector<1x4xf32> to vector<128x4xf32>
    %73 = arith.addf %70, %72 : vector<128x4xf32>
    %c0_33 = arith.constant 0 : index
    %c0_34 = arith.constant 0 : index
    %c0_35 = arith.constant 0 : index
    %c0_36 = arith.constant 0 : index
    %74 = vector.load %arg9[%c0_33, %c0_34, %c0_35, %c0_36] : memref<1x8x16x4xf32, #tpu.memory_space<vmem>>, vector<1x8x16x4xf32>
    %75 = vector.shape_cast %74 : vector<1x8x16x4xf32> to vector<8x16x4xf32>
    %76 = vector.shape_cast %75 : vector<8x16x4xf32> to vector<128x4xf32>
    %77 = arith.addf %73, %76 : vector<128x4xf32>
    %cst_37 = arith.constant 1.000000e+00 : f32
    %78 = vector.broadcast %cst_37 : f32 to vector<128x4xf32>
    %79 = arith.mulf %77, %78 : vector<128x4xf32>
    %80 = vector.shape_cast %79 : vector<128x4xf32> to vector<8x16x4xf32>
    %c0_38 = arith.constant 0 : index
    %c0_39 = arith.constant 0 : index
    %c0_40 = arith.constant 0 : index
    %c0_41 = arith.constant 0 : index
    %81 = vector.load %arg10[%c0_38, %c0_39, %c0_40, %c0_41] : memref<1x8x16x4xf32, #tpu.memory_space<vmem>>, vector<1x8x16x4xf32>
    %82 = vector.shape_cast %81 : vector<1x8x16x4xf32> to vector<8x16x4xf32>
    %83 = vector.shape_cast %80 : vector<8x16x4xf32> to vector<1x8x16x4xf32>
    tpu.vector_store %arg10[%c0_38, %c0_39, %c0_40, %c0_41], %83 {strides = array<i32>} : memref<1x8x16x4xf32, #tpu.memory_space<vmem>>, vector<1x8x16x4xf32>,
    return
  }
  func.func @transform_0(%arg0: i32, %arg1: i32) -> (i32, i32, i32, i32) {
    %c8_i32 = arith.constant 8 : i32
    %0 = arith.muli %arg1, %c8_i32 : i32
    %c1_i32 = arith.constant 1 : i32
    %1 = arith.subi %0, %c1_i32 : i32
    %c0_i32 = arith.constant 0 : i32
    %2 = arith.maxsi %1, %c0_i32 : i32
    %c0_i32_0 = arith.constant 0 : i32
    %c0_i32_1 = arith.constant 0 : i32
    %c0_i32_2 = arith.constant 0 : i32
    return %arg0, %2, %c0_i32_0, %c0_i32_1 : i32, i32, i32, i32
  }
  func.func @transform_1(%arg0: i32, %arg1: i32) -> (i32, i32, i32, i32) {
    %c0_i32 = arith.constant 0 : i32
    %c0_i32_0 = arith.constant 0 : i32
    %c0_i32_1 = arith.constant 0 : i32
    return %arg0, %arg1, %c0_i32, %c0_i32_0 : i32, i32, i32, i32
  }
  func.func @transform_2(%arg0: i32, %arg1: i32) -> (i32, i32, i32, i32) {
    %c8_i32 = arith.constant 8 : i32
    %0 = arith.muli %arg1, %c8_i32 : i32
    %c8_i32_0 = arith.constant 8 : i32
    %1 = arith.addi %0, %c8_i32_0 : i32
    %c15_i32 = arith.constant 15 : i32
    %2 = arith.minsi %1, %c15_i32 : i32
    %c0_i32 = arith.constant 0 : i32
    %c0_i32_1 = arith.constant 0 : i32
    %c0_i32_2 = arith.constant 0 : i32
    return %arg0, %2, %c0_i32, %c0_i32_1 : i32, i32, i32, i32
  }
  func.func @transform_3(%arg0: i32, %arg1: i32) -> (i32, i32, i32) {
    %c0_i32 = arith.constant 0 : i32
    %c0_i32_0 = arith.constant 0 : i32
    %c0_i32_1 = arith.constant 0 : i32
    return %arg0, %c0_i32, %c0_i32_0 : i32, i32, i32
  }
  func.func @transform_4(%arg0: i32, %arg1: i32) -> (i32, i32, i32) {
    %c0_i32 = arith.constant 0 : i32
    %c0_i32_0 = arith.constant 0 : i32
    %c0_i32_1 = arith.constant 0 : i32
    return %arg0, %c0_i32, %c0_i32_0 : i32, i32, i32
  }
  func.func @transform_5(%arg0: i32, %arg1: i32) -> (i32, i32, i32) {
    %c0_i32 = arith.constant 0 : i32
    %c0_i32_0 = arith.constant 0 : i32
    %c0_i32_1 = arith.constant 0 : i32
    %c0_i32_2 = arith.constant 0 : i32
    return %c0_i32, %c0_i32_0, %c0_i32_1 : i32, i32, i32
  }
  func.func @transform_6(%arg0: i32, %arg1: i32) -> (i32, i32) {
    %c0_i32 = arith.constant 0 : i32
    %c0_i32_0 = arith.constant 0 : i32
    %c0_i32_1 = arith.constant 0 : i32
    return %c0_i32, %c0_i32_0 : i32, i32
  }
  func.func @transform_7(%arg0: i32, %arg1: i32) -> (i32, i32, i32, i32) {
    %c0_i32 = arith.constant 0 : i32
    %c0_i32_0 = arith.constant 0 : i32
    %c0_i32_1 = arith.constant 0 : i32
    return %arg0, %arg1, %c0_i32, %c0_i32_0 : i32, i32, i32, i32
  }
  func.func @transform_8(%arg0: i32, %arg1: i32) -> (i32, i32, i32, i32) {
    %c0_i32 = arith.constant 0 : i32
    %c0_i32_0 = arith.constant 0 : i32
    %c0_i32_1 = arith.constant 0 : i32
    return %arg0, %arg1, %c0_i32, %c0_i32_0 : i32, i32, i32, i32
  }
}

module attributes {stable_mosaic.version = 11 : i64} {
  func.func @_upsample_conv3x3_kernel(%arg0: i32, %arg1: i32, %arg2: memref<1x1x16x4xf32, #tpu.memory_space<vmem>>, %arg3: memref<1x8x16x4xf32, #tpu.memory_space<vmem>>, %arg4: memref<1x1x16x4xf32, #tpu.memory_space<vmem>>, %arg5: memref<2x2x2x8x4xf32, #tpu.memory_space<vmem>>, %arg6: memref<1x4xf32, #tpu.memory_space<vmem>>, %arg7: memref<1x8x2x16x8xf32, #tpu.memory_space<vmem>>) attributes {dimension_semantics = [#tpu.dimension_semantics<parallel>, #tpu.dimension_semantics<parallel>], iteration_bounds = array<i64: 2, 2>, scalar_prefetch = 0 : i64, scratch_operands = 0 : i64, tpu.core_type = #tpu.core_type<tc>, window_params = [{transform_indices = @transform_0, window_bounds = array<i64: 1, 1, 16, 4>}, {transform_indices = @transform_1, window_bounds = array<i64: 1, 8, 16, 4>}, {transform_indices = @transform_2, window_bounds = array<i64: 1, 1, 16, 4>}, {pipeline_mode = #tpu.pipeline_mode<synchronous>, transform_indices = @transform_3, window_bounds = array<i64: 2, 2, 2, 8, 4>}, {pipeline_mode = #tpu.pipeline_mode<synchronous>, transform_indices = @transform_4, window_bounds = array<i64: 1, 4>}, {transform_indices = @transform_5, window_bounds = array<i64: 1, 8, 2, 16, 8>}]} {
    %cst = arith.constant 0.000000e+00 : f32
    %0 = vector.broadcast %cst : f32 to vector<1x16x4xf32>
    %c0_i32 = arith.constant 0 : i32
    %1 = arith.cmpi sgt, %arg1, %c0_i32 : i32
    %c0 = arith.constant 0 : index
    %c0_0 = arith.constant 0 : index
    %c0_1 = arith.constant 0 : index
    %c0_2 = arith.constant 0 : index
    %2 = vector.load %arg2[%c0, %c0_0, %c0_1, %c0_2] : memref<1x1x16x4xf32, #tpu.memory_space<vmem>>, vector<1x1x16x4xf32>
    %3 = vector.shape_cast %2 : vector<1x1x16x4xf32> to vector<1x16x4xf32>
    %4 = arith.select %1, %3, %0 : vector<1x16x4xf32>
    %c0_3 = arith.constant 0 : index
    %c0_4 = arith.constant 0 : index
    %c0_5 = arith.constant 0 : index
    %c0_6 = arith.constant 0 : index
    %5 = vector.load %arg3[%c0_3, %c0_4, %c0_5, %c0_6] : memref<1x8x16x4xf32, #tpu.memory_space<vmem>>, vector<1x8x16x4xf32>
    %6 = vector.shape_cast %5 : vector<1x8x16x4xf32> to vector<8x16x4xf32>
    %c1_i32 = arith.constant 1 : i32
    %7 = arith.cmpi slt, %arg1, %c1_i32 : i32
    %c0_7 = arith.constant 0 : index
    %c0_8 = arith.constant 0 : index
    %c0_9 = arith.constant 0 : index
    %c0_10 = arith.constant 0 : index
    %8 = vector.load %arg4[%c0_7, %c0_8, %c0_9, %c0_10] : memref<1x1x16x4xf32, #tpu.memory_space<vmem>>, vector<1x1x16x4xf32>
    %9 = vector.shape_cast %8 : vector<1x1x16x4xf32> to vector<1x16x4xf32>
    %10 = arith.select %7, %9, %0 : vector<1x16x4xf32>
    %11 = tpu.concatenate %4, %6, %10 in 0 : vector<1x16x4xf32>, vector<8x16x4xf32>, vector<1x16x4xf32> -> vector<10x16x4xf32>
    %cst_11 = arith.constant 0.000000e+00 : f32
    %12 = vector.broadcast %cst_11 : f32 to vector<10x1x4xf32>
    %13 = tpu.concatenate %12, %11, %12 in 1 : vector<10x1x4xf32>, vector<10x16x4xf32>, vector<10x1x4xf32> -> vector<10x18x4xf32>
    %c0_12 = arith.constant 0 : index
    %c0_13 = arith.constant 0 : index
    %14 = vector.load %arg6[%c0_12, %c0_13] : memref<1x4xf32, #tpu.memory_space<vmem>>, vector<1x4xf32>
    %15 = vector.extract_strided_slice %13 {offsets = [0, 0, 0], sizes = [8, 18, 4], strides = [1, 1, 1]} : vector<10x18x4xf32> to vector<8x18x4xf32>
    %16 = vector.extract_strided_slice %13 {offsets = [1, 0, 0], sizes = [8, 18, 4], strides = [1, 1, 1]} : vector<10x18x4xf32> to vector<8x18x4xf32>
    %17 = tpu.concatenate %15, %16 in 2 : vector<8x18x4xf32>, vector<8x18x4xf32> -> vector<8x18x8xf32>
    %18 = vector.extract_strided_slice %17 {offsets = [0, 0, 0], sizes = [8, 16, 8], strides = [1, 1, 1]} : vector<8x18x8xf32> to vector<8x16x8xf32>
    %19 = vector.shape_cast %18 : vector<8x16x8xf32> to vector<128x8xf32>
    %c0_14 = arith.constant 0 : index
    %c0_15 = arith.constant 0 : index
    %c0_16 = arith.constant 0 : index
    %c0_17 = arith.constant 0 : index
    %c0_18 = arith.constant 0 : index
    %20 = vector.load %arg5[%c0_14, %c0_15, %c0_16, %c0_17, %c0_18] : memref<2x2x2x8x4xf32, #tpu.memory_space<vmem>>, vector<1x1x1x8x4xf32>
    %21 = vector.shape_cast %20 : vector<1x1x1x8x4xf32> to vector<8x4xf32>
    %cst_19 = arith.constant dense<0.000000e+00> : vector<128x4xf32>
    %22 = tpu.matmul %19, %21, %cst_19 {dimension_numbers = #tpu.dot_dimension_numbers<[1], [0], [0], [1], [0, 0, 1, 1], [], []>} : vector<128x8xf32>, vector<8x4xf32>, vector<128x4xf32> -> vector<128x4xf32>
    %23 = vector.extract_strided_slice %17 {offsets = [0, 1, 0], sizes = [8, 16, 8], strides = [1, 1, 1]} : vector<8x18x8xf32> to vector<8x16x8xf32>
    %24 = vector.shape_cast %23 : vector<8x16x8xf32> to vector<128x8xf32>
    %c0_20 = arith.constant 0 : index
    %c0_21 = arith.constant 0 : index
    %c1 = arith.constant 1 : index
    %c0_22 = arith.constant 0 : index
    %c0_23 = arith.constant 0 : index
    %25 = vector.load %arg5[%c0_20, %c0_21, %c1, %c0_22, %c0_23] : memref<2x2x2x8x4xf32, #tpu.memory_space<vmem>>, vector<1x1x1x8x4xf32>
    %26 = vector.shape_cast %25 : vector<1x1x1x8x4xf32> to vector<8x4xf32>
    %cst_24 = arith.constant dense<0.000000e+00> : vector<128x4xf32>
    %27 = tpu.matmul %24, %26, %cst_24 {dimension_numbers = #tpu.dot_dimension_numbers<[1], [0], [0], [1], [0, 0, 1, 1], [], []>} : vector<128x8xf32>, vector<8x4xf32>, vector<128x4xf32> -> vector<128x4xf32>
    %28 = arith.addf %22, %27 : vector<128x4xf32>
    %29 = vector.broadcast %14 : vector<1x4xf32> to vector<128x4xf32>
    %30 = arith.addf %28, %29 : vector<128x4xf32>
    %31 = vector.shape_cast %30 : vector<128x4xf32> to vector<8x16x4xf32>
    %c0_25 = arith.constant 0 : index
    %c0_26 = arith.constant 0 : index
    %c0_27 = arith.constant 0 : index
    %c0_28 = arith.constant 0 : index
    %c0_29 = arith.constant 0 : index
    %32 = vector.load %arg7[%c0_25, %c0_26, %c0_27, %c0_28, %c0_29] : memref<1x8x2x16x8xf32, #tpu.memory_space<vmem>>, vector<1x8x1x16x4xf32>
    %33 = vector.shape_cast %32 : vector<1x8x1x16x4xf32> to vector<8x16x4xf32>
    %34 = vector.shape_cast %31 : vector<8x16x4xf32> to vector<1x8x1x16x4xf32>
    tpu.vector_store %arg7[%c0_25, %c0_26, %c0_27, %c0_28, %c0_29], %34 {strides = array<i32>} : memref<1x8x2x16x8xf32, #tpu.memory_space<vmem>>, vector<1x8x1x16x4xf32>,
    %35 = vector.extract_strided_slice %17 {offsets = [0, 1, 0], sizes = [8, 16, 8], strides = [1, 1, 1]} : vector<8x18x8xf32> to vector<8x16x8xf32>
    %36 = vector.shape_cast %35 : vector<8x16x8xf32> to vector<128x8xf32>
    %c0_30 = arith.constant 0 : index
    %c1_31 = arith.constant 1 : index
    %c0_32 = arith.constant 0 : index
    %c0_33 = arith.constant 0 : index
    %c0_34 = arith.constant 0 : index
    %37 = vector.load %arg5[%c0_30, %c1_31, %c0_32, %c0_33, %c0_34] : memref<2x2x2x8x4xf32, #tpu.memory_space<vmem>>, vector<1x1x1x8x4xf32>
    %38 = vector.shape_cast %37 : vector<1x1x1x8x4xf32> to vector<8x4xf32>
    %cst_35 = arith.constant dense<0.000000e+00> : vector<128x4xf32>
    %39 = tpu.matmul %36, %38, %cst_35 {dimension_numbers = #tpu.dot_dimension_numbers<[1], [0], [0], [1], [0, 0, 1, 1], [], []>} : vector<128x8xf32>, vector<8x4xf32>, vector<128x4xf32> -> vector<128x4xf32>
    %40 = vector.extract_strided_slice %17 {offsets = [0, 2, 0], sizes = [8, 16, 8], strides = [1, 1, 1]} : vector<8x18x8xf32> to vector<8x16x8xf32>
    %41 = vector.shape_cast %40 : vector<8x16x8xf32> to vector<128x8xf32>
    %c0_36 = arith.constant 0 : index
    %c1_37 = arith.constant 1 : index
    %c1_38 = arith.constant 1 : index
    %c0_39 = arith.constant 0 : index
    %c0_40 = arith.constant 0 : index
    %42 = vector.load %arg5[%c0_36, %c1_37, %c1_38, %c0_39, %c0_40] : memref<2x2x2x8x4xf32, #tpu.memory_space<vmem>>, vector<1x1x1x8x4xf32>
    %43 = vector.shape_cast %42 : vector<1x1x1x8x4xf32> to vector<8x4xf32>
    %cst_41 = arith.constant dense<0.000000e+00> : vector<128x4xf32>
    %44 = tpu.matmul %41, %43, %cst_41 {dimension_numbers = #tpu.dot_dimension_numbers<[1], [0], [0], [1], [0, 0, 1, 1], [], []>} : vector<128x8xf32>, vector<8x4xf32>, vector<128x4xf32> -> vector<128x4xf32>
    %45 = arith.addf %39, %44 : vector<128x4xf32>
    %46 = vector.broadcast %14 : vector<1x4xf32> to vector<128x4xf32>
    %47 = arith.addf %45, %46 : vector<128x4xf32>
    %48 = vector.shape_cast %47 : vector<128x4xf32> to vector<8x16x4xf32>
    %c0_42 = arith.constant 0 : index
    %c0_43 = arith.constant 0 : index
    %c0_44 = arith.constant 0 : index
    %c0_45 = arith.constant 0 : index
    %c4 = arith.constant 4 : index
    %49 = vector.load %arg7[%c0_42, %c0_43, %c0_44, %c0_45, %c4] : memref<1x8x2x16x8xf32, #tpu.memory_space<vmem>>, vector<1x8x1x16x4xf32>
    %50 = vector.shape_cast %49 : vector<1x8x1x16x4xf32> to vector<8x16x4xf32>
    %51 = vector.shape_cast %48 : vector<8x16x4xf32> to vector<1x8x1x16x4xf32>
    tpu.vector_store %arg7[%c0_42, %c0_43, %c0_44, %c0_45, %c4], %51 {strides = array<i32>} : memref<1x8x2x16x8xf32, #tpu.memory_space<vmem>>, vector<1x8x1x16x4xf32>,
    %52 = vector.extract_strided_slice %13 {offsets = [1, 0, 0], sizes = [8, 18, 4], strides = [1, 1, 1]} : vector<10x18x4xf32> to vector<8x18x4xf32>
    %53 = vector.extract_strided_slice %13 {offsets = [2, 0, 0], sizes = [8, 18, 4], strides = [1, 1, 1]} : vector<10x18x4xf32> to vector<8x18x4xf32>
    %54 = tpu.concatenate %52, %53 in 2 : vector<8x18x4xf32>, vector<8x18x4xf32> -> vector<8x18x8xf32>
    %55 = vector.extract_strided_slice %54 {offsets = [0, 0, 0], sizes = [8, 16, 8], strides = [1, 1, 1]} : vector<8x18x8xf32> to vector<8x16x8xf32>
    %56 = vector.shape_cast %55 : vector<8x16x8xf32> to vector<128x8xf32>
    %c1_46 = arith.constant 1 : index
    %c0_47 = arith.constant 0 : index
    %c0_48 = arith.constant 0 : index
    %c0_49 = arith.constant 0 : index
    %c0_50 = arith.constant 0 : index
    %57 = vector.load %arg5[%c1_46, %c0_47, %c0_48, %c0_49, %c0_50] : memref<2x2x2x8x4xf32, #tpu.memory_space<vmem>>, vector<1x1x1x8x4xf32>
    %58 = vector.shape_cast %57 : vector<1x1x1x8x4xf32> to vector<8x4xf32>
    %cst_51 = arith.constant dense<0.000000e+00> : vector<128x4xf32>
    %59 = tpu.matmul %56, %58, %cst_51 {dimension_numbers = #tpu.dot_dimension_numbers<[1], [0], [0], [1], [0, 0, 1, 1], [], []>} : vector<128x8xf32>, vector<8x4xf32>, vector<128x4xf32> -> vector<128x4xf32>
    %60 = vector.extract_strided_slice %54 {offsets = [0, 1, 0], sizes = [8, 16, 8], strides = [1, 1, 1]} : vector<8x18x8xf32> to vector<8x16x8xf32>
    %61 = vector.shape_cast %60 : vector<8x16x8xf32> to vector<128x8xf32>
    %c1_52 = arith.constant 1 : index
    %c0_53 = arith.constant 0 : index
    %c1_54 = arith.constant 1 : index
    %c0_55 = arith.constant 0 : index
    %c0_56 = arith.constant 0 : index
    %62 = vector.load %arg5[%c1_52, %c0_53, %c1_54, %c0_55, %c0_56] : memref<2x2x2x8x4xf32, #tpu.memory_space<vmem>>, vector<1x1x1x8x4xf32>
    %63 = vector.shape_cast %62 : vector<1x1x1x8x4xf32> to vector<8x4xf32>
    %cst_57 = arith.constant dense<0.000000e+00> : vector<128x4xf32>
    %64 = tpu.matmul %61, %63, %cst_57 {dimension_numbers = #tpu.dot_dimension_numbers<[1], [0], [0], [1], [0, 0, 1, 1], [], []>} : vector<128x8xf32>, vector<8x4xf32>, vector<128x4xf32> -> vector<128x4xf32>
    %65 = arith.addf %59, %64 : vector<128x4xf32>
    %66 = vector.broadcast %14 : vector<1x4xf32> to vector<128x4xf32>
    %67 = arith.addf %65, %66 : vector<128x4xf32>
    %68 = vector.shape_cast %67 : vector<128x4xf32> to vector<8x16x4xf32>
    %c0_58 = arith.constant 0 : index
    %c0_59 = arith.constant 0 : index
    %c1_60 = arith.constant 1 : index
    %c0_61 = arith.constant 0 : index
    %c0_62 = arith.constant 0 : index
    %69 = vector.load %arg7[%c0_58, %c0_59, %c1_60, %c0_61, %c0_62] : memref<1x8x2x16x8xf32, #tpu.memory_space<vmem>>, vector<1x8x1x16x4xf32>
    %70 = vector.shape_cast %69 : vector<1x8x1x16x4xf32> to vector<8x16x4xf32>
    %71 = vector.shape_cast %68 : vector<8x16x4xf32> to vector<1x8x1x16x4xf32>
    tpu.vector_store %arg7[%c0_58, %c0_59, %c1_60, %c0_61, %c0_62], %71 {strides = array<i32>} : memref<1x8x2x16x8xf32, #tpu.memory_space<vmem>>, vector<1x8x1x16x4xf32>,
    %72 = vector.extract_strided_slice %54 {offsets = [0, 1, 0], sizes = [8, 16, 8], strides = [1, 1, 1]} : vector<8x18x8xf32> to vector<8x16x8xf32>
    %73 = vector.shape_cast %72 : vector<8x16x8xf32> to vector<128x8xf32>
    %c1_63 = arith.constant 1 : index
    %c1_64 = arith.constant 1 : index
    %c0_65 = arith.constant 0 : index
    %c0_66 = arith.constant 0 : index
    %c0_67 = arith.constant 0 : index
    %74 = vector.load %arg5[%c1_63, %c1_64, %c0_65, %c0_66, %c0_67] : memref<2x2x2x8x4xf32, #tpu.memory_space<vmem>>, vector<1x1x1x8x4xf32>
    %75 = vector.shape_cast %74 : vector<1x1x1x8x4xf32> to vector<8x4xf32>
    %cst_68 = arith.constant dense<0.000000e+00> : vector<128x4xf32>
    %76 = tpu.matmul %73, %75, %cst_68 {dimension_numbers = #tpu.dot_dimension_numbers<[1], [0], [0], [1], [0, 0, 1, 1], [], []>} : vector<128x8xf32>, vector<8x4xf32>, vector<128x4xf32> -> vector<128x4xf32>
    %77 = vector.extract_strided_slice %54 {offsets = [0, 2, 0], sizes = [8, 16, 8], strides = [1, 1, 1]} : vector<8x18x8xf32> to vector<8x16x8xf32>
    %78 = vector.shape_cast %77 : vector<8x16x8xf32> to vector<128x8xf32>
    %c1_69 = arith.constant 1 : index
    %c1_70 = arith.constant 1 : index
    %c1_71 = arith.constant 1 : index
    %c0_72 = arith.constant 0 : index
    %c0_73 = arith.constant 0 : index
    %79 = vector.load %arg5[%c1_69, %c1_70, %c1_71, %c0_72, %c0_73] : memref<2x2x2x8x4xf32, #tpu.memory_space<vmem>>, vector<1x1x1x8x4xf32>
    %80 = vector.shape_cast %79 : vector<1x1x1x8x4xf32> to vector<8x4xf32>
    %cst_74 = arith.constant dense<0.000000e+00> : vector<128x4xf32>
    %81 = tpu.matmul %78, %80, %cst_74 {dimension_numbers = #tpu.dot_dimension_numbers<[1], [0], [0], [1], [0, 0, 1, 1], [], []>} : vector<128x8xf32>, vector<8x4xf32>, vector<128x4xf32> -> vector<128x4xf32>
    %82 = arith.addf %76, %81 : vector<128x4xf32>
    %83 = vector.broadcast %14 : vector<1x4xf32> to vector<128x4xf32>
    %84 = arith.addf %82, %83 : vector<128x4xf32>
    %85 = vector.shape_cast %84 : vector<128x4xf32> to vector<8x16x4xf32>
    %c0_75 = arith.constant 0 : index
    %c0_76 = arith.constant 0 : index
    %c1_77 = arith.constant 1 : index
    %c0_78 = arith.constant 0 : index
    %c4_79 = arith.constant 4 : index
    %86 = vector.load %arg7[%c0_75, %c0_76, %c1_77, %c0_78, %c4_79] : memref<1x8x2x16x8xf32, #tpu.memory_space<vmem>>, vector<1x8x1x16x4xf32>
    %87 = vector.shape_cast %86 : vector<1x8x1x16x4xf32> to vector<8x16x4xf32>
    %88 = vector.shape_cast %85 : vector<8x16x4xf32> to vector<1x8x1x16x4xf32>
    tpu.vector_store %arg7[%c0_75, %c0_76, %c1_77, %c0_78, %c4_79], %88 {strides = array<i32>} : memref<1x8x2x16x8xf32, #tpu.memory_space<vmem>>, vector<1x8x1x16x4xf32>,
    return
  }
  func.func @transform_0(%arg0: i32, %arg1: i32) -> (i32, i32, i32, i32) {
    %c8_i32 = arith.constant 8 : i32
    %0 = arith.muli %arg1, %c8_i32 : i32
    %c1_i32 = arith.constant 1 : i32
    %1 = arith.subi %0, %c1_i32 : i32
    %c0_i32 = arith.constant 0 : i32
    %2 = arith.maxsi %1, %c0_i32 : i32
    %c0_i32_0 = arith.constant 0 : i32
    %c0_i32_1 = arith.constant 0 : i32
    %c0_i32_2 = arith.constant 0 : i32
    return %arg0, %2, %c0_i32_0, %c0_i32_1 : i32, i32, i32, i32
  }
  func.func @transform_1(%arg0: i32, %arg1: i32) -> (i32, i32, i32, i32) {
    %c0_i32 = arith.constant 0 : i32
    %c0_i32_0 = arith.constant 0 : i32
    %c0_i32_1 = arith.constant 0 : i32
    return %arg0, %arg1, %c0_i32, %c0_i32_0 : i32, i32, i32, i32
  }
  func.func @transform_2(%arg0: i32, %arg1: i32) -> (i32, i32, i32, i32) {
    %c8_i32 = arith.constant 8 : i32
    %0 = arith.muli %arg1, %c8_i32 : i32
    %c8_i32_0 = arith.constant 8 : i32
    %1 = arith.addi %0, %c8_i32_0 : i32
    %c15_i32 = arith.constant 15 : i32
    %2 = arith.minsi %1, %c15_i32 : i32
    %c0_i32 = arith.constant 0 : i32
    %c0_i32_1 = arith.constant 0 : i32
    %c0_i32_2 = arith.constant 0 : i32
    return %arg0, %2, %c0_i32, %c0_i32_1 : i32, i32, i32, i32
  }
  func.func @transform_3(%arg0: i32, %arg1: i32) -> (i32, i32, i32, i32, i32) {
    %c0_i32 = arith.constant 0 : i32
    %c0_i32_0 = arith.constant 0 : i32
    %c0_i32_1 = arith.constant 0 : i32
    %c0_i32_2 = arith.constant 0 : i32
    %c0_i32_3 = arith.constant 0 : i32
    %c0_i32_4 = arith.constant 0 : i32
    return %c0_i32, %c0_i32_0, %c0_i32_1, %c0_i32_2, %c0_i32_3 : i32, i32, i32, i32, i32
  }
  func.func @transform_4(%arg0: i32, %arg1: i32) -> (i32, i32) {
    %c0_i32 = arith.constant 0 : i32
    %c0_i32_0 = arith.constant 0 : i32
    %c0_i32_1 = arith.constant 0 : i32
    return %c0_i32, %c0_i32_0 : i32, i32
  }
  func.func @transform_5(%arg0: i32, %arg1: i32) -> (i32, i32, i32, i32, i32) {
    %c0_i32 = arith.constant 0 : i32
    %c0_i32_0 = arith.constant 0 : i32
    %c0_i32_1 = arith.constant 0 : i32
    %c0_i32_2 = arith.constant 0 : i32
    return %arg0, %arg1, %c0_i32, %c0_i32_0, %c0_i32_1 : i32, i32, i32, i32, i32
  }
}

</mosaic_0001>

<bundles_post_ra>
// kernel: up_decoder_block_2d.6
= control target key start
LH: loop header
LB: loop body
LE: loop exit
PB: predicated region body
PF: predicated region fallthrough
CT: control target
= control target key end

     0   :  { %s502_s9 = smov 0   ;;  %s504_s10 = smov 0   ;;  %s616_s0 = inlined_call_operand.vmem [shape: f32[2,16,16,8], index: 0, kind: input, shape index: {}]   ;;  %s617_s1 = inlined_call_operand.vmem [shape: f32[2,1,8], index: 1, kind: output, shape index: {0}]   ;;  %s618_s2 = inlined_call_operand.vmem [shape: f32[2,1,8], index: 2, kind: output, shape index: {1}]  }
   0x1   :  { %s506_s11 = smov 0   ;;  %s508_s12 = smov 0  }
   0x2   :  { %s510_s13 = smov 0  }
   0x3 LB: > { %s22_s14 = sadd.s32 1, %s476_s11  ;;  %s25_s15 = sadd.s32 1, %s480_s12  ;;  %s484_s13 = sphi %s510_s13, %s13_s13   ;;  %s480_s12 = sphi %s508_s12, %s622_s12   ;;  %s476_s11 = sphi %s506_s11, %s621_s11   ;;  %s472_s10 = sphi %s504_s10, %s620_s10   ;;  %s468_s9 = sphi %s502_s9, %s619_s9  }
   0x4   : > { %p23_p0 = scmp.ge.s32.totalorder %s22_s14, 2  ;;  %p397_p1 = scmp.ge.s32.totalorder %s484_s13, 1 }
   0x5   : > { %p135_p2 = scmp.lt.s32.totalorder %s484_s13, 5 }
   0x6   : > { %s624_s14 = smov (%p23_p0, %s22_s14), 0  ;;  %s626_s15 = smov (!%p23_p0, %s25_s15), %s480_s12 }
   0x7   : > { %p136_p3 = pnand %p397_p1, %p135_p2  ;;  %p27_p4 = scmp.ge.s32.totalorder %s626_s15, 2 }
   0x8   : > { %s398_s16 = sshll.u32 (!%p136_p3), %s468_s9, 3  ;;  %p164_p5 = scmp.lt.s32.totalorder (!%p136_p3), %s472_s10, 1 }
   0x9   : > { %s628_s15 = smov (%p27_p4, %s626_s15), 0  ;;  %139 = sbr.rel (%p136_p3) target bundleno = 74 (0x4a), region = 24 }
   0xa   : > { %p166_p6 = scmp.lt.s32.totalorder (!%p136_p3), %s398_s16, 15  ;;  %p402_p7 = scmp.ne.s32.totalorder (!%p136_p3), %s468_s9, 0 }
   0xe   : > { %s630_s10 = smov (!%p164_p5, %s472_s10), 1  ;;  %s632_s16 = smov (!%p166_p6, %s398_s16), 15 }
   0xf   : > { %s400_s17 = sshll.u32 %s630_s10, 5  ;;  %s535_s20 = scalar_lea.vmem %s617_s1, %s630_s10 }
  0x10   : > { %s399_s21 = sshll.u32 %s632_s16, 1  ;;  %s540_s24 = scalar_lea.vmem %s618_s2, %s630_s10 }
  0x11   : > { %s170_s25 = sadd.s32 %s400_s17, %s399_s21  ;;  %183 = sbr.rel (%p402_p7) target bundleno = 24 (0x18), region = 28 }
  0x12   : > { %s401_s26 = sshll.u32 %s170_s25, 3 }
  0x13   : > { %s545_s29 = scalar_lea.vmem %s616_s0, %s401_s26 }
  0x16   : > { %vm184_vm0 = vcmask 57344   ;;  %v486_v0 = vmov 0.0  }
  0x17   : > { %185 = vst.msk [vmem:[%s535_s20] sm:$0x1] %vm184_vm0, %v486_v0  ;;  %186 = vst.msk [vmem:[%s540_s24] sm:$0x1] %vm184_vm0, %v486_v0 }
  0x18 PF: > { %v187_v1 = vld [vmem:[%s545_s29] sm:$0xff]  ;;  %v188_v2 = vld [vmem:[%s545_s29 + $0x8] sm:$0xff]  ;;  %v189_v3 = vld [vmem:[%s545_s29 + $0x10] sm:$0xff]  ;;  %vm204_vm1 = vcmask 64512   ;;  %vm243_vm2 = vcmask 57344  }
  0x19   : > { %v205_v4 = vsel %vm204_vm1, %v187_v1, 0.0  ;;  %v206_v5 = vsel %vm204_vm1, %v188_v2, 0.0  ;;  %v208_v6 = vsel %vm204_vm1, %v189_v3, 0.0  ;;  %v190_v7 = vld [vmem:[%s545_s29 + $0x18] sm:$0xff]  ;;  %v191_v10 = vld [vmem:[%s545_s29 + $0x20] sm:$0xff]  ;;  %v192_v13 = vld [vmem:[%s545_s29 + $0x28] sm:$0xff]  ;;  %v246_v15 = vmul.f32 %v187_v1, %v187_v1 }
  0x1a   : > { %v207_v8 = vadd.f32 %v206_v5, %v205_v4  ;;  %v210_v9 = vsel %vm204_vm1, %v190_v7, 0.0  ;;  %v212_v12 = vsel %vm204_vm1, %v191_v10, 0.0  ;;  %v247_v16 = vmul.f32 %v188_v2, %v188_v2  ;;  %v193_v19 = vld [vmem:[%s545_s29 + $0x30] sm:$0xff]  ;;  %v194_v24 = vld [vmem:[%s545_s29 + $0x38] sm:$0xff]  ;;  %v195_v31 = vld [vmem:[%s545_s29 + $0x40] sm:$0xff] }
  0x1b   : > { %v248_v17 = vmul.f32 %v189_v3, %v189_v3  ;;  %v214_v18 = vsel %vm204_vm1, %v192_v13, 0.0  ;;  %v249_v21 = vmul.f32 %v190_v7, %v190_v7  ;;  %v216_v22 = vsel %vm204_vm1, %v193_v19, 0.0  ;;  %v196_v37 = vld [vmem:[%s545_s29 + $0x48] sm:$0xff]  ;;  %v197_v43 = vld [vmem:[%s545_s29 + $0x50] sm:$0xff]  ;;  %v198_v49 = vld [vmem:[%s545_s29 + $0x58] sm:$0xff] }
  0x1c   : > { %v209_v11 = vadd.f32 %v208_v6, %v207_v8  ;;  %v250_v23 = vmul.f32 %v191_v10, %v191_v10  ;;  %v262_v26 = vsel %vm204_vm1, %v246_v15, 0.0  ;;  %v263_v27 = vsel %vm204_vm1, %v247_v16, 0.0  ;;  %v199_v55 = vld [vmem:[%s545_s29 + $0x60] sm:$0xff]  ;;  %v200_v61 = vld [vmem:[%s545_s29 + $0x68] sm:$0xff]  ;;  %v201_v3 = vld [vmem:[%s545_s29 + $0x70] sm:$0xff] }
  0x1d   : > { %v265_v28 = vsel %vm204_vm1, %v248_v17, 0.0  ;;  %v218_v29 = vsel %vm204_vm1, %v194_v24, 0.0  ;;  %v264_v30 = vadd.f32 %v263_v27, %v262_v26  ;;  %v251_v33 = vmul.f32 %v192_v13, %v192_v13 }
  0x1e   : > { %v211_v14 = vadd.f32 %v210_v9, %v209_v11  ;;  %v267_v34 = vsel %vm204_vm1, %v249_v21, 0.0  ;;  %v220_v35 = vsel %vm204_vm1, %v195_v31, 0.0  ;;  %v252_v39 = vmul.f32 %v193_v19, %v193_v19  ;;  %v202_v9 = vld [vmem:[%s545_s29 + $0x78] sm:$0xff] }
  0x1f   : > { %v266_v36 = vadd.f32 %v265_v28, %v264_v30  ;;  %v269_v40 = vsel %vm204_vm1, %v250_v23, 0.0  ;;  %v222_v41 = vsel %vm204_vm1, %v196_v37, 0.0  ;;  %v253_v45 = vmul.f32 %v194_v24, %v194_v24 }
  0x20   : > { %v213_v20 = vadd.f32 %v212_v12, %v211_v14  ;;  %v271_v46 = vsel %vm204_vm1, %v251_v33, 0.0  ;;  %v224_v47 = vsel %vm204_vm1, %v197_v43, 0.0  ;;  %v254_v51 = vmul.f32 %v195_v31, %v195_v31 }
  0x21   : > { %v268_v42 = vadd.f32 %v267_v34, %v266_v36  ;;  %v273_v52 = vsel %vm204_vm1, %v252_v39, 0.0  ;;  %v226_v53 = vsel %vm204_vm1, %v198_v49, 0.0  ;;  %v255_v57 = vmul.f32 %v196_v37, %v196_v37  ;;  %v203_v36 = vld [vmem:[%s535_s20] sm:$0x1] }
  0x22   : > { %v215_v25 = vadd.f32 %v214_v18, %v213_v20  ;;  %v275_v58 = vsel %vm204_vm1, %v253_v45, 0.0  ;;  %v228_v59 = vsel %vm204_vm1, %v199_v55, 0.0  ;;  %v256_v63 = vmul.f32 %v197_v43, %v197_v43 }
  0x23   : > { %v270_v48 = vadd.f32 %v269_v40, %v268_v42  ;;  %v277_v0 = vsel %vm204_vm1, %v254_v51, 0.0  ;;  %v230_v1 = vsel %vm204_vm1, %v200_v61, 0.0  ;;  %v257_v5 = vmul.f32 %v198_v49, %v198_v49 }
  0x24   : > { %v217_v32 = vadd.f32 %v216_v22, %v215_v25  ;;  %v279_v6 = vsel %vm204_vm1, %v255_v57, 0.0  ;;  %v232_v7 = vsel %vm204_vm1, %v201_v3, 0.0  ;;  %v258_v11 = vmul.f32 %v199_v55, %v199_v55 }
  0x25   : > { %v272_v54 = vadd.f32 %v271_v46, %v270_v48  ;;  %v281_v12 = vsel %vm204_vm1, %v256_v63, 0.0  ;;  %v234_v13 = vsel %vm204_vm1, %v202_v9, 0.0  ;;  %v259_v16 = vmul.f32 %v200_v61, %v200_v61 }
  0x26   : > { %v219_v38 = vadd.f32 %v218_v29, %v217_v32  ;;  %v283_v17 = vsel %vm204_vm1, %v257_v5, 0.0  ;;  %v260_v20 = vmul.f32 %v201_v3, %v201_v3  ;;  %v285_v21 = vsel %vm204_vm1, %v258_v11, 0.0 }
  0x27   : > { %v274_v60 = vadd.f32 %v273_v52, %v272_v54  ;;  %v261_v24 = vmul.f32 %v202_v9, %v202_v9  ;;  %v287_v25 = vsel %vm204_vm1, %v259_v16, 0.0 }
  0x28   : > { %v221_v44 = vadd.f32 %v220_v35, %v219_v38  ;;  %v289_v28 = vsel %vm204_vm1, %v260_v20, 0.0 }
  0x29   : > { %v276_v2 = vadd.f32 %v275_v58, %v274_v60  ;;  %v291_v31 = vsel %vm204_vm1, %v261_v24, 0.0 }
  0x2a   : > { %v223_v50 = vadd.f32 %v222_v41, %v221_v44  ;;  %v245_v44 = vld [vmem:[%s540_s24] sm:$0x1] }
  0x2b   : > { %v278_v8 = vadd.f32 %v277_v0, %v276_v2 }
  0x2c   : > { %v225_v56 = vadd.f32 %v224_v47, %v223_v50 }
  0x2d   : > { %v280_v14 = vadd.f32 %v279_v6, %v278_v8 }
  0x2e   : > { %v227_v62 = vadd.f32 %v226_v53, %v225_v56 }
  0x2f   : > { %v282_v18 = vadd.f32 %v281_v12, %v280_v14 }
  0x30   : > { %v229_v4 = vadd.f32 %v228_v59, %v227_v62 }
  0x31   : > { %v284_v22 = vadd.f32 %v283_v17, %v282_v18 }
  0x32   : > { %v231_v10 = vadd.f32 %v230_v1, %v229_v4 }
  0x33   : > { %v286_v26 = vadd.f32 %v285_v21, %v284_v22 }
  0x34   : > { %v233_v15 = vadd.f32 %v232_v7, %v231_v10 }
  0x35   : > { %v288_v29 = vadd.f32 %v287_v25, %v286_v26 }
  0x36   : > { %v235_v19 = vadd.f32 %v234_v13, %v233_v15 }
  0x37   : > { %v290_v32 = vadd.f32 %v289_v28, %v288_v29 }
  0x38   : > { %v236_v23 = vrot.slane %v235_v19, 4 }
  0x39   : > { %v292_v34 = vadd.f32 %v291_v31, %v290_v32 }
  0x3a   : > { %v237_v27 = vadd.f32 %v236_v23, %v235_v19 }
  0x3b   : > { %v293_v37 = vrot.slane %v292_v34, 4 }
  0x3c   : > { %v238_v30 = vrot.slane %v237_v27, 2 }
  0x3d   : > { %v294_v39 = vadd.f32 %v293_v37, %v292_v34 }
  0x3e   : > { %v239_v33 = vadd.f32 %v238_v30, %v237_v27 }
  0x3f   : > { %v295_v41 = vrot.slane %v294_v39, 2 }
  0x40   : > { %v240_v35 = vrot.slane %v239_v33, 1 }
  0x41   : > { %v296_v42 = vadd.f32 %v295_v41, %v294_v39 }
  0x42   : > { %v241_v38 = vadd.f32 %v240_v35, %v239_v33 }
  0x43   : > { %v297_v43 = vrot.slane %v296_v42, 1 }
  0x44   : > { %v242_v40 = vadd.f32 %v241_v38, %v203_v36 }
  0x45   : > { %v298_v45 = vadd.f32 %v297_v43, %v296_v42 }
  0x46   : > { %244 = vst.msk [vmem:[%s535_s20] sm:$0x1] %vm243_vm2, %v242_v40 }
  0x47   : > { %v299_v46 = vadd.f32 %v298_v45, %v245_v44 }
  0x49   : > { %300 = vst.msk [vmem:[%s540_s24] sm:$0x1] %vm243_vm2, %v299_v46 }
  0x4a PF: > { %s13_s13 = sadd.s32 1, %s484_s13   ;;  %s619_s9 = smov %s476_s11 }
  0x4b   : > { %p10_p8 = scmp.ge.s32.totalorder %s13_s13, 6   ;;  %s620_s10 = smov %s480_s12 }
  0x4c   : > { %s621_s11 = smov %s624_s14  ;;  %s622_s12 = smov %s628_s15 }
  0x4d   :  { %12 = sbr.rel (!%p10_p8) target bundleno = 3 (0x3), region = 70 }

// kernel: up_decoder_block_2d.7
= control target key start
LH: loop header
LB: loop body
LE: loop exit
PB: predicated region body
PF: predicated region fallthrough
CT: control target
= control target key end

     0   :  { %s2588_s30 = smov 0   ;;  %s2590_s10 = smov 0   ;;  %s3506_s0 = inlined_call_operand.vmem [shape: f32[2,16,16,8], index: 0, kind: input, shape index: {}, may-alias: {0,1,2}]   ;;  %s3507_s1 = inlined_call_operand.vmem [shape: f32[2,16,16,8], index: 1, kind: input, shape index: {}, may-alias: {0,1,2}]   ;;  %s3508_s2 = inlined_call_operand.vmem [shape: f32[2,16,16,8], index: 2, kind: input, shape index: {}, may-alias: {0,1,2}]   ;;  %s3509_s3 = inlined_call_operand.vmem [shape: f32[2,1,8], index: 3, kind: input, shape index: {}]   ;;  %s3510_s4 = inlined_call_operand.vmem [shape: f32[2,1,8], index: 4, kind: input, shape index: {}]   ;;  %s3511_s5 = inlined_call_operand.vmem [shape: f32[3,24,4], index: 5, kind: input, shape index: {}]   ;;  %s3512_s6 = inlined_call_operand.vmem [shape: f32[1,4], index: 6, kind: input, shape index: {}]   ;;  %s3513_s7 = inlined_call_operand.vmem [shape: f32[2,16,16,4], index: 7, kind: output, shape index: {0}]   ;;  %s3514_s8 = inlined_call_operand.vmem [shape: f32[2,1,4], index: 8, kind: output, shape index: {1}]   ;;  %s3515_s9 = inlined_call_operand.vmem [shape: f32[2,1,4], index: 9, kind: output, shape index: {2}]  }
   0x1   :  { %s2592_s11 = smov 0   ;;  %s2594_s12 = smov 0  }
   0x2   :  { %s2596_s13 = smov 0  }
   0x3 LB: > { %3518 = sst [smem:[#allocation2_spill]] %s2525_s11  ;;  %s29_s14 = sadd.s32 1, %s2525_s11  ;;  %s2533_s13 = sphi %s2596_s13, %s20_s13   ;;  %s2529_s12 = sphi %s2594_s12, %s3530_s12   ;;  %s2525_s11 = sphi %s2592_s11, %s3529_s11   ;;  %s2521_s10 = sphi %s2590_s10, %s3528_s10   ;;  %s2517_s30 = sphi %s2588_s30, %s3527_s30  }
   0x4   : > { %3519 = sst [smem:[#allocation3_spill]] %s2529_s12  ;;  %s32_s15 = sadd.s32 1, %s2529_s12 }
   0x5   : > { %p30_p0 = scmp.ge.s32.totalorder %s29_s14, 2  ;;  %p2111_p1 = scmp.ge.s32.totalorder %s2533_s13, 1 }
   0x6   : > { %p394_p2 = scmp.lt.s32.totalorder %s2533_s13, 5 }
   0x7   : > { %s3532_s14 = smov (%p30_p0, %s29_s14), 0  ;;  %s3534_s15 = smov (!%p30_p0, %s32_s15), %s2529_s12 }
   0x8   : > { %3520 = sst [smem:[#allocation4_spill]] %s3532_s14  ;;  %p395_p3 = pnand %p2111_p1, %p394_p2 }
   0x9   : > { %p34_p4 = scmp.ge.s32.totalorder %s3534_s15, 2  ;;  %s2621_s16 = sshll.u32 (!%p395_p3), %s2517_s30, 3 }
   0xa   : > { %398 = sbr.rel (%p395_p3) target bundleno = 558 (0x22e), region = 48  ;;  %p482_p5 = scmp.lt.s32.totalorder (!%p395_p3), %s2521_s10, 1 }
   0xb   : > { %s3536_s15 = smov (%p34_p4, %s3534_s15), 0  ;;  %p498_p6 = scmp.lt.s32.totalorder (!%p395_p3), %s2621_s16, 15 }
   0xc   : > { %3521 = sst [smem:[#allocation5_spill]] %s3536_s15  ;;  %s2709_s14 = sadd.s32 (!%p395_p3), 4294967295, %s2621_s16 }
   0xd   : > { %p480_p8 = scmp.gt.s32.totalorder (!%p395_p3), %s2709_s14, 0  ;;  %p2114_p9 = scmp.lt.s32.totalorder (!%p395_p3), %s2709_s14, 15 }
   0xe   : > { %p746_p10 = scmp.lt.s32.totalorder (!%p395_p3), %s2517_s30, 1  ;;  %p548_p11 = scmp.gt.s32.totalorder (!%p395_p3), %s2517_s30, 0 }
   0xf   : > { %s3538_s10 = smov (!%p482_p5, %s2521_s10), 1  ;;  %vm792_vm0 = vcmask 1040384   ;;  %vm1033_vm3 = vcmask 64512   ;;  %vm1058_vm4 = vcmask 130048   ;;  %vm1110_vm5 = vcmask 1046528   ;;  %p2214_p12 = scmp.ne.s32.totalorder %s2517_s30, 0 }
  0x10   : > { %s499_s17 = scalar_select %p498_p6, %s2621_s16, 15  ;;  %vm1155_vm6 = vcmask 195584   ;;  %vm1510_vm7 = vcmask 1045504  }
  0x11   : > { %s2625_s18 = sshll.u32 %s3538_s10, 5  ;;  %s525_s21 = scalar_lea.vmem %s3509_s3, %s3538_s10 }
  0x12   : > { %s2123_s22 = sshll.u32 %s499_s17, 1  ;;  %s528_s25 = scalar_lea.vmem %s3510_s4, %s3538_s10  ;;  %v2644_v0 = vld [vmem:[%s525_s21] ss:$0 sm:$0xff] }
  0x13   : > { %s502_s26 = sadd.s32 %s2123_s22, %s2625_s18  ;;  %s2637_s29 = scalar_lea.vmem %s3514_s8, %s3538_s10  ;;  %v2656_v1 = vld [vmem:[%s528_s25] ss:$0 sm:$0xff] }
  0x14   : > { %s2125_s15 = sshll.u32 %s502_s26, 3  ;;  %s2642_s11 = scalar_lea.vmem %s3515_s9, %s3538_s10 }
  0x15   : > { %s2649_s20 = scalar_lea.vmem %s3507_s1, %s2125_s15  ;;  %s2654_s24 = scalar_lea.vmem %s3513_s7, %s2125_s15 }
  0x16   : > { %v595_v2 = vld [vmem:[%s2649_s20 + $0x48] sm:$0xff]  ;;  %v594_v3 = vld [vmem:[%s2649_s20 + $0x40] sm:$0xff]  ;;  %v596_v4 = vld [vmem:[%s2649_s20 + $0x50] sm:$0xff]  ;;  %s507_s10 = sadd.s32 8, %s2621_s16  ;;  %s2536_s26 = smov 16  }
  0x17   : > { %v611_v5 = vmul.f32 %v2644_v0, %v595_v2  ;;  %v610_v6 = vmul.f32 %v2644_v0, %v594_v3  ;;  %v612_v7 = vmul.f32 %v2644_v0, %v596_v4  ;;  %v597_v8 = vld [vmem:[%s2649_s20 + $0x58] sm:$0xff]  ;;  %v586_v9 = vld [vmem:[%s2649_s20] sm:$0xff]  ;;  %v587_v10 = vld [vmem:[%s2649_s20 + $0x8] sm:$0xff]  ;;  %p2668_p7 = scmp.lt.s32.totalorder %s507_s10, 15 }
  0x18   : > { %v613_v11 = vmul.f32 %v2644_v0, %v597_v8  ;;  %v602_v12 = vmul.f32 %v2644_v0, %v586_v9  ;;  %v603_v13 = vmul.f32 %v2644_v0, %v587_v10  ;;  %v588_v14 = vld [vmem:[%s2649_s20 + $0x10] sm:$0xff]  ;;  %v589_v15 = vld [vmem:[%s2649_s20 + $0x18] sm:$0xff]  ;;  %v598_v24 = vld [vmem:[%s2649_s20 + $0x60] sm:$0xff]  ;;  %s481_s28 = scalar_select %p480_p8, %s2709_s14, 0 }
  0x19   : > { %v2678_v16 = vadd.f32 %v2656_v1, %v611_v5  ;;  %v2681_v17 = vadd.f32 %v2656_v1, %v610_v6  ;;  %v2684_v18 = vadd.f32 %v2656_v1, %v612_v7  ;;  %v604_v19 = vmul.f32 %v2644_v0, %v588_v14  ;;  %s3540_s10 = smov (!%p2668_p7, %s507_s10), 15  ;;  %v599_v25 = vld [vmem:[%s2649_s20 + $0x68] sm:$0xff]  ;;  %v592_v37 = vld [vmem:[%s2649_s20 + $0x30] sm:$0xff]  ;;  %v593_v38 = vld [vmem:[%s2649_s20 + $0x38] sm:$0xff] }
  0x1a   : > { %v2690_v20 = vadd.f32 %v2656_v1, %v613_v11  ;;  %v2693_v21 = vadd.f32 %v2656_v1, %v602_v12  ;;  %v2696_v22 = vadd.f32 %v2656_v1, %v603_v13  ;;  %v605_v23 = vmul.f32 %v2644_v0, %v589_v15  ;;  %s3542_s10 = smov (!%p2668_p7, %s3540_s10), 15  ;;  %s3544_s28 = smov (!%p2114_p9, %s481_s28), 15  ;;  %v590_v55 = vld [vmem:[%s2649_s20 + $0x20] sm:$0xff]  ;;  %v591_v58 = vld [vmem:[%s2649_s20 + $0x28] sm:$0xff] }
  0x1b   : > { %v2150_v26 = vmul.f32 -1.442695, %v2678_v16  ;;  %v2149_v27 = vmul.f32 -1.442695, %v2681_v17  ;;  %v2151_v28 = vmul.f32 -1.442695, %v2684_v18  ;;  %v2705_v29 = vadd.f32 %v2656_v1, %v604_v19 }
  0x1c   : > { %v2152_v30 = vmul.f32 -1.442695, %v2690_v20  ;;  %v2141_v31 = vmul.f32 -1.442695, %v2693_v21  ;;  %v614_v32 = vmul.f32 %v2644_v0, %v598_v24  ;;  %v2142_v33 = vmul.f32 -1.442695, %v2696_v22 }
  0x1d   : > { %2415 = vpow2.f32 %v2150_v26  ;;  %v2717_v34 = vadd.f32 %v2656_v1, %v605_v23  ;;  %v615_v35 = vmul.f32 %v2644_v0, %v599_v25  ;;  %v2143_v36 = vmul.f32 -1.442695, %v2705_v29  ;;  %s2130_s15 = sshll.u32 %s3542_s10, 1  ;;  %s2119_s19 = sshll.u32 %s3544_s28, 1 }
  0x1e   : > { %2417 = vpow2.f32 %v2149_v27  ;;  %s516_s16 = sadd.s32 %s2130_s15, %s2625_s18  ;;  %v2726_v39 = vadd.f32 %v2656_v1, %v614_v32  ;;  %v608_v42 = vmul.f32 %v2644_v0, %v592_v37  ;;  %v609_v43 = vmul.f32 %v2644_v0, %v593_v38  ;;  %s488_s17 = sadd.s32 %s2625_s18, %s2119_s19  ;;  %v601_v37 = vld [vmem:[%s2649_s20 + $0x78] sm:$0xff] }
  0x1f   : > { %2419 = vpow2.f32 %v2151_v28  ;;  %s2132_s21 = sshll.u32 %s516_s16, 3  ;;  %v2144_v40 = vmul.f32 -1.442695, %v2717_v34  ;;  %v2731_v41 = vadd.f32 %v2656_v1, %v615_v35  ;;  %s2121_s23 = sshll.u32 %s488_s17, 3  ;;  %v606_v61 = vmul.f32 %v2644_v0, %v590_v55 }
  0x20   : > { %2421 = vpow2.f32 %v2152_v30  ;;  %s518_s27 = scalar_lea.vmem %s3508_s2, %s2132_s21  ;;  %v2153_v48 = vmul.f32 -1.442695, %v2726_v39  ;;  %v2745_v49 = vadd.f32 %v2656_v1, %v608_v42  ;;  %v2748_v50 = vadd.f32 %v2656_v1, %v609_v43  ;;  %s490_s12 = scalar_lea.vmem %s3506_s0, %s2121_s23  ;;  %v600_v30 = vld [vmem:[%s2649_s20 + $0x70] sm:$0xff] }
  0x21   : > { %2423 = vpow2.f32 %v2141_v31  ;;  %v747_v44 = vld [vmem:[%s518_s27] sm:$0xff]  ;;  %v748_v45 = vld [vmem:[%s518_s27 + $0x8] sm:$0xff]  ;;  %v2154_v51 = vmul.f32 -1.442695, %v2731_v41  ;;  %v607_v8 = vmul.f32 %v2644_v0, %v591_v58  ;;  %v2778_v23 = vadd.f32 %v2656_v1, %v606_v61  ;;  %s2535_s16 = smov 8  }
  0x22   : > { %2425 = vpow2.f32 %v2142_v33  ;;  %v749_v46 = vmul.f32 %v2644_v0, %v747_v44  ;;  %v750_v47 = vmul.f32 %v2644_v0, %v748_v45  ;;  %v2147_v54 = vmul.f32 -1.442695, %v2745_v49  ;;  %v549_v62 = vld [vmem:[%s490_s12] sm:$0xff]  ;;  %v550_v63 = vld [vmem:[%s490_s12 + $0x8] sm:$0xff]  ;;  %s767_s27 = scalar_select %p746_p10, 1, 0 }
  0x23   : > { %2427 = vpow2.f32 %v2143_v36  ;;  %v2148_v56 = vmul.f32 -1.442695, %v2748_v50  ;;  %v557_v4 = vmul.f32 %v2644_v0, %v549_v62  ;;  %v558_v5 = vmul.f32 %v2644_v0, %v550_v63  ;;  %s581_s28 = scalar_select %p548_p11, 1, 0 }
  0x24   : > { %2429 = vpow2.f32 %v2144_v40  ;;  %v2754_v52 = vadd.f32 %v2656_v1, %v749_v46  ;;  %v2757_v53 = vadd.f32 %v2656_v1, %v750_v47  ;;  %v2781_v25 = vadd.f32 %v2656_v1, %v607_v8 }
  0x25   : > { %2431 = vpow2.f32 %v2153_v48  ;;  %v2772_v11 = vadd.f32 %v2656_v1, %v557_v4  ;;  %v2775_v12 = vadd.f32 %v2656_v1, %v558_v5  ;;  %v2145_v27 = vmul.f32 -1.442695, %v2778_v23  ;;  %v2160_v4 = vld [vmem:[%s3511_s5 + $0x20] sm:$0xff] }
  0x26   : > { %2433 = vpow2.f32 %v2154_v51  ;;  %v2146_v28 = vmul.f32 -1.442695, %v2781_v25  ;;  %v616_v36 = vmul.f32 %v2644_v0, %v600_v30  ;;  %v2157_v42 = vmul.f32 -1.442695, %v2754_v52 }
  0x27   : > { %2435 = vpow2.f32 %v2147_v54  ;;  %v2158_v45 = vmul.f32 -1.442695, %v2757_v53  ;;  %v617_v48 = vmul.f32 %v2644_v0, %v601_v37  ;;  %v2139_v51 = vmul.f32 -1.442695, %v2772_v11  ;;  %v2161_v0 = vld [vmem:[%s3511_s5 + $0x28] sm:$0xff] }
  0x28   : > { %2437 = vpow2.f32 %v2148_v56  ;;  %2366 = vmatprep.subr.mxu1 %v2161_v0  ;;  %2276 = vmatprep.subr.mxu0 %v2161_v0 }
  0x29   : > { %2369 = vmatpush3.msra.mxu1 %v2161_v0  ;;  %2277 = vmatpush3.msra.mxu0 %v2161_v0  ;;  %v2816_v5 = vadd.f32 %v2656_v1, %v617_v48 }
  0x2a   : > { %v2416_v57 = vpop.eup %2415  ;;  %2367 = vmatprep.subr.mxu1 %v2160_v4  ;;  %2278 = vmatprep.subr.mxu0 %v2160_v4 }
  0x2b   : > { %v2418_v59 = vpop.eup %2417  ;;  %v691_v60 = vadd.f32 1.0, %v2416_v57  ;;  %v2795_v57 = vadd.f32 %v2656_v1, %v616_v36  ;;  %2370 = vmatpush3.msra.mxu1 %v2160_v4  ;;  %2279 = vmatpush3.msra.mxu0 %v2160_v4 }
  0x2c   : > { %v2420_v2 = vpop.eup %2419  ;;  %v690_v3 = vadd.f32 1.0, %v2418_v59 }
  0x2d   : > { %v2422_v6 = vpop.eup %2421  ;;  %2439 = vrcp.f32 %v691_v60  ;;  %v692_v7 = vadd.f32 1.0, %v2420_v2  ;;  %v2155_v8 = vmul.f32 -1.442695, %v2795_v57 }
  0x2e   : > { %v2424_v9 = vpop.eup %2423  ;;  %2441 = vrcp.f32 %v690_v3  ;;  %v693_v10 = vadd.f32 1.0, %v2422_v6 }
  0x2f   : > { %v2426_v13 = vpop.eup %2425  ;;  %2443 = vrcp.f32 %v692_v7  ;;  %v682_v14 = vadd.f32 1.0, %v2424_v9 }
  0x30   : > { %v2428_v15 = vpop.eup %2427  ;;  %2445 = vrcp.f32 %v693_v10  ;;  %v683_v19 = vadd.f32 1.0, %v2426_v13 }
  0x31   : > { %2447 = vrcp.f32 %v682_v14  ;;  %v684_v24 = vadd.f32 1.0, %v2428_v15  ;;  %v2430_v26 = vpop.eup %2429 }
  0x32   : > { %2449 = vrcp.f32 %v683_v19  ;;  %v2432_v31 = vpop.eup %2431  ;;  %v685_v32 = vadd.f32 1.0, %v2430_v26 }
  0x33   : > { %2451 = vrcp.f32 %v684_v24  ;;  %v2434_v33 = vpop.eup %2433  ;;  %v694_v56 = vadd.f32 1.0, %v2432_v31 }
  0x34   : > { %v2436_v35 = vpop.eup %2435  ;;  %2453 = vpow2.f32 %v2145_v27  ;;  %v695_v14 = vadd.f32 1.0, %v2434_v33 }
  0x35   : > { %v2438_v38 = vpop.eup %2437  ;;  %2455 = vpow2.f32 %v2146_v28  ;;  %v688_v40 = vadd.f32 1.0, %v2436_v35  ;;  %v2156_v28 = vmul.f32 -1.442695, %v2816_v5 }
  0x36   : > { %2457 = vrcp.f32 %v685_v32  ;;  %v689_v44 = vadd.f32 1.0, %v2438_v38 }
  0x37   : > { %2459 = vrcp.f32 %v688_v40 }
  0x38   : > { %2461 = vrcp.f32 %v689_v44 }
  0x39   : > { %2463 = vpow2.f32 %v2157_v42 }
  0x3a   : > { %v2440_v43 = vpop.eup %2439  ;;  %2465 = vpow2.f32 %v2158_v45 }
  0x3b   : > { %v2442_v46 = vpop.eup %2441  ;;  %v739_v47 = vmul.f32 %v2440_v43, %v2678_v16  ;;  %v2140_v16 = vmul.f32 -1.442695, %v2775_v12  ;;  %2467 = vpow2.f32 %v2139_v51 }
  0x3c   : > { %v2444_v54 = vpop.eup %2443  ;;  %v738_v55 = vmul.f32 %v2442_v46, %v2681_v17  ;;  %2469 = vrcp.f32 %v694_v56 }
  0x3d   : > { %v2446_v58 = vpop.eup %2445  ;;  %v809_v59 = vrot.slane %v739_v47, 7  ;;  %v740_v60 = vmul.f32 %v2444_v54, %v2684_v18  ;;  %2471 = vpow2.f32 %v2140_v16 }
  0x3e   : > { %v2448_v61 = vpop.eup %2447  ;;  %v808_v62 = vrot.slane %v738_v55, 7  ;;  %v741_v17 = vmul.f32 %v2446_v58, %v2690_v20  ;;  %2473 = vpow2.f32 %v2155_v8 }
  0x3f   : > { %v2450_v63 = vpop.eup %2449  ;;  %v2804_v2 = vsel %vm792_vm0, %v809_v59, 0.0  ;;  %v811_v3 = vrot.slane %v740_v60, 7  ;;  %v730_v18 = vmul.f32 %v2448_v61, %v2693_v21  ;;  %v2159_v21 = vld [vmem:[%s3511_s5 + $0x18] sm:$0xff]  ;;  %2475 = vrcp.f32 %v695_v14 }
  0x40   : > { %915 = vrot.lane.b32.xlu1 %v2804_v2, %s2535_s16  ;;  %v2813_v20 = vsel %vm792_vm0, 0.0, %v808_v62  ;;  %v2452_v9 = vpop.eup %2451  ;;  %v2828_v1 = vsel %vm792_vm0, %v808_v62, %v809_v59  ;;  %v812_v10 = vrot.slane %v741_v17, 7  ;;  %v731_v13 = vmul.f32 %v2450_v63, %v2696_v22  ;;  %2368 = vmatprep.subr.mxu1 %v2159_v21 }
  0x41   : > { %911 = vrot.lane.b32.xlu0 %v2813_v20, %s2535_s16  ;;  %v2824_v6 = vsel %vm792_vm0, 0.0, %v811_v3  ;;  %v796_v7 = vrot.slane %v730_v18, 7  ;;  %2371 = vmatpush3.msra.mxu1 %v2159_v21  ;;  %v2454_v15 = vpop.eup %2453  ;;  %v732_v24 = vmul.f32 %v2452_v9, %v2705_v29  ;;  %2477 = vpow2.f32 %v2156_v28 }
  0x42   : > { %2280 = vmatprep.subr.mxu0 %v2159_v21  ;;  %v2456_v22 = vpop.eup %2455  ;;  %v2840_v26 = vsel %vm792_vm0, %v811_v3, %v812_v10  ;;  %v797_v27 = vrot.slane %v731_v13, 7  ;;  %v686_v32 = vadd.f32 1.0, %v2454_v15  ;;  %v2848_v29 = vsel %vm792_vm0, %v812_v10, 0.0 }
  0x43   : > { %v2836_v19 = vsel %vm792_vm0, 0.0, %v796_v7  ;;  %2281 = vmatpush3.msra.mxu0 %v2159_v21  ;;  %v2458_v30 = vpop.eup %2457  ;;  %v799_v35 = vrot.slane %v732_v24, 7  ;;  %v687_v44 = vadd.f32 1.0, %v2456_v22  ;;  %v768_v21 = vstv %s767_s27 }
  0x44   : > { %985 = vrot.lane.b32.xlu1 %v2824_v6, %s2536_s26  ;;  %v2460_v31 = vpop.eup %2459  ;;  %v2852_v38 = vsel %vm792_vm0, %v796_v7, %v797_v27  ;;  %v733_v40 = vmul.f32 %v2458_v30, %v2717_v34  ;;  %2479 = vrcp.f32 %v686_v32  ;;  %v582_v9 = vstv %s581_s28 }
  0x45   : > { %913 = vrot.lane.b32.xlu0 %v2828_v1, %s2535_s16  ;;  %v2462_v33 = vpop.eup %2461  ;;  %v736_v36 = vmul.f32 %v2460_v31, %v2745_v49  ;;  %v2859_v49 = vsel %vm792_vm0, %v797_v27, 0.0  ;;  %v2864_v34 = vsel %vm792_vm0, 0.0, %v799_v35  ;;  %vm2900_vm1 = vcmp.eq.s32.totalorder %v768_v21, 1  ;;  %v1085_v21 = vld [vmem:[%s3511_s5 + $0x10] sm:$0xff] }
  0x46   : > { %v2464_v37 = vpop.eup %2463  ;;  %v737_v42 = vmul.f32 %v2462_v33, %v2748_v50  ;;  %v800_v58 = vrot.slane %v733_v40, 7  ;;  %vm2909_vm2 = vcmp.eq.s32.totalorder %v582_v9, 1  ;;  %2306 = vmatprep.subr.mxu1 %v1085_v21 }
  0x47   : > { %v2466_v43 = vpop.eup %2465  ;;  %v805_v45 = vrot.slane %v736_v36, 7  ;;  %v759_v46 = vadd.f32 1.0, %v2464_v37 }
  0x48   : > { %887 = vrot.lane.b32.xlu1 %v2836_v19, %s2535_s16  ;;  %v2468_v47 = vpop.eup %2467  ;;  %v806_v48 = vrot.slane %v737_v42, 7  ;;  %v760_v51 = vadd.f32 1.0, %v2466_v43  ;;  %v2883_v62 = vsel %vm792_vm0, %v799_v35, %v800_v58  ;;  %v2890_v63 = vsel %vm792_vm0, %v800_v58, 0.0 }
  0x49   : > { %987 = vrot.lane.b32.xlu0 %v2840_v26, %s2536_s26  ;;  %v2470_v54 = vpop.eup %2469  ;;  %v2867_v50 = vsel %vm792_vm0, 0.0, %v805_v45  ;;  %2481 = vrcp.f32 %v759_v46  ;;  %v573_v55 = vadd.f32 1.0, %v2468_v47 }
  0x4a   : > { %v2472_v56 = vpop.eup %2471  ;;  %v2870_v59 = vsel %vm792_vm0, %v805_v45, %v806_v48  ;;  %v2873_v60 = vsel %vm792_vm0, %v806_v48, 0.0  ;;  %2483 = vrcp.f32 %v760_v51  ;;  %v742_v16 = vmul.f32 %v2470_v54, %v2726_v39 }
  0x4b   : > { %2485 = vrcp.f32 %v573_v55  ;;  %v574_v0 = vadd.f32 1.0, %v2472_v56  ;;  %v2474_v61 = vpop.eup %2473 }
  0x4c   : > { %989 = vrot.lane.b32.xlu1 %v2848_v29, %s2536_s26  ;;  %v2476_v17 = vpop.eup %2475  ;;  %v814_v3 = vrot.slane %v742_v16, 7  ;;  %v696_v39 = vadd.f32 1.0, %v2474_v61 }
  0x4d   : > { %889 = vrot.lane.b32.xlu0 %v2852_v38, %s2535_s16  ;;  %2487 = vrcp.f32 %v574_v0  ;;  %v743_v18 = vmul.f32 %v2476_v17, %v2731_v41 }
  0x4e   : > { %2489 = vrcp.f32 %v687_v44  ;;  %v2478_v4 = vpop.eup %2477  ;;  %v2898_v8 = vsel %vm792_vm0, 0.0, %v814_v3 }
  0x4f   : > { %2491 = vrcp.f32 %v696_v39  ;;  %v815_v13 = vrot.slane %v743_v18, 7  ;;  %v697_v14 = vadd.f32 1.0, %v2478_v4 }
  0x50   : > { %961 = vrot.lane.b32.xlu1 %v2864_v34, %s2536_s26 }
  0x51   : > { %891 = vrot.lane.b32.xlu0 %v2859_v49, %s2535_s16  ;;  %v2480_v7 = vpop.eup %2479  ;;  %v2919_v33 = vsel %vm792_vm0, %v814_v3, %v815_v13  ;;  %2493 = vrcp.f32 %v697_v14  ;;  %v2932_v44 = vsel %vm792_vm0, %v815_v13, 0.0 }
  0x52   : > { %v734_v27 = vmul.f32 %v2480_v7, %v2778_v23  ;;  %v3002_v7 = vld [vmem:[%s3511_s5 + $0x40] sm:$0xff] }
  0x53   : > { %2336 = vmatprep.subr.mxu0 %v3002_v7 }
  0x54   : > { %917 = vrot.lane.b32.xlu1 %v2824_v6, %s2535_s16 }
  0x55   : > { %963 = vrot.lane.b32.xlu0 %v2883_v62, %s2536_s26 }
  0x56   : > { %v2482_v10 = vpop.eup %2481 }
  0x57   : > { %v2484_v41 = vpop.eup %2483  ;;  %v765_v24 = vmul.f32 %v2482_v10, %v2754_v52 }
  0x58   : > { %965 = vrot.lane.b32.xlu1 %v2890_v63, %s2536_s26  ;;  %v2486_v22 = vpop.eup %2485  ;;  %v766_v28 = vmul.f32 %v2484_v41, %v2757_v53 }
  0x59   : > { %919 = vrot.lane.b32.xlu0 %v2840_v26, %s2535_s16  ;;  %v770_v31 = vsel %vm2900_vm1, %v765_v24, 0.0  ;;  %v579_v52 = vmul.f32 %v2486_v22, %v2772_v11  ;;  %v802_v11 = vrot.slane %v734_v27, 7 }
  0x5a   : > { %v2488_v32 = vpop.eup %2487  ;;  %v771_v53 = vsel %vm2900_vm1, %v766_v28, 0.0  ;;  %v820_v23 = vrot.slane %v770_v31, 7 }
  0x5b   : > { %v2490_v35 = vpop.eup %2489  ;;  %v821_v36 = vrot.slane %v771_v53, 7  ;;  %v584_v37 = vsel %vm2909_vm2, %v579_v52, 0.0  ;;  %v580_v40 = vmul.f32 %v2488_v32, %v2775_v12  ;;  %v2953_v56 = vsel %vm792_vm0, 0.0, %v802_v11 }
  0x5c   : > { %991 = vrot.lane.b32.xlu1 %v2898_v8, %s2536_s26  ;;  %v860_v42 = vsel %vm792_vm0, 0.0, %v820_v23  ;;  %v793_v43 = vrot.slane %v584_v37, 7  ;;  %v735_v47 = vmul.f32 %v2490_v35, %v2781_v25  ;;  %v2492_v25 = vpop.eup %2491  ;;  %v1084_v37 = vld [vmem:[%s3511_s5 + $0x8] sm:$0xff] }
  0x5d   : > { %921 = vrot.lane.b32.xlu0 %v2848_v29, %s2535_s16  ;;  %v822_v45 = vsel %vm792_vm0, %v820_v23, %v821_v36  ;;  %v870_v46 = vsel %vm792_vm0, %v821_v36, 0.0  ;;  %v585_v12 = vsel %vm2909_vm2, %v580_v40, 0.0  ;;  %v744_v0 = vmul.f32 %v2492_v25, %v2795_v57 }
  0x5e   : > { %v2940_v48 = vsel %vm792_vm0, 0.0, %v793_v43  ;;  %v794_v51 = vrot.slane %v585_v12, 7  ;;  %v803_v58 = vrot.slane %v735_v47, 7  ;;  %v2494_v61 = vpop.eup %2493 }
  0x5f   : > { %v817_v3 = vrot.slane %v744_v0, 7  ;;  %v745_v39 = vmul.f32 %v2494_v61, %v2816_v5 }
  0x60   : > { %893 = vrot.lane.b32.xlu1 %v2864_v34, %s2535_s16  ;;  %v2945_v54 = vsel %vm792_vm0, %v793_v43, %v794_v51  ;;  %v2948_v55 = vsel %vm792_vm0, %v794_v51, 0.0  ;;  %v2961_v16 = vsel %vm792_vm0, %v802_v11, %v803_v58  ;;  %v2968_v17 = vsel %vm792_vm0, %v803_v58, 0.0 }
  0x61   : > { %993 = vrot.lane.b32.xlu0 %v2919_v33, %s2536_s26  ;;  %v859_v57 = vsel %vm792_vm0, 0.0, %v817_v3  ;;  %v818_v18 = vrot.slane %v745_v39, 7 }
  0x63   : > { %v819_v4 = vsel %vm792_vm0, %v817_v3, %v818_v18  ;;  %v869_v5 = vsel %vm792_vm0, %v818_v18, 0.0 }
  0x64   : > { %995 = vrot.lane.b32.xlu1 %v2932_v44, %s2536_s26 }
  0x65   : > { %895 = vrot.lane.b32.xlu0 %v2883_v62, %s2535_s16 }
  0x68   : > { %967 = vrot.lane.b32.xlu1 %v2953_v56, %s2536_s26 }
  0x69   : > { %897 = vrot.lane.b32.xlu0 %v2890_v63, %s2535_s16 }
  0x6c   : > { %923 = vrot.lane.b32.xlu1 %v2898_v8, %s2535_s16 }
  0x6d   : > { %969 = vrot.lane.b32.xlu0 %v2961_v16, %s2536_s26 }
  0x70   : > { %971 = vrot.lane.b32.xlu1 %v2968_v17, %s2536_s26 }
  0x71   : > { %925 = vrot.lane.b32.xlu0 %v2919_v33, %s2535_s16 }
  0x74   : > { %997 = vrot.lane.b32.xlu1 %v859_v57, %s2536_s26 }
  0x75   : > { %927 = vrot.lane.b32.xlu0 %v2932_v44, %s2535_s16 }
  0x78   : > { %899 = vrot.lane.b32.xlu1 %v2953_v56, %s2535_s16 }
  0x79   : > { %999 = vrot.lane.b32.xlu0 %v819_v4, %s2536_s26 }
  0x7c   : > { %1001 = vrot.lane.b32.xlu1 %v869_v5, %s2536_s26 }
  0x7d   : > { %901 = vrot.lane.b32.xlu0 %v2961_v16, %s2535_s16 }
  0x80   : > { %973 = vrot.lane.b32.xlu1 %v2867_v50, %s2536_s26 }
  0x81   : > { %903 = vrot.lane.b32.xlu0 %v2968_v17, %s2535_s16 }
  0x84   : > { %929 = vrot.lane.b32.xlu1 %v859_v57, %s2535_s16  ;;  %v2195_v57 = vld [vmem:[%s3511_s5 + $0x38] sm:$0xff] }
  0x85   : > { %975 = vrot.lane.b32.xlu0 %v2870_v59, %s2536_s26 }
  0x88   : > { %977 = vrot.lane.b32.xlu1 %v2873_v60, %s2536_s26 }
  0x89   : > { %931 = vrot.lane.b32.xlu0 %v819_v4, %s2535_s16 }
  0x8c   : > { %1003 = vrot.lane.b32.xlu1 %v860_v42, %s2536_s26 }
  0x8d   : > { %933 = vrot.lane.b32.xlu0 %v869_v5, %s2535_s16 }
  0x90   : > { %905 = vrot.lane.b32.xlu1 %v2867_v50, %s2535_s16 }
  0x91   : > { %1005 = vrot.lane.b32.xlu0 %v822_v45, %s2536_s26 }
  0x94   : > { %1007 = vrot.lane.b32.xlu1 %v870_v46, %s2536_s26 }
  0x95   : > { %907 = vrot.lane.b32.xlu0 %v2870_v59, %s2535_s16 }
  0x98   : > { %979 = vrot.lane.b32.xlu1 %v2813_v20, %s2536_s26 }
  0x99   : > { %909 = vrot.lane.b32.xlu0 %v2873_v60, %s2535_s16 }
  0x9c   : > { %983 = vrot.lane.b32.xlu1 %v2804_v2, %s2536_s26 }
  0x9d   : > { %981 = vrot.lane.b32.xlu0 %v2828_v1, %s2536_s26 }
  0xb2   : > { %v916_v9 = vpop.permute.xlu1 %915 }
  0xb3   : > { %v912_v10 = vpop.permute.xlu0 %911 }
  0xb4   : > { %v1046_v15 = vsel %vm1033_vm3, %v2867_v50, %v912_v10  ;;  %v1048_v50 = vsel %vm1033_vm3, %v2873_v60, %v916_v9  ;;  %v1083_v60 = vld [vmem:[%s3511_s5] sm:$0xff] }
  0xb6   : > { %v986_v13 = vpop.permute.xlu1 %985 }
  0xb7   : > { %v914_v14 = vpop.permute.xlu0 %913  ;;  %v3025_v41 = vsel %vm1058_vm4, %v1046_v15, %v986_v13 }
  0xb8   : > { %v1047_v22 = vsel %vm1033_vm3, %v2870_v59, %v914_v14  ;;  %v1131_v30 = vrot.slane %v3025_v41, 1 }
  0xba   : > { %v888_v24 = vpop.permute.xlu1 %887 }
  0xbb   : > { %v988_v27 = vpop.permute.xlu0 %987  ;;  %v1034_v11 = vsel %vm1033_vm3, %v2940_v48, %v888_v24 }
  0xbc   : > { %v3030_v28 = vsel %vm1058_vm4, %v1047_v22, %v988_v27 }
  0xbd   : > { %v1132_v31 = vrot.slane %v3030_v28, 1 }
  0xbe   : > { %v990_v52 = vpop.permute.xlu1 %989 }
  0xbf   : > { %v3037_v32 = vsel %vm1058_vm4, %v1048_v50, %v990_v52  ;;  %v890_v53 = vpop.permute.xlu0 %889  ;;  %v1133_v59 = vsel %vm1110_vm5, %v1131_v30, %v1132_v31 }
  0xc0   : > { %v1134_v23 = vrot.slane %v3037_v32, 1  ;;  %2294 = vmatprep.mubr.msk.f32.mxu1 %vm1155_vm6, %v1133_v59  ;;  %v1035_v45 = vsel %vm1033_vm3, %v2945_v54, %v890_v53 }
  0xc2   : > { %v962_v35 = vpop.permute.xlu1 %961  ;;  %v1135_v36 = vsel %vm1110_vm5, %v1132_v31, %v1134_v23 }
  0xc3   : > { %v892_v40 = vpop.permute.xlu0 %891  ;;  %2295 = vmatmul.mubr.msk.f32.vlgmr.msra.gmra.mxu1 %vm1155_vm6, %v1135_v36  ;;  %v3053_v42 = vsel %vm1058_vm4, %v1034_v11, %v962_v35 }
  0xc4   : > { %2307 = vmatpush3.msra.mxu1 %v1085_v21  ;;  %v1111_v47 = vrot.slane %v3053_v42, 1  ;;  %v1036_v48 = vsel %vm1033_vm3, %v2948_v55, %v892_v40  ;;  %v2194_v55 = vld [vmem:[%s3511_s5 + $0x30] sm:$0xff] }
  0xc5   : > { %2308 = vmatprep.subr.mxu1 %v1084_v37 }
  0xc6   : > { %v918_v43 = vpop.permute.xlu1 %917  ;;  %2309 = vmatpush3.msra.mxu1 %v1084_v37 }
  0xc7   : > { %v964_v46 = vpop.permute.xlu0 %963  ;;  %2310 = vmatprep.subr.mxu1 %v1083_v60  ;;  %v1049_v4 = vsel %vm1033_vm3, %v2813_v20, %v918_v43 }
  0xc8   : > { %v3058_v12 = vsel %vm1058_vm4, %v1035_v45, %v964_v46  ;;  %2311 = vmatpush3.msra.mxu1 %v1083_v60 }
  0xc9   : > { %v1112_v51 = vrot.slane %v3058_v12, 1 }
  0xca   : > { %v966_v25 = vpop.permute.xlu1 %965 }
  0xcb   : > { %v3065_v58 = vsel %vm1058_vm4, %v1036_v48, %v966_v25  ;;  %v920_v0 = vpop.permute.xlu0 %919  ;;  %v1113_v54 = vsel %vm1110_vm5, %v1111_v47, %v1112_v51 }
  0xcc   : > { %v1114_v61 = vrot.slane %v3065_v58, 1  ;;  %2282 = vmatprep.mubr.msk.f32.mxu0 %vm1155_vm6, %v1113_v54  ;;  %v1050_v9 = vsel %vm1033_vm3, %v2828_v1, %v920_v0 }
  0xce   : > { %v992_v3 = vpop.permute.xlu1 %991  ;;  %v1115_v39 = vsel %vm1110_vm5, %v1112_v51, %v1114_v61 }
  0xcf   : > { %v922_v18 = vpop.permute.xlu0 %921  ;;  %2283 = vmatmul.mubr.msk.f32.vlgmr.msra.gmra.mxu0 %vm1155_vm6, %v1115_v39  ;;  %v3082_v5 = vsel %vm1058_vm4, %v1049_v4, %v992_v3 }
  0xd0   : > { %2337 = vmatpush3.msra.mxu0 %v3002_v7  ;;  %v1136_v13 = vrot.slane %v3082_v5, 1  ;;  %v1051_v20 = vsel %vm1033_vm3, %v2804_v2, %v922_v18 }
  0xd1   : > { %2338 = vmatprep.subr.mxu0 %v2195_v57 }
  0xd2   : > { %v894_v21 = vpop.permute.xlu1 %893  ;;  %2339 = vmatpush3.msra.mxu0 %v2195_v57 }
  0xd3   : > { %v994_v10 = vpop.permute.xlu0 %993  ;;  %2340 = vmatprep.subr.mxu0 %v2194_v55  ;;  %v1037_v2 = vsel %vm1033_vm3, %v2836_v19, %v894_v21 }
  0xd4   : > { %v3087_v7 = vsel %vm1058_vm4, %v1050_v9, %v994_v10  ;;  %2341 = vmatpush3.msra.mxu0 %v2194_v55 }
  0xd5   : > { %v1137_v14 = vrot.slane %v3087_v7, 1 }
  0xd6   : > { %v996_v15 = vpop.permute.xlu1 %995 }
  0xd7   : > { %v3094_v24 = vsel %vm1058_vm4, %v1051_v20, %v996_v15  ;;  %v896_v22 = vpop.permute.xlu0 %895  ;;  %v1138_v1 = vsel %vm1110_vm5, %v1136_v13, %v1137_v14 }
  0xd8   : > { %v1139_v27 = vrot.slane %v3094_v24, 1  ;;  %2297 = vmatprep.mubr.msk.f32.mxu1 %vm1155_vm6, %v1138_v1  ;;  %v1038_v59 = vsel %vm1033_vm3, %v2852_v38, %v896_v22 }
  0xda   : > { %v968_v30 = vpop.permute.xlu1 %967  ;;  %v1140_v31 = vsel %vm1110_vm5, %v1137_v14, %v1139_v27 }
  0xdb   : > { %v898_v50 = vpop.permute.xlu0 %897  ;;  %2298 = vmatmul.mubr.msk.f32.gmra.mxu1 %vm1155_vm6, %v1140_v31  ;;  %v3104_v52 = vsel %vm1058_vm4, %v1037_v2, %v968_v30 }
  0xdc   : > { %v1116_v36 = vrot.slane %v3104_v52, 1  ;;  %v1039_v40 = vsel %vm1033_vm3, %v2859_v49, %v898_v50 }
  0xde   : > { %v924_v53 = vpop.permute.xlu1 %923 }
  0xdf   : > { %v970_v23 = vpop.permute.xlu0 %969  ;;  %v1052_v49 = vsel %vm1033_vm3, %v2824_v6, %v924_v53 }
  0xe0   : > { %v3109_v35 = vsel %vm1058_vm4, %v1038_v59, %v970_v23 }
  0xe1   : > { %v1117_v37 = vrot.slane %v3109_v35, 1 }
  0xe2   : > { %v972_v60 = vpop.permute.xlu1 %971 }
  0xe3   : > { %v3116_v19 = vsel %vm1058_vm4, %v1039_v40, %v972_v60  ;;  %v926_v11 = vpop.permute.xlu0 %925  ;;  %v1118_v43 = vsel %vm1110_vm5, %v1116_v36, %v1117_v37 }
  0xe4   : > { %v1119_v38 = vrot.slane %v3116_v19, 1  ;;  %2285 = vmatprep.mubr.msk.f32.mxu0 %vm1155_vm6, %v1118_v43  ;;  %v1053_v25 = vsel %vm1033_vm3, %v2840_v26, %v926_v11 }
  0xe6   : > { %v998_v45 = vpop.permute.xlu1 %997  ;;  %v1120_v46 = vsel %vm1110_vm5, %v1117_v37, %v1119_v38 }
  0xe7   : > { %v928_v47 = vpop.permute.xlu0 %927  ;;  %2286 = vmatmul.mubr.msk.f32.gmra.mxu0 %vm1155_vm6, %v1120_v46  ;;  %v3126_v51 = vsel %vm1058_vm4, %v1052_v49, %v998_v45 }
  0xe8   : > { %v1141_v61 = vrot.slane %v3126_v51, 1  ;;  %v1054_v39 = vsel %vm1033_vm3, %v2848_v29, %v928_v47 }
  0xea   : > { %v900_v48 = vpop.permute.xlu1 %899 }
  0xeb   : > { %v1000_v0 = vpop.permute.xlu0 %999  ;;  %v1040_v29 = vsel %vm1033_vm3, %v2864_v34, %v900_v48 }
  0xec   : > { %v3131_v54 = vsel %vm1058_vm4, %v1053_v25, %v1000_v0 }
  0xed   : > { %v1142_v3 = vrot.slane %v3131_v54, 1 }
  0xee   : > { %v1002_v57 = vpop.permute.xlu1 %1001 }
  0xef   : > { %v3138_v6 = vsel %vm1058_vm4, %v1054_v39, %v1002_v57  ;;  %v902_v18 = vpop.permute.xlu0 %901  ;;  %v1143_v55 = vsel %vm1110_vm5, %v1141_v61, %v1142_v3 }
  0xf0   : > { %v1144_v26 = vrot.slane %v3138_v6, 1  ;;  %2300 = vmatprep.mubr.msk.f32.mxu1 %vm1155_vm6, %v1143_v55  ;;  %v1041_v14 = vsel %vm1033_vm3, %v2883_v62, %v902_v18 }
  0xf2   : > { %v974_v4 = vpop.permute.xlu1 %973  ;;  %v1145_v21 = vsel %vm1110_vm5, %v1142_v3, %v1144_v26 }
  0xf3   : > { %v904_v9 = vpop.permute.xlu0 %903  ;;  %2301 = vmatmul.mubr.msk.f32.gmra.mxu1 %vm1155_vm6, %v1145_v21  ;;  %v3148_v10 = vsel %vm1058_vm4, %v1040_v29, %v974_v4  ;;  %v1511_v21 = vrot.slane %v3053_v42, 2  ;;  %v1514_v29 = vrot.slane %v3065_v58, 2 }
  0xf4   : > { %v1121_v22 = vrot.slane %v3148_v10, 1  ;;  %v1042_v27 = vsel %vm1033_vm3, %v2890_v63, %v904_v9 }
  0xf6   : > { %v930_v13 = vpop.permute.xlu1 %929 }
  0xf7   : > { %v976_v20 = vpop.permute.xlu0 %975  ;;  %v1055_v63 = vsel %vm1033_vm3, %v2898_v8, %v930_v13  ;;  %v1516_v13 = vrot.slane %v3104_v52, 2 }
  0xf8   : > { %v3153_v15 = vsel %vm1058_vm4, %v1041_v14, %v976_v20  ;;  %v1519_v14 = vrot.slane %v3116_v19, 2 }
  0xf9   : > { %v1122_v1 = vrot.slane %v3153_v15, 1  ;;  %v1522_v20 = vrot.slane %v3153_v15, 2 }
  0xfa   : > { %v978_v30 = vpop.permute.xlu1 %977 }
  0xfb   : > { %v3160_v34 = vsel %vm1058_vm4, %v1042_v27, %v978_v30  ;;  %v932_v31 = vpop.permute.xlu0 %931  ;;  %v1123_v50 = vsel %vm1110_vm5, %v1121_v22, %v1122_v1  ;;  %v1521_v22 = vrot.slane %v3148_v10, 2 }
  0xfc   : > { %v1124_v62 = vrot.slane %v3160_v34, 1  ;;  %2288 = vmatprep.mubr.msk.f32.mxu0 %vm1155_vm6, %v1123_v50  ;;  %v1056_v37 = vsel %vm1033_vm3, %v2919_v33, %v932_v31  ;;  %v1531_v50 = vrot.slane %v3025_v41, 2 }
  0xfe   : > { %v1004_v2 = vpop.permute.xlu1 %1003  ;;  %v1125_v53 = vsel %vm1110_vm5, %v1122_v1, %v1124_v62  ;;  %v1534_v62 = vrot.slane %v3037_v32, 2  ;;  %v1539_v32 = vrot.slane %v3094_v24, 2  ;;  %v1544_v24 = vrot.slane %v3138_v6, 2 }
  0xff   : > { %v934_v59 = vpop.permute.xlu0 %933  ;;  %2289 = vmatmul.mubr.msk.f32.gmra.mxu0 %vm1155_vm6, %v1125_v53  ;;  %v3170_v23 = vsel %vm1058_vm4, %v1055_v63, %v1004_v2 }
 0x100   : > { %v1146_v11 = vrot.slane %v3170_v23, 1  ;;  %v1057_v38 = vsel %vm1033_vm3, %v2932_v44, %v934_v59 }
 0x102   : > { %v906_v36 = vpop.permute.xlu1 %905 }
 0x103   : > { %v1006_v40 = vpop.permute.xlu0 %1005  ;;  %v1043_v44 = vsel %vm1033_vm3, %v2953_v56, %v906_v36  ;;  %v1512_v56 = vrot.slane %v3058_v12, 2 }
 0x104   : > { %v3175_v60 = vsel %vm1058_vm4, %v1056_v37, %v1006_v40  ;;  %v1546_v40 = vrot.slane %v3170_v23, 2 }
 0x105   : > { %v1147_v43 = vrot.slane %v3175_v60, 1  ;;  %v1515_v58 = vsel %vm1510_vm7, %v1512_v56, %v1514_v29  ;;  %v1547_v37 = vrot.slane %v3175_v60, 2 }
 0x106   : > { %v1008_v45 = vpop.permute.xlu1 %1007 }
 0x107   : > { %v3182_v8 = vsel %vm1058_vm4, %v1057_v38, %v1008_v45  ;;  %v908_v46 = vpop.permute.xlu0 %907  ;;  %v1148_v47 = vsel %vm1110_vm5, %v1146_v11, %v1147_v43  ;;  %v1548_v6 = vsel %vm1510_vm7, %v1546_v40, %v1547_v37 }
 0x108   : > { %v1149_v33 = vrot.slane %v3182_v8, 1  ;;  %2303 = vmatprep.mubr.msk.f32.mxu1 %vm1155_vm6, %v1148_v47  ;;  %v1044_v39 = vsel %vm1033_vm3, %v2961_v16, %v908_v46  ;;  %v1549_v11 = vrot.slane %v3182_v8, 2 }
 0x10a   : > { %v980_v49 = vpop.permute.xlu1 %979  ;;  %v1150_v48 = vsel %vm1110_vm5, %v1147_v43, %v1149_v33 }
 0x10b   : > { %v910_v25 = vpop.permute.xlu0 %909  ;;  %2304 = vmatmul.mubr.msk.f32.gmra.mxu1 %vm1155_vm6, %v1150_v48  ;;  %v1068_v0 = vsel %vm1058_vm4, %v1043_v44, %v980_v49 }
 0x10c   : > { %2312 = vmatprep.mubr.msk.f32.mxu1 %vm1155_vm6, %v3053_v42  ;;  %v1045_v61 = vsel %vm1033_vm3, %v2968_v17, %v910_v25  ;;  %v1126_v4 = vrot.slane %v1068_v0, 1  ;;  %v1513_v42 = vsel %vm1510_vm7, %v1511_v21, %v1512_v56  ;;  %v1526_v27 = vrot.slane %v1068_v0, 2  ;;  %v3300_v21 = vld [vmem:[%s3512_s6] ss:$0 sm:$0xff] }
 0x10e   : > { %v984_v3 = vpop.permute.xlu1 %983 }
 0x10f   : > { %v1070_v57 = vsel %vm1058_vm4, %v1045_v61, %v984_v3  ;;  %v982_v18 = vpop.permute.xlu0 %981  ;;  %2313 = vmatmul.mubr.msk.f32.vlgmr.msra.gmra.mxu1 %vm1155_vm6, %v3058_v12  ;;  %v1517_v12 = vrot.slane %v3109_v35, 2 }
 0x110   : > { %v1129_v55 = vrot.slane %v1070_v57, 1  ;;  %v1069_v26 = vsel %vm1058_vm4, %v1044_v39, %v982_v18  ;;  %2315 = vmatprep.mubr.msk.f32.mxu1 %vm1155_vm6, %v3104_v52  ;;  %v1524_v52 = vrot.slane %v3160_v34, 2  ;;  %v1532_v34 = vrot.slane %v3030_v28, 2 }
 0x111   : > { %v1127_v17 = vrot.slane %v1069_v26, 1  ;;  %v1520_v19 = vsel %vm1510_vm7, %v1517_v12, %v1519_v14  ;;  %v1527_v1 = vrot.slane %v1069_v26, 2 }
 0x112   : > { %v1525_v30 = vsel %vm1510_vm7, %v1522_v20, %v1524_v52  ;;  %v1533_v53 = vsel %vm1510_vm7, %v1531_v50, %v1532_v34  ;;  %v1535_v59 = vsel %vm1510_vm7, %v1532_v34, %v1534_v62 }
 0x113   : > { %v1128_v16 = vsel %vm1110_vm5, %v1126_v4, %v1127_v17  ;;  %2316 = vmatmul.mubr.msk.f32.gmra.mxu1 %vm1155_vm6, %v3109_v35  ;;  %v1130_v9 = vsel %vm1110_vm5, %v1127_v17, %v1129_v55  ;;  %v1518_v35 = vsel %vm1510_vm7, %v1516_v13, %v1517_v12  ;;  %v1528_v31 = vsel %vm1510_vm7, %v1526_v27, %v1527_v1 }
 0x114   : > { %2291 = vmatprep.mubr.msk.f32.mxu0 %vm1155_vm6, %v1128_v16  ;;  %2318 = vmatprep.mubr.msk.f32.mxu1 %vm1155_vm6, %v3148_v10  ;;  %v1529_v10 = vrot.slane %v1070_v57, 2 }
 0x115   : > { %2292 = vmatmul.mubr.msk.f32.gmra.mxu0 %vm1155_vm6, %v1130_v9 }
 0x116   : > { %2342 = vmatprep.mubr.msk.f32.mxu0 %vm1155_vm6, %v1513_v42  ;;  %v1530_v2 = vsel %vm1510_vm7, %v1527_v1, %v1529_v10 }
 0x117   : > { %2319 = vmatmul.mubr.msk.f32.gmra.mxu1 %vm1155_vm6, %v3153_v15  ;;  %v1523_v15 = vsel %vm1510_vm7, %v1521_v22, %v1522_v20 }
 0x118   : > { %2321 = vmatprep.mubr.msk.f32.mxu1 %vm1155_vm6, %v1068_v0 }
 0x119   : > { %2343 = vmatmul.mubr.msk.f32.vlgmr.msra.gmra.mxu0 %vm1155_vm6, %v1515_v58 }
 0x11a   : > { %2345 = vmatprep.mubr.msk.f32.mxu0 %vm1155_vm6, %v1518_v35 }
 0x11b   : > { %2322 = vmatmul.mubr.msk.f32.gmra.mxu1 %vm1155_vm6, %v1069_v26 }
 0x11c   : > { %2324 = vmatprep.mubr.msk.f32.mxu1 %vm1155_vm6, %v3025_v41  ;;  %v1536_v41 = vrot.slane %v3082_v5, 2 }
 0x11d   : > { %2346 = vmatmul.mubr.msk.f32.gmra.mxu0 %vm1155_vm6, %v1520_v19 }
 0x11e   : > { %2348 = vmatprep.mubr.msk.f32.mxu0 %vm1155_vm6, %v1523_v15 }
 0x11f   : > { %2325 = vmatmul.mubr.msk.f32.gmra.mxu1 %vm1155_vm6, %v3030_v28  ;;  %v1537_v28 = vrot.slane %v3087_v7, 2 }
 0x120   : > { %2327 = vmatprep.mubr.msk.f32.mxu1 %vm1155_vm6, %v3082_v5  ;;  %v1541_v5 = vrot.slane %v3126_v51, 2 }
 0x121   : > { %2349 = vmatmul.mubr.msk.f32.gmra.mxu0 %vm1155_vm6, %v1525_v30  ;;  %v1538_v63 = vsel %vm1510_vm7, %v1536_v41, %v1537_v28  ;;  %v1540_v36 = vsel %vm1510_vm7, %v1537_v28, %v1539_v32 }
 0x122   : > { %2351 = vmatprep.mubr.msk.f32.mxu0 %vm1155_vm6, %v1528_v31 }
 0x123   : > { %2328 = vmatmul.mubr.msk.f32.gmra.mxu1 %vm1155_vm6, %v3087_v7  ;;  %v1542_v7 = vrot.slane %v3131_v54, 2 }
 0x124   : > { %2330 = vmatprep.mubr.msk.f32.mxu1 %vm1155_vm6, %v3126_v51 }
 0x125   : > { %2352 = vmatmul.mubr.msk.f32.gmra.mxu0 %vm1155_vm6, %v1530_v2  ;;  %v1545_v51 = vsel %vm1510_vm7, %v1542_v7, %v1544_v24 }
 0x126   : > { %2354 = vmatprep.mubr.msk.f32.mxu0 %vm1155_vm6, %v1533_v53 }
 0x127   : > { %2331 = vmatmul.mubr.msk.f32.gmra.mxu1 %vm1155_vm6, %v3131_v54  ;;  %v1543_v54 = vsel %vm1510_vm7, %v1541_v5, %v1542_v7 }
 0x128   : > { %2333 = vmatprep.mubr.msk.f32.mxu1 %vm1155_vm6, %v3170_v23 }
 0x129   : > { %2355 = vmatmul.mubr.msk.f32.gmra.mxu0 %vm1155_vm6, %v1535_v59 }
 0x12a   : > { %2357 = vmatprep.mubr.msk.f32.mxu0 %vm1155_vm6, %v1538_v63 }
 0x12b   : > { %2334 = vmatmul.mubr.msk.f32.gmra.mxu1 %vm1155_vm6, %v3175_v60  ;;  %v1550_v60 = vsel %vm1510_vm7, %v1547_v37, %v1549_v11 }
 0x12d   : > { %2358 = vmatmul.mubr.msk.f32.gmra.mxu0 %vm1155_vm6, %v1540_v36 }
 0x12e   : > { %2360 = vmatprep.mubr.msk.f32.mxu0 %vm1155_vm6, %v1543_v54 }
 0x131   : > { %2361 = vmatmul.mubr.msk.f32.gmra.mxu0 %vm1155_vm6, %v1545_v51 }
 0x132   : > { %2363 = vmatprep.mubr.msk.f32.mxu0 %vm1155_vm6, %v1548_v6 }
 0x135   : > { %2364 = vmatmul.mubr.msk.f32.gmra.mxu0 %vm1155_vm6, %v1550_v60 }
 0x183   : > { %v2296_v43 = vpop.f32.mrf.mxu1 }
 0x185   : > { %v1294_v38 = vpop.f32.mrf.mxu1 }
 0x18f   : > { %v2284_v46 = vpop.f32.mrf.mxu0 }
 0x191   : > { %v1254_v47 = vpop.f32.mrf.mxu0 }
 0x19b   : > { %v3285_v45 = vpop.f32.mrf.mxu1 }
 0x19d   : > { %v3287_v23 = vpop.f32.mrf.mxu1 }
 0x1a7   : > { %v2287_v33 = vpop.f32.mrf.mxu0 }
 0x1a9   : > { %v1264_v25 = vpop.f32.mrf.mxu0 }
 0x1b3   : > { %v3289_v8 = vpop.f32.mrf.mxu1 }
 0x1b5   : > { %v3291_v49 = vpop.f32.mrf.mxu1 }
 0x1bf   : > { %v2290_v0 = vpop.f32.mrf.mxu0 }
 0x1c1   : > { %v1274_v39 = vpop.f32.mrf.mxu0 }
 0x1cb   : > { %v3293_v48 = vpop.f32.mrf.mxu1 }
 0x1cd   : > { %v3295_v44 = vpop.f32.mrf.mxu1 }
 0x1cf   : > { %v2314_v61 = vpop.f32.mrf.mxu1 }
 0x1d0   : > { %v1437_v4 = vadd.f32 %v2314_v61, %v2284_v46 }
 0x1d1   : > { %v1431_v3 = vpop.f32.mrf.mxu1 }
 0x1d2   : > { %v1432_v9 = vadd.f32 %v1431_v3, %v1254_v47 }
 0x1d3   : > { %v2317_v57 = vpop.f32.mrf.mxu1 }
 0x1d4   : > { %v1447_v13 = vadd.f32 %v2317_v57, %v2287_v33 }
 0x1d5   : > { %v2293_v18 = vpop.f32.mrf.mxu0  ;;  %v1441_v55 = vpop.f32.mrf.mxu1 }
 0x1d6   : > { %v1442_v22 = vadd.f32 %v1441_v55, %v1264_v25 }
 0x1d7   : > { %v1284_v26 = vpop.f32.mrf.mxu0  ;;  %v2320_v56 = vpop.f32.mrf.mxu1 }
 0x1d8   : > { %v1457_v27 = vadd.f32 %v2320_v56, %v2290_v0 }
 0x1d9   : > { %v2344_v17 = vpop.f32.mrf.mxu0  ;;  %v1451_v16 = vpop.f32.mrf.mxu1 }
 0x1da   : > { %v1733_v29 = vadd.f32 %v2344_v17, %v1437_v4  ;;  %v1452_v50 = vadd.f32 %v1451_v16, %v1274_v39 }
 0x1db   : > { %v1653_v12 = vpop.f32.mrf.mxu0  ;;  %v2323_v42 = vpop.f32.mrf.mxu1 }
 0x1dc   : > { %v3303_v58 = vadd.f32 %v3300_v21, %v1733_v29  ;;  %v1732_v14 = vadd.f32 %v1653_v12, %v1432_v9  ;;  %v1467_v41 = vadd.f32 %v2323_v42, %v2293_v18 }
 0x1dd   : > { %v2347_v20 = vpop.f32.mrf.mxu0  ;;  %v1461_v35 = vpop.f32.mrf.mxu1 }
 0x1de   : > { %v3306_v52 = vadd.f32 %v3300_v21, %v1732_v14  ;;  %v1735_v19 = vadd.f32 %v2347_v20, %v1447_v13  ;;  %v1462_v5 = vadd.f32 %v1461_v35, %v1284_v26 }
 0x1df   : > { %v1663_v1 = vpop.f32.mrf.mxu0  ;;  %v2326_v15 = vpop.f32.mrf.mxu1 }
 0x1e0   : > { %v3309_v10 = vadd.f32 %v3300_v21, %v1735_v19  ;;  %v1734_v30 = vadd.f32 %v1663_v1, %v1442_v22  ;;  %v1477_v40 = vadd.f32 %v2326_v15, %v2296_v43 }
 0x1e1   : > { %v2350_v34 = vpop.f32.mrf.mxu0  ;;  %v1471_v31 = vpop.f32.mrf.mxu1 }
 0x1e2   : > { %v3312_v62 = vadd.f32 %v3300_v21, %v1734_v30  ;;  %v1737_v2 = vadd.f32 %v2350_v34, %v1457_v27  ;;  %v1472_v60 = vadd.f32 %v1471_v31, %v1294_v38 }
 0x1e3   : > { %v1673_v28 = vpop.f32.mrf.mxu0  ;;  %v2329_v53 = vpop.f32.mrf.mxu1 }
 0x1e4   : > { %v3315_v32 = vadd.f32 %v3300_v21, %v1737_v2  ;;  %v1736_v59 = vadd.f32 %v1673_v28, %v1452_v50  ;;  %v1487_v0 = vadd.f32 %v2329_v53, %v3285_v45 }
 0x1e5   : > { %v2353_v7 = vpop.f32.mrf.mxu0  ;;  %v1481_v63 = vpop.f32.mrf.mxu1 }
 0x1e6   : > { %v3318_v24 = vadd.f32 %v3300_v21, %v1736_v59  ;;  %v1739_v36 = vadd.f32 %v2353_v7, %v1467_v41  ;;  %v1482_v43 = vadd.f32 %v1481_v63, %v3287_v23 }
 0x1e7   : > { %v1683_v37 = vpop.f32.mrf.mxu0  ;;  %v2332_v54 = vpop.f32.mrf.mxu1 }
 0x1e8   : > { %v3321_v11 = vadd.f32 %v3300_v21, %v1739_v36  ;;  %v1738_v51 = vadd.f32 %v1683_v37, %v1462_v5  ;;  %v1497_v26 = vadd.f32 %v2332_v54, %v3289_v8 }
 0x1e9   : > { %v2356_v6 = vpop.f32.mrf.mxu0  ;;  %v1491_v33 = vpop.f32.mrf.mxu1 }
 0x1ea   : > { %v3324_v46 = vadd.f32 %v3300_v21, %v1738_v51  ;;  %v1741_v47 = vadd.f32 %v2356_v6, %v1477_v40  ;;  %v1492_v17 = vadd.f32 %v1491_v33, %v3291_v49 }
 0x1eb   : > { %v1693_v25 = vpop.f32.mrf.mxu0  ;;  %v2335_v38 = vpop.f32.mrf.mxu1 }
 0x1ec   : > { %v3328_v61 = vadd.f32 %v3300_v21, %v1741_v47  ;;  %v1740_v3 = vadd.f32 %v1693_v25, %v1472_v60  ;;  %v1507_v12 = vadd.f32 %v2335_v38, %v3293_v48 }
 0x1ed   : > { %v2359_v39 = vpop.f32.mrf.mxu0  ;;  %v1501_v23 = vpop.f32.mrf.mxu1 }
 0x1ee   : > { %v3332_v57 = vadd.f32 %v3300_v21, %v1740_v3  ;;  %v1743_v18 = vadd.f32 %v2359_v39, %v1487_v0  ;;  %v1502_v14 = vadd.f32 %v1501_v23, %v3295_v44 }
 0x1ef   : > { %v1703_v55 = vpop.f32.mrf.mxu0 }
 0x1f0   : > { %v3336_v56 = vadd.f32 %v3300_v21, %v1743_v18  ;;  %v1742_v4 = vadd.f32 %v1703_v55, %v1482_v43 }
 0x1f1   : > { %v2362_v45 = vpop.f32.mrf.mxu0 }
 0x1f2   : > { %v3340_v16 = vadd.f32 %v3300_v21, %v1742_v4  ;;  %v1745_v9 = vadd.f32 %v2362_v45, %v1497_v26 }
 0x1f3   : > { %v1713_v29 = vpop.f32.mrf.mxu0 }
 0x1f4   : > { %v3344_v42 = vadd.f32 %v3300_v21, %v1745_v9  ;;  %v1744_v13 = vadd.f32 %v1713_v29, %v1492_v17 }
 0x1f5   : > { %v2365_v8 = vpop.f32.mrf.mxu0 }
 0x1f6   : > { %v3348_v20 = vadd.f32 %v3300_v21, %v1744_v13  ;;  %v1747_v35 = vadd.f32 %v2365_v8, %v1507_v12  ;;  %1774 = sbr.rel (%p2214_p12) target bundleno = 509 (0x1fd), region = 52 }
 0x1f7   : > { %v1723_v49 = vpop.f32.mrf.mxu0 }
 0x1f8   : > { %v3351_v22 = vadd.f32 %v3300_v21, %v1747_v35  ;;  %v1746_v19 = vadd.f32 %v1723_v49, %v1502_v14 }
 0x1fa   : > { %v3354_v1 = vadd.f32 %v3300_v21, %v1746_v19 }
 0x1fb   : > { %vm1775_vm8 = vcmask 24576   ;;  %v2537_v48 = vmov 0.0  }
 0x1fc   : > { %1776 = vst.msk [vmem:[%s2637_s29] sm:$0x1] %vm1775_vm8, %v2537_v48  ;;  %1777 = vst.msk [vmem:[%s2642_s11] sm:$0x1] %vm1775_vm8, %v2537_v48 }
 0x1fd PF: > { %vm1779_vm9 = vcmask 31744   ;;  %v1821_v50 = vmul.f32 %v3306_v52, %v3306_v52  ;;  %v1822_v2 = vmul.f32 %v3303_v58, %v3303_v58  ;;  %v1823_v53 = vmul.f32 %v3312_v62, %v3312_v62 }
 0x1fe   : > { %v1780_v44 = vsel %vm1779_vm9, %v3306_v52, 0.0  ;;  %v1781_v21 = vsel %vm1779_vm9, %v3303_v58, 0.0  ;;  %v1783_v15 = vsel %vm1779_vm9, %v3312_v62, 0.0  ;;  %1876 = vst.msk [vmem:[%s2654_s24] sm:$0xff] %vm1779_vm9, %v3306_v52  ;;  %1877 = vst.msk [vmem:[%s2654_s24 + $0x8] sm:$0xff] %vm1779_vm9, %v3303_v58  ;;  %v1785_v30 = vsel %vm1779_vm9, %v3309_v10, 0.0 }
 0x1ff   : > { %1878 = vst.msk [vmem:[%s2654_s24 + $0x10] sm:$0xff] %vm1779_vm9, %v3312_v62  ;;  %1879 = vst.msk [vmem:[%s2654_s24 + $0x18] sm:$0xff] %vm1779_vm9, %v3309_v10  ;;  %v1782_v27 = vadd.f32 %v1781_v21, %v1780_v44  ;;  %v1787_v31 = vsel %vm1779_vm9, %v3318_v24, 0.0  ;;  %v1789_v41 = vsel %vm1779_vm9, %v3315_v32, 0.0  ;;  %v1824_v59 = vmul.f32 %v3309_v10, %v3309_v10 }
 0x200   : > { %1880 = vst.msk [vmem:[%s2654_s24 + $0x20] sm:$0xff] %vm1779_vm9, %v3318_v24  ;;  %1881 = vst.msk [vmem:[%s2654_s24 + $0x28] sm:$0xff] %vm1779_vm9, %v3315_v32  ;;  %v1791_v63 = vsel %vm1779_vm9, %v3324_v46, 0.0  ;;  %v1825_v52 = vmul.f32 %v3318_v24, %v3318_v24  ;;  %v1837_v5 = vsel %vm1779_vm9, %v1821_v50, 0.0  ;;  %v1838_v58 = vsel %vm1779_vm9, %v1822_v2, 0.0 }
 0x201   : > { %1882 = vst.msk [vmem:[%s2654_s24 + $0x30] sm:$0xff] %vm1779_vm9, %v3324_v46  ;;  %1883 = vst.msk [vmem:[%s2654_s24 + $0x38] sm:$0xff] %vm1779_vm9, %v3321_v11  ;;  %v1784_v34 = vadd.f32 %v1783_v15, %v1782_v27  ;;  %v1839_v37 = vadd.f32 %v1838_v58, %v1837_v5  ;;  %v1840_v62 = vsel %vm1779_vm9, %v1823_v53, 0.0  ;;  %v1793_v54 = vsel %vm1779_vm9, %v3321_v11, 0.0 }
 0x202   : > { %1884 = vst.msk [vmem:[%s2654_s24 + $0x40] sm:$0xff] %vm1779_vm9, %v3332_v57  ;;  %1885 = vst.msk [vmem:[%s2654_s24 + $0x48] sm:$0xff] %vm1779_vm9, %v3328_v61  ;;  %v1826_v10 = vmul.f32 %v3315_v32, %v3315_v32  ;;  %v1842_v40 = vsel %vm1779_vm9, %v1824_v59, 0.0  ;;  %v1795_v24 = vsel %vm1779_vm9, %v3332_v57, 0.0  ;;  %v1827_v60 = vmul.f32 %v3324_v46, %v3324_v46 }
 0x203   : > { %1886 = vst.msk [vmem:[%s2654_s24 + $0x50] sm:$0xff] %vm1779_vm9, %v3340_v16  ;;  %1887 = vst.msk [vmem:[%s2654_s24 + $0x58] sm:$0xff] %vm1779_vm9, %v3336_v56  ;;  %v1786_v28 = vadd.f32 %v1785_v30, %v1784_v34  ;;  %v1841_v6 = vadd.f32 %v1840_v62, %v1839_v37  ;;  %v1844_v47 = vsel %vm1779_vm9, %v1825_v52, 0.0  ;;  %v1797_v0 = vsel %vm1779_vm9, %v3328_v61, 0.0 }
 0x204   : > { %1888 = vst.msk [vmem:[%s2654_s24 + $0x60] sm:$0xff] %vm1779_vm9, %v3348_v20  ;;  %1889 = vst.msk [vmem:[%s2654_s24 + $0x68] sm:$0xff] %vm1779_vm9, %v3344_v42  ;;  %v1828_v32 = vmul.f32 %v3321_v11, %v3321_v11  ;;  %v1846_v3 = vsel %vm1779_vm9, %v1826_v10, 0.0  ;;  %v1799_v18 = vsel %vm1779_vm9, %v3340_v16, 0.0  ;;  %v1829_v46 = vmul.f32 %v3332_v57, %v3332_v57 }
 0x205   : > { %1890 = vst.msk [vmem:[%s2654_s24 + $0x70] sm:$0xff] %vm1779_vm9, %v3354_v1  ;;  %1891 = vst.msk [vmem:[%s2654_s24 + $0x78] sm:$0xff] %vm1779_vm9, %v3351_v22  ;;  %v1788_v7 = vadd.f32 %v1787_v31, %v1786_v28  ;;  %v1843_v25 = vadd.f32 %v1842_v40, %v1841_v6  ;;  %v1848_v38 = vsel %vm1779_vm9, %v1827_v60, 0.0  ;;  %v1801_v4 = vsel %vm1779_vm9, %v3336_v56, 0.0  ;;  %v1820_v60 = vld [vmem:[%s2642_s11] sm:$0x1] }
 0x206   : > { %v1830_v11 = vmul.f32 %v3328_v61, %v3328_v61  ;;  %v1850_v45 = vsel %vm1779_vm9, %v1828_v32, 0.0  ;;  %v1803_v23 = vsel %vm1779_vm9, %v3348_v20, 0.0  ;;  %v1831_v57 = vmul.f32 %v3340_v16, %v3340_v16 }
 0x207   : > { %v1790_v36 = vadd.f32 %v1789_v41, %v1788_v7  ;;  %v1845_v43 = vadd.f32 %v1844_v47, %v1843_v25  ;;  %v1852_v29 = vsel %vm1779_vm9, %v1829_v46, 0.0  ;;  %v1805_v8 = vsel %vm1779_vm9, %v3344_v42, 0.0 }
 0x208   : > { %v1832_v61 = vmul.f32 %v3336_v56, %v3336_v56  ;;  %v1854_v14 = vsel %vm1779_vm9, %v1830_v11, 0.0  ;;  %v1807_v19 = vsel %vm1779_vm9, %v3354_v1, 0.0  ;;  %v1833_v16 = vmul.f32 %v3348_v20, %v3348_v20 }
 0x209   : > { %v1792_v51 = vadd.f32 %v1791_v63, %v1790_v36  ;;  %v1847_v26 = vadd.f32 %v1846_v3, %v1845_v43  ;;  %v1856_v48 = vsel %vm1779_vm9, %v1831_v57, 0.0  ;;  %v1809_v15 = vsel %vm1779_vm9, %v3351_v22, 0.0 }
 0x20a   : > { %v1834_v56 = vmul.f32 %v3344_v42, %v3344_v42  ;;  %v1858_v27 = vsel %vm1779_vm9, %v1832_v61, 0.0  ;;  %v1835_v31 = vmul.f32 %v3354_v1, %v3354_v1  ;;  %v1860_v50 = vsel %vm1779_vm9, %v1833_v16, 0.0 }
 0x20b   : > { %v1794_v33 = vadd.f32 %v1793_v54, %v1792_v51  ;;  %v1849_v9 = vadd.f32 %v1848_v38, %v1847_v26  ;;  %v1836_v28 = vmul.f32 %v3351_v22, %v3351_v22  ;;  %v1778_v22 = vld [vmem:[%s2637_s29] sm:$0x1]  ;;  %vm1818_vm10 = vcmask 24576  }
 0x20c   : > { %v1862_v53 = vsel %vm1779_vm9, %v1834_v56, 0.0  ;;  %v1864_v42 = vsel %vm1779_vm9, %v1835_v31, 0.0 }
 0x20d   : > { %v1796_v39 = vadd.f32 %v1795_v24, %v1794_v33  ;;  %v1851_v13 = vadd.f32 %v1850_v45, %v1849_v9  ;;  %v1866_v52 = vsel %vm1779_vm9, %v1836_v28, 0.0 }
 0x20f   : > { %v1798_v55 = vadd.f32 %v1797_v0, %v1796_v39  ;;  %v1853_v49 = vadd.f32 %v1852_v29, %v1851_v13 }
 0x211   : > { %v1800_v17 = vadd.f32 %v1799_v18, %v1798_v55  ;;  %v1855_v21 = vadd.f32 %v1854_v14, %v1853_v49 }
 0x213   : > { %v1802_v12 = vadd.f32 %v1801_v4, %v1800_v17  ;;  %v1857_v34 = vadd.f32 %v1856_v48, %v1855_v21 }
 0x215   : > { %v1804_v35 = vadd.f32 %v1803_v23, %v1802_v12  ;;  %v1859_v2 = vadd.f32 %v1858_v27, %v1857_v34 }
 0x217   : > { %v1806_v44 = vadd.f32 %v1805_v8, %v1804_v35  ;;  %v1861_v59 = vadd.f32 %v1860_v50, %v1859_v2 }
 0x219   : > { %v1808_v30 = vadd.f32 %v1807_v19, %v1806_v44  ;;  %v1863_v63 = vadd.f32 %v1862_v53, %v1861_v59 }
 0x21b   : > { %v1810_v20 = vadd.f32 %v1809_v15, %v1808_v30  ;;  %v1865_v5 = vadd.f32 %v1864_v42, %v1863_v63 }
 0x21d   : > { %v1811_v41 = vrot.slane %v1810_v20, 4  ;;  %v1867_v36 = vadd.f32 %v1866_v52, %v1865_v5 }
 0x21f   : > { %v1812_v7 = vadd.f32 %v1811_v41, %v1810_v20  ;;  %v1868_v62 = vrot.slane %v1867_v36, 4 }
 0x221   : > { %v1813_v1 = vrot.slane %v1812_v7, 2  ;;  %v1869_v10 = vadd.f32 %v1868_v62, %v1867_v36 }
 0x223   : > { %v1814_v58 = vadd.f32 %v1813_v1, %v1812_v7  ;;  %v1870_v51 = vrot.slane %v1869_v10, 2 }
 0x225   : > { %v1815_v37 = vrot.slane %v1814_v58, 1  ;;  %v1871_v6 = vadd.f32 %v1870_v51, %v1869_v10 }
 0x227   : > { %v1816_v54 = vadd.f32 %v1815_v37, %v1814_v58  ;;  %v1872_v24 = vrot.slane %v1871_v6, 1 }
 0x229   : > { %v1817_v40 = vadd.f32 %v1816_v54, %v1778_v22  ;;  %v1873_v47 = vadd.f32 %v1872_v24, %v1871_v6 }
 0x22b   : > { %1819 = vst.msk [vmem:[%s2637_s29] sm:$0x1] %vm1818_vm10, %v1817_v40  ;;  %v1874_v33 = vadd.f32 %v1873_v47, %v1820_v60 }
 0x22d   : > { %1875 = vst.msk [vmem:[%s2642_s11] sm:$0x1] %vm1818_vm10, %v1874_v33 }
 0x22e PF: > { %s20_s13 = sadd.s32 1, %s2533_s13   ;;  %s3527_s30 = sld [smem:[#allocation2_spill]] }
 0x22f   : > { %p17_p13 = scmp.ge.s32.totalorder %s20_s13, 6   ;;  %s3528_s10 = sld [smem:[#allocation3_spill]] }
 0x230   : > { %s3529_s11 = sld [smem:[#allocation4_spill]] }
 0x231   : > { %s3530_s12 = sld [smem:[#allocation5_spill]]  ;;  %19 = sbr.rel (!%p17_p13) target bundleno = 3 (0x3), region = 120 }

// kernel: up_decoder_block_2d.9
= control target key start
LH: loop header
LB: loop body
LE: loop exit
PB: predicated region body
PF: predicated region fallthrough
CT: control target
= control target key end

     0   :  { %s2584_s30 = smov 0   ;;  %s2586_s10 = smov 0   ;;  %s3501_s0 = inlined_call_operand.vmem [shape: f32[2,16,16,4], index: 0, kind: input, shape index: {}, may-alias: {0,1,2}]   ;;  %s3502_s1 = inlined_call_operand.vmem [shape: f32[2,16,16,4], index: 1, kind: input, shape index: {}, may-alias: {0,1,2}]   ;;  %s3503_s2 = inlined_call_operand.vmem [shape: f32[2,16,16,4], index: 2, kind: input, shape index: {}, may-alias: {0,1,2}]   ;;  %s3504_s3 = inlined_call_operand.vmem [shape: f32[2,1,4], index: 3, kind: input, shape index: {}]   ;;  %s3505_s4 = inlined_call_operand.vmem [shape: f32[2,1,4], index: 4, kind: input, shape index: {}]   ;;  %s3506_s5 = inlined_call_operand.vmem [shape: f32[3,12,4], index: 5, kind: input, shape index: {}]   ;;  %s3507_s6 = inlined_call_operand.vmem [shape: f32[1,4], index: 6, kind: input, shape index: {}]   ;;  %s3508_s7 = inlined_call_operand.vmem [shape: f32[2,16,16,4], index: 7, kind: output, shape index: {0}]   ;;  %s3509_s8 = inlined_call_operand.vmem [shape: f32[2,1,4], index: 8, kind: output, shape index: {1}]   ;;  %s3510_s9 = inlined_call_operand.vmem [shape: f32[2,1,4], index: 9, kind: output, shape index: {2}]  }
   0x1   :  { %s2588_s11 = smov 0   ;;  %s2590_s12 = smov 0  }
   0x2   :  { %s2592_s13 = smov 0  }
   0x3 LB: > { %3513 = sst [smem:[#allocation2_spill]] %s2521_s11  ;;  %s29_s14 = sadd.s32 1, %s2521_s11  ;;  %s2529_s13 = sphi %s2592_s13, %s20_s13   ;;  %s2525_s12 = sphi %s2590_s12, %s3525_s12   ;;  %s2521_s11 = sphi %s2588_s11, %s3524_s11   ;;  %s2517_s10 = sphi %s2586_s10, %s3523_s10   ;;  %s2513_s30 = sphi %s2584_s30, %s3522_s30  }
   0x4   : > { %3514 = sst [smem:[#allocation3_spill]] %s2525_s12  ;;  %s32_s15 = sadd.s32 1, %s2525_s12 }
   0x5   : > { %p30_p0 = scmp.ge.s32.totalorder %s29_s14, 2  ;;  %p2117_p1 = scmp.ge.s32.totalorder %s2529_s13, 1 }
   0x6   : > { %p394_p2 = scmp.lt.s32.totalorder %s2529_s13, 5 }
   0x7   : > { %s3527_s14 = smov (%p30_p0, %s29_s14), 0  ;;  %s3529_s15 = smov (!%p30_p0, %s32_s15), %s2525_s12 }
   0x8   : > { %3515 = sst [smem:[#allocation4_spill]] %s3527_s14  ;;  %p395_p3 = pnand %p2117_p1, %p394_p2 }
   0x9   : > { %p34_p4 = scmp.ge.s32.totalorder %s3529_s15, 2  ;;  %s2617_s16 = sshll.u32 (!%p395_p3), %s2513_s30, 3 }
   0xa   : > { %398 = sbr.rel (%p395_p3) target bundleno = 558 (0x22e), region = 48  ;;  %p482_p5 = scmp.lt.s32.totalorder (!%p395_p3), %s2517_s10, 1 }
   0xb   : > { %s3531_s15 = smov (%p34_p4, %s3529_s15), 0  ;;  %p498_p6 = scmp.lt.s32.totalorder (!%p395_p3), %s2617_s16, 15 }
   0xc   : > { %3516 = sst [smem:[#allocation5_spill]] %s3531_s15  ;;  %s2705_s14 = sadd.s32 (!%p395_p3), 4294967295, %s2617_s16 }
   0xd   : > { %p480_p8 = scmp.gt.s32.totalorder (!%p395_p3), %s2705_s14, 0  ;;  %p2120_p9 = scmp.lt.s32.totalorder (!%p395_p3), %s2705_s14, 15 }
   0xe   : > { %p746_p10 = scmp.lt.s32.totalorder (!%p395_p3), %s2513_s30, 1  ;;  %p548_p11 = scmp.gt.s32.totalorder (!%p395_p3), %s2513_s30, 0 }
   0xf   : > { %s3533_s10 = smov (!%p482_p5, %s2517_s10), 1  ;;  %vm792_vm0 = vcmask 1040384   ;;  %vm1186_vm1 = vcmask 1043456   ;;  %vm1033_vm4 = vcmask 31744   ;;  %vm1058_vm5 = vcmask 64512   ;;  %p2221_p12 = scmp.ne.s32.totalorder %s2513_s30, 0 }
  0x10   : > { %s499_s17 = scalar_select %p498_p6, %s2617_s16, 15  ;;  %vm1109_vm6 = vcmask 1046528   ;;  %vm1153_vm7 = vcmask 97280   ;;  %vm1515_vm8 = vcmask 1045504  }
  0x11   : > { %s2621_s18 = sshll.u32 %s3533_s10, 5  ;;  %s525_s21 = scalar_lea.vmem %s3504_s3, %s3533_s10 }
  0x12   : > { %s2129_s22 = sshll.u32 %s499_s17, 1  ;;  %s528_s25 = scalar_lea.vmem %s3505_s4, %s3533_s10  ;;  %v2640_v0 = vld [vmem:[%s525_s21] ss:$0 sm:$0xff] }
  0x13   : > { %s502_s26 = sadd.s32 %s2129_s22, %s2621_s18  ;;  %s2633_s29 = scalar_lea.vmem %s3509_s8, %s3533_s10  ;;  %v2652_v1 = vld [vmem:[%s528_s25] ss:$0 sm:$0xff] }
  0x14   : > { %s2131_s15 = sshll.u32 %s502_s26, 3  ;;  %s2638_s11 = scalar_lea.vmem %s3510_s9, %s3533_s10 }
  0x15   : > { %s2645_s20 = scalar_lea.vmem %s3502_s1, %s2131_s15  ;;  %s2650_s24 = scalar_lea.vmem %s3508_s7, %s2131_s15 }
  0x16   : > { %v595_v2 = vld [vmem:[%s2645_s20 + $0x48] sm:$0xff]  ;;  %v594_v3 = vld [vmem:[%s2645_s20 + $0x40] sm:$0xff]  ;;  %v596_v4 = vld [vmem:[%s2645_s20 + $0x50] sm:$0xff]  ;;  %s507_s10 = sadd.s32 8, %s2617_s16 }
  0x17   : > { %v611_v5 = vmul.f32 %v2640_v0, %v595_v2  ;;  %v610_v6 = vmul.f32 %v2640_v0, %v594_v3  ;;  %v612_v7 = vmul.f32 %v2640_v0, %v596_v4  ;;  %v597_v8 = vld [vmem:[%s2645_s20 + $0x58] sm:$0xff]  ;;  %v586_v9 = vld [vmem:[%s2645_s20] sm:$0xff]  ;;  %v587_v10 = vld [vmem:[%s2645_s20 + $0x8] sm:$0xff]  ;;  %p2664_p7 = scmp.lt.s32.totalorder %s507_s10, 15 }
  0x18   : > { %v613_v11 = vmul.f32 %v2640_v0, %v597_v8  ;;  %v602_v12 = vmul.f32 %v2640_v0, %v586_v9  ;;  %v603_v13 = vmul.f32 %v2640_v0, %v587_v10  ;;  %v588_v14 = vld [vmem:[%s2645_s20 + $0x10] sm:$0xff]  ;;  %v589_v15 = vld [vmem:[%s2645_s20 + $0x18] sm:$0xff]  ;;  %v598_v24 = vld [vmem:[%s2645_s20 + $0x60] sm:$0xff]  ;;  %s481_s28 = scalar_select %p480_p8, %s2705_s14, 0 }
  0x19   : > { %v2674_v16 = vadd.f32 %v2652_v1, %v611_v5  ;;  %v2677_v17 = vadd.f32 %v2652_v1, %v610_v6  ;;  %v2680_v18 = vadd.f32 %v2652_v1, %v612_v7  ;;  %v604_v19 = vmul.f32 %v2640_v0, %v588_v14  ;;  %s3535_s10 = smov (!%p2664_p7, %s507_s10), 15  ;;  %v599_v25 = vld [vmem:[%s2645_s20 + $0x68] sm:$0xff]  ;;  %v592_v37 = vld [vmem:[%s2645_s20 + $0x30] sm:$0xff]  ;;  %v593_v38 = vld [vmem:[%s2645_s20 + $0x38] sm:$0xff] }
  0x1a   : > { %v2686_v20 = vadd.f32 %v2652_v1, %v613_v11  ;;  %v2689_v21 = vadd.f32 %v2652_v1, %v602_v12  ;;  %v2692_v22 = vadd.f32 %v2652_v1, %v603_v13  ;;  %v605_v23 = vmul.f32 %v2640_v0, %v589_v15  ;;  %s3537_s10 = smov (!%p2664_p7, %s3535_s10), 15  ;;  %s3539_s28 = smov (!%p2120_p9, %s481_s28), 15  ;;  %v590_v55 = vld [vmem:[%s2645_s20 + $0x20] sm:$0xff]  ;;  %v591_v58 = vld [vmem:[%s2645_s20 + $0x28] sm:$0xff] }
  0x1b   : > { %v2156_v26 = vmul.f32 -1.442695, %v2674_v16  ;;  %v2155_v27 = vmul.f32 -1.442695, %v2677_v17  ;;  %v2157_v28 = vmul.f32 -1.442695, %v2680_v18  ;;  %v2701_v29 = vadd.f32 %v2652_v1, %v604_v19 }
  0x1c   : > { %v2158_v30 = vmul.f32 -1.442695, %v2686_v20  ;;  %v2147_v31 = vmul.f32 -1.442695, %v2689_v21  ;;  %v614_v32 = vmul.f32 %v2640_v0, %v598_v24  ;;  %v2148_v33 = vmul.f32 -1.442695, %v2692_v22 }
  0x1d   : > { %2411 = vpow2.f32 %v2156_v26  ;;  %v2713_v34 = vadd.f32 %v2652_v1, %v605_v23  ;;  %v615_v35 = vmul.f32 %v2640_v0, %v599_v25  ;;  %v2149_v36 = vmul.f32 -1.442695, %v2701_v29  ;;  %s2136_s15 = sshll.u32 %s3537_s10, 1  ;;  %s2125_s19 = sshll.u32 %s3539_s28, 1 }
  0x1e   : > { %2413 = vpow2.f32 %v2155_v27  ;;  %s516_s16 = sadd.s32 %s2136_s15, %s2621_s18  ;;  %v2722_v39 = vadd.f32 %v2652_v1, %v614_v32  ;;  %v608_v42 = vmul.f32 %v2640_v0, %v592_v37  ;;  %v609_v43 = vmul.f32 %v2640_v0, %v593_v38  ;;  %s488_s17 = sadd.s32 %s2621_s18, %s2125_s19  ;;  %v601_v37 = vld [vmem:[%s2645_s20 + $0x78] sm:$0xff] }
  0x1f   : > { %2415 = vpow2.f32 %v2157_v28  ;;  %s2138_s21 = sshll.u32 %s516_s16, 3  ;;  %v2150_v40 = vmul.f32 -1.442695, %v2713_v34  ;;  %v2727_v41 = vadd.f32 %v2652_v1, %v615_v35  ;;  %s2127_s23 = sshll.u32 %s488_s17, 3  ;;  %v606_v61 = vmul.f32 %v2640_v0, %v590_v55 }
  0x20   : > { %2417 = vpow2.f32 %v2158_v30  ;;  %s518_s27 = scalar_lea.vmem %s3503_s2, %s2138_s21  ;;  %v2159_v48 = vmul.f32 -1.442695, %v2722_v39  ;;  %v2741_v49 = vadd.f32 %v2652_v1, %v608_v42  ;;  %v2744_v50 = vadd.f32 %v2652_v1, %v609_v43  ;;  %s490_s12 = scalar_lea.vmem %s3501_s0, %s2127_s23  ;;  %v600_v30 = vld [vmem:[%s2645_s20 + $0x70] sm:$0xff] }
  0x21   : > { %2419 = vpow2.f32 %v2147_v31  ;;  %v747_v44 = vld [vmem:[%s518_s27] sm:$0xff]  ;;  %v748_v45 = vld [vmem:[%s518_s27 + $0x8] sm:$0xff]  ;;  %v2160_v51 = vmul.f32 -1.442695, %v2727_v41  ;;  %v607_v8 = vmul.f32 %v2640_v0, %v591_v58  ;;  %v2774_v23 = vadd.f32 %v2652_v1, %v606_v61  ;;  %s2531_s18 = smov 4   ;;  %s2532_s21 = smov 8  }
  0x22   : > { %2421 = vpow2.f32 %v2148_v33  ;;  %v749_v46 = vmul.f32 %v2640_v0, %v747_v44  ;;  %v750_v47 = vmul.f32 %v2640_v0, %v748_v45  ;;  %v2153_v54 = vmul.f32 -1.442695, %v2741_v49  ;;  %v549_v62 = vld [vmem:[%s490_s12] sm:$0xff]  ;;  %v550_v63 = vld [vmem:[%s490_s12 + $0x8] sm:$0xff]  ;;  %s767_s25 = scalar_select %p746_p10, 1, 0 }
  0x23   : > { %2423 = vpow2.f32 %v2149_v36  ;;  %v2154_v56 = vmul.f32 -1.442695, %v2744_v50  ;;  %v557_v4 = vmul.f32 %v2640_v0, %v549_v62  ;;  %v558_v5 = vmul.f32 %v2640_v0, %v550_v63  ;;  %s581_s26 = scalar_select %p548_p11, 1, 0 }
  0x24   : > { %2425 = vpow2.f32 %v2150_v40  ;;  %v2750_v52 = vadd.f32 %v2652_v1, %v749_v46  ;;  %v2753_v53 = vadd.f32 %v2652_v1, %v750_v47  ;;  %v2777_v25 = vadd.f32 %v2652_v1, %v607_v8 }
  0x25   : > { %2427 = vpow2.f32 %v2159_v48  ;;  %v2768_v11 = vadd.f32 %v2652_v1, %v557_v4  ;;  %v2771_v12 = vadd.f32 %v2652_v1, %v558_v5  ;;  %v2151_v27 = vmul.f32 -1.442695, %v2774_v23 }
  0x26   : > { %2429 = vpow2.f32 %v2160_v51  ;;  %v2152_v28 = vmul.f32 -1.442695, %v2777_v25  ;;  %v616_v36 = vmul.f32 %v2640_v0, %v600_v30  ;;  %v2163_v42 = vmul.f32 -1.442695, %v2750_v52 }
  0x27   : > { %2431 = vpow2.f32 %v2153_v54  ;;  %v2164_v45 = vmul.f32 -1.442695, %v2753_v53  ;;  %v617_v48 = vmul.f32 %v2640_v0, %v601_v37  ;;  %v2145_v51 = vmul.f32 -1.442695, %v2768_v11 }
  0x28   : > { %2433 = vpow2.f32 %v2154_v56 }
  0x29   : > { %v2806_v4 = vadd.f32 %v2652_v1, %v617_v48 }
  0x2a   : > { %v2412_v57 = vpop.eup %2411 }
  0x2b   : > { %v2414_v59 = vpop.eup %2413  ;;  %v691_v60 = vadd.f32 1.0, %v2412_v57  ;;  %v2791_v57 = vadd.f32 %v2652_v1, %v616_v36 }
  0x2c   : > { %v2416_v2 = vpop.eup %2415  ;;  %v690_v3 = vadd.f32 1.0, %v2414_v59 }
  0x2d   : > { %v2418_v6 = vpop.eup %2417  ;;  %2435 = vrcp.f32 %v691_v60  ;;  %v692_v7 = vadd.f32 1.0, %v2416_v2 }
  0x2e   : > { %v2420_v9 = vpop.eup %2419  ;;  %2437 = vrcp.f32 %v690_v3  ;;  %v693_v10 = vadd.f32 1.0, %v2418_v6  ;;  %v2166_v6 = vld [vmem:[%s3506_s5 + $0x18] sm:$0xf] }
  0x2f   : > { %v2422_v13 = vpop.eup %2421  ;;  %2439 = vrcp.f32 %v692_v7  ;;  %v682_v14 = vadd.f32 1.0, %v2420_v9  ;;  %2364 = vmatprep.subr.msk.mxu1 %vm1186_vm1, %v2166_v6  ;;  %2280 = vmatprep.subr.msk.mxu0 %vm1186_vm1, %v2166_v6 }
  0x30   : > { %v2424_v15 = vpop.eup %2423  ;;  %2441 = vrcp.f32 %v693_v10  ;;  %v683_v19 = vadd.f32 1.0, %v2422_v13  ;;  %v2165_v13 = vld [vmem:[%s3506_s5 + $0x10] sm:$0xff]  ;;  %2366 = vmatpush3.msk.msra.mxu1 %vm1186_vm1, %v2166_v6  ;;  %2281 = vmatpush3.msk.msra.mxu0 %vm1186_vm1, %v2166_v6 }
  0x31   : > { %2443 = vrcp.f32 %v682_v14  ;;  %v684_v24 = vadd.f32 1.0, %v2424_v15  ;;  %v2426_v26 = vpop.eup %2425  ;;  %2365 = vmatprep.subr.mxu1 %v2165_v13  ;;  %2282 = vmatprep.subr.mxu0 %v2165_v13 }
  0x32   : > { %2445 = vrcp.f32 %v683_v19  ;;  %v2428_v31 = vpop.eup %2427  ;;  %v685_v32 = vadd.f32 1.0, %v2426_v26  ;;  %2367 = vmatpush3.msra.mxu1 %v2165_v13  ;;  %2283 = vmatpush3.msra.mxu0 %v2165_v13 }
  0x33   : > { %2447 = vrcp.f32 %v684_v24  ;;  %v2430_v33 = vpop.eup %2429  ;;  %v694_v56 = vadd.f32 1.0, %v2428_v31 }
  0x34   : > { %v2432_v35 = vpop.eup %2431  ;;  %2449 = vpow2.f32 %v2151_v27  ;;  %v695_v10 = vadd.f32 1.0, %v2430_v33  ;;  %v2162_v27 = vmul.f32 -1.442695, %v2806_v4 }
  0x35   : > { %v2434_v38 = vpop.eup %2433  ;;  %2451 = vpow2.f32 %v2152_v28  ;;  %v688_v40 = vadd.f32 1.0, %v2432_v35 }
  0x36   : > { %2453 = vrcp.f32 %v685_v32  ;;  %v689_v44 = vadd.f32 1.0, %v2434_v38 }
  0x37   : > { %2455 = vrcp.f32 %v688_v40 }
  0x38   : > { %2457 = vrcp.f32 %v689_v44 }
  0x39   : > { %2459 = vpow2.f32 %v2163_v42 }
  0x3a   : > { %v2436_v43 = vpop.eup %2435  ;;  %2461 = vpow2.f32 %v2164_v45 }
  0x3b   : > { %v2438_v46 = vpop.eup %2437  ;;  %v739_v47 = vmul.f32 %v2436_v43, %v2674_v16  ;;  %v2146_v16 = vmul.f32 -1.442695, %v2771_v12  ;;  %2463 = vpow2.f32 %v2145_v51 }
  0x3c   : > { %v2440_v54 = vpop.eup %2439  ;;  %v738_v55 = vmul.f32 %v2438_v46, %v2677_v17  ;;  %2465 = vrcp.f32 %v694_v56 }
  0x3d   : > { %v2442_v58 = vpop.eup %2441  ;;  %v809_v59 = vrot.slane %v739_v47, 7  ;;  %v740_v60 = vmul.f32 %v2440_v54, %v2680_v18  ;;  %2467 = vpow2.f32 %v2146_v16 }
  0x3e   : > { %v2444_v61 = vpop.eup %2443  ;;  %v808_v0 = vrot.slane %v738_v55, 7  ;;  %v741_v62 = vmul.f32 %v2442_v58, %v2686_v20 }
  0x3f   : > { %v2446_v63 = vpop.eup %2445  ;;  %v2797_v17 = vsel %vm792_vm0, %v809_v59, 0.0  ;;  %v811_v2 = vrot.slane %v740_v60, 7  ;;  %v730_v3 = vmul.f32 %v2444_v61, %v2689_v21  ;;  %v2161_v21 = vmul.f32 -1.442695, %v2791_v57 }
  0x40   : > { %915 = vrot.lane.b32.xlu1 %v2797_v17, %s2531_s18  ;;  %v2803_v18 = vsel %vm792_vm0, 0.0, %v808_v0  ;;  %v2448_v7 = vpop.eup %2447  ;;  %v2818_v8 = vsel %vm792_vm0, %v808_v0, %v809_v59  ;;  %v812_v1 = vrot.slane %v741_v62, 7  ;;  %v731_v9 = vmul.f32 %v2446_v63, %v2692_v22 }
  0x41   : > { %911 = vrot.lane.b32.xlu0 %v2803_v18, %s2531_s18  ;;  %v2811_v20 = vsel %vm792_vm0, 0.0, %v811_v2  ;;  %v796_v5 = vrot.slane %v730_v3, 7  ;;  %v2450_v14 = vpop.eup %2449  ;;  %v732_v22 = vmul.f32 %v2448_v7, %v2701_v29  ;;  %2469 = vpow2.f32 %v2161_v21 }
  0x42   : > { %v2452_v19 = vpop.eup %2451  ;;  %v2835_v24 = vsel %vm792_vm0, %v811_v2, %v812_v1  ;;  %v797_v26 = vrot.slane %v731_v9, 7  ;;  %2471 = vrcp.f32 %v695_v10  ;;  %v686_v29 = vadd.f32 1.0, %v2450_v14 }
  0x43   : > { %v2830_v15 = vsel %vm792_vm0, 0.0, %v796_v5  ;;  %v2454_v28 = vpop.eup %2453  ;;  %v2845_v32 = vsel %vm792_vm0, %v812_v1, 0.0  ;;  %v799_v33 = vrot.slane %v732_v22, 7  ;;  %2473 = vpow2.f32 %v2162_v27 }
  0x44   : > { %985 = vrot.lane.b32.xlu1 %v2811_v20, %s2532_s21  ;;  %v2456_v30 = vpop.eup %2455  ;;  %v2849_v37 = vsel %vm792_vm0, %v796_v5, %v797_v26  ;;  %v733_v38 = vmul.f32 %v2454_v28, %v2713_v34  ;;  %v687_v43 = vadd.f32 1.0, %v2452_v19  ;;  %2475 = vrcp.f32 %v686_v29 }
  0x45   : > { %913 = vrot.lane.b32.xlu0 %v2818_v8, %s2531_s18  ;;  %v2458_v31 = vpop.eup %2457  ;;  %v736_v35 = vmul.f32 %v2456_v30, %v2741_v49  ;;  %v2856_v49 = vsel %vm792_vm0, %v797_v26, 0.0  ;;  %v2861_v34 = vsel %vm792_vm0, 0.0, %v799_v33  ;;  %v768_v21 = vstv %s767_s25 }
  0x46   : > { %v2460_v36 = vpop.eup %2459  ;;  %v737_v40 = vmul.f32 %v2458_v31, %v2744_v50  ;;  %v800_v56 = vrot.slane %v733_v38, 7  ;;  %v582_v1 = vstv %s581_s26  ;;  %vm2897_vm2 = vcmp.eq.s32.totalorder %v768_v21, 1  ;;  %v1084_v21 = vld [vmem:[%s3506_s5 + $0x8] sm:$0xf] }
  0x47   : > { %v2462_v42 = vpop.eup %2461  ;;  %v805_v44 = vrot.slane %v736_v35, 7  ;;  %v759_v45 = vadd.f32 1.0, %v2460_v36  ;;  %vm2906_vm3 = vcmp.eq.s32.totalorder %v582_v1, 1  ;;  %2308 = vmatprep.subr.msk.mxu1 %vm1186_vm1, %v1084_v21 }
  0x48   : > { %887 = vrot.lane.b32.xlu1 %v2830_v15, %s2531_s18  ;;  %v2464_v46 = vpop.eup %2463  ;;  %v806_v47 = vrot.slane %v737_v40, 7  ;;  %v760_v48 = vadd.f32 1.0, %v2462_v42  ;;  %v2880_v0 = vsel %vm792_vm0, %v799_v33, %v800_v56  ;;  %v2887_v63 = vsel %vm792_vm0, %v800_v56, 0.0 }
  0x49   : > { %987 = vrot.lane.b32.xlu0 %v2835_v24, %s2532_s21  ;;  %v2466_v51 = vpop.eup %2465  ;;  %v2864_v50 = vsel %vm792_vm0, 0.0, %v805_v44  ;;  %2477 = vrcp.f32 %v759_v45  ;;  %v573_v54 = vadd.f32 1.0, %v2464_v46 }
  0x4a   : > { %v2468_v55 = vpop.eup %2467  ;;  %v2867_v58 = vsel %vm792_vm0, %v805_v44, %v806_v47  ;;  %v2870_v59 = vsel %vm792_vm0, %v806_v47, 0.0  ;;  %2479 = vrcp.f32 %v760_v48  ;;  %v742_v16 = vmul.f32 %v2466_v51, %v2722_v39 }
  0x4b   : > { %2481 = vrcp.f32 %v573_v54  ;;  %v574_v60 = vadd.f32 1.0, %v2468_v55 }
  0x4c   : > { %989 = vrot.lane.b32.xlu1 %v2845_v32, %s2532_s21  ;;  %v814_v2 = vrot.slane %v742_v16, 7 }
  0x4d   : > { %889 = vrot.lane.b32.xlu0 %v2849_v37, %s2531_s18  ;;  %2483 = vrcp.f32 %v574_v60 }
  0x4e   : > { %v2470_v61 = vpop.eup %2469  ;;  %2485 = vrcp.f32 %v687_v43  ;;  %v2895_v7 = vsel %vm792_vm0, 0.0, %v814_v2 }
  0x4f   : > { %v2472_v62 = vpop.eup %2471  ;;  %v696_v39 = vadd.f32 1.0, %v2470_v61 }
  0x50   : > { %961 = vrot.lane.b32.xlu1 %v2861_v34, %s2532_s21  ;;  %v743_v3 = vmul.f32 %v2472_v62, %v2727_v41  ;;  %v2474_v5 = vpop.eup %2473 }
  0x51   : > { %891 = vrot.lane.b32.xlu0 %v2856_v49, %s2531_s18  ;;  %v2476_v6 = vpop.eup %2475  ;;  %2487 = vrcp.f32 %v696_v39  ;;  %v697_v13 = vadd.f32 1.0, %v2474_v5 }
  0x52   : > { %v815_v10 = vrot.slane %v743_v3, 7  ;;  %v734_v26 = vmul.f32 %v2476_v6, %v2774_v23  ;;  %v3000_v6 = vld [vmem:[%s3506_s5 + $0x28] sm:$0xf] }
  0x53   : > { %2489 = vrcp.f32 %v697_v13  ;;  %2336 = vmatprep.subr.msk.mxu0 %vm1186_vm1, %v3000_v6 }
  0x54   : > { %917 = vrot.lane.b32.xlu1 %v2811_v20, %s2531_s18  ;;  %v2916_v31 = vsel %vm792_vm0, %v814_v2, %v815_v10  ;;  %v2929_v43 = vsel %vm792_vm0, %v815_v10, 0.0 }
  0x55   : > { %963 = vrot.lane.b32.xlu0 %v2880_v0, %s2532_s21 }
  0x56   : > { %v2478_v9 = vpop.eup %2477 }
  0x57   : > { %v2480_v41 = vpop.eup %2479  ;;  %v765_v22 = vmul.f32 %v2478_v9, %v2750_v52 }
  0x58   : > { %965 = vrot.lane.b32.xlu1 %v2887_v63, %s2532_s21  ;;  %v2482_v19 = vpop.eup %2481  ;;  %v766_v27 = vmul.f32 %v2480_v41, %v2753_v53 }
  0x59   : > { %919 = vrot.lane.b32.xlu0 %v2835_v24, %s2531_s18  ;;  %v770_v30 = vsel %vm2897_vm2, %v765_v22, 0.0  ;;  %v579_v52 = vmul.f32 %v2482_v19, %v2768_v11  ;;  %v802_v11 = vrot.slane %v734_v26, 7 }
  0x5a   : > { %v2484_v29 = vpop.eup %2483  ;;  %v771_v53 = vsel %vm2897_vm2, %v766_v27, 0.0  ;;  %v820_v23 = vrot.slane %v770_v30, 7 }
  0x5b   : > { %v2486_v33 = vpop.eup %2485  ;;  %v821_v35 = vrot.slane %v771_v53, 7  ;;  %v584_v36 = vsel %vm2906_vm3, %v579_v52, 0.0  ;;  %v580_v38 = vmul.f32 %v2484_v29, %v2771_v12  ;;  %v2950_v55 = vsel %vm792_vm0, 0.0, %v802_v11 }
  0x5c   : > { %991 = vrot.lane.b32.xlu1 %v2895_v7, %s2532_s21  ;;  %v860_v40 = vsel %vm792_vm0, 0.0, %v820_v23  ;;  %v793_v42 = vrot.slane %v584_v36, 7  ;;  %v735_v46 = vmul.f32 %v2486_v33, %v2777_v25  ;;  %v1083_v36 = vld [vmem:[%s3506_s5] sm:$0xff] }
  0x5d   : > { %921 = vrot.lane.b32.xlu0 %v2845_v32, %s2531_s18  ;;  %v822_v44 = vsel %vm792_vm0, %v820_v23, %v821_v35  ;;  %v870_v45 = vsel %vm792_vm0, %v821_v35, 0.0  ;;  %v585_v12 = vsel %vm2906_vm3, %v580_v38, 0.0 }
  0x5e   : > { %v2937_v47 = vsel %vm792_vm0, 0.0, %v793_v42  ;;  %v794_v48 = vrot.slane %v585_v12, 7  ;;  %v2488_v25 = vpop.eup %2487  ;;  %v803_v56 = vrot.slane %v735_v46, 7 }
  0x5f   : > { %v744_v60 = vmul.f32 %v2488_v25, %v2791_v57 }
  0x60   : > { %893 = vrot.lane.b32.xlu1 %v2861_v34, %s2531_s18  ;;  %v2942_v51 = vsel %vm792_vm0, %v793_v42, %v794_v48  ;;  %v2945_v54 = vsel %vm792_vm0, %v794_v48, 0.0  ;;  %v2958_v16 = vsel %vm792_vm0, %v802_v11, %v803_v56  ;;  %v2490_v61 = vpop.eup %2489  ;;  %v2965_v62 = vsel %vm792_vm0, %v803_v56, 0.0 }
  0x61   : > { %993 = vrot.lane.b32.xlu0 %v2916_v31, %s2532_s21  ;;  %v817_v2 = vrot.slane %v744_v60, 7  ;;  %v745_v39 = vmul.f32 %v2490_v61, %v2806_v4 }
  0x63   : > { %v859_v57 = vsel %vm792_vm0, 0.0, %v817_v2  ;;  %v818_v3 = vrot.slane %v745_v39, 7  ;;  %v2201_v39 = vld [vmem:[%s3506_s5 + $0x20] sm:$0xff] }
  0x64   : > { %995 = vrot.lane.b32.xlu1 %v2929_v43, %s2532_s21 }
  0x65   : > { %895 = vrot.lane.b32.xlu0 %v2880_v0, %s2531_s18  ;;  %v819_v5 = vsel %vm792_vm0, %v817_v2, %v818_v3  ;;  %v869_v4 = vsel %vm792_vm0, %v818_v3, 0.0 }
  0x68   : > { %967 = vrot.lane.b32.xlu1 %v2950_v55, %s2532_s21 }
  0x69   : > { %897 = vrot.lane.b32.xlu0 %v2887_v63, %s2531_s18 }
  0x6c   : > { %923 = vrot.lane.b32.xlu1 %v2895_v7, %s2531_s18 }
  0x6d   : > { %969 = vrot.lane.b32.xlu0 %v2958_v16, %s2532_s21 }
  0x70   : > { %971 = vrot.lane.b32.xlu1 %v2965_v62, %s2532_s21 }
  0x71   : > { %925 = vrot.lane.b32.xlu0 %v2916_v31, %s2531_s18 }
  0x74   : > { %997 = vrot.lane.b32.xlu1 %v859_v57, %s2532_s21 }
  0x75   : > { %927 = vrot.lane.b32.xlu0 %v2929_v43, %s2531_s18 }
  0x78   : > { %899 = vrot.lane.b32.xlu1 %v2950_v55, %s2531_s18 }
  0x79   : > { %999 = vrot.lane.b32.xlu0 %v819_v5, %s2532_s21 }
  0x7c   : > { %1001 = vrot.lane.b32.xlu1 %v869_v4, %s2532_s21 }
  0x7d   : > { %901 = vrot.lane.b32.xlu0 %v2958_v16, %s2531_s18 }
  0x80   : > { %973 = vrot.lane.b32.xlu1 %v2864_v50, %s2532_s21 }
  0x81   : > { %903 = vrot.lane.b32.xlu0 %v2965_v62, %s2531_s18 }
  0x84   : > { %929 = vrot.lane.b32.xlu1 %v859_v57, %s2531_s18 }
  0x85   : > { %975 = vrot.lane.b32.xlu0 %v2867_v58, %s2532_s21 }
  0x88   : > { %977 = vrot.lane.b32.xlu1 %v2870_v59, %s2532_s21 }
  0x89   : > { %931 = vrot.lane.b32.xlu0 %v819_v5, %s2531_s18 }
  0x8c   : > { %1003 = vrot.lane.b32.xlu1 %v860_v40, %s2532_s21 }
  0x8d   : > { %933 = vrot.lane.b32.xlu0 %v869_v4, %s2531_s18 }
  0x90   : > { %905 = vrot.lane.b32.xlu1 %v2864_v50, %s2531_s18 }
  0x91   : > { %1005 = vrot.lane.b32.xlu0 %v822_v44, %s2532_s21 }
  0x94   : > { %1007 = vrot.lane.b32.xlu1 %v870_v45, %s2532_s21 }
  0x95   : > { %907 = vrot.lane.b32.xlu0 %v2867_v58, %s2531_s18 }
  0x98   : > { %979 = vrot.lane.b32.xlu1 %v2803_v18, %s2532_s21 }
  0x99   : > { %909 = vrot.lane.b32.xlu0 %v2870_v59, %s2531_s18 }
  0x9c   : > { %983 = vrot.lane.b32.xlu1 %v2797_v17, %s2532_s21 }
  0x9d   : > { %981 = vrot.lane.b32.xlu0 %v2818_v8, %s2532_s21 }
  0xb2   : > { %v916_v1 = vpop.permute.xlu1 %915 }
  0xb3   : > { %v912_v9 = vpop.permute.xlu0 %911 }
  0xb4   : > { %v1046_v14 = vsel %vm1033_vm4, %v2864_v50, %v912_v9  ;;  %v1048_v50 = vsel %vm1033_vm4, %v2870_v59, %v916_v1 }
  0xb6   : > { %v986_v10 = vpop.permute.xlu1 %985 }
  0xb7   : > { %v914_v13 = vpop.permute.xlu0 %913  ;;  %v3024_v41 = vsel %vm1058_vm5, %v1046_v14, %v986_v10 }
  0xb8   : > { %v1047_v19 = vsel %vm1033_vm4, %v2867_v58, %v914_v13  ;;  %v1130_v28 = vrot.slane %v3024_v41, 1 }
  0xba   : > { %v888_v22 = vpop.permute.xlu1 %887 }
  0xbb   : > { %v988_v26 = vpop.permute.xlu0 %987  ;;  %v1034_v59 = vsel %vm1033_vm4, %v2937_v47, %v888_v22 }
  0xbc   : > { %v3029_v27 = vsel %vm1058_vm5, %v1047_v19, %v988_v26 }
  0xbd   : > { %v1131_v30 = vrot.slane %v3029_v27, 1 }
  0xbe   : > { %v990_v52 = vpop.permute.xlu1 %989 }
  0xbf   : > { %v3036_v29 = vsel %vm1058_vm5, %v1048_v50, %v990_v52  ;;  %v890_v53 = vpop.permute.xlu0 %889  ;;  %v1132_v58 = vsel %vm1109_vm6, %v1130_v28, %v1131_v30 }
  0xc0   : > { %v1133_v23 = vrot.slane %v3036_v29, 1  ;;  %2296 = vmatprep.mubr.msk.f32.mxu1 %vm1153_vm7, %v1132_v58  ;;  %v1035_v42 = vsel %vm1033_vm4, %v2942_v51, %v890_v53 }
  0xc2   : > { %v962_v33 = vpop.permute.xlu1 %961  ;;  %v1134_v35 = vsel %vm1109_vm6, %v1131_v30, %v1133_v23 }
  0xc3   : > { %v892_v38 = vpop.permute.xlu0 %891  ;;  %2297 = vmatmul.mubr.msk.f32.vlgmr.msra.gmra.mxu1 %vm1153_vm7, %v1134_v35  ;;  %v3050_v11 = vsel %vm1058_vm5, %v1034_v59, %v962_v33 }
  0xc4   : > { %2309 = vmatpush3.msk.msra.mxu1 %vm1186_vm1, %v1084_v21  ;;  %v1110_v12 = vrot.slane %v3050_v11, 1  ;;  %v1036_v47 = vsel %vm1033_vm4, %v2945_v54, %v892_v38 }
  0xc5   : > { %2310 = vmatprep.subr.mxu1 %v1083_v36 }
  0xc6   : > { %v918_v40 = vpop.permute.xlu1 %917  ;;  %2311 = vmatpush3.msra.mxu1 %v1083_v36 }
  0xc7   : > { %v964_v44 = vpop.permute.xlu0 %963  ;;  %v1049_v54 = vsel %vm1033_vm4, %v2803_v18, %v918_v40 }
  0xc8   : > { %v3055_v45 = vsel %vm1058_vm5, %v1035_v42, %v964_v44 }
  0xc9   : > { %v1111_v46 = vrot.slane %v3055_v45, 1 }
  0xca   : > { %v966_v48 = vpop.permute.xlu1 %965 }
  0xcb   : > { %v3062_v25 = vsel %vm1058_vm5, %v1036_v47, %v966_v48  ;;  %v920_v56 = vpop.permute.xlu0 %919  ;;  %v1112_v60 = vsel %vm1109_vm6, %v1110_v12, %v1111_v46 }
  0xcc   : > { %v1113_v51 = vrot.slane %v3062_v25, 1  ;;  %2284 = vmatprep.mubr.msk.f32.mxu0 %vm1153_vm7, %v1112_v60  ;;  %v1050_v4 = vsel %vm1033_vm4, %v2818_v8, %v920_v56 }
  0xce   : > { %v992_v61 = vpop.permute.xlu1 %991  ;;  %v1114_v2 = vsel %vm1109_vm6, %v1111_v46, %v1113_v51 }
  0xcf   : > { %v922_v57 = vpop.permute.xlu0 %921  ;;  %2285 = vmatmul.mubr.msk.f32.vlgmr.msra.gmra.mxu0 %vm1153_vm7, %v1114_v2  ;;  %v3077_v3 = vsel %vm1058_vm5, %v1049_v54, %v992_v61 }
  0xd0   : > { %2337 = vmatpush3.msk.msra.mxu0 %vm1186_vm1, %v3000_v6  ;;  %v1135_v9 = vrot.slane %v3077_v3, 1  ;;  %v1051_v18 = vsel %vm1033_vm4, %v2797_v17, %v922_v57 }
  0xd1   : > { %2338 = vmatprep.subr.mxu0 %v2201_v39 }
  0xd2   : > { %v894_v5 = vpop.permute.xlu1 %893  ;;  %2339 = vmatpush3.msra.mxu0 %v2201_v39 }
  0xd3   : > { %v994_v21 = vpop.permute.xlu0 %993  ;;  %v1037_v17 = vsel %vm1033_vm4, %v2830_v15, %v894_v5 }
  0xd4   : > { %v3082_v1 = vsel %vm1058_vm5, %v1050_v4, %v994_v21 }
  0xd5   : > { %v1136_v6 = vrot.slane %v3082_v1, 1 }
  0xd6   : > { %v996_v10 = vpop.permute.xlu1 %995 }
  0xd7   : > { %v3089_v13 = vsel %vm1058_vm5, %v1051_v18, %v996_v10  ;;  %v896_v14 = vpop.permute.xlu0 %895  ;;  %v1137_v22 = vsel %vm1109_vm6, %v1135_v9, %v1136_v6 }
  0xd8   : > { %v1138_v8 = vrot.slane %v3089_v13, 1  ;;  %2299 = vmatprep.mubr.msk.f32.mxu1 %vm1153_vm7, %v1137_v22  ;;  %v1038_v52 = vsel %vm1033_vm4, %v2849_v37, %v896_v14 }
  0xda   : > { %v968_v19 = vpop.permute.xlu1 %967  ;;  %v1139_v26 = vsel %vm1109_vm6, %v1136_v6, %v1138_v8 }
  0xdb   : > { %v898_v28 = vpop.permute.xlu0 %897  ;;  %2300 = vmatmul.mubr.msk.f32.gmra.mxu1 %vm1153_vm7, %v1139_v26  ;;  %v3099_v30 = vsel %vm1058_vm5, %v1037_v17, %v968_v19 }
  0xdc   : > { %v1115_v23 = vrot.slane %v3099_v30, 1  ;;  %v1039_v35 = vsel %vm1033_vm4, %v2856_v49, %v898_v28 }
  0xde   : > { %v924_v50 = vpop.permute.xlu1 %923 }
  0xdf   : > { %v970_v53 = vpop.permute.xlu0 %969  ;;  %v1052_v49 = vsel %vm1033_vm4, %v2811_v20, %v924_v50 }
  0xe0   : > { %v3104_v58 = vsel %vm1058_vm5, %v1038_v52, %v970_v53 }
  0xe1   : > { %v1116_v33 = vrot.slane %v3104_v58, 1 }
  0xe2   : > { %v972_v36 = vpop.permute.xlu1 %971 }
  0xe3   : > { %v3111_v15 = vsel %vm1058_vm5, %v1039_v35, %v972_v36  ;;  %v926_v38 = vpop.permute.xlu0 %925  ;;  %v1117_v59 = vsel %vm1109_vm6, %v1115_v23, %v1116_v33 }
  0xe4   : > { %v1118_v37 = vrot.slane %v3111_v15, 1  ;;  %2287 = vmatprep.mubr.msk.f32.mxu0 %vm1153_vm7, %v1117_v59  ;;  %v1053_v47 = vsel %vm1033_vm4, %v2835_v24, %v926_v38 }
  0xe6   : > { %v998_v40 = vpop.permute.xlu1 %997  ;;  %v1119_v42 = vsel %vm1109_vm6, %v1116_v33, %v1118_v37 }
  0xe7   : > { %v928_v44 = vpop.permute.xlu0 %927  ;;  %2288 = vmatmul.mubr.msk.f32.gmra.mxu0 %vm1153_vm7, %v1119_v42  ;;  %v3121_v12 = vsel %vm1058_vm5, %v1052_v49, %v998_v40 }
  0xe8   : > { %v1140_v60 = vrot.slane %v3121_v12, 1  ;;  %v1054_v61 = vsel %vm1033_vm4, %v2845_v32, %v928_v44 }
  0xea   : > { %v900_v46 = vpop.permute.xlu1 %899 }
  0xeb   : > { %v1000_v48 = vpop.permute.xlu0 %999  ;;  %v1040_v32 = vsel %vm1033_vm4, %v2861_v34, %v900_v46 }
  0xec   : > { %v3126_v56 = vsel %vm1058_vm5, %v1053_v47, %v1000_v48 }
  0xed   : > { %v1141_v51 = vrot.slane %v3126_v56, 1 }
  0xee   : > { %v1002_v2 = vpop.permute.xlu1 %1001 }
  0xef   : > { %v3133_v20 = vsel %vm1058_vm5, %v1054_v61, %v1002_v2  ;;  %v902_v39 = vpop.permute.xlu0 %901  ;;  %v1142_v57 = vsel %vm1109_vm6, %v1140_v60, %v1141_v51 }
  0xf0   : > { %v1143_v24 = vrot.slane %v3133_v20, 1  ;;  %2302 = vmatprep.mubr.msk.f32.mxu1 %vm1153_vm7, %v1142_v57  ;;  %v1041_v6 = vsel %vm1033_vm4, %v2880_v0, %v902_v39 }
  0xf2   : > { %v974_v54 = vpop.permute.xlu1 %973  ;;  %v1144_v5 = vsel %vm1109_vm6, %v1141_v51, %v1143_v24 }
  0xf3   : > { %v904_v4 = vpop.permute.xlu0 %903  ;;  %2303 = vmatmul.mubr.msk.f32.gmra.mxu1 %vm1153_vm7, %v1144_v5  ;;  %v3143_v21 = vsel %vm1058_vm5, %v1040_v32, %v974_v54  ;;  %v1516_v5 = vrot.slane %v3050_v11, 2  ;;  %v1519_v32 = vrot.slane %v3062_v25, 2 }
  0xf4   : > { %v1120_v14 = vrot.slane %v3143_v21, 1  ;;  %v1042_v8 = vsel %vm1033_vm4, %v2887_v63, %v904_v4 }
  0xf6   : > { %v930_v9 = vpop.permute.xlu1 %929 }
  0xf7   : > { %v976_v18 = vpop.permute.xlu0 %975  ;;  %v1055_v63 = vsel %vm1033_vm4, %v2895_v7, %v930_v9  ;;  %v1521_v9 = vrot.slane %v3099_v30, 2 }
  0xf8   : > { %v3148_v10 = vsel %vm1058_vm5, %v1041_v6, %v976_v18  ;;  %v1524_v6 = vrot.slane %v3111_v15, 2 }
  0xf9   : > { %v1121_v22 = vrot.slane %v3148_v10, 1  ;;  %v1527_v18 = vrot.slane %v3148_v10, 2 }
  0xfa   : > { %v978_v19 = vpop.permute.xlu1 %977 }
  0xfb   : > { %v3155_v34 = vsel %vm1058_vm5, %v1042_v8, %v978_v19  ;;  %v932_v26 = vpop.permute.xlu0 %931  ;;  %v1122_v28 = vsel %vm1109_vm6, %v1120_v14, %v1121_v22  ;;  %v1526_v14 = vrot.slane %v3143_v21, 2 }
  0xfc   : > { %v1123_v0 = vrot.slane %v3155_v34, 1  ;;  %2290 = vmatprep.mubr.msk.f32.mxu0 %vm1153_vm7, %v1122_v28  ;;  %v1056_v33 = vsel %vm1033_vm4, %v2916_v31, %v932_v26  ;;  %v1536_v28 = vrot.slane %v3024_v41, 2 }
  0xfe   : > { %v1004_v17 = vpop.permute.xlu1 %1003  ;;  %v1124_v50 = vsel %vm1109_vm6, %v1121_v22, %v1123_v0  ;;  %v1539_v0 = vrot.slane %v3036_v29, 2  ;;  %v1544_v29 = vrot.slane %v3089_v13, 2  ;;  %v1549_v13 = vrot.slane %v3133_v20, 2 }
  0xff   : > { %v934_v52 = vpop.permute.xlu0 %933  ;;  %2291 = vmatmul.mubr.msk.f32.gmra.mxu0 %vm1153_vm7, %v1124_v50  ;;  %v3165_v53 = vsel %vm1058_vm5, %v1055_v63, %v1004_v17 }
 0x100   : > { %v1145_v38 = vrot.slane %v3165_v53, 1  ;;  %v1057_v37 = vsel %vm1033_vm4, %v2929_v43, %v934_v52 }
 0x102   : > { %v906_v23 = vpop.permute.xlu1 %905 }
 0x103   : > { %v1006_v35 = vpop.permute.xlu0 %1005  ;;  %v1043_v43 = vsel %vm1033_vm4, %v2950_v55, %v906_v23  ;;  %v1517_v55 = vrot.slane %v3055_v45, 2 }
 0x104   : > { %v3170_v36 = vsel %vm1058_vm5, %v1056_v33, %v1006_v35  ;;  %v1551_v35 = vrot.slane %v3165_v53, 2 }
 0x105   : > { %v1146_v59 = vrot.slane %v3170_v36, 1  ;;  %v1520_v25 = vsel %vm1515_vm8, %v1517_v55, %v1519_v32  ;;  %v1552_v33 = vrot.slane %v3170_v36, 2 }
 0x106   : > { %v1008_v40 = vpop.permute.xlu1 %1007 }
 0x107   : > { %v3177_v7 = vsel %vm1058_vm5, %v1057_v37, %v1008_v40  ;;  %v908_v42 = vpop.permute.xlu0 %907  ;;  %v1147_v44 = vsel %vm1109_vm6, %v1145_v38, %v1146_v59  ;;  %v1553_v20 = vsel %vm1515_vm8, %v1551_v35, %v1552_v33 }
 0x108   : > { %v1148_v31 = vrot.slane %v3177_v7, 1  ;;  %2305 = vmatprep.mubr.msk.f32.mxu1 %vm1153_vm7, %v1147_v44  ;;  %v1044_v61 = vsel %vm1033_vm4, %v2958_v16, %v908_v42  ;;  %v1554_v38 = vrot.slane %v3177_v7, 2 }
 0x10a   : > { %v980_v49 = vpop.permute.xlu1 %979  ;;  %v1149_v46 = vsel %vm1109_vm6, %v1146_v59, %v1148_v31 }
 0x10b   : > { %v910_v47 = vpop.permute.xlu0 %909  ;;  %2306 = vmatmul.mubr.msk.f32.gmra.mxu1 %vm1153_vm7, %v1149_v46  ;;  %v1068_v48 = vsel %vm1058_vm5, %v1043_v43, %v980_v49 }
 0x10c   : > { %2312 = vmatprep.mubr.msk.f32.mxu1 %vm1153_vm7, %v3050_v11  ;;  %v1045_v60 = vsel %vm1033_vm4, %v2965_v62, %v910_v47  ;;  %v1125_v54 = vrot.slane %v1068_v48, 1  ;;  %v1518_v11 = vsel %vm1515_vm8, %v1516_v5, %v1517_v55  ;;  %v1531_v8 = vrot.slane %v1068_v48, 2  ;;  %v3295_v5 = vld [vmem:[%s3507_s6] ss:$0 sm:$0xff] }
 0x10e   : > { %v984_v51 = vpop.permute.xlu1 %983 }
 0x10f   : > { %v1070_v2 = vsel %vm1058_vm5, %v1045_v60, %v984_v51  ;;  %v982_v39 = vpop.permute.xlu0 %981  ;;  %2313 = vmatmul.mubr.msk.f32.vlgmr.msra.gmra.mxu1 %vm1153_vm7, %v3055_v45  ;;  %v1522_v45 = vrot.slane %v3104_v58, 2 }
 0x110   : > { %v1128_v57 = vrot.slane %v1070_v2, 1  ;;  %v1069_v24 = vsel %vm1058_vm5, %v1044_v61, %v982_v39  ;;  %2315 = vmatprep.mubr.msk.f32.mxu1 %vm1153_vm7, %v3099_v30  ;;  %v1529_v30 = vrot.slane %v3155_v34, 2  ;;  %v1537_v34 = vrot.slane %v3029_v27, 2 }
 0x111   : > { %v1126_v62 = vrot.slane %v1069_v24, 1  ;;  %v1525_v15 = vsel %vm1515_vm8, %v1522_v45, %v1524_v6  ;;  %v1532_v22 = vrot.slane %v1069_v24, 2 }
 0x112   : > { %v1530_v19 = vsel %vm1515_vm8, %v1527_v18, %v1529_v30  ;;  %v1538_v50 = vsel %vm1515_vm8, %v1536_v28, %v1537_v34  ;;  %v1540_v52 = vsel %vm1515_vm8, %v1537_v34, %v1539_v0 }
 0x113   : > { %v1127_v16 = vsel %vm1109_vm6, %v1125_v54, %v1126_v62  ;;  %2316 = vmatmul.mubr.msk.f32.gmra.mxu1 %vm1153_vm7, %v3104_v58  ;;  %v1129_v4 = vsel %vm1109_vm6, %v1126_v62, %v1128_v57  ;;  %v1523_v58 = vsel %vm1515_vm8, %v1521_v9, %v1522_v45  ;;  %v1533_v26 = vsel %vm1515_vm8, %v1531_v8, %v1532_v22 }
 0x114   : > { %2293 = vmatprep.mubr.msk.f32.mxu0 %vm1153_vm7, %v1127_v16  ;;  %2318 = vmatprep.mubr.msk.f32.mxu1 %vm1153_vm7, %v3143_v21  ;;  %v1534_v21 = vrot.slane %v1070_v2, 2 }
 0x115   : > { %2294 = vmatmul.mubr.msk.f32.gmra.mxu0 %vm1153_vm7, %v1129_v4 }
 0x116   : > { %2340 = vmatprep.mubr.msk.f32.mxu0 %vm1153_vm7, %v1518_v11  ;;  %v1535_v17 = vsel %vm1515_vm8, %v1532_v22, %v1534_v21 }
 0x117   : > { %2319 = vmatmul.mubr.msk.f32.gmra.mxu1 %vm1153_vm7, %v3148_v10  ;;  %v1528_v10 = vsel %vm1515_vm8, %v1526_v14, %v1527_v18 }
 0x118   : > { %2321 = vmatprep.mubr.msk.f32.mxu1 %vm1153_vm7, %v1068_v48 }
 0x119   : > { %2341 = vmatmul.mubr.msk.f32.vlgmr.msra.gmra.mxu0 %vm1153_vm7, %v1520_v25 }
 0x11a   : > { %2343 = vmatprep.mubr.msk.f32.mxu0 %vm1153_vm7, %v1523_v58 }
 0x11b   : > { %2322 = vmatmul.mubr.msk.f32.gmra.mxu1 %vm1153_vm7, %v1069_v24 }
 0x11c   : > { %2324 = vmatprep.mubr.msk.f32.mxu1 %vm1153_vm7, %v3024_v41  ;;  %v1541_v41 = vrot.slane %v3077_v3, 2 }
 0x11d   : > { %2344 = vmatmul.mubr.msk.f32.gmra.mxu0 %vm1153_vm7, %v1525_v15 }
 0x11e   : > { %2346 = vmatprep.mubr.msk.f32.mxu0 %vm1153_vm7, %v1528_v10 }
 0x11f   : > { %2325 = vmatmul.mubr.msk.f32.gmra.mxu1 %vm1153_vm7, %v3029_v27  ;;  %v1542_v27 = vrot.slane %v3082_v1, 2 }
 0x120   : > { %2327 = vmatprep.mubr.msk.f32.mxu1 %vm1153_vm7, %v3077_v3  ;;  %v1546_v3 = vrot.slane %v3121_v12, 2 }
 0x121   : > { %2347 = vmatmul.mubr.msk.f32.gmra.mxu0 %vm1153_vm7, %v1530_v19  ;;  %v1543_v63 = vsel %vm1515_vm8, %v1541_v41, %v1542_v27  ;;  %v1545_v23 = vsel %vm1515_vm8, %v1542_v27, %v1544_v29 }
 0x122   : > { %2349 = vmatprep.mubr.msk.f32.mxu0 %vm1153_vm7, %v1533_v26 }
 0x123   : > { %2328 = vmatmul.mubr.msk.f32.gmra.mxu1 %vm1153_vm7, %v3082_v1  ;;  %v1547_v1 = vrot.slane %v3126_v56, 2 }
 0x124   : > { %2330 = vmatprep.mubr.msk.f32.mxu1 %vm1153_vm7, %v3121_v12 }
 0x125   : > { %2350 = vmatmul.mubr.msk.f32.gmra.mxu0 %vm1153_vm7, %v1535_v17  ;;  %v1550_v12 = vsel %vm1515_vm8, %v1547_v1, %v1549_v13 }
 0x126   : > { %2352 = vmatprep.mubr.msk.f32.mxu0 %vm1153_vm7, %v1538_v50 }
 0x127   : > { %2331 = vmatmul.mubr.msk.f32.gmra.mxu1 %vm1153_vm7, %v3126_v56  ;;  %v1548_v56 = vsel %vm1515_vm8, %v1546_v3, %v1547_v1 }
 0x128   : > { %2333 = vmatprep.mubr.msk.f32.mxu1 %vm1153_vm7, %v3165_v53 }
 0x129   : > { %2353 = vmatmul.mubr.msk.f32.gmra.mxu0 %vm1153_vm7, %v1540_v52 }
 0x12a   : > { %2355 = vmatprep.mubr.msk.f32.mxu0 %vm1153_vm7, %v1543_v63 }
 0x12b   : > { %2334 = vmatmul.mubr.msk.f32.gmra.mxu1 %vm1153_vm7, %v3170_v36  ;;  %v1555_v36 = vsel %vm1515_vm8, %v1552_v33, %v1554_v38 }
 0x12d   : > { %2356 = vmatmul.mubr.msk.f32.gmra.mxu0 %vm1153_vm7, %v1545_v23 }
 0x12e   : > { %2358 = vmatprep.mubr.msk.f32.mxu0 %vm1153_vm7, %v1548_v56 }
 0x131   : > { %2359 = vmatmul.mubr.msk.f32.gmra.mxu0 %vm1153_vm7, %v1550_v12 }
 0x132   : > { %2361 = vmatprep.mubr.msk.f32.mxu0 %vm1153_vm7, %v1553_v20 }
 0x135   : > { %2362 = vmatmul.mubr.msk.f32.gmra.mxu0 %vm1153_vm7, %v1555_v36 }
 0x183   : > { %v2298_v59 = vpop.f32.mrf.mxu1 }
 0x185   : > { %v1296_v37 = vpop.f32.mrf.mxu1 }
 0x18f   : > { %v2286_v42 = vpop.f32.mrf.mxu0 }
 0x191   : > { %v1256_v44 = vpop.f32.mrf.mxu0 }
 0x19b   : > { %v3280_v40 = vpop.f32.mrf.mxu1 }
 0x19d   : > { %v3282_v53 = vpop.f32.mrf.mxu1 }
 0x1a7   : > { %v2289_v31 = vpop.f32.mrf.mxu0 }
 0x1a9   : > { %v1266_v47 = vpop.f32.mrf.mxu0 }
 0x1b3   : > { %v3284_v7 = vpop.f32.mrf.mxu1 }
 0x1b5   : > { %v3286_v49 = vpop.f32.mrf.mxu1 }
 0x1bf   : > { %v2292_v48 = vpop.f32.mrf.mxu0 }
 0x1c1   : > { %v1276_v61 = vpop.f32.mrf.mxu0 }
 0x1cb   : > { %v3288_v46 = vpop.f32.mrf.mxu1 }
 0x1cd   : > { %v3290_v43 = vpop.f32.mrf.mxu1 }
 0x1cf   : > { %v2314_v60 = vpop.f32.mrf.mxu1 }
 0x1d0   : > { %v1442_v54 = vadd.f32 %v2314_v60, %v2286_v42 }
 0x1d1   : > { %v1436_v51 = vpop.f32.mrf.mxu1 }
 0x1d2   : > { %v1437_v4 = vadd.f32 %v1436_v51, %v1256_v44 }
 0x1d3   : > { %v2317_v2 = vpop.f32.mrf.mxu1 }
 0x1d4   : > { %v1452_v9 = vadd.f32 %v2317_v2, %v2289_v31 }
 0x1d5   : > { %v2295_v39 = vpop.f32.mrf.mxu0  ;;  %v1446_v57 = vpop.f32.mrf.mxu1 }
 0x1d6   : > { %v1447_v14 = vadd.f32 %v1446_v57, %v1266_v47 }
 0x1d7   : > { %v1286_v24 = vpop.f32.mrf.mxu0  ;;  %v2320_v55 = vpop.f32.mrf.mxu1 }
 0x1d8   : > { %v1462_v8 = vadd.f32 %v2320_v55, %v2292_v48 }
 0x1d9   : > { %v2342_v62 = vpop.f32.mrf.mxu0  ;;  %v1456_v16 = vpop.f32.mrf.mxu1 }
 0x1da   : > { %v1740_v32 = vadd.f32 %v2342_v62, %v1442_v54  ;;  %v1457_v28 = vadd.f32 %v1456_v16, %v1276_v61 }
 0x1db   : > { %v1660_v45 = vpop.f32.mrf.mxu0  ;;  %v2323_v11 = vpop.f32.mrf.mxu1 }
 0x1dc   : > { %v3298_v25 = vadd.f32 %v3295_v5, %v1740_v32  ;;  %v1739_v6 = vadd.f32 %v1660_v45, %v1437_v4  ;;  %v1472_v41 = vadd.f32 %v2323_v11, %v2295_v39 }
 0x1dd   : > { %v2345_v18 = vpop.f32.mrf.mxu0  ;;  %v1466_v58 = vpop.f32.mrf.mxu1 }
 0x1de   : > { %v3301_v30 = vadd.f32 %v3295_v5, %v1739_v6  ;;  %v1742_v15 = vadd.f32 %v2345_v18, %v1452_v9  ;;  %v1467_v3 = vadd.f32 %v1466_v58, %v1286_v24 }
 0x1df   : > { %v1670_v22 = vpop.f32.mrf.mxu0  ;;  %v2326_v10 = vpop.f32.mrf.mxu1 }
 0x1e0   : > { %v3304_v21 = vadd.f32 %v3295_v5, %v1742_v15  ;;  %v1741_v19 = vadd.f32 %v1670_v22, %v1447_v14  ;;  %v1482_v35 = vadd.f32 %v2326_v10, %v2298_v59 }
 0x1e1   : > { %v2348_v34 = vpop.f32.mrf.mxu0  ;;  %v1476_v26 = vpop.f32.mrf.mxu1 }
 0x1e2   : > { %v3307_v0 = vadd.f32 %v3295_v5, %v1741_v19  ;;  %v1744_v17 = vadd.f32 %v2348_v34, %v1462_v8  ;;  %v1477_v36 = vadd.f32 %v1476_v26, %v1296_v37 }
 0x1e3   : > { %v1680_v27 = vpop.f32.mrf.mxu0  ;;  %v2329_v50 = vpop.f32.mrf.mxu1 }
 0x1e4   : > { %v3310_v29 = vadd.f32 %v3295_v5, %v1744_v17  ;;  %v1743_v52 = vadd.f32 %v1680_v27, %v1457_v28  ;;  %v1492_v48 = vadd.f32 %v2329_v50, %v3280_v40 }
 0x1e5   : > { %v2351_v1 = vpop.f32.mrf.mxu0  ;;  %v1486_v63 = vpop.f32.mrf.mxu1 }
 0x1e6   : > { %v3313_v13 = vadd.f32 %v3295_v5, %v1743_v52  ;;  %v1746_v23 = vadd.f32 %v2351_v1, %v1472_v41  ;;  %v1487_v59 = vadd.f32 %v1486_v63, %v3282_v53 }
 0x1e7   : > { %v1690_v33 = vpop.f32.mrf.mxu0  ;;  %v2332_v56 = vpop.f32.mrf.mxu1 }
 0x1e8   : > { %v3316_v38 = vadd.f32 %v3295_v5, %v1746_v23  ;;  %v1745_v12 = vadd.f32 %v1690_v33, %v1467_v3  ;;  %v1502_v24 = vadd.f32 %v2332_v56, %v3284_v7 }
 0x1e9   : > { %v2354_v20 = vpop.f32.mrf.mxu0  ;;  %v1496_v31 = vpop.f32.mrf.mxu1 }
 0x1ea   : > { %v3319_v42 = vadd.f32 %v3295_v5, %v1745_v12  ;;  %v1748_v44 = vadd.f32 %v2354_v20, %v1482_v35  ;;  %v1497_v62 = vadd.f32 %v1496_v31, %v3286_v49 }
 0x1eb   : > { %v1700_v47 = vpop.f32.mrf.mxu0  ;;  %v2335_v37 = vpop.f32.mrf.mxu1 }
 0x1ec   : > { %v3323_v60 = vadd.f32 %v3295_v5, %v1748_v44  ;;  %v1747_v51 = vadd.f32 %v1700_v47, %v1477_v36  ;;  %v1512_v45 = vadd.f32 %v2335_v37, %v3288_v46 }
 0x1ed   : > { %v2357_v61 = vpop.f32.mrf.mxu0  ;;  %v1506_v53 = vpop.f32.mrf.mxu1 }
 0x1ee   : > { %v3327_v2 = vadd.f32 %v3295_v5, %v1747_v51  ;;  %v1750_v39 = vadd.f32 %v2357_v61, %v1492_v48  ;;  %v1507_v6 = vadd.f32 %v1506_v53, %v3290_v43 }
 0x1ef   : > { %v1710_v57 = vpop.f32.mrf.mxu0 }
 0x1f0   : > { %v3331_v55 = vadd.f32 %v3295_v5, %v1750_v39  ;;  %v1749_v54 = vadd.f32 %v1710_v57, %v1487_v59 }
 0x1f1   : > { %v2360_v40 = vpop.f32.mrf.mxu0 }
 0x1f2   : > { %v3335_v16 = vadd.f32 %v3295_v5, %v1749_v54  ;;  %v1752_v4 = vadd.f32 %v2360_v40, %v1502_v24 }
 0x1f3   : > { %v1720_v32 = vpop.f32.mrf.mxu0 }
 0x1f4   : > { %v3339_v11 = vadd.f32 %v3295_v5, %v1752_v4  ;;  %v1751_v9 = vadd.f32 %v1720_v32, %v1497_v62 }
 0x1f5   : > { %v2363_v7 = vpop.f32.mrf.mxu0 }
 0x1f6   : > { %v3343_v18 = vadd.f32 %v3295_v5, %v1751_v9  ;;  %v1754_v58 = vadd.f32 %v2363_v7, %v1512_v45  ;;  %1781 = sbr.rel (%p2221_p12) target bundleno = 509 (0x1fd), region = 52 }
 0x1f7   : > { %v1730_v49 = vpop.f32.mrf.mxu0 }
 0x1f8   : > { %v3346_v14 = vadd.f32 %v3295_v5, %v1754_v58  ;;  %v1753_v15 = vadd.f32 %v1730_v49, %v1507_v6 }
 0x1fa   : > { %v3349_v22 = vadd.f32 %v3295_v5, %v1753_v15 }
 0x1fb   : > { %vm1782_vm9 = vcmask 24576   ;;  %v2533_v46 = vmov 0.0  }
 0x1fc   : > { %1783 = vst.msk [vmem:[%s2633_s29] sm:$0x1] %vm1782_vm9, %v2533_v46  ;;  %1784 = vst.msk [vmem:[%s2638_s11] sm:$0x1] %vm1782_vm9, %v2533_v46 }
 0x1fd PF: > { %v1786_v43 = vsel %vm1033_vm4, %v3301_v30, 0.0  ;;  %v1787_v5 = vsel %vm1033_vm4, %v3298_v25, 0.0  ;;  %v1789_v10 = vsel %vm1033_vm4, %v3307_v0, 0.0  ;;  %1882 = vst.msk [vmem:[%s2650_s24] sm:$0xff] %vm1033_vm4, %v3301_v30  ;;  %1883 = vst.msk [vmem:[%s2650_s24 + $0x8] sm:$0xff] %vm1033_vm4, %v3298_v25  ;;  %v1791_v19 = vsel %vm1033_vm4, %v3304_v21, 0.0 }
 0x1fe   : > { %1884 = vst.msk [vmem:[%s2650_s24 + $0x10] sm:$0xff] %vm1033_vm4, %v3307_v0  ;;  %1885 = vst.msk [vmem:[%s2650_s24 + $0x18] sm:$0xff] %vm1033_vm4, %v3304_v21  ;;  %v1788_v8 = vadd.f32 %v1787_v5, %v1786_v43  ;;  %v1793_v26 = vsel %vm1033_vm4, %v3313_v13, 0.0  ;;  %v1827_v17 = vmul.f32 %v3301_v30, %v3301_v30  ;;  %v1828_v27 = vmul.f32 %v3298_v25, %v3298_v25 }
 0x1ff   : > { %1886 = vst.msk [vmem:[%s2650_s24 + $0x20] sm:$0xff] %vm1033_vm4, %v3313_v13  ;;  %1887 = vst.msk [vmem:[%s2650_s24 + $0x28] sm:$0xff] %vm1033_vm4, %v3310_v29  ;;  %v1795_v50 = vsel %vm1033_vm4, %v3310_v29, 0.0  ;;  %v1829_v41 = vmul.f32 %v3307_v0, %v3307_v0  ;;  %v1830_v1 = vmul.f32 %v3304_v21, %v3304_v21  ;;  %v1797_v63 = vsel %vm1033_vm4, %v3319_v42, 0.0 }
 0x200   : > { %1888 = vst.msk [vmem:[%s2650_s24 + $0x30] sm:$0xff] %vm1033_vm4, %v3319_v42  ;;  %1889 = vst.msk [vmem:[%s2650_s24 + $0x38] sm:$0xff] %vm1033_vm4, %v3316_v38  ;;  %v1790_v34 = vadd.f32 %v1789_v10, %v1788_v8  ;;  %v1831_v30 = vmul.f32 %v3313_v13, %v3313_v13  ;;  %v1843_v23 = vsel %vm1033_vm4, %v1827_v17, 0.0  ;;  %v1844_v25 = vsel %vm1033_vm4, %v1828_v27, 0.0 }
 0x201   : > { %1890 = vst.msk [vmem:[%s2650_s24 + $0x40] sm:$0xff] %vm1033_vm4, %v3327_v2  ;;  %1891 = vst.msk [vmem:[%s2650_s24 + $0x48] sm:$0xff] %vm1033_vm4, %v3323_v60  ;;  %v1799_v33 = vsel %vm1033_vm4, %v3316_v38, 0.0  ;;  %v1845_v56 = vadd.f32 %v1844_v25, %v1843_v23  ;;  %v1846_v0 = vsel %vm1033_vm4, %v1829_v41, 0.0  ;;  %v1832_v21 = vmul.f32 %v3310_v29, %v3310_v29 }
 0x202   : > { %1892 = vst.msk [vmem:[%s2650_s24 + $0x50] sm:$0xff] %vm1033_vm4, %v3335_v16  ;;  %1893 = vst.msk [vmem:[%s2650_s24 + $0x58] sm:$0xff] %vm1033_vm4, %v3331_v55  ;;  %v1792_v28 = vadd.f32 %v1791_v19, %v1790_v34  ;;  %v1848_v12 = vsel %vm1033_vm4, %v1830_v1, 0.0  ;;  %v1801_v20 = vsel %vm1033_vm4, %v3327_v2, 0.0  ;;  %v1833_v44 = vmul.f32 %v3319_v42, %v3319_v42 }
 0x203   : > { %1894 = vst.msk [vmem:[%s2650_s24 + $0x60] sm:$0xff] %vm1033_vm4, %v3343_v18  ;;  %1895 = vst.msk [vmem:[%s2650_s24 + $0x68] sm:$0xff] %vm1033_vm4, %v3339_v11  ;;  %v1847_v13 = vadd.f32 %v1846_v0, %v1845_v56  ;;  %v1850_v31 = vsel %vm1033_vm4, %v1831_v30, 0.0  ;;  %v1803_v47 = vsel %vm1033_vm4, %v3323_v60, 0.0  ;;  %v1834_v29 = vmul.f32 %v3316_v38, %v3316_v38  ;;  %v1785_v56 = vld [vmem:[%s2633_s29] sm:$0x1] }
 0x204   : > { %1896 = vst.msk [vmem:[%s2650_s24 + $0x70] sm:$0xff] %vm1033_vm4, %v3349_v22  ;;  %1897 = vst.msk [vmem:[%s2650_s24 + $0x78] sm:$0xff] %vm1033_vm4, %v3346_v14  ;;  %v1794_v52 = vadd.f32 %v1793_v26, %v1792_v28  ;;  %v1852_v61 = vsel %vm1033_vm4, %v1832_v21, 0.0  ;;  %v1805_v59 = vsel %vm1033_vm4, %v3335_v16, 0.0  ;;  %v1835_v42 = vmul.f32 %v3327_v2, %v3327_v2 }
 0x205   : > { %v1849_v48 = vadd.f32 %v1848_v12, %v1847_v13  ;;  %v1854_v57 = vsel %vm1033_vm4, %v1833_v44, 0.0  ;;  %v1807_v24 = vsel %vm1033_vm4, %v3331_v55, 0.0  ;;  %v1836_v38 = vmul.f32 %v3323_v60, %v3323_v60 }
 0x206   : > { %v1796_v3 = vadd.f32 %v1795_v50, %v1794_v52  ;;  %v1856_v62 = vsel %vm1033_vm4, %v1834_v29, 0.0  ;;  %v1809_v4 = vsel %vm1033_vm4, %v3343_v18, 0.0  ;;  %v1837_v2 = vmul.f32 %v3335_v16, %v3335_v16 }
 0x207   : > { %v1851_v39 = vadd.f32 %v1850_v31, %v1849_v48  ;;  %v1858_v45 = vsel %vm1033_vm4, %v1835_v42, 0.0  ;;  %v1811_v9 = vsel %vm1033_vm4, %v3339_v11, 0.0  ;;  %v1838_v60 = vmul.f32 %v3331_v55, %v3331_v55 }
 0x208   : > { %v1798_v35 = vadd.f32 %v1797_v63, %v1796_v3  ;;  %v1860_v58 = vsel %vm1033_vm4, %v1836_v38, 0.0  ;;  %v1813_v49 = vsel %vm1033_vm4, %v3349_v22, 0.0  ;;  %v1839_v16 = vmul.f32 %v3343_v18, %v3343_v18 }
 0x209   : > { %v1853_v54 = vadd.f32 %v1852_v61, %v1851_v39  ;;  %v1862_v43 = vsel %vm1033_vm4, %v1837_v2, 0.0  ;;  %v1815_v5 = vsel %vm1033_vm4, %v3346_v14, 0.0  ;;  %v1840_v55 = vmul.f32 %v3339_v11, %v3339_v11 }
 0x20a   : > { %v1800_v36 = vadd.f32 %v1799_v33, %v1798_v35  ;;  %v1864_v19 = vsel %vm1033_vm4, %v1838_v60, 0.0  ;;  %v1841_v28 = vmul.f32 %v3349_v22, %v3349_v22  ;;  %v1866_v18 = vsel %vm1033_vm4, %v1839_v16, 0.0 }
 0x20b   : > { %v1855_v53 = vadd.f32 %v1854_v57, %v1853_v54  ;;  %v1842_v50 = vmul.f32 %v3346_v14, %v3346_v14  ;;  %v1868_v41 = vsel %vm1033_vm4, %v1840_v55, 0.0  ;;  %vm1824_vm10 = vcmask 24576  }
 0x20c   : > { %v1802_v51 = vadd.f32 %v1801_v20, %v1800_v36  ;;  %v1870_v11 = vsel %vm1033_vm4, %v1841_v28, 0.0  ;;  %v1826_v36 = vld [vmem:[%s2638_s11] sm:$0x1] }
 0x20d   : > { %v1857_v7 = vadd.f32 %v1856_v62, %v1855_v53  ;;  %v1872_v22 = vsel %vm1033_vm4, %v1842_v50, 0.0 }
 0x20e   : > { %v1804_v37 = vadd.f32 %v1803_v47, %v1802_v51 }
 0x20f   : > { %v1859_v15 = vadd.f32 %v1858_v45, %v1857_v7 }
 0x210   : > { %v1806_v40 = vadd.f32 %v1805_v59, %v1804_v37 }
 0x211   : > { %v1861_v10 = vadd.f32 %v1860_v58, %v1859_v15 }
 0x212   : > { %v1808_v32 = vadd.f32 %v1807_v24, %v1806_v40 }
 0x213   : > { %v1863_v34 = vadd.f32 %v1862_v43, %v1861_v10 }
 0x214   : > { %v1810_v6 = vadd.f32 %v1809_v4, %v1808_v32 }
 0x215   : > { %v1865_v17 = vadd.f32 %v1864_v19, %v1863_v34 }
 0x216   : > { %v1812_v46 = vadd.f32 %v1811_v9, %v1810_v6 }
 0x217   : > { %v1867_v52 = vadd.f32 %v1866_v18, %v1865_v17 }
 0x218   : > { %v1814_v8 = vadd.f32 %v1813_v49, %v1812_v46 }
 0x219   : > { %v1869_v63 = vadd.f32 %v1868_v41, %v1867_v52 }
 0x21a   : > { %v1816_v26 = vadd.f32 %v1815_v5, %v1814_v8 }
 0x21b   : > { %v1871_v30 = vadd.f32 %v1870_v11, %v1869_v63 }
 0x21c   : > { %v1817_v27 = vrot.slane %v1816_v26, 4 }
 0x21d   : > { %v1873_v25 = vadd.f32 %v1872_v22, %v1871_v30 }
 0x21e   : > { %v1818_v1 = vadd.f32 %v1817_v27, %v1816_v26 }
 0x21f   : > { %v1874_v0 = vrot.slane %v1873_v25, 4 }
 0x220   : > { %v1819_v3 = vrot.slane %v1818_v1, 2 }
 0x221   : > { %v1875_v35 = vadd.f32 %v1874_v0, %v1873_v25 }
 0x222   : > { %v1820_v23 = vadd.f32 %v1819_v3, %v1818_v1 }
 0x223   : > { %v1876_v12 = vrot.slane %v1875_v35, 2 }
 0x224   : > { %v1821_v33 = vrot.slane %v1820_v23, 1 }
 0x225   : > { %v1877_v20 = vadd.f32 %v1876_v12, %v1875_v35 }
 0x226   : > { %v1822_v14 = vadd.f32 %v1821_v33, %v1820_v23 }
 0x227   : > { %v1878_v13 = vrot.slane %v1877_v20, 1 }
 0x228   : > { %v1823_v21 = vadd.f32 %v1822_v14, %v1785_v56 }
 0x229   : > { %v1879_v44 = vadd.f32 %v1878_v13, %v1877_v20 }
 0x22a   : > { %1825 = vst.msk [vmem:[%s2633_s29] sm:$0x1] %vm1824_vm10, %v1823_v21 }
 0x22b   : > { %v1880_v31 = vadd.f32 %v1879_v44, %v1826_v36 }
 0x22d   : > { %1881 = vst.msk [vmem:[%s2638_s11] sm:$0x1] %vm1824_vm10, %v1880_v31 }
 0x22e PF: > { %s20_s13 = sadd.s32 1, %s2529_s13   ;;  %s3522_s30 = sld [smem:[#allocation2_spill]] }
 0x22f   : > { %p17_p13 = scmp.ge.s32.totalorder %s20_s13, 6   ;;  %s3523_s10 = sld [smem:[#allocation3_spill]] }
 0x230   : > { %s3524_s11 = sld [smem:[#allocation4_spill]] }
 0x231   : > { %s3525_s12 = sld [smem:[#allocation5_spill]]  ;;  %19 = sbr.rel (!%p17_p13) target bundleno = 3 (0x3), region = 120 }

// kernel: up_decoder_block_2d.8
= control target key start
LH: loop header
LB: loop body
LE: loop exit
PB: predicated region body
PF: predicated region fallthrough
CT: control target
= control target key end

     0   :  { %s3049_s21 = smov 0   ;;  %s3051_s22 = smov 0   ;;  %s4046_s0 = inlined_call_operand.vmem [shape: f32[2,16,16,4], index: 0, kind: input, shape index: {}, may-alias: {0,1,2}]   ;;  %s4047_s1 = inlined_call_operand.vmem [shape: f32[2,16,16,4], index: 1, kind: input, shape index: {}, may-alias: {0,1,2}]   ;;  %s4048_s2 = inlined_call_operand.vmem [shape: f32[2,16,16,4], index: 2, kind: input, shape index: {}, may-alias: {0,1,2}]   ;;  %s4049_s3 = inlined_call_operand.vmem [shape: f32[2,1,4], index: 3, kind: input, shape index: {}]   ;;  %s4050_s4 = inlined_call_operand.vmem [shape: f32[2,1,4], index: 4, kind: input, shape index: {}]   ;;  %s4051_s5 = inlined_call_operand.vmem [shape: f32[3,12,4], index: 5, kind: input, shape index: {}]   ;;  %s4052_s6 = inlined_call_operand.vmem [shape: f32[1,4], index: 6, kind: input, shape index: {}]   ;;  %s4053_s7 = inlined_call_operand.vmem [shape: f32[2,16,16,8], index: 7, kind: input, shape index: {}]   ;;  %s4054_s8 = inlined_call_operand.vmem [shape: f32[8,4], index: 8, kind: input, shape index: {}]   ;;  %s4055_s9 = inlined_call_operand.vmem [shape: f32[1,4], index: 9, kind: input, shape index: {}]   ;;  %s4056_s10 = inlined_call_operand.vmem [shape: f32[2,16,16,4], index: 10, kind: output, shape index: {0}]   ;;  %s4057_s11 = inlined_call_operand.vmem [shape: f32[2,1,4], index: 11, kind: output, shape index: {1}]   ;;  %s4058_s12 = inlined_call_operand.vmem [shape: f32[2,1,4], index: 12, kind: output, shape index: {2}]  }
   0x1   :  { %4062 = sst [smem:[#allocation7_spill]] %s4055_s9  ;;  %s3053_s23 = smov 0  }
   0x2   :  { %s3055_s24 = smov 0   ;;  %s3057_s25 = smov 0  }
   0x3 LB: > { %4063 = sst [smem:[#allocation2_spill]] %s2971_s23  ;;  %s32_s26 = sadd.s32 1, %s2971_s23  ;;  %s2979_s25 = sphi %s3057_s25, %s23_s25   ;;  %s2975_s24 = sphi %s3055_s24, %s4078_s24   ;;  %s2971_s23 = sphi %s3053_s23, %s4077_s23   ;;  %s2967_s22 = sphi %s3051_s22, %s4076_s22   ;;  %s2963_s21 = sphi %s3049_s21, %s4075_s21  }
   0x4   : > { %4064 = sst [smem:[#allocation3_spill]] %s2975_s24  ;;  %s35_s27 = sadd.s32 1, %s2975_s24 }
   0x5   : > { %4065 = sst [smem:[#allocation4_spill]] %s2979_s25  ;;  %p33_p0 = scmp.ge.s32.totalorder %s32_s26, 2 }
   0x6   : > { %p2507_p1 = scmp.ge.s32.totalorder %s2979_s25, 1  ;;  %p487_p2 = scmp.lt.s32.totalorder %s2979_s25, 5 }
   0x7   : > { %s4080_s26 = smov (%p33_p0, %s32_s26), 0  ;;  %s4082_s27 = smov (!%p33_p0, %s35_s27), %s2975_s24 }
   0x8   : > { %4066 = sst [smem:[#allocation5_spill]] %s4080_s26  ;;  %p488_p3 = pnand %p2507_p1, %p487_p2 }
   0x9   : > { %p37_p4 = scmp.ge.s32.totalorder %s4082_s27, 2  ;;  %s3082_s28 = sshll.u32 (!%p488_p3), %s2963_s21, 3 }
   0xa   : > { %491 = sbr.rel (%p488_p3) target bundleno = 562 (0x232), region = 60  ;;  %p591_p5 = scmp.lt.s32.totalorder (!%p488_p3), %s2967_s22, 1 }
   0xb   : > { %s4084_s27 = smov (%p37_p4, %s4082_s27), 0  ;;  %p607_p6 = scmp.lt.s32.totalorder (!%p488_p3), %s3082_s28, 15 }
   0xc   : > { %4067 = sst [smem:[#allocation6_spill]] %s4084_s27  ;;  %s3168_s27 = sadd.s32 (!%p488_p3), 4294967295, %s3082_s28 }
   0xd   : > { %p589_p8 = scmp.gt.s32.totalorder (!%p488_p3), %s3168_s27, 0  ;;  %p2510_p9 = scmp.lt.s32.totalorder (!%p488_p3), %s3168_s27, 15 }
   0xe   : > { %p866_p10 = scmp.lt.s32.totalorder (!%p488_p3), %s2963_s21, 1  ;;  %p668_p11 = scmp.gt.s32.totalorder (!%p488_p3), %s2963_s21, 0 }
   0xf   : > { %s4086_s22 = smov (!%p591_p5, %s2967_s22), 1  ;;  %vm1306_vm0 = vcmask 1043456   ;;  %vm912_vm1 = vcmask 1040384   ;;  %vm1153_vm4 = vcmask 31744   ;;  %vm1178_vm5 = vcmask 64512   ;;  %p2632_p12 = scmp.ne.s32.totalorder %s2963_s21, 0 }
  0x10   : > { %s608_s29 = scalar_select %p607_p6, %s3082_s28, 15  ;;  %vm1273_vm6 = vcmask 97280   ;;  %vm1229_vm7 = vcmask 1046528   ;;  %vm1635_vm8 = vcmask 1045504  }
  0x11   : > { %s3086_s30 = sshll.u32 %s4086_s22, 5  ;;  %s634_s15 = scalar_lea.vmem %s4049_s3, %s4086_s22 }
  0x12   : > { %s2519_s16 = sshll.u32 %s608_s29, 1  ;;  %s637_s19 = scalar_lea.vmem %s4050_s4, %s4086_s22  ;;  %v3107_v0 = vld [vmem:[%s634_s15] ss:$0 sm:$0xff] }
  0x13   : > { %s611_s20 = sadd.s32 %s2519_s16, %s3086_s30  ;;  %s3098_s24 = scalar_lea.vmem %s4057_s11, %s4086_s22  ;;  %v3121_v1 = vld [vmem:[%s637_s19] ss:$0 sm:$0xff] }
  0x14   : > { %s3100_s23 = sshll.u32 %s611_s20, 3  ;;  %s3105_s13 = scalar_lea.vmem %s4058_s12, %s4086_s22 }
  0x15   : > { %s3113_s16 = scalar_lea.vmem %s4047_s1, %s3100_s23  ;;  %s3119_s9 = scalar_lea.vmem %s4056_s10, %s3100_s23 }
  0x16   : > { %v707_v2 = vld [vmem:[%s3113_s16 + $0x8] sm:$0xff]  ;;  %v706_v3 = vld [vmem:[%s3113_s16] sm:$0xff]  ;;  %v708_v4 = vld [vmem:[%s3113_s16 + $0x10] sm:$0xff]  ;;  %s616_s22 = sadd.s32 8, %s3082_s28 }
  0x17   : > { %v723_v5 = vmul.f32 %v3107_v0, %v707_v2  ;;  %v722_v6 = vmul.f32 %v3107_v0, %v706_v3  ;;  %v724_v7 = vmul.f32 %v3107_v0, %v708_v4  ;;  %v709_v8 = vld [vmem:[%s3113_s16 + $0x18] sm:$0xff]  ;;  %v710_v9 = vld [vmem:[%s3113_s16 + $0x20] sm:$0xff]  ;;  %v711_v10 = vld [vmem:[%s3113_s16 + $0x28] sm:$0xff]  ;;  %p3133_p7 = scmp.lt.s32.totalorder %s616_s22, 15 }
  0x18   : > { %v725_v11 = vmul.f32 %v3107_v0, %v709_v8  ;;  %v726_v12 = vmul.f32 %v3107_v0, %v710_v9  ;;  %v727_v13 = vmul.f32 %v3107_v0, %v711_v10  ;;  %v712_v17 = vld [vmem:[%s3113_s16 + $0x30] sm:$0xff]  ;;  %v718_v26 = vld [vmem:[%s3113_s16 + $0x60] sm:$0xff]  ;;  %v719_v28 = vld [vmem:[%s3113_s16 + $0x68] sm:$0xff]  ;;  %s590_s14 = scalar_select %p589_p8, %s3168_s27, 0 }
  0x19   : > { %v3141_v14 = vadd.f32 %v3121_v1, %v723_v5  ;;  %v3144_v15 = vadd.f32 %v3121_v1, %v722_v6  ;;  %v3147_v16 = vadd.f32 %v3121_v1, %v724_v7  ;;  %s4088_s22 = smov (!%p3133_p7, %s616_s22), 15  ;;  %v728_v25 = vmul.f32 %v3107_v0, %v712_v17  ;;  %v720_v33 = vld [vmem:[%s3113_s16 + $0x70] sm:$0xff]  ;;  %v721_v34 = vld [vmem:[%s3113_s16 + $0x78] sm:$0xff]  ;;  %v714_v51 = vld [vmem:[%s3113_s16 + $0x40] sm:$0xff] }
  0x1a   : > { %v3153_v18 = vadd.f32 %v3121_v1, %v725_v11  ;;  %v3156_v19 = vadd.f32 %v3121_v1, %v726_v12  ;;  %v3162_v23 = vadd.f32 %v3121_v1, %v727_v13  ;;  %s4090_s22 = smov (!%p3133_p7, %s4088_s22), 15  ;;  %v734_v30 = vmul.f32 %v3107_v0, %v718_v26  ;;  %v713_v35 = vld [vmem:[%s3113_s16 + $0x38] sm:$0xff]  ;;  %s4092_s14 = smov (!%p2510_p9, %s590_s14), 15  ;;  %v715_v56 = vld [vmem:[%s3113_s16 + $0x48] sm:$0xff] }
  0x1b   : > { %v2542_v20 = vmul.f32 -1.442695, %v3141_v14  ;;  %v2541_v21 = vmul.f32 -1.442695, %v3144_v15  ;;  %v2543_v22 = vmul.f32 -1.442695, %v3147_v16  ;;  %v3177_v31 = vadd.f32 %v3121_v1, %v728_v25 }
  0x1c   : > { %v2544_v24 = vmul.f32 -1.442695, %v3153_v18  ;;  %v2545_v27 = vmul.f32 -1.442695, %v3156_v19  ;;  %v2546_v29 = vmul.f32 -1.442695, %v3162_v23  ;;  %v735_v32 = vmul.f32 %v3107_v0, %v719_v28 }
  0x1d   : > { %2861 = vpow2.f32 %v2542_v20  ;;  %s2526_s15 = sshll.u32 %s4090_s22, 1  ;;  %v3186_v36 = vadd.f32 %v3121_v1, %v734_v30  ;;  %v736_v38 = vmul.f32 %v3107_v0, %v720_v33  ;;  %v737_v39 = vmul.f32 %v3107_v0, %v721_v34  ;;  %s2515_s17 = sshll.u32 %s4092_s14, 1  ;;  %v717_v34 = vld [vmem:[%s3113_s16 + $0x58] sm:$0xff] }
  0x1e   : > { %2863 = vpow2.f32 %v2541_v21  ;;  %s625_s28 = sadd.s32 %s2526_s15, %s3086_s30  ;;  %v3189_v37 = vadd.f32 %v3121_v1, %v735_v32  ;;  %v2547_v42 = vmul.f32 -1.442695, %v3177_v31  ;;  %v729_v43 = vmul.f32 %v3107_v0, %v713_v35  ;;  %s597_s26 = sadd.s32 %s3086_s30, %s2515_s17 }
  0x1f   : > { %2865 = vpow2.f32 %v2543_v22  ;;  %s2528_s18 = sshll.u32 %s625_s28, 3  ;;  %v2553_v45 = vmul.f32 -1.442695, %v3186_v36  ;;  %v3205_v46 = vadd.f32 %v3121_v1, %v736_v38  ;;  %v3208_v47 = vadd.f32 %v3121_v1, %v737_v39  ;;  %s2517_s22 = sshll.u32 %s597_s26, 3  ;;  %v1204_v38 = vld [vmem:[%s4051_s5 + $0x8] sm:$0xf] }
  0x20   : > { %2867 = vpow2.f32 %v2544_v24  ;;  %s627_s29 = scalar_lea.vmem %s4048_s2, %s2528_s18  ;;  %v2554_v48 = vmul.f32 -1.442695, %v3189_v37  ;;  %v3220_v53 = vadd.f32 %v3121_v1, %v729_v43  ;;  %v730_v58 = vmul.f32 %v3107_v0, %v714_v51  ;;  %s599_s15 = scalar_lea.vmem %s4046_s0, %s2517_s22  ;;  %v1203_v39 = vld [vmem:[%s4051_s5] sm:$0xff]  ;;  %2736 = vmatprep.subr.msk.mxu1 %vm1306_vm0, %v1204_v38 }
  0x21   : > { %2869 = vpow2.f32 %v2545_v27  ;;  %v867_v40 = vld [vmem:[%s627_s29] sm:$0xff]  ;;  %v868_v41 = vld [vmem:[%s627_s29 + $0x8] sm:$0xff]  ;;  %v2555_v52 = vmul.f32 -1.442695, %v3205_v46  ;;  %v2556_v54 = vmul.f32 -1.442695, %v3208_v47  ;;  %v731_v2 = vmul.f32 %v3107_v0, %v715_v56  ;;  %2737 = vmatpush3.msk.msra.mxu1 %vm1306_vm0, %v1204_v38  ;;  %s3677_s29 = scalar_lea.vmem %s4053_s7, %s3100_s23 }
  0x22   : > { %2871 = vpow2.f32 %v2546_v29  ;;  %v869_v44 = vmul.f32 %v3107_v0, %v867_v40  ;;  %v870_v50 = vmul.f32 %v3107_v0, %v868_v41  ;;  %v2548_v63 = vmul.f32 -1.442695, %v3220_v53  ;;  %v670_v3 = vld [vmem:[%s599_s15 + $0x8] sm:$0xff]  ;;  %v669_v4 = vld [vmem:[%s599_s15] sm:$0xff]  ;;  %v716_v27 = vld [vmem:[%s3113_s16 + $0x50] sm:$0xff]  ;;  %2738 = vmatprep.subr.mxu1 %v1203_v39  ;;  %s2981_s17 = smov 4  }
  0x23   : > { %2873 = vpow2.f32 %v2547_v42  ;;  %v678_v7 = vmul.f32 %v3107_v0, %v670_v3  ;;  %v677_v8 = vmul.f32 %v3107_v0, %v669_v4  ;;  %v3237_v11 = vadd.f32 %v3121_v1, %v730_v58  ;;  %2739 = vmatpush3.msra.mxu1 %v1203_v39  ;;  %s2982_s26 = smov 8  }
  0x24   : > { %v3212_v49 = vadd.f32 %v3121_v1, %v869_v44  ;;  %v3224_v55 = vadd.f32 %v3121_v1, %v870_v50  ;;  %2875 = vpow2.f32 %v2553_v45  ;;  %v3246_v20 = vadd.f32 %v3121_v1, %v731_v2  ;;  %s887_s22 = scalar_select %p866_p10, 1, 0 }
  0x25   : > { %2877 = vpow2.f32 %v2554_v48  ;;  %v3240_v12 = vadd.f32 %v3121_v1, %v678_v7  ;;  %v3243_v13 = vadd.f32 %v3121_v1, %v677_v8  ;;  %v2549_v22 = vmul.f32 -1.442695, %v3237_v11  ;;  %s701_s25 = scalar_select %p668_p11, 1, 0 }
  0x26   : > { %2879 = vpow2.f32 %v2555_v52  ;;  %v2550_v25 = vmul.f32 -1.442695, %v3246_v20  ;;  %v732_v33 = vmul.f32 %v3107_v0, %v716_v27  ;;  %v2557_v42 = vmul.f32 -1.442695, %v3212_v49 }
  0x27   : > { %2881 = vpow2.f32 %v2556_v54  ;;  %v2558_v45 = vmul.f32 -1.442695, %v3224_v55  ;;  %v733_v51 = vmul.f32 %v3107_v0, %v717_v34  ;;  %v2540_v52 = vmul.f32 -1.442695, %v3240_v12 }
  0x28   : > { %v3268_v58 = vadd.f32 %v3121_v1, %v732_v33 }
  0x2a   : > { %v2862_v57 = vpop.eup %2861 }
  0x2b   : > { %v2864_v59 = vpop.eup %2863  ;;  %v803_v60 = vadd.f32 1.0, %v2862_v57 }
  0x2c   : > { %v2866_v61 = vpop.eup %2865  ;;  %v802_v62 = vadd.f32 1.0, %v2864_v59  ;;  %v2560_v59 = vld [vmem:[%s4051_s5 + $0x18] sm:$0xf] }
  0x2d   : > { %v2868_v5 = vpop.eup %2867  ;;  %2883 = vrcp.f32 %v803_v60  ;;  %v804_v6 = vadd.f32 1.0, %v2866_v61  ;;  %v2539_v61 = vmul.f32 -1.442695, %v3243_v13  ;;  %2708 = vmatprep.subr.msk.mxu0 %vm1306_vm0, %v2560_v59 }
  0x2e   : > { %v2870_v9 = vpop.eup %2869  ;;  %2885 = vrcp.f32 %v802_v62  ;;  %v805_v10 = vadd.f32 1.0, %v2868_v5  ;;  %2709 = vmatpush3.msk.msra.mxu0 %vm1306_vm0, %v2560_v59  ;;  %v2551_v5 = vmul.f32 -1.442695, %v3268_v58 }
  0x2f   : > { %2887 = vrcp.f32 %v804_v6  ;;  %v2872_v17 = vpop.eup %2871  ;;  %v806_v21 = vadd.f32 1.0, %v2870_v9 }
  0x30   : > { %2889 = vrcp.f32 %v805_v10  ;;  %v807_v24 = vadd.f32 1.0, %v2872_v17  ;;  %v2874_v26 = vpop.eup %2873 }
  0x31   : > { %2891 = vpow2.f32 %v2548_v63  ;;  %v2876_v28 = vpop.eup %2875  ;;  %v808_v57 = vadd.f32 1.0, %v2874_v26 }
  0x32   : > { %2893 = vrcp.f32 %v806_v21  ;;  %v2878_v29 = vpop.eup %2877  ;;  %v814_v30 = vadd.f32 1.0, %v2876_v28 }
  0x33   : > { %2895 = vpow2.f32 %v2549_v22  ;;  %v2880_v32 = vpop.eup %2879  ;;  %v815_v35 = vadd.f32 1.0, %v2878_v29 }
  0x34   : > { %2897 = vrcp.f32 %v807_v24  ;;  %v2882_v40 = vpop.eup %2881  ;;  %v816_v41 = vadd.f32 1.0, %v2880_v32 }
  0x35   : > { %2899 = vpow2.f32 %v2550_v25  ;;  %v817_v44 = vadd.f32 1.0, %v2882_v40 }
  0x36   : > { %2901 = vrcp.f32 %v814_v30 }
  0x37   : > { %2903 = vrcp.f32 %v815_v35 }
  0x38   : > { %2905 = vrcp.f32 %v816_v41 }
  0x39   : > { %2907 = vrcp.f32 %v817_v44 }
  0x3a   : > { %v2884_v43 = vpop.eup %2883  ;;  %2909 = vpow2.f32 %v2557_v42 }
  0x3b   : > { %v2886_v48 = vpop.eup %2885  ;;  %v851_v50 = vmul.f32 %v2884_v43, %v3141_v14  ;;  %2911 = vpow2.f32 %v2558_v45 }
  0x3c   : > { %v2888_v54 = vpop.eup %2887  ;;  %v850_v56 = vmul.f32 %v2886_v48, %v3144_v15  ;;  %v2559_v15 = vld [vmem:[%s4051_s5 + $0x10] sm:$0xff]  ;;  %2913 = vpow2.f32 %v2540_v52 }
  0x3d   : > { %v2890_v14 = vpop.eup %2889  ;;  %v917_v60 = vrot.slane %v851_v50, 7  ;;  %v852_v0 = vmul.f32 %v2888_v54, %v3147_v16  ;;  %2710 = vmatprep.subr.mxu0 %v2559_v15  ;;  %2915 = vrcp.f32 %v808_v57 }
  0x3e   : > { %v2892_v62 = vpop.eup %2891  ;;  %v916_v63 = vrot.slane %v850_v56, 7  ;;  %v853_v2 = vmul.f32 %v2890_v14, %v3153_v18  ;;  %v3291_v18 = vadd.f32 %v3121_v1, %v733_v51  ;;  %2711 = vmatpush3.msra.mxu0 %v2559_v15  ;;  %2917 = vpow2.f32 %v2539_v61 }
  0x3f   : > { %v3282_v3 = vsel %vm912_vm1, %v917_v60, 0.0  ;;  %v919_v16 = vrot.slane %v852_v0, 7  ;;  %v809_v8 = vadd.f32 1.0, %v2892_v62  ;;  %v2894_v9 = vpop.eup %2893  ;;  %2919 = vpow2.f32 %v2551_v5 }
  0x40   : > { %1011 = vrot.lane.b32.xlu1 %v3282_v3, %s2981_s17  ;;  %v3287_v4 = vsel %vm912_vm1, 0.0, %v916_v63  ;;  %v920_v7 = vrot.slane %v853_v2, 7  ;;  %v3299_v10 = vsel %vm912_vm1, %v916_v63, %v917_v60  ;;  %v2896_v17 = vpop.eup %2895  ;;  %v2552_v1 = vmul.f32 -1.442695, %v3291_v18 }
  0x41   : > { %1007 = vrot.lane.b32.xlu0 %v3287_v4, %s2981_s17  ;;  %v3296_v6 = vsel %vm912_vm1, 0.0, %v919_v16  ;;  %v2898_v21 = vpop.eup %2897  ;;  %v854_v25 = vmul.f32 %v2894_v9, %v3156_v19  ;;  %2921 = vrcp.f32 %v809_v8  ;;  %v810_v28 = vadd.f32 1.0, %v2896_v17 }
  0x42   : > { %v2900_v22 = vpop.eup %2899  ;;  %v3307_v24 = vsel %vm912_vm1, %v920_v7, 0.0  ;;  %v3311_v27 = vsel %vm912_vm1, %v919_v16, %v920_v7  ;;  %v855_v30 = vmul.f32 %v2898_v21, %v3162_v23  ;;  %2923 = vpow2.f32 %v2552_v1 }
  0x43   : > { %v2902_v26 = vpop.eup %2901  ;;  %v922_v19 = vrot.slane %v854_v25, 7  ;;  %2925 = vrcp.f32 %v810_v28  ;;  %v811_v23 = vadd.f32 1.0, %v2900_v22  ;;  %v888_v9 = vstv %s887_s22  ;;  %s4073_s22 = sld [smem:[#allocation7_spill]] }
  0x44   : > { %1081 = vrot.lane.b32.xlu1 %v3296_v6, %s2982_s26  ;;  %v2904_v29 = vpop.eup %2903  ;;  %v862_v32 = vmul.f32 %v2902_v26, %v3186_v36  ;;  %v923_v43 = vrot.slane %v855_v30, 7  ;;  %v702_v22 = vstv %s701_s25  ;;  %vm3372_vm2 = vcmp.eq.s32.totalorder %v888_v9, 1  ;;  %v1914_v9 = vld [vmem:[%s4054_s8] sm:$0xff] }
  0x45   : > { %1009 = vrot.lane.b32.xlu0 %v3299_v10, %s2981_s17  ;;  %v2906_v33 = vpop.eup %2905  ;;  %v863_v34 = vmul.f32 %v2904_v29, %v3189_v37  ;;  %v3336_v54 = vsel %vm912_vm1, 0.0, %v922_v19  ;;  %vm3380_vm3 = vcmp.eq.s32.totalorder %v702_v22, 1  ;;  %2792 = vmatprep.subr.mxu1 %v1914_v9 }
  0x46   : > { %v2908_v35 = vpop.eup %2907  ;;  %v934_v38 = vrot.slane %v862_v32, 7  ;;  %v864_v39 = vmul.f32 %v2906_v33, %v3205_v46  ;;  %v3353_v15 = vsel %vm912_vm1, %v923_v43, 0.0  ;;  %v3358_v2 = vsel %vm912_vm1, %v922_v19, %v923_v43 }
  0x47   : > { %v2910_v40 = vpop.eup %2909  ;;  %v935_v41 = vrot.slane %v863_v34, 7  ;;  %v865_v36 = vmul.f32 %v2908_v35, %v3208_v47 }
  0x48   : > { %1085 = vrot.lane.b32.xlu1 %v3307_v24, %s2982_s26  ;;  %v2912_v42 = vpop.eup %2911  ;;  %v3323_v44 = vsel %vm912_vm1, 0.0, %v934_v38  ;;  %v937_v37 = vrot.slane %v864_v39, 7  ;;  %v879_v45 = vadd.f32 1.0, %v2910_v40 }
  0x49   : > { %1083 = vrot.lane.b32.xlu0 %v3311_v27, %s2982_s26  ;;  %v2914_v48 = vpop.eup %2913  ;;  %v3328_v46 = vsel %vm912_vm1, %v935_v41, 0.0  ;;  %v3331_v50 = vsel %vm912_vm1, %v934_v38, %v935_v41  ;;  %v938_v51 = vrot.slane %v865_v36, 7  ;;  %v880_v47 = vadd.f32 1.0, %v2912_v42 }
  0x4a   : > { %v2916_v52 = vpop.eup %2915  ;;  %v3339_v56 = vsel %vm912_vm1, 0.0, %v937_v37  ;;  %2927 = vrcp.f32 %v879_v45  ;;  %v694_v57 = vadd.f32 1.0, %v2914_v48 }
  0x4b   : > { %v2918_v59 = vpop.eup %2917  ;;  %v3342_v14 = vsel %vm912_vm1, %v938_v51, 0.0  ;;  %v3345_v60 = vsel %vm912_vm1, %v937_v37, %v938_v51  ;;  %2929 = vrcp.f32 %v880_v47  ;;  %v856_v62 = vmul.f32 %v2916_v52, %v3177_v31 }
  0x4c   : > { %1015 = vrot.lane.b32.xlu1 %v3311_v27, %s2981_s17  ;;  %2931 = vrcp.f32 %v694_v57  ;;  %v693_v0 = vadd.f32 1.0, %v2918_v59  ;;  %v2920_v61 = vpop.eup %2919 }
  0x4d   : > { %1013 = vrot.lane.b32.xlu0 %v3296_v6, %s2981_s17  ;;  %2933 = vrcp.f32 %v811_v23  ;;  %v925_v5 = vrot.slane %v856_v62, 7  ;;  %v812_v8 = vadd.f32 1.0, %v2920_v61 }
  0x4e   : > { %2935 = vrcp.f32 %v693_v0  ;;  %v2922_v63 = vpop.eup %2921 }
  0x4f   : > { %v2924_v16 = vpop.eup %2923  ;;  %v857_v7 = vmul.f32 %v2922_v63, %v3220_v53  ;;  %v3370_v21 = vsel %vm912_vm1, 0.0, %v925_v5  ;;  %2937 = vrcp.f32 %v812_v8 }
  0x50   : > { %1087 = vrot.lane.b32.xlu1 %v3336_v54, %s2982_s26  ;;  %v2926_v31 = vpop.eup %2925  ;;  %v813_v17 = vadd.f32 1.0, %v2924_v16 }
  0x51   : > { %1017 = vrot.lane.b32.xlu0 %v3307_v24, %s2981_s17  ;;  %v926_v1 = vrot.slane %v857_v7, 7 }
  0x52   : > { %2939 = vrcp.f32 %v813_v17 }
  0x53   : > { %v3387_v34 = vsel %vm912_vm1, %v926_v1, 0.0 }
  0x54   : > { %1091 = vrot.lane.b32.xlu1 %v3353_v15, %s2982_s26 }
  0x55   : > { %1089 = vrot.lane.b32.xlu0 %v3358_v2, %s2982_s26 }
  0x57   : > { %v2928_v25 = vpop.eup %2927 }
  0x58   : > { %1021 = vrot.lane.b32.xlu1 %v3358_v2, %s2981_s17  ;;  %v2930_v26 = vpop.eup %2929  ;;  %v885_v28 = vmul.f32 %v2928_v25, %v3212_v49  ;;  %v858_v49 = vmul.f32 %v2926_v31, %v3237_v11  ;;  %v2596_v31 = vld [vmem:[%s4051_s5 + $0x28] sm:$0xf] }
  0x59   : > { %1019 = vrot.lane.b32.xlu0 %v3336_v54, %s2981_s17  ;;  %v2932_v29 = vpop.eup %2931  ;;  %v886_v30 = vmul.f32 %v2930_v26, %v3224_v55  ;;  %v3394_v55 = vsel %vm912_vm1, %v925_v5, %v926_v1  ;;  %2764 = vmatprep.subr.msk.mxu0 %vm1306_vm0, %v2596_v31 }
  0x5a   : > { %v2934_v33 = vpop.eup %2933  ;;  %v890_v35 = vsel %vm3372_vm2, %v885_v28, 0.0  ;;  %v700_v19 = vmul.f32 %v2932_v29, %v3240_v12  ;;  %v928_v43 = vrot.slane %v858_v49, 7 }
  0x5b   : > { %v2936_v38 = vpop.eup %2935  ;;  %v940_v39 = vrot.slane %v890_v35, 7  ;;  %v891_v40 = vsel %vm3372_vm2, %v886_v30, 0.0  ;;  %v859_v11 = vmul.f32 %v2934_v33, %v3246_v20 }
  0x5c   : > { %1093 = vrot.lane.b32.xlu1 %v3370_v21, %s2982_s26  ;;  %v941_v23 = vrot.slane %v891_v40, 7  ;;  %v705_v41 = vsel %vm3380_vm3, %v700_v19, 0.0  ;;  %v699_v36 = vmul.f32 %v2936_v38, %v3243_v13  ;;  %v3419_v52 = vsel %vm912_vm1, 0.0, %v928_v43  ;;  %v2938_v59 = vpop.eup %2937 }
  0x5d   : > { %1023 = vrot.lane.b32.xlu0 %v3353_v15, %s2981_s17  ;;  %v980_v12 = vsel %vm912_vm1, 0.0, %v940_v39  ;;  %v914_v42 = vrot.slane %v705_v41, 7  ;;  %v929_v57 = vrot.slane %v859_v11, 7  ;;  %v860_v62 = vmul.f32 %v2938_v59, %v3268_v58  ;;  %v2595_v11 = vld [vmem:[%s4051_s5 + $0x20] sm:$0xff] }
  0x5e   : > { %v990_v37 = vsel %vm912_vm1, %v941_v23, 0.0  ;;  %v942_v45 = vsel %vm912_vm1, %v940_v39, %v941_v23  ;;  %v704_v48 = vsel %vm3380_vm3, %v699_v36, 0.0 }
  0x5f   : > { %v981_v13 = vsel %vm912_vm1, %v914_v42, 0.0  ;;  %v913_v51 = vrot.slane %v704_v48, 7  ;;  %v2940_v0 = vpop.eup %2939  ;;  %v3426_v61 = vsel %vm912_vm1, %v929_v57, 0.0  ;;  %v3430_v63 = vsel %vm912_vm1, %v928_v43, %v929_v57 }
  0x60   : > { %1097 = vrot.lane.b32.xlu1 %v3387_v34, %s2982_s26  ;;  %v931_v16 = vrot.slane %v860_v62, 7  ;;  %v861_v5 = vmul.f32 %v2940_v0, %v3291_v18 }
  0x61   : > { %1095 = vrot.lane.b32.xlu0 %v3394_v55, %s2982_s26  ;;  %v971_v20 = vsel %vm912_vm1, 0.0, %v913_v51  ;;  %v915_v47 = vsel %vm912_vm1, %v913_v51, %v914_v42 }
  0x62   : > { %v3442_v58 = vsel %vm912_vm1, 0.0, %v931_v16  ;;  %v932_v7 = vrot.slane %v861_v5, 7 }
  0x64   : > { %1027 = vrot.lane.b32.xlu1 %v3394_v55, %s2981_s17  ;;  %v3449_v8 = vsel %vm912_vm1, %v932_v7, 0.0  ;;  %v3452_v18 = vsel %vm912_vm1, %v931_v16, %v932_v7 }
  0x65   : > { %1025 = vrot.lane.b32.xlu0 %v3370_v21, %s2981_s17 }
  0x68   : > { %1099 = vrot.lane.b32.xlu1 %v3419_v52, %s2982_s26 }
  0x69   : > { %1029 = vrot.lane.b32.xlu0 %v3387_v34, %s2981_s17 }
  0x6c   : > { %1103 = vrot.lane.b32.xlu1 %v3426_v61, %s2982_s26 }
  0x6d   : > { %1101 = vrot.lane.b32.xlu0 %v3430_v63, %s2982_s26 }
  0x70   : > { %1033 = vrot.lane.b32.xlu1 %v3430_v63, %s2981_s17 }
  0x71   : > { %1031 = vrot.lane.b32.xlu0 %v3419_v52, %s2981_s17 }
  0x74   : > { %1105 = vrot.lane.b32.xlu1 %v3442_v58, %s2982_s26 }
  0x75   : > { %1035 = vrot.lane.b32.xlu0 %v3426_v61, %s2981_s17 }
  0x78   : > { %1109 = vrot.lane.b32.xlu1 %v3449_v8, %s2982_s26 }
  0x79   : > { %1107 = vrot.lane.b32.xlu0 %v3452_v18, %s2982_s26 }
  0x7c   : > { %1039 = vrot.lane.b32.xlu1 %v3452_v18, %s2981_s17 }
  0x7d   : > { %1037 = vrot.lane.b32.xlu0 %v3442_v58, %s2981_s17 }
  0x80   : > { %1111 = vrot.lane.b32.xlu1 %v3323_v44, %s2982_s26 }
  0x81   : > { %1041 = vrot.lane.b32.xlu0 %v3449_v8, %s2981_s17 }
  0x84   : > { %1115 = vrot.lane.b32.xlu1 %v3328_v46, %s2982_s26 }
  0x85   : > { %1113 = vrot.lane.b32.xlu0 %v3331_v50, %s2982_s26 }
  0x88   : > { %1045 = vrot.lane.b32.xlu1 %v3331_v50, %s2981_s17 }
  0x89   : > { %1043 = vrot.lane.b32.xlu0 %v3323_v44, %s2981_s17 }
  0x8c   : > { %1117 = vrot.lane.b32.xlu1 %v3339_v56, %s2982_s26 }
  0x8d   : > { %1047 = vrot.lane.b32.xlu0 %v3328_v46, %s2981_s17 }
  0x90   : > { %1121 = vrot.lane.b32.xlu1 %v3342_v14, %s2982_s26 }
  0x91   : > { %1119 = vrot.lane.b32.xlu0 %v3345_v60, %s2982_s26 }
  0x94   : > { %1051 = vrot.lane.b32.xlu1 %v3345_v60, %s2981_s17 }
  0x95   : > { %1049 = vrot.lane.b32.xlu0 %v3339_v56, %s2981_s17 }
  0x98   : > { %1123 = vrot.lane.b32.xlu1 %v980_v12, %s2982_s26 }
  0x99   : > { %1053 = vrot.lane.b32.xlu0 %v3342_v14, %s2981_s17 }
  0x9c   : > { %1127 = vrot.lane.b32.xlu1 %v990_v37, %s2982_s26 }
  0x9d   : > { %1125 = vrot.lane.b32.xlu0 %v942_v45, %s2982_s26 }
  0xb2   : > { %v1012_v17 = vpop.permute.xlu1 %1011 }
  0xb3   : > { %v1008_v1 = vpop.permute.xlu0 %1007  ;;  %v1156_v53 = vsel %vm1153_vm4, %v981_v13, %v1012_v17 }
  0xb4   : > { %v1154_v22 = vsel %vm1153_vm4, %v971_v20, %v1008_v1 }
  0xb6   : > { %v1082_v60 = vpop.permute.xlu1 %1081 }
  0xb7   : > { %v1010_v25 = vpop.permute.xlu0 %1009  ;;  %v1179_v56 = vsel %vm1178_vm5, %v1154_v22, %v1082_v60 }
  0xb8   : > { %2740 = vmatprep.mubr.msk.f32.mxu1 %vm1273_vm6, %v1179_v56  ;;  %v1155_v26 = vsel %vm1153_vm4, %v915_v47, %v1010_v25  ;;  %v1230_v49 = vrot.slane %v1179_v56, 1  ;;  %v1636_v35 = vrot.slane %v1179_v56, 2 }
  0xba   : > { %v1086_v14 = vpop.permute.xlu1 %1085 }
  0xbb   : > { %v1181_v28 = vsel %vm1178_vm5, %v1156_v53, %v1086_v14  ;;  %v1084_v29 = vpop.permute.xlu0 %1083 }
  0xbc   : > { %v1233_v30 = vrot.slane %v1181_v28, 1  ;;  %v1639_v32 = vrot.slane %v1181_v28, 2  ;;  %v1180_v33 = vsel %vm1178_vm5, %v1155_v26, %v1084_v29 }
  0xbd   : > { %v1231_v19 = vrot.slane %v1180_v33, 1  ;;  %v1637_v38 = vrot.slane %v1180_v33, 2  ;;  %2741 = vmatmul.mubr.msk.f32.vlgmr.msra.gmra.mxu1 %vm1273_vm6, %v1180_v33 }
  0xbe   : > { %v1016_v39 = vpop.permute.xlu1 %1015  ;;  %2793 = vmatpush3.msra.mxu1 %v1914_v9 }
  0xbf   : > { %v1014_v40 = vpop.permute.xlu0 %1013  ;;  %v1232_v23 = vsel %vm1229_vm7, %v1230_v49, %v1231_v19  ;;  %v1234_v41 = vsel %vm1229_vm7, %v1231_v19, %v1233_v30  ;;  %v3509_v36 = vsel %vm1635_vm8, %v1636_v35, %v1637_v38  ;;  %v3516_v12 = vsel %vm1635_vm8, %v1637_v38, %v1639_v32 }
  0xc0   : > { %2712 = vmatprep.mubr.msk.f32.mxu0 %vm1273_vm6, %v1232_v23  ;;  %v1157_v42 = vsel %vm1153_vm4, %v3287_v4, %v1014_v40  ;;  %v1158_v51 = vsel %vm1153_vm4, %v3299_v10, %v1016_v39 }
  0xc1   : > { %2713 = vmatmul.mubr.msk.f32.vlgmr.msra.gmra.mxu0 %vm1273_vm6, %v1234_v41 }
  0xc2   : > { %v1088_v43 = vpop.permute.xlu1 %1087  ;;  %2765 = vmatpush3.msk.msra.mxu0 %vm1306_vm0, %v2596_v31 }
  0xc3   : > { %v1182_v37 = vsel %vm1178_vm5, %v1157_v42, %v1088_v43  ;;  %v1018_v45 = vpop.permute.xlu0 %1017  ;;  %2766 = vmatprep.subr.mxu0 %v2595_v11 }
  0xc4   : > { %2743 = vmatprep.mubr.msk.f32.mxu1 %vm1273_vm6, %v1182_v37  ;;  %2767 = vmatpush3.msra.mxu0 %v2595_v11  ;;  %v1159_v48 = vsel %vm1153_vm4, %v3282_v3, %v1018_v45  ;;  %v1235_v0 = vrot.slane %v1182_v37, 1  ;;  %v1641_v62 = vrot.slane %v1182_v37, 2 }
  0xc6   : > { %v1092_v13 = vpop.permute.xlu1 %1091 }
  0xc7   : > { %v1184_v20 = vsel %vm1178_vm5, %v1159_v48, %v1092_v13  ;;  %v1090_v4 = vpop.permute.xlu0 %1089 }
  0xc8   : > { %v1238_v47 = vrot.slane %v1184_v20, 1  ;;  %v1644_v57 = vrot.slane %v1184_v20, 2  ;;  %v1183_v59 = vsel %vm1178_vm5, %v1158_v51, %v1090_v4 }
  0xc9   : > { %v1236_v16 = vrot.slane %v1183_v59, 1  ;;  %v1642_v5 = vrot.slane %v1183_v59, 2  ;;  %2744 = vmatmul.mubr.msk.f32.gmra.mxu1 %vm1273_vm6, %v1183_v59 }
  0xca   : > { %v1022_v7 = vpop.permute.xlu1 %1021 }
  0xcb   : > { %v1020_v31 = vpop.permute.xlu0 %1019  ;;  %v1237_v3 = vsel %vm1229_vm7, %v1235_v0, %v1236_v16  ;;  %v1239_v9 = vsel %vm1229_vm7, %v1236_v16, %v1238_v47  ;;  %v3534_v10 = vsel %vm1635_vm8, %v1641_v62, %v1642_v5  ;;  %v3538_v17 = vsel %vm1635_vm8, %v1642_v5, %v1644_v57 }
  0xcc   : > { %2715 = vmatprep.mubr.msk.f32.mxu0 %vm1273_vm6, %v1237_v3  ;;  %v1160_v1 = vsel %vm1153_vm4, %v3296_v6, %v1020_v31  ;;  %v1161_v14 = vsel %vm1153_vm4, %v3311_v27, %v1022_v7 }
  0xcd   : > { %2716 = vmatmul.mubr.msk.f32.gmra.mxu0 %vm1273_vm6, %v1239_v9 }
  0xce   : > { %v1094_v22 = vpop.permute.xlu1 %1093 }
  0xcf   : > { %v1185_v60 = vsel %vm1178_vm5, %v1160_v1, %v1094_v22  ;;  %v1024_v25 = vpop.permute.xlu0 %1023 }
  0xd0   : > { %2746 = vmatprep.mubr.msk.f32.mxu1 %vm1273_vm6, %v1185_v60  ;;  %v1162_v56 = vsel %vm1153_vm4, %v3307_v24, %v1024_v25  ;;  %v1240_v32 = vrot.slane %v1185_v60, 1  ;;  %v1646_v33 = vrot.slane %v1185_v60, 2 }
  0xd2   : > { %v1098_v53 = vpop.permute.xlu1 %1097 }
  0xd3   : > { %v1187_v26 = vsel %vm1178_vm5, %v1162_v56, %v1098_v53  ;;  %v1096_v28 = vpop.permute.xlu0 %1095 }
  0xd4   : > { %v1243_v29 = vrot.slane %v1187_v26, 1  ;;  %v1649_v30 = vrot.slane %v1187_v26, 2  ;;  %v1186_v6 = vsel %vm1178_vm5, %v1161_v14, %v1096_v28 }
  0xd5   : > { %v1241_v49 = vrot.slane %v1186_v6, 1  ;;  %v1647_v35 = vrot.slane %v1186_v6, 2  ;;  %2747 = vmatmul.mubr.msk.f32.gmra.mxu1 %vm1273_vm6, %v1186_v6 }
  0xd6   : > { %v1028_v19 = vpop.permute.xlu1 %1027 }
  0xd7   : > { %v1026_v38 = vpop.permute.xlu0 %1025  ;;  %v1242_v24 = vsel %vm1229_vm7, %v1240_v32, %v1241_v49  ;;  %v1244_v39 = vsel %vm1229_vm7, %v1241_v49, %v1243_v29  ;;  %v3555_v27 = vsel %vm1635_vm8, %v1646_v33, %v1647_v35  ;;  %v3559_v40 = vsel %vm1635_vm8, %v1647_v35, %v1649_v30 }
  0xd8   : > { %2718 = vmatprep.mubr.msk.f32.mxu0 %vm1273_vm6, %v1242_v24  ;;  %v1163_v23 = vsel %vm1153_vm4, %v3336_v54, %v1026_v38  ;;  %v1164_v45 = vsel %vm1153_vm4, %v3358_v2, %v1028_v19 }
  0xd9   : > { %2719 = vmatmul.mubr.msk.f32.gmra.mxu0 %vm1273_vm6, %v1244_v39 }
  0xda   : > { %v1100_v41 = vpop.permute.xlu1 %1099 }
  0xdb   : > { %v3565_v11 = vsel %vm1178_vm5, %v1163_v23, %v1100_v41  ;;  %v1030_v42 = vpop.permute.xlu0 %1029 }
  0xdc   : > { %2749 = vmatprep.mubr.msk.f32.mxu1 %vm1273_vm6, %v3565_v11  ;;  %v1165_v43 = vsel %vm1153_vm4, %v3353_v15, %v1030_v42  ;;  %v1245_v20 = vrot.slane %v3565_v11, 1 }
  0xde   : > { %v1104_v37 = vpop.permute.xlu1 %1103 }
  0xdf   : > { %v3574_v48 = vsel %vm1178_vm5, %v1165_v43, %v1104_v37  ;;  %v1102_v13 = vpop.permute.xlu0 %1101 }
  0xe0   : > { %v1248_v54 = vrot.slane %v3574_v48, 1  ;;  %v3578_v51 = vsel %vm1178_vm5, %v1164_v45, %v1102_v13 }
  0xe1   : > { %v1246_v4 = vrot.slane %v3578_v51, 1  ;;  %2750 = vmatmul.mubr.msk.f32.gmra.mxu1 %vm1273_vm6, %v3578_v51 }
  0xe2   : > { %v1034_v15 = vpop.permute.xlu1 %1033 }
  0xe3   : > { %v1032_v47 = vpop.permute.xlu0 %1031  ;;  %v1247_v2 = vsel %vm1229_vm7, %v1245_v20, %v1246_v4  ;;  %v1249_v57 = vsel %vm1229_vm7, %v1246_v4, %v1248_v54  ;;  %v1167_v31 = vsel %vm1153_vm4, %v3394_v55, %v1034_v15 }
  0xe4   : > { %2721 = vmatprep.mubr.msk.f32.mxu0 %vm1273_vm6, %v1247_v2  ;;  %v1166_v59 = vsel %vm1153_vm4, %v3370_v21, %v1032_v47 }
  0xe5   : > { %2722 = vmatmul.mubr.msk.f32.gmra.mxu0 %vm1273_vm6, %v1249_v57 }
  0xe6   : > { %v1106_v0 = vpop.permute.xlu1 %1105 }
  0xe7   : > { %v3591_v62 = vsel %vm1178_vm5, %v1166_v59, %v1106_v0  ;;  %v1036_v16 = vpop.permute.xlu0 %1035 }
  0xe8   : > { %2752 = vmatprep.mubr.msk.f32.mxu1 %vm1273_vm6, %v3591_v62  ;;  %v1168_v5 = vsel %vm1153_vm4, %v3387_v34, %v1036_v16  ;;  %v1250_v22 = vrot.slane %v3591_v62, 1 }
  0xea   : > { %v1110_v7 = vpop.permute.xlu1 %1109 }
  0xeb   : > { %v3600_v3 = vsel %vm1178_vm5, %v1168_v5, %v1110_v7  ;;  %v1108_v9 = vpop.permute.xlu0 %1107 }
  0xec   : > { %v1253_v21 = vrot.slane %v3600_v3, 1  ;;  %v3604_v1 = vsel %vm1178_vm5, %v1167_v31, %v1108_v9 }
  0xed   : > { %v1251_v60 = vrot.slane %v3604_v1, 1  ;;  %2753 = vmatmul.mubr.msk.f32.gmra.mxu1 %vm1273_vm6, %v3604_v1 }
  0xee   : > { %v1040_v34 = vpop.permute.xlu1 %1039 }
  0xef   : > { %v1038_v25 = vpop.permute.xlu0 %1037  ;;  %v1252_v55 = vsel %vm1229_vm7, %v1250_v22, %v1251_v60  ;;  %v1254_v56 = vsel %vm1229_vm7, %v1251_v60, %v1253_v21  ;;  %v1170_v6 = vsel %vm1153_vm4, %v3430_v63, %v1040_v34  ;;  %v1898_v21 = vld [vmem:[%s3677_s29] sm:$0xff] }
  0xf0   : > { %2724 = vmatprep.mubr.msk.f32.mxu0 %vm1273_vm6, %v1252_v55  ;;  %v1169_v53 = vsel %vm1153_vm4, %v3419_v52, %v1038_v25 }
  0xf1   : > { %2725 = vmatmul.mubr.msk.f32.gmra.mxu0 %vm1273_vm6, %v1254_v56  ;;  %v1900_v56 = vld [vmem:[%s3677_s29 + $0x10] sm:$0xff] }
  0xf2   : > { %v1112_v14 = vpop.permute.xlu1 %1111 }
  0xf3   : > { %v3617_v26 = vsel %vm1178_vm5, %v1169_v53, %v1112_v14  ;;  %v1042_v28 = vpop.permute.xlu0 %1041  ;;  %v1901_v53 = vld [vmem:[%s3677_s29 + $0x18] sm:$0xff]  ;;  %v1902_v14 = vld [vmem:[%s3677_s29 + $0x20] sm:$0xff] }
  0xf4   : > { %2755 = vmatprep.mubr.msk.f32.mxu1 %vm1273_vm6, %v3617_v26  ;;  %v1171_v29 = vsel %vm1153_vm4, %v3426_v61, %v1042_v28  ;;  %v1255_v35 = vrot.slane %v3617_v26, 1  ;;  %v1903_v28 = vld [vmem:[%s3677_s29 + $0x28] sm:$0xff] }
  0xf6   : > { %v1116_v30 = vpop.permute.xlu1 %1115 }
  0xf7   : > { %v3626_v32 = vsel %vm1178_vm5, %v1171_v29, %v1116_v30  ;;  %v1114_v33 = vpop.permute.xlu0 %1113  ;;  %v1904_v29 = vld [vmem:[%s3677_s29 + $0x30] sm:$0xff]  ;;  %v1906_v30 = vld [vmem:[%s3677_s29 + $0x40] sm:$0xff] }
  0xf8   : > { %v1258_v52 = vrot.slane %v3626_v32, 1  ;;  %v3630_v49 = vsel %vm1178_vm5, %v1170_v6, %v1114_v33  ;;  %v1654_v6 = vrot.slane %v3574_v48, 2  ;;  %v1657_v33 = vrot.slane %v3604_v1, 2 }
  0xf9   : > { %v1256_v19 = vrot.slane %v3630_v49, 1  ;;  %2756 = vmatmul.mubr.msk.f32.gmra.mxu1 %vm1273_vm6, %v3630_v49  ;;  %v1659_v48 = vrot.slane %v3600_v3, 2  ;;  %v1910_v3 = vld [vmem:[%s3677_s29 + $0x60] sm:$0xff] }
  0xfa   : > { %v1046_v61 = vpop.permute.xlu1 %1045 }
  0xfb   : > { %v1044_v38 = vpop.permute.xlu0 %1043  ;;  %v1257_v63 = vsel %vm1229_vm7, %v1255_v35, %v1256_v19  ;;  %v1259_v24 = vsel %vm1229_vm7, %v1256_v19, %v1258_v52  ;;  %v1173_v45 = vsel %vm1153_vm4, %v3452_v18, %v1046_v61  ;;  %v1661_v35 = vrot.slane %v3617_v26, 2 }
  0xfc   : > { %2727 = vmatprep.mubr.msk.f32.mxu0 %vm1273_vm6, %v1257_v63  ;;  %v1172_v39 = vsel %vm1153_vm4, %v3442_v58, %v1044_v38  ;;  %v1664_v19 = vrot.slane %v3626_v32, 2  ;;  %v1911_v63 = vld [vmem:[%s3677_s29 + $0x68] sm:$0xff] }
  0xfd   : > { %2728 = vmatmul.mubr.msk.f32.gmra.mxu0 %vm1273_vm6, %v1259_v24  ;;  %v1912_v24 = vld [vmem:[%s3677_s29 + $0x70] sm:$0xff] }
  0xfe   : > { %v1118_v23 = vpop.permute.xlu1 %1117 }
  0xff   : > { %v3643_v41 = vsel %vm1178_vm5, %v1172_v39, %v1118_v23  ;;  %v1048_v42 = vpop.permute.xlu0 %1047 }
 0x100   : > { %2758 = vmatprep.mubr.msk.f32.mxu1 %vm1273_vm6, %v3643_v41  ;;  %v1174_v43 = vsel %vm1153_vm4, %v3449_v8, %v1048_v42  ;;  %v1260_v4 = vrot.slane %v3643_v41, 1  ;;  %v1666_v26 = vrot.slane %v3643_v41, 2 }
 0x102   : > { %v1122_v37 = vpop.permute.xlu1 %1121 }
 0x103   : > { %v3652_v13 = vsel %vm1178_vm5, %v1174_v43, %v1122_v37  ;;  %v1120_v54 = vpop.permute.xlu0 %1119  ;;  %v1913_v43 = vld [vmem:[%s3677_s29 + $0x78] sm:$0xff] }
 0x104   : > { %v1263_v58 = vrot.slane %v3652_v13, 1  ;;  %v3656_v20 = vsel %vm1178_vm5, %v1173_v45, %v1120_v54  ;;  %v1669_v32 = vrot.slane %v3652_v13, 2 }
 0x105   : > { %v1261_v15 = vrot.slane %v3656_v20, 1  ;;  %2759 = vmatmul.mubr.msk.f32.gmra.mxu1 %vm1273_vm6, %v3656_v20  ;;  %v1667_v61 = vrot.slane %v3656_v20, 2 }
 0x106   : > { %v1052_v8 = vpop.permute.xlu1 %1051 }
 0x107   : > { %v1050_v47 = vpop.permute.xlu0 %1049  ;;  %v1262_v18 = vsel %vm1229_vm7, %v1260_v4, %v1261_v15  ;;  %v1264_v2 = vsel %vm1229_vm7, %v1261_v15, %v1263_v58  ;;  %v1176_v7 = vsel %vm1153_vm4, %v3331_v50, %v1052_v8  ;;  %v1899_v50 = vld [vmem:[%s3677_s29 + $0x8] sm:$0xff]  ;;  %v1668_v42 = vsel %vm1635_vm8, %v1666_v26, %v1667_v61 }
 0x108   : > { %2730 = vmatprep.mubr.msk.f32.mxu0 %vm1273_vm6, %v1262_v18  ;;  %v1175_v57 = vsel %vm1153_vm4, %v3323_v44, %v1050_v47  ;;  %v1670_v45 = vsel %vm1635_vm8, %v1667_v61, %v1669_v32 }
 0x109   : > { %2731 = vmatmul.mubr.msk.f32.gmra.mxu0 %vm1273_vm6, %v1264_v2 }
 0x10a   : > { %v1124_v59 = vpop.permute.xlu1 %1123 }
 0x10b   : > { %v3669_v0 = vsel %vm1178_vm5, %v1175_v57, %v1124_v59  ;;  %v1054_v16 = vpop.permute.xlu0 %1053 }
 0x10c   : > { %2761 = vmatprep.mubr.msk.f32.mxu1 %vm1273_vm6, %v3669_v0  ;;  %v1177_v5 = vsel %vm1153_vm4, %v3328_v46, %v1054_v16  ;;  %v1265_v34 = vrot.slane %v3669_v0, 1  ;;  %v1671_v41 = vrot.slane %v3669_v0, 2 }
 0x10e   : > { %v1128_v44 = vpop.permute.xlu1 %1127 }
 0x10f   : > { %v3684_v31 = vsel %vm1178_vm5, %v1177_v5, %v1128_v44  ;;  %v1126_v9 = vpop.permute.xlu0 %1125 }
 0x110   : > { %v1268_v22 = vrot.slane %v3684_v31, 1  ;;  %v3689_v60 = vsel %vm1178_vm5, %v1176_v7, %v1126_v9  ;;  %v1674_v37 = vrot.slane %v3684_v31, 2 }
 0x111   : > { %v1266_v46 = vrot.slane %v3689_v60, 1  ;;  %2762 = vmatmul.mubr.msk.f32.gmra.mxu1 %vm1273_vm6, %v3689_v60  ;;  %v1672_v23 = vrot.slane %v3689_v60, 2 }
 0x112   : > { %2794 = vmatprep.mubr.msk.f32.mxu1 %vm1178_vm5, %v1898_v21 }
 0x113   : > { %v1267_v25 = vsel %vm1229_vm7, %v1265_v34, %v1266_v46  ;;  %v1269_v55 = vsel %vm1229_vm7, %v1266_v46, %v1268_v22  ;;  %v1673_v13 = vsel %vm1635_vm8, %v1671_v41, %v1672_v23  ;;  %v1675_v54 = vsel %vm1635_vm8, %v1672_v23, %v1674_v37 }
 0x114   : > { %2733 = vmatprep.mubr.msk.f32.mxu0 %vm1273_vm6, %v1267_v25 }
 0x115   : > { %2734 = vmatmul.mubr.msk.f32.gmra.mxu0 %vm1273_vm6, %v1269_v55  ;;  %2795 = vmatmul.mubr.msk.f32.vlgmr.msra.gmra.mxu1 %vm1178_vm5, %v1899_v50 }
 0x116   : > { %2768 = vmatprep.mubr.msk.f32.mxu0 %vm1273_vm6, %v3509_v36  ;;  %2797 = vmatprep.mubr.msk.f32.mxu1 %vm1178_vm5, %v1900_v56  ;;  %v1652_v36 = vrot.slane %v3578_v51, 2  ;;  %v1908_v51 = vld [vmem:[%s3677_s29 + $0x50] sm:$0xff] }
 0x118   : > { %v1655_v1 = vsel %vm1635_vm8, %v1652_v36, %v1654_v6 }
 0x119   : > { %2769 = vmatmul.mubr.msk.f32.vlgmr.msra.gmra.mxu0 %vm1273_vm6, %v3516_v12  ;;  %2798 = vmatmul.mubr.msk.f32.gmra.mxu1 %vm1178_vm5, %v1901_v53  ;;  %v1905_v12 = vld [vmem:[%s3677_s29 + $0x38] sm:$0xff] }
 0x11a   : > { %2771 = vmatprep.mubr.msk.f32.mxu0 %vm1273_vm6, %v3534_v10  ;;  %2800 = vmatprep.mubr.msk.f32.mxu1 %vm1178_vm5, %v1902_v14  ;;  %v1651_v10 = vrot.slane %v3565_v11, 2  ;;  %v1656_v11 = vrot.slane %v3591_v62, 2  ;;  %v1909_v62 = vld [vmem:[%s3677_s29 + $0x58] sm:$0xff] }
 0x11c   : > { %v1658_v52 = vsel %vm1635_vm8, %v1656_v11, %v1657_v33 }
 0x11d   : > { %2772 = vmatmul.mubr.msk.f32.gmra.mxu0 %vm1273_vm6, %v3538_v17  ;;  %2801 = vmatmul.mubr.msk.f32.gmra.mxu1 %vm1178_vm5, %v1903_v28  ;;  %v1653_v17 = vsel %vm1635_vm8, %v1651_v10, %v1652_v36 }
 0x11e   : > { %2774 = vmatprep.mubr.msk.f32.mxu0 %vm1273_vm6, %v3555_v27  ;;  %2803 = vmatprep.mubr.msk.f32.mxu1 %vm1178_vm5, %v1904_v29  ;;  %v1907_v27 = vld [vmem:[%s3677_s29 + $0x48] sm:$0xff] }
 0x121   : > { %2775 = vmatmul.mubr.msk.f32.gmra.mxu0 %vm1273_vm6, %v3559_v40  ;;  %2804 = vmatmul.mubr.msk.f32.gmra.mxu1 %vm1178_vm5, %v1905_v12  ;;  %v1662_v40 = vrot.slane %v3630_v49, 2  ;;  %v1660_v49 = vsel %vm1635_vm8, %v1657_v33, %v1659_v48 }
 0x122   : > { %2777 = vmatprep.mubr.msk.f32.mxu0 %vm1273_vm6, %v1653_v17  ;;  %2806 = vmatprep.mubr.msk.f32.mxu1 %vm1178_vm5, %v1906_v30  ;;  %v3810_v17 = vld [vmem:[%s4052_s6] ss:$0 sm:$0xff] }
 0x123   : > { %v1663_v38 = vsel %vm1635_vm8, %v1661_v35, %v1662_v40  ;;  %v1665_v39 = vsel %vm1635_vm8, %v1662_v40, %v1664_v19  ;;  %v3816_v35 = vld [vmem:[%s4073_s22] ss:$0 sm:$0xff] }
 0x125   : > { %2778 = vmatmul.mubr.msk.f32.gmra.mxu0 %vm1273_vm6, %v1655_v1  ;;  %2807 = vmatmul.mubr.msk.f32.gmra.mxu1 %vm1178_vm5, %v1907_v27 }
 0x126   : > { %2780 = vmatprep.mubr.msk.f32.mxu0 %vm1273_vm6, %v1658_v52  ;;  %2809 = vmatprep.mubr.msk.f32.mxu1 %vm1178_vm5, %v1908_v51 }
 0x129   : > { %2781 = vmatmul.mubr.msk.f32.gmra.mxu0 %vm1273_vm6, %v1660_v49  ;;  %2810 = vmatmul.mubr.msk.f32.gmra.mxu1 %vm1178_vm5, %v1909_v62 }
 0x12a   : > { %2783 = vmatprep.mubr.msk.f32.mxu0 %vm1273_vm6, %v1663_v38  ;;  %2812 = vmatprep.mubr.msk.f32.mxu1 %vm1178_vm5, %v1910_v3 }
 0x12d   : > { %2784 = vmatmul.mubr.msk.f32.gmra.mxu0 %vm1273_vm6, %v1665_v39  ;;  %2813 = vmatmul.mubr.msk.f32.gmra.mxu1 %vm1178_vm5, %v1911_v63 }
 0x12e   : > { %2786 = vmatprep.mubr.msk.f32.mxu0 %vm1273_vm6, %v1668_v42  ;;  %2815 = vmatprep.mubr.msk.f32.mxu1 %vm1178_vm5, %v1912_v24 }
 0x131   : > { %2787 = vmatmul.mubr.msk.f32.gmra.mxu0 %vm1273_vm6, %v1670_v45  ;;  %2816 = vmatmul.mubr.msk.f32.gmra.mxu1 %vm1178_vm5, %v1913_v43 }
 0x132   : > { %2789 = vmatprep.mubr.msk.f32.mxu0 %vm1273_vm6, %v1673_v13 }
 0x135   : > { %2790 = vmatmul.mubr.msk.f32.gmra.mxu0 %vm1273_vm6, %v1675_v54 }
 0x17d   : > { %v2742_v58 = vpop.f32.mrf.mxu1 }
 0x17f   : > { %v1556_v20 = vpop.f32.mrf.mxu1 }
 0x181   : > { %v2714_v4 = vpop.f32.mrf.mxu0 }
 0x182   : > { %v1562_v6 = vadd.f32 %v2742_v58, %v2714_v4 }
 0x183   : > { %v1376_v8 = vpop.f32.mrf.mxu0 }
 0x184   : > { %v1557_v11 = vadd.f32 %v1556_v20, %v1376_v8 }
 0x189   : > { %v2745_v15 = vpop.f32.mrf.mxu1 }
 0x18b   : > { %v1566_v47 = vpop.f32.mrf.mxu1 }
 0x18d   : > { %v2717_v18 = vpop.f32.mrf.mxu0 }
 0x18e   : > { %v1572_v40 = vadd.f32 %v2745_v15, %v2717_v18 }
 0x18f   : > { %v1386_v57 = vpop.f32.mrf.mxu0 }
 0x190   : > { %v1567_v49 = vadd.f32 %v1566_v47, %v1386_v57 }
 0x195   : > { %v2748_v2 = vpop.f32.mrf.mxu1 }
 0x197   : > { %v1576_v59 = vpop.f32.mrf.mxu1 }
 0x199   : > { %v2720_v0 = vpop.f32.mrf.mxu0 }
 0x19a   : > { %v1582_v26 = vadd.f32 %v2748_v2, %v2720_v0 }
 0x19b   : > { %v1396_v5 = vpop.f32.mrf.mxu0 }
 0x19c   : > { %v1577_v41 = vadd.f32 %v1576_v59, %v1396_v5 }
 0x1a1   : > { %v2751_v16 = vpop.f32.mrf.mxu1 }
 0x1a3   : > { %v1586_v44 = vpop.f32.mrf.mxu1 }
 0x1a5   : > { %v2723_v7 = vpop.f32.mrf.mxu0 }
 0x1a6   : > { %v1592_v4 = vadd.f32 %v2751_v16, %v2723_v7 }
 0x1a7   : > { %v1406_v9 = vpop.f32.mrf.mxu0 }
 0x1a8   : > { %v1587_v59 = vadd.f32 %v1586_v44, %v1406_v9 }
 0x1ad   : > { %v3777_v31 = vpop.f32.mrf.mxu1 }
 0x1af   : > { %v3779_v21 = vpop.f32.mrf.mxu1 }
 0x1b1   : > { %v2726_v22 = vpop.f32.mrf.mxu0 }
 0x1b2   : > { %v1602_v16 = vadd.f32 %v3777_v31, %v2726_v22 }
 0x1b3   : > { %v3783_v34 = vpop.f32.mrf.mxu0 }
 0x1b4   : > { %v1597_v9 = vadd.f32 %v3779_v21, %v3783_v34 }
 0x1b9   : > { %v3781_v60 = vpop.f32.mrf.mxu1 }
 0x1bb   : > { %v3785_v46 = vpop.f32.mrf.mxu1 }
 0x1bd   : > { %v3787_v50 = vpop.f32.mrf.mxu0 }
 0x1be   : > { %v1612_v22 = vadd.f32 %v3781_v60, %v3787_v50 }
 0x1bf   : > { %v3791_v55 = vpop.f32.mrf.mxu0 }
 0x1c0   : > { %v1607_v34 = vadd.f32 %v3785_v46, %v3791_v55 }
 0x1c5   : > { %v3789_v25 = vpop.f32.mrf.mxu1 }
 0x1c7   : > { %v3793_v56 = vpop.f32.mrf.mxu1 }
 0x1c9   : > { %v3795_v53 = vpop.f32.mrf.mxu0 }
 0x1ca   : > { %v1622_v50 = vadd.f32 %v3789_v25, %v3795_v53 }
 0x1cb   : > { %v3799_v28 = vpop.f32.mrf.mxu0 }
 0x1cc   : > { %v1617_v55 = vadd.f32 %v3793_v56, %v3799_v28 }
 0x1d1   : > { %v3797_v14 = vpop.f32.mrf.mxu1 }
 0x1d3   : > { %v3801_v29 = vpop.f32.mrf.mxu1 }
 0x1d5   : > { %v3803_v36 = vpop.f32.mrf.mxu0  ;;  %v2796_v12 = vpop.f32.mrf.mxu1 }
 0x1d6   : > { %v1632_v53 = vadd.f32 %v3797_v14, %v3803_v36 }
 0x1d7   : > { %v3805_v10 = vpop.f32.mrf.mxu0  ;;  %v2029_v30 = vpop.f32.mrf.mxu1 }
 0x1d8   : > { %v1627_v28 = vadd.f32 %v3801_v29, %v3805_v10 }
 0x1d9   : > { %v2770_v33 = vpop.f32.mrf.mxu0  ;;  %v2799_v27 = vpop.f32.mrf.mxu1 }
 0x1da   : > { %v1860_v51 = vadd.f32 %v2770_v33, %v1562_v6 }
 0x1db   : > { %v1780_v48 = vpop.f32.mrf.mxu0  ;;  %v2039_v1 = vpop.f32.mrf.mxu1 }
 0x1dc   : > { %v1859_v52 = vadd.f32 %v1780_v48, %v1557_v11  ;;  %v1883_v62 = vadd.f32 %v3810_v17, %v1860_v51 }
 0x1dd   : > { %v2773_v3 = vpop.f32.mrf.mxu0  ;;  %v2802_v19 = vpop.f32.mrf.mxu1 }
 0x1de   : > { %v2109_v61 = vadd.f32 %v2796_v12, %v1883_v62  ;;  %v1862_v38 = vadd.f32 %v2773_v3, %v1572_v40  ;;  %v1882_v63 = vadd.f32 %v3810_v17, %v1859_v52 }
 0x1df   : > { %v1790_v24 = vpop.f32.mrf.mxu0  ;;  %v2049_v32 = vpop.f32.mrf.mxu1 }
 0x1e0   : > { %v3820_v39 = vadd.f32 %v3816_v35, %v2109_v61  ;;  %v2108_v23 = vadd.f32 %v2029_v30, %v1882_v63  ;;  %v1861_v42 = vadd.f32 %v1790_v24, %v1567_v49  ;;  %v1885_v43 = vadd.f32 %v3810_v17, %v1862_v38 }
 0x1e1   : > { %v2776_v37 = vpop.f32.mrf.mxu0  ;;  %v2805_v45 = vpop.f32.mrf.mxu1 }
 0x1e2   : > { %v3824_v13 = vadd.f32 %v3816_v35, %v2108_v23  ;;  %v2111_v54 = vadd.f32 %v2799_v27, %v1885_v43  ;;  %v1864_v58 = vadd.f32 %v2776_v37, %v1582_v26  ;;  %v1884_v20 = vadd.f32 %v3810_v17, %v1861_v42 }
 0x1e3   : > { %v1800_v15 = vpop.f32.mrf.mxu0  ;;  %v2059_v8 = vpop.f32.mrf.mxu1 }
 0x1e4   : > { %v3828_v47 = vadd.f32 %v3816_v35, %v2111_v54  ;;  %v2110_v18 = vadd.f32 %v2039_v1, %v1884_v20  ;;  %v1863_v2 = vadd.f32 %v1800_v15, %v1577_v41  ;;  %v1887_v57 = vadd.f32 %v3810_v17, %v1864_v58 }
 0x1e5   : > { %v2779_v0 = vpop.f32.mrf.mxu0  ;;  %v2808_v5 = vpop.f32.mrf.mxu1 }
 0x1e6   : > { %v3832_v12 = vadd.f32 %v3816_v35, %v2110_v18  ;;  %v2113_v30 = vadd.f32 %v2802_v19, %v1887_v57  ;;  %v1866_v6 = vadd.f32 %v2779_v0, %v1592_v4  ;;  %v1886_v33 = vadd.f32 %v3810_v17, %v1863_v2 }
 0x1e7   : > { %v1810_v7 = vpop.f32.mrf.mxu0  ;;  %v2069_v27 = vpop.f32.mrf.mxu1 }
 0x1e8   : > { %v3837_v11 = vadd.f32 %v3816_v35, %v2113_v30  ;;  %v2112_v51 = vadd.f32 %v2049_v32, %v1886_v33  ;;  %v1865_v48 = vadd.f32 %v1810_v7, %v1587_v59  ;;  %v1889_v44 = vadd.f32 %v3810_v17, %v1866_v6 }
 0x1e9   : > { %v2782_v1 = vpop.f32.mrf.mxu0  ;;  %v2811_v40 = vpop.f32.mrf.mxu1 }
 0x1ea   : > { %v3843_v52 = vadd.f32 %v3816_v35, %v2112_v51  ;;  %v2115_v62 = vadd.f32 %v2805_v45, %v1889_v44  ;;  %v1868_v3 = vadd.f32 %v2782_v1, %v1602_v16  ;;  %v1888_v31 = vadd.f32 %v3810_v17, %v1865_v48 }
 0x1eb   : > { %v1820_v19 = vpop.f32.mrf.mxu0  ;;  %v2079_v49 = vpop.f32.mrf.mxu1 }
 0x1ec   : > { %v3849_v61 = vadd.f32 %v3816_v35, %v2115_v62  ;;  %v2114_v38 = vadd.f32 %v2059_v8, %v1888_v31  ;;  %v1867_v63 = vadd.f32 %v1820_v19, %v1597_v9  ;;  %v1891_v21 = vadd.f32 %v3810_v17, %v1868_v3 }
 0x1ed   : > { %v2785_v26 = vpop.f32.mrf.mxu0  ;;  %v2814_v43 = vpop.f32.mrf.mxu1 }
 0x1ee   : > { %v3855_v24 = vadd.f32 %v3816_v35, %v2114_v38  ;;  %v2117_v32 = vadd.f32 %v2808_v5, %v1891_v21  ;;  %v1870_v23 = vadd.f32 %v2785_v26, %v1612_v22  ;;  %v1890_v60 = vadd.f32 %v3810_v17, %v1867_v63 }
 0x1ef   : > { %v1830_v42 = vpop.f32.mrf.mxu0  ;;  %v2089_v8 = vpop.f32.mrf.mxu1 }
 0x1f0   : > { %v3861_v41 = vadd.f32 %v3816_v35, %v2117_v32  ;;  %v2116_v37 = vadd.f32 %v2069_v27, %v1890_v60  ;;  %v1869_v45 = vadd.f32 %v1830_v42, %v1607_v34  ;;  %v1893_v46 = vadd.f32 %v3810_v17, %v1870_v23 }
 0x1f1   : > { %v2788_v54 = vpop.f32.mrf.mxu0  ;;  %v2817_v6 = vpop.f32.mrf.mxu1 }
 0x1f2   : > { %v3867_v58 = vadd.f32 %v3816_v35, %v2116_v37  ;;  %v2119_v20 = vadd.f32 %v2811_v40, %v1893_v46  ;;  %v1872_v4 = vadd.f32 %v2788_v54, %v1622_v50  ;;  %v1892_v25 = vadd.f32 %v3810_v17, %v1869_v45 }
 0x1f3   : > { %v1840_v15 = vpop.f32.mrf.mxu0  ;;  %v2099_v48 = vpop.f32.mrf.mxu1 }
 0x1f4   : > { %v3873_v18 = vadd.f32 %v3816_v35, %v2119_v20  ;;  %v2118_v2 = vadd.f32 %v2079_v49, %v1892_v25  ;;  %v1871_v57 = vadd.f32 %v1840_v15, %v1617_v55  ;;  %v1895_v56 = vadd.f32 %v3810_v17, %v1872_v4 }
 0x1f5   : > { %v2791_v59 = vpop.f32.mrf.mxu0 }
 0x1f6   : > { %v3879_v0 = vadd.f32 %v3816_v35, %v2118_v2  ;;  %v2121_v5 = vadd.f32 %v2814_v43, %v1895_v56  ;;  %v1874_v30 = vadd.f32 %v2791_v59, %v1632_v53  ;;  %v1894_v14 = vadd.f32 %v3810_v17, %v1871_v57 }
 0x1f7   : > { %v1850_v36 = vpop.f32.mrf.mxu0 }
 0x1f8   : > { %v3883_v33 = vadd.f32 %v3816_v35, %v2121_v5  ;;  %v2120_v16 = vadd.f32 %v2089_v8, %v1894_v14  ;;  %v1873_v7 = vadd.f32 %v1850_v36, %v1627_v28  ;;  %v1897_v27 = vadd.f32 %v3810_v17, %v1874_v30 }
 0x1fa   : > { %v3887_v51 = vadd.f32 %v3816_v35, %v2120_v16  ;;  %v2123_v29 = vadd.f32 %v2817_v6, %v1897_v27  ;;  %v1896_v10 = vadd.f32 %v3810_v17, %v1873_v7  ;;  %2150 = sbr.rel (%p2632_p12) target bundleno = 513 (0x201), region = 64 }
 0x1fc   : > { %v3891_v44 = vadd.f32 %v3816_v35, %v2123_v29  ;;  %v2122_v9 = vadd.f32 %v2099_v48, %v1896_v10 }
 0x1fe   : > { %v3894_v1 = vadd.f32 %v3816_v35, %v2122_v9 }
 0x1ff   : > { %vm2151_vm9 = vcmask 24576   ;;  %v2983_v40 = vmov 0.0  }
 0x200   : > { %2152 = vst.msk [vmem:[%s3098_s24] sm:$0x1] %vm2151_vm9, %v2983_v40  ;;  %2153 = vst.msk [vmem:[%s3105_s13] sm:$0x1] %vm2151_vm9, %v2983_v40 }
 0x201 PF: > { %v2155_v17 = vsel %vm1153_vm4, %v3824_v13, 0.0  ;;  %v2156_v35 = vsel %vm1153_vm4, %v3820_v39, 0.0  ;;  %v2158_v62 = vsel %vm1153_vm4, %v3832_v12, 0.0  ;;  %2251 = vst.msk [vmem:[%s3119_s9] sm:$0xff] %vm1153_vm4, %v3824_v13  ;;  %2252 = vst.msk [vmem:[%s3119_s9 + $0x8] sm:$0xff] %vm1153_vm4, %v3820_v39  ;;  %v2160_v31 = vsel %vm1153_vm4, %v3828_v47, 0.0 }
 0x202   : > { %2253 = vst.msk [vmem:[%s3119_s9 + $0x10] sm:$0xff] %vm1153_vm4, %v3832_v12  ;;  %2254 = vst.msk [vmem:[%s3119_s9 + $0x18] sm:$0xff] %vm1153_vm4, %v3828_v47  ;;  %v2157_v3 = vadd.f32 %v2156_v35, %v2155_v17  ;;  %v2162_v19 = vsel %vm1153_vm4, %v3843_v52, 0.0  ;;  %v2196_v38 = vmul.f32 %v3824_v13, %v3824_v13  ;;  %v2197_v63 = vmul.f32 %v3820_v39, %v3820_v39 }
 0x203   : > { %2255 = vst.msk [vmem:[%s3119_s9 + $0x20] sm:$0xff] %vm1153_vm4, %v3843_v52  ;;  %2256 = vst.msk [vmem:[%s3119_s9 + $0x28] sm:$0xff] %vm1153_vm4, %v3837_v11  ;;  %v2164_v21 = vsel %vm1153_vm4, %v3837_v11, 0.0  ;;  %v2198_v34 = vmul.f32 %v3832_v12, %v3832_v12  ;;  %v2199_v32 = vmul.f32 %v3828_v47, %v3828_v47  ;;  %v2166_v23 = vsel %vm1153_vm4, %v3855_v24, 0.0 }
 0x204   : > { %2257 = vst.msk [vmem:[%s3119_s9 + $0x30] sm:$0xff] %vm1153_vm4, %v3855_v24  ;;  %2258 = vst.msk [vmem:[%s3119_s9 + $0x38] sm:$0xff] %vm1153_vm4, %v3849_v61  ;;  %v2159_v22 = vadd.f32 %v2158_v62, %v2157_v3  ;;  %v2200_v13 = vmul.f32 %v3843_v52, %v3843_v52  ;;  %v2212_v50 = vsel %vm1153_vm4, %v2196_v38, 0.0  ;;  %v2213_v39 = vsel %vm1153_vm4, %v2197_v63, 0.0 }
 0x205   : > { %2259 = vst.msk [vmem:[%s3119_s9 + $0x40] sm:$0xff] %vm1153_vm4, %v3867_v58  ;;  %2260 = vst.msk [vmem:[%s3119_s9 + $0x48] sm:$0xff] %vm1153_vm4, %v3861_v41  ;;  %v2168_v42 = vsel %vm1153_vm4, %v3849_v61, 0.0  ;;  %v2214_v43 = vadd.f32 %v2213_v39, %v2212_v50  ;;  %v2215_v12 = vsel %vm1153_vm4, %v2198_v34, 0.0  ;;  %v2201_v47 = vmul.f32 %v3837_v11, %v3837_v11 }
 0x206   : > { %2261 = vst.msk [vmem:[%s3119_s9 + $0x50] sm:$0xff] %vm1153_vm4, %v3879_v0  ;;  %2262 = vst.msk [vmem:[%s3119_s9 + $0x58] sm:$0xff] %vm1153_vm4, %v3873_v18  ;;  %v2161_v49 = vadd.f32 %v2160_v31, %v2159_v22  ;;  %v2217_v45 = vsel %vm1153_vm4, %v2199_v32, 0.0  ;;  %v2170_v46 = vsel %vm1153_vm4, %v3867_v58, 0.0  ;;  %v2202_v54 = vmul.f32 %v3855_v24, %v3855_v24 }
 0x207   : > { %2263 = vst.msk [vmem:[%s3119_s9 + $0x60] sm:$0xff] %vm1153_vm4, %v3887_v51  ;;  %2264 = vst.msk [vmem:[%s3119_s9 + $0x68] sm:$0xff] %vm1153_vm4, %v3883_v33  ;;  %v2216_v52 = vadd.f32 %v2215_v12, %v2214_v43  ;;  %v2219_v20 = vsel %vm1153_vm4, %v2200_v13, 0.0  ;;  %v2172_v4 = vsel %vm1153_vm4, %v3861_v41, 0.0  ;;  %v2203_v11 = vmul.f32 %v3849_v61, %v3849_v61  ;;  %v2154_v43 = vld [vmem:[%s3098_s24] sm:$0x1] }
 0x208   : > { %2265 = vst.msk [vmem:[%s3119_s9 + $0x70] sm:$0xff] %vm1153_vm4, %v3894_v1  ;;  %2266 = vst.msk [vmem:[%s3119_s9 + $0x78] sm:$0xff] %vm1153_vm4, %v3891_v44  ;;  %v2163_v26 = vadd.f32 %v2162_v19, %v2161_v49  ;;  %v2221_v15 = vsel %vm1153_vm4, %v2201_v47, 0.0  ;;  %v2174_v8 = vsel %vm1153_vm4, %v3879_v0, 0.0  ;;  %v2204_v24 = vmul.f32 %v3867_v58, %v3867_v58 }
 0x209   : > { %v2218_v25 = vadd.f32 %v2217_v45, %v2216_v52  ;;  %v2223_v56 = vsel %vm1153_vm4, %v2202_v54, 0.0  ;;  %v2176_v28 = vsel %vm1153_vm4, %v3873_v18, 0.0  ;;  %v2205_v61 = vmul.f32 %v3861_v41, %v3861_v41 }
 0x20a   : > { %v2165_v60 = vadd.f32 %v2164_v21, %v2163_v26  ;;  %v2225_v30 = vsel %vm1153_vm4, %v2203_v11, 0.0  ;;  %v2178_v14 = vsel %vm1153_vm4, %v3887_v51, 0.0  ;;  %v2206_v58 = vmul.f32 %v3879_v0, %v3879_v0 }
 0x20b   : > { %v2220_v2 = vadd.f32 %v2219_v20, %v2218_v25  ;;  %v2227_v16 = vsel %vm1153_vm4, %v2204_v24, 0.0  ;;  %v2180_v7 = vsel %vm1153_vm4, %v3883_v33, 0.0  ;;  %v2207_v41 = vmul.f32 %v3873_v18, %v3873_v18 }
 0x20c   : > { %v2167_v37 = vadd.f32 %v2166_v23, %v2165_v60  ;;  %v2229_v10 = vsel %vm1153_vm4, %v2205_v61, 0.0  ;;  %v2182_v48 = vsel %vm1153_vm4, %v3894_v1, 0.0  ;;  %v2208_v0 = vmul.f32 %v3887_v51, %v3887_v51 }
 0x20d   : > { %v2222_v59 = vadd.f32 %v2221_v15, %v2220_v2  ;;  %v2231_v17 = vsel %vm1153_vm4, %v2206_v58, 0.0  ;;  %v2184_v35 = vsel %vm1153_vm4, %v3891_v44, 0.0  ;;  %v2209_v18 = vmul.f32 %v3883_v33, %v3883_v33 }
 0x20e   : > { %v2169_v55 = vadd.f32 %v2168_v42, %v2167_v37  ;;  %v2233_v31 = vsel %vm1153_vm4, %v2207_v41, 0.0  ;;  %v2210_v49 = vmul.f32 %v3894_v1, %v3894_v1  ;;  %v2235_v51 = vsel %vm1153_vm4, %v2208_v0, 0.0 }
 0x20f   : > { %v2224_v36 = vadd.f32 %v2223_v56, %v2222_v59  ;;  %v2211_v21 = vmul.f32 %v3891_v44, %v3891_v44  ;;  %v2237_v34 = vsel %vm1153_vm4, %v2209_v18, 0.0  ;;  %vm2193_vm10 = vcmask 24576  }
 0x210   : > { %v2171_v53 = vadd.f32 %v2170_v46, %v2169_v55  ;;  %v2239_v33 = vsel %vm1153_vm4, %v2210_v49, 0.0  ;;  %v2195_v55 = vld [vmem:[%s3105_s13] sm:$0x1] }
 0x211   : > { %v2226_v27 = vadd.f32 %v2225_v30, %v2224_v36  ;;  %v2241_v1 = vsel %vm1153_vm4, %v2211_v21, 0.0 }
 0x212   : > { %v2173_v57 = vadd.f32 %v2172_v4, %v2171_v53 }
 0x213   : > { %v2228_v9 = vadd.f32 %v2227_v16, %v2226_v27 }
 0x214   : > { %v2175_v5 = vadd.f32 %v2174_v8, %v2173_v57 }
 0x215   : > { %v2230_v62 = vadd.f32 %v2229_v10, %v2228_v9 }
 0x216   : > { %v2177_v6 = vadd.f32 %v2176_v28, %v2175_v5 }
 0x217   : > { %v2232_v22 = vadd.f32 %v2231_v17, %v2230_v62 }
 0x218   : > { %v2179_v29 = vadd.f32 %v2178_v14, %v2177_v6 }
 0x219   : > { %v2234_v38 = vadd.f32 %v2233_v31, %v2232_v22 }
 0x21a   : > { %v2181_v40 = vadd.f32 %v2180_v7, %v2179_v29 }
 0x21b   : > { %v2236_v26 = vadd.f32 %v2235_v51, %v2234_v38 }
 0x21c   : > { %v2183_v3 = vadd.f32 %v2182_v48, %v2181_v40 }
 0x21d   : > { %v2238_v23 = vadd.f32 %v2237_v34, %v2236_v26 }
 0x21e   : > { %v2185_v19 = vadd.f32 %v2184_v35, %v2183_v3 }
 0x21f   : > { %v2240_v13 = vadd.f32 %v2239_v33, %v2238_v23 }
 0x220   : > { %v2186_v63 = vrot.slane %v2185_v19, 4 }
 0x221   : > { %v2242_v39 = vadd.f32 %v2241_v1, %v2240_v13 }
 0x222   : > { %v2187_v32 = vadd.f32 %v2186_v63, %v2185_v19 }
 0x223   : > { %v2243_v12 = vrot.slane %v2242_v39, 4 }
 0x224   : > { %v2188_v60 = vrot.slane %v2187_v32, 2 }
 0x225   : > { %v2244_v37 = vadd.f32 %v2243_v12, %v2242_v39 }
 0x226   : > { %v2189_v50 = vadd.f32 %v2188_v60, %v2187_v32 }
 0x227   : > { %v2245_v45 = vrot.slane %v2244_v37, 2 }
 0x228   : > { %v2190_v42 = vrot.slane %v2189_v50, 1 }
 0x229   : > { %v2246_v46 = vadd.f32 %v2245_v45, %v2244_v37 }
 0x22a   : > { %v2191_v44 = vadd.f32 %v2190_v42, %v2189_v50 }
 0x22b   : > { %v2247_v52 = vrot.slane %v2246_v46, 1 }
 0x22c   : > { %v2192_v47 = vadd.f32 %v2191_v44, %v2154_v43 }
 0x22d   : > { %v2248_v54 = vadd.f32 %v2247_v52, %v2246_v46 }
 0x22e   : > { %2194 = vst.msk [vmem:[%s3098_s24] sm:$0x1] %vm2193_vm10, %v2192_v47 }
 0x22f   : > { %v2249_v20 = vadd.f32 %v2248_v54, %v2195_v55 }
 0x231   : > { %2250 = vst.msk [vmem:[%s3105_s13] sm:$0x1] %vm2193_vm10, %v2249_v20 }
 0x232 PF: > { %s4074_s21 = sld [smem:[#allocation4_spill]] }
 0x233   : > { %s4076_s22 = sld [smem:[#allocation3_spill]] }
 0x234   : > { %s4077_s23 = sld [smem:[#allocation5_spill]] }
 0x235   : > { %s4078_s24 = sld [smem:[#allocation6_spill]] }
 0x238   : > { %s23_s25 = sadd.s32 1, %s4074_s21   ;;  %s4075_s21 = sld [smem:[#allocation2_spill]] }
 0x239   : > { %p20_p13 = scmp.ge.s32.totalorder %s23_s25, 6  }
 0x23b   :  { %22 = sbr.rel (!%p20_p13) target bundleno = 3 (0x3), region = 135 }

// kernel: up_decoder_block_2d.10
= control target key start
LH: loop header
LB: loop body
LE: loop exit
PB: predicated region body
PF: predicated region fallthrough
CT: control target
= control target key end

     0   :  { %s2474_s27 = smov 0   ;;  %s2476_s28 = smov 0   ;;  %s3278_s0 = inlined_call_operand.vmem [shape: f32[2,16,16,4], index: 0, kind: input, shape index: {}, may-alias: {0,1,2}]   ;;  %s3279_s1 = inlined_call_operand.vmem [shape: f32[2,16,16,4], index: 1, kind: input, shape index: {}, may-alias: {0,1,2}]   ;;  %s3280_s2 = inlined_call_operand.vmem [shape: f32[2,16,16,4], index: 2, kind: input, shape index: {}, may-alias: {0,1,2}]   ;;  %s3281_s3 = inlined_call_operand.vmem [shape: f32[2,1,4], index: 3, kind: input, shape index: {}]   ;;  %s3282_s4 = inlined_call_operand.vmem [shape: f32[2,1,4], index: 4, kind: input, shape index: {}]   ;;  %s3283_s5 = inlined_call_operand.vmem [shape: f32[3,12,4], index: 5, kind: input, shape index: {}]   ;;  %s3284_s6 = inlined_call_operand.vmem [shape: f32[1,4], index: 6, kind: input, shape index: {}]   ;;  %s3285_s7 = inlined_call_operand.vmem [shape: f32[2,16,16,4], index: 7, kind: input, shape index: {}]   ;;  %s3286_s8 = inlined_call_operand.vmem [shape: f32[2,16,16,4], index: 8, kind: output, shape index: {}]  }
   0x1   :  { %s2478_s29 = smov 0   ;;  %s2480_s30 = smov 0  }
   0x2   :  { %s2482_s9 = smov 0  }
   0x3 LB: > { %s27_s10 = sadd.s32 1, %s2417_s29  ;;  %s30_s11 = sadd.s32 1, %s2421_s30  ;;  %s2425_s9 = sphi %s2482_s9, %s18_s9   ;;  %s2421_s30 = sphi %s2480_s30, %s3297_s30   ;;  %s2417_s29 = sphi %s2478_s29, %s3296_s29   ;;  %s2413_s28 = sphi %s2476_s28, %s3295_s28   ;;  %s2409_s27 = sphi %s2474_s27, %s3294_s27  }
   0x4   : > { %p28_p0 = scmp.ge.s32.totalorder %s27_s10, 2  ;;  %p2011_p1 = scmp.ge.s32.totalorder %s2425_s9, 1 }
   0x5   : > { %p382_p2 = scmp.lt.s32.totalorder %s2425_s9, 5 }
   0x6   : > { %s3299_s10 = smov (%p28_p0, %s27_s10), 0  ;;  %s3301_s11 = smov (!%p28_p0, %s30_s11), %s2421_s30 }
   0x7   : > { %p383_p3 = pnand %p2011_p1, %p382_p2  ;;  %p32_p4 = scmp.ge.s32.totalorder %s3301_s11, 2 }
   0x8   : > { %s2507_s12 = sshll.u32 (!%p383_p3), %s2409_s27, 3  ;;  %p472_p5 = scmp.lt.s32.totalorder (!%p383_p3), %s2413_s28, 1 }
   0x9   : > { %s3303_s11 = smov (%p32_p4, %s3301_s11), 0  ;;  %386 = sbr.rel (%p383_p3) target bundleno = 510 (0x1fe), region = 52 }
   0xa   : > { %3287 = sst [smem:[#allocation2_spill]] %s3303_s11  ;;  %p488_p6 = scmp.lt.s32.totalorder (!%p383_p3), %s2507_s12, 15 }
   0xb   : > { %s497_s24 = sadd.s32 (!%p383_p3), 8, %s2507_s12  ;;  %p741_p10 = scmp.lt.s32.totalorder (!%p383_p3), %s2409_s27, 1 }
   0xc   : > { %p2533_p7 = scmp.lt.s32.totalorder (!%p383_p3), %s497_s24, 15  ;;  %p543_p11 = scmp.gt.s32.totalorder (!%p383_p3), %s2409_s27, 0 }
   0xe   : > { %s3305_s28 = smov (!%p472_p5, %s2413_s28), 1  ;;  %s3307_s24 = smov (!%p2533_p7, %s497_s24), 15  ;;  %vm787_vm0 = vcmask 1040384   ;;  %vm1181_vm1 = vcmask 1043456   ;;  %vm1028_vm4 = vcmask 31744   ;;  %vm1053_vm5 = vcmask 64512  }
   0xf   : > { %s489_s13 = scalar_select %p488_p6, %s2507_s12, 15  ;;  %vm1104_vm6 = vcmask 1046528   ;;  %vm1148_vm7 = vcmask 97280   ;;  %vm1510_vm8 = vcmask 1045504  }
  0x10   : > { %s2511_s14 = sshll.u32 %s3305_s28, 5  ;;  %s515_s17 = scalar_lea.vmem %s3281_s3, %s3305_s28 }
  0x11   : > { %s2023_s18 = sshll.u32 %s489_s13, 1  ;;  %s518_s21 = scalar_lea.vmem %s3282_s4, %s3305_s28  ;;  %v2522_v0 = vld [vmem:[%s515_s17] ss:$0 sm:$0xff] }
  0x12   : > { %s492_s22 = sadd.s32 %s2023_s18, %s2511_s14  ;;  %v2531_v1 = vld [vmem:[%s518_s21] ss:$0 sm:$0xff]  ;;  %s3309_s24 = smov (!%p2533_p7, %s3307_s24), 15 }
  0x13   : > { %s2520_s23 = sshll.u32 %s492_s22, 3  ;;  %s2578_s13 = sadd.s32 4294967295, %s2507_s12 }
  0x14   : > { %s2529_s11 = scalar_lea.vmem %s3279_s1, %s2520_s23  ;;  %s2030_s12 = sshll.u32 %s3309_s24, 1 }
  0x15   : > { %v590_v2 = vld [vmem:[%s2529_s11 + $0x48] sm:$0xff]  ;;  %v589_v3 = vld [vmem:[%s2529_s11 + $0x40] sm:$0xff]  ;;  %v591_v4 = vld [vmem:[%s2529_s11 + $0x50] sm:$0xff]  ;;  %s506_s15 = sadd.s32 %s2030_s12, %s2511_s14  ;;  %p470_p8 = scmp.gt.s32.totalorder %s2578_s13, 0 }
  0x16   : > { %v606_v5 = vmul.f32 %v2522_v0, %v590_v2  ;;  %v605_v6 = vmul.f32 %v2522_v0, %v589_v3  ;;  %v607_v7 = vmul.f32 %v2522_v0, %v591_v4  ;;  %v592_v8 = vld [vmem:[%s2529_s11 + $0x58] sm:$0xff]  ;;  %v581_v9 = vld [vmem:[%s2529_s11] sm:$0xff]  ;;  %v582_v10 = vld [vmem:[%s2529_s11 + $0x8] sm:$0xff]  ;;  %s2032_s16 = sshll.u32 %s506_s15, 3  ;;  %p2014_p9 = scmp.lt.s32.totalorder %s2578_s13, 15 }
  0x17   : > { %v608_v11 = vmul.f32 %v2522_v0, %v592_v8  ;;  %v597_v12 = vmul.f32 %v2522_v0, %v581_v9  ;;  %v598_v13 = vmul.f32 %v2522_v0, %v582_v10  ;;  %v583_v14 = vld [vmem:[%s2529_s11 + $0x10] sm:$0xff]  ;;  %v584_v15 = vld [vmem:[%s2529_s11 + $0x18] sm:$0xff]  ;;  %v593_v24 = vld [vmem:[%s2529_s11 + $0x60] sm:$0xff]  ;;  %s508_s19 = scalar_lea.vmem %s3280_s2, %s2032_s16  ;;  %s2428_s16 = smov 8  }
  0x18   : > { %v2554_v16 = vadd.f32 %v2531_v1, %v606_v5  ;;  %v2557_v17 = vadd.f32 %v2531_v1, %v605_v6  ;;  %v2560_v18 = vadd.f32 %v2531_v1, %v607_v7  ;;  %v599_v19 = vmul.f32 %v2522_v0, %v583_v14  ;;  %v594_v25 = vld [vmem:[%s2529_s11 + $0x68] sm:$0xff]  ;;  %v587_v37 = vld [vmem:[%s2529_s11 + $0x30] sm:$0xff]  ;;  %v588_v38 = vld [vmem:[%s2529_s11 + $0x38] sm:$0xff]  ;;  %s471_s20 = scalar_select %p470_p8, %s2578_s13, 0 }
  0x19   : > { %v2566_v20 = vadd.f32 %v2531_v1, %v608_v11  ;;  %v2569_v21 = vadd.f32 %v2531_v1, %v597_v12  ;;  %v2572_v22 = vadd.f32 %v2531_v1, %v598_v13  ;;  %v600_v23 = vmul.f32 %v2522_v0, %v584_v15  ;;  %v742_v40 = vld [vmem:[%s508_s19] sm:$0xff]  ;;  %v743_v41 = vld [vmem:[%s508_s19 + $0x8] sm:$0xff]  ;;  %s762_s17 = scalar_select %p741_p10, 1, 0 }
  0x1a   : > { %v2054_v26 = vmul.f32 -1.442695, %v2554_v16  ;;  %v2053_v27 = vmul.f32 -1.442695, %v2557_v17  ;;  %v2055_v28 = vmul.f32 -1.442695, %v2560_v18  ;;  %v2584_v29 = vadd.f32 %v2531_v1, %v599_v19 }
  0x1b   : > { %v2056_v30 = vmul.f32 -1.442695, %v2566_v20  ;;  %v2045_v31 = vmul.f32 -1.442695, %v2569_v21  ;;  %v609_v32 = vmul.f32 %v2522_v0, %v593_v24  ;;  %v2046_v33 = vmul.f32 -1.442695, %v2572_v22 }
  0x1c   : > { %2307 = vpow2.f32 %v2054_v26  ;;  %v2591_v34 = vadd.f32 %v2531_v1, %v600_v23  ;;  %v610_v35 = vmul.f32 %v2522_v0, %v594_v25  ;;  %v2047_v36 = vmul.f32 -1.442695, %v2584_v29  ;;  %s3311_s20 = smov (!%p2014_p9, %s471_s20), 15  ;;  %v585_v56 = vld [vmem:[%s2529_s11 + $0x20] sm:$0xff]  ;;  %v586_v57 = vld [vmem:[%s2529_s11 + $0x28] sm:$0xff] }
  0x1d   : > { %2309 = vpow2.f32 %v2053_v27  ;;  %v2604_v39 = vadd.f32 %v2531_v1, %v609_v32  ;;  %v603_v44 = vmul.f32 %v2522_v0, %v587_v37  ;;  %v604_v45 = vmul.f32 %v2522_v0, %v588_v38  ;;  %s2019_s21 = sshll.u32 %s3311_s20, 1  ;;  %v596_v37 = vld [vmem:[%s2529_s11 + $0x78] sm:$0xff] }
  0x1e   : > { %2311 = vpow2.f32 %v2055_v28  ;;  %v2048_v42 = vmul.f32 -1.442695, %v2591_v34  ;;  %v2608_v43 = vadd.f32 %v2531_v1, %v610_v35  ;;  %v744_v46 = vmul.f32 %v2522_v0, %v742_v40  ;;  %s478_s22 = sadd.s32 %s2511_s14, %s2019_s21  ;;  %s3178_s14 = scalar_lea.vmem %s3285_s7, %s2520_s23 }
  0x1f   : > { %2313 = vpow2.f32 %v2056_v30  ;;  %v745_v47 = vmul.f32 %v2522_v0, %v743_v41  ;;  %v2057_v48 = vmul.f32 -1.442695, %v2604_v39  ;;  %v2621_v49 = vadd.f32 %v2531_v1, %v603_v44  ;;  %s2021_s24 = sshll.u32 %s478_s22, 3  ;;  %v595_v30 = vld [vmem:[%s2529_s11 + $0x70] sm:$0xff]  ;;  %s2427_s11 = smov 4  }
  0x20   : > { %2315 = vpow2.f32 %v2045_v31  ;;  %v2624_v50 = vadd.f32 %v2531_v1, %v604_v45  ;;  %v2058_v51 = vmul.f32 -1.442695, %v2608_v43  ;;  %v2628_v52 = vadd.f32 %v2531_v1, %v744_v46  ;;  %s480_s28 = scalar_lea.vmem %s3278_s0, %s2021_s24 }
  0x21   : > { %2317 = vpow2.f32 %v2046_v33  ;;  %v2631_v53 = vadd.f32 %v2531_v1, %v745_v47  ;;  %v2051_v54 = vmul.f32 -1.442695, %v2621_v49  ;;  %v544_v59 = vld [vmem:[%s480_s28] sm:$0xff]  ;;  %v545_v60 = vld [vmem:[%s480_s28 + $0x8] sm:$0xff]  ;;  %v601_v5 = vmul.f32 %v2522_v0, %v585_v56  ;;  %s576_s27 = scalar_select %p543_p11, 1, 0 }
  0x22   : > { %2319 = vpow2.f32 %v2047_v36  ;;  %v2052_v55 = vmul.f32 -1.442695, %v2624_v50  ;;  %v552_v63 = vmul.f32 %v2522_v0, %v544_v59  ;;  %v553_v2 = vmul.f32 %v2522_v0, %v545_v60 }
  0x23   : > { %2321 = vpow2.f32 %v2048_v42  ;;  %v602_v6 = vmul.f32 %v2522_v0, %v586_v57  ;;  %v2652_v23 = vadd.f32 %v2531_v1, %v601_v5  ;;  %v611_v36 = vmul.f32 %v2522_v0, %v595_v30 }
  0x24   : > { %2323 = vpow2.f32 %v2057_v48  ;;  %v2646_v9 = vadd.f32 %v2531_v1, %v552_v63  ;;  %v2649_v10 = vadd.f32 %v2531_v1, %v553_v2  ;;  %v2061_v41 = vmul.f32 -1.442695, %v2628_v52 }
  0x25   : > { %2325 = vpow2.f32 %v2058_v51  ;;  %v2655_v25 = vadd.f32 %v2531_v1, %v602_v6  ;;  %v2049_v27 = vmul.f32 -1.442695, %v2652_v23  ;;  %v2062_v45 = vmul.f32 -1.442695, %v2631_v53  ;;  %v2064_v6 = vld [vmem:[%s3283_s5 + $0x18] sm:$0xf] }
  0x26   : > { %2327 = vpow2.f32 %v2051_v54  ;;  %v612_v48 = vmul.f32 %v2522_v0, %v596_v37  ;;  %v2043_v51 = vmul.f32 -1.442695, %v2646_v9  ;;  %v2669_v57 = vadd.f32 %v2531_v1, %v611_v36  ;;  %2261 = vmatprep.subr.msk.mxu1 %vm1181_vm1, %v2064_v6  ;;  %2177 = vmatprep.subr.msk.mxu0 %vm1181_vm1, %v2064_v6 }
  0x27   : > { %2329 = vpow2.f32 %v2052_v55  ;;  %v2050_v28 = vmul.f32 -1.442695, %v2655_v25  ;;  %2263 = vmatpush3.msk.msra.mxu1 %vm1181_vm1, %v2064_v6  ;;  %2178 = vmatpush3.msk.msra.mxu0 %vm1181_vm1, %v2064_v6 }
  0x29   : > { %v2308_v58 = vpop.eup %2307 }
  0x2a   : > { %v2310_v61 = vpop.eup %2309  ;;  %v686_v62 = vadd.f32 1.0, %v2308_v58 }
  0x2b   : > { %v2312_v3 = vpop.eup %2311  ;;  %v685_v4 = vadd.f32 1.0, %v2310_v61 }
  0x2c   : > { %v2314_v7 = vpop.eup %2313  ;;  %2331 = vrcp.f32 %v686_v62  ;;  %v687_v8 = vadd.f32 1.0, %v2312_v3 }
  0x2d   : > { %v2316_v11 = vpop.eup %2315  ;;  %2333 = vrcp.f32 %v685_v4  ;;  %v688_v12 = vadd.f32 1.0, %v2314_v7  ;;  %v2684_v4 = vadd.f32 %v2531_v1, %v612_v48 }
  0x2e   : > { %v2318_v13 = vpop.eup %2317  ;;  %2335 = vrcp.f32 %v687_v8  ;;  %v677_v14 = vadd.f32 1.0, %v2316_v11 }
  0x2f   : > { %v2320_v15 = vpop.eup %2319  ;;  %2337 = vrcp.f32 %v688_v12  ;;  %v678_v19 = vadd.f32 1.0, %v2318_v13  ;;  %v2063_v13 = vld [vmem:[%s3283_s5 + $0x10] sm:$0xff] }
  0x30   : > { %2339 = vrcp.f32 %v677_v14  ;;  %v679_v24 = vadd.f32 1.0, %v2320_v15  ;;  %v2322_v26 = vpop.eup %2321  ;;  %2262 = vmatprep.subr.mxu1 %v2063_v13  ;;  %2179 = vmatprep.subr.mxu0 %v2063_v13 }
  0x31   : > { %2341 = vrcp.f32 %v678_v19  ;;  %v2324_v31 = vpop.eup %2323  ;;  %v680_v32 = vadd.f32 1.0, %v2322_v26  ;;  %2264 = vmatpush3.msra.mxu1 %v2063_v13  ;;  %2180 = vmatpush3.msra.mxu0 %v2063_v13 }
  0x32   : > { %2343 = vrcp.f32 %v679_v24  ;;  %v2326_v33 = vpop.eup %2325  ;;  %v689_v56 = vadd.f32 1.0, %v2324_v31 }
  0x33   : > { %v2328_v35 = vpop.eup %2327  ;;  %2345 = vpow2.f32 %v2049_v27  ;;  %v690_v12 = vadd.f32 1.0, %v2326_v33  ;;  %v2060_v27 = vmul.f32 -1.442695, %v2684_v4 }
  0x34   : > { %v2330_v38 = vpop.eup %2329  ;;  %2347 = vpow2.f32 %v2050_v28  ;;  %v683_v40 = vadd.f32 1.0, %v2328_v35 }
  0x35   : > { %2349 = vrcp.f32 %v680_v32  ;;  %v684_v44 = vadd.f32 1.0, %v2330_v38 }
  0x36   : > { %2351 = vrcp.f32 %v683_v40 }
  0x37   : > { %2353 = vrcp.f32 %v684_v44 }
  0x38   : > { %2355 = vpow2.f32 %v2061_v41 }
  0x39   : > { %v2332_v42 = vpop.eup %2331  ;;  %2357 = vpow2.f32 %v2062_v45 }
  0x3a   : > { %v2334_v46 = vpop.eup %2333  ;;  %v734_v47 = vmul.f32 %v2332_v42, %v2554_v16  ;;  %v2044_v16 = vmul.f32 -1.442695, %v2649_v10  ;;  %2359 = vpow2.f32 %v2043_v51 }
  0x3b   : > { %v2336_v54 = vpop.eup %2335  ;;  %v733_v55 = vmul.f32 %v2334_v46, %v2557_v17  ;;  %2361 = vrcp.f32 %v689_v56 }
  0x3c   : > { %v2338_v58 = vpop.eup %2337  ;;  %v804_v59 = vrot.slane %v734_v47, 7  ;;  %v735_v60 = vmul.f32 %v2336_v54, %v2560_v18  ;;  %2363 = vpow2.f32 %v2044_v16 }
  0x3d   : > { %v2340_v61 = vpop.eup %2339  ;;  %v803_v0 = vrot.slane %v733_v55, 7  ;;  %v736_v62 = vmul.f32 %v2338_v58, %v2566_v20 }
  0x3e   : > { %v2342_v63 = vpop.eup %2341  ;;  %v2675_v17 = vsel %vm787_vm0, %v804_v59, 0.0  ;;  %v806_v2 = vrot.slane %v735_v60, 7  ;;  %v725_v3 = vmul.f32 %v2340_v61, %v2569_v21  ;;  %v2059_v21 = vmul.f32 -1.442695, %v2669_v57 }
  0x3f   : > { %910 = vrot.lane.b32.xlu1 %v2675_v17, %s2427_s11  ;;  %v2681_v18 = vsel %vm787_vm0, 0.0, %v803_v0  ;;  %v2344_v7 = vpop.eup %2343  ;;  %v2696_v8 = vsel %vm787_vm0, %v803_v0, %v804_v59  ;;  %v807_v1 = vrot.slane %v736_v62, 7  ;;  %v726_v11 = vmul.f32 %v2342_v63, %v2572_v22 }
  0x40   : > { %906 = vrot.lane.b32.xlu0 %v2681_v18, %s2427_s11  ;;  %v2689_v20 = vsel %vm787_vm0, 0.0, %v806_v2  ;;  %v791_v5 = vrot.slane %v725_v3, 7  ;;  %v2346_v14 = vpop.eup %2345  ;;  %v727_v22 = vmul.f32 %v2344_v7, %v2584_v29  ;;  %2365 = vpow2.f32 %v2059_v21 }
  0x41   : > { %v2348_v19 = vpop.eup %2347  ;;  %v2713_v24 = vsel %vm787_vm0, %v806_v2, %v807_v1  ;;  %v792_v26 = vrot.slane %v726_v11, 7  ;;  %2367 = vrcp.f32 %v690_v12  ;;  %v681_v29 = vadd.f32 1.0, %v2346_v14 }
  0x42   : > { %v2708_v15 = vsel %vm787_vm0, 0.0, %v791_v5  ;;  %v2350_v28 = vpop.eup %2349  ;;  %v2723_v32 = vsel %vm787_vm0, %v807_v1, 0.0  ;;  %v794_v33 = vrot.slane %v727_v22, 7  ;;  %2369 = vpow2.f32 %v2060_v27 }
  0x43   : > { %980 = vrot.lane.b32.xlu1 %v2689_v20, %s2428_s16  ;;  %v2352_v30 = vpop.eup %2351  ;;  %v2727_v37 = vsel %vm787_vm0, %v791_v5, %v792_v26  ;;  %v728_v38 = vmul.f32 %v2350_v28, %v2591_v34  ;;  %v682_v42 = vadd.f32 1.0, %v2348_v19  ;;  %2371 = vrcp.f32 %v681_v29 }
  0x44   : > { %908 = vrot.lane.b32.xlu0 %v2696_v8, %s2427_s11  ;;  %v2354_v31 = vpop.eup %2353  ;;  %v731_v35 = vmul.f32 %v2352_v30, %v2621_v49  ;;  %v2734_v49 = vsel %vm787_vm0, %v792_v26, 0.0  ;;  %v2739_v34 = vsel %vm787_vm0, 0.0, %v794_v33  ;;  %v763_v21 = vstv %s762_s17  ;;  %s3191_s17 = scalar_lea.vmem %s3286_s8, %s2520_s23 }
  0x45   : > { %v2356_v36 = vpop.eup %2355  ;;  %v732_v40 = vmul.f32 %v2354_v31, %v2624_v50  ;;  %v795_v56 = vrot.slane %v728_v38, 7  ;;  %v577_v1 = vstv %s576_s27  ;;  %vm2775_vm2 = vcmp.eq.s32.totalorder %v763_v21, 1  ;;  %v1079_v21 = vld [vmem:[%s3283_s5 + $0x8] sm:$0xf] }
  0x46   : > { %v2358_v41 = vpop.eup %2357  ;;  %v800_v44 = vrot.slane %v731_v35, 7  ;;  %v754_v45 = vadd.f32 1.0, %v2356_v36  ;;  %vm2784_vm3 = vcmp.eq.s32.totalorder %v577_v1, 1  ;;  %2205 = vmatprep.subr.msk.mxu1 %vm1181_vm1, %v1079_v21 }
  0x47   : > { %882 = vrot.lane.b32.xlu1 %v2708_v15, %s2427_s11  ;;  %v2360_v46 = vpop.eup %2359  ;;  %v801_v47 = vrot.slane %v732_v40, 7  ;;  %v755_v48 = vadd.f32 1.0, %v2358_v41  ;;  %v2758_v0 = vsel %vm787_vm0, %v794_v33, %v795_v56  ;;  %v2765_v63 = vsel %vm787_vm0, %v795_v56, 0.0 }
  0x48   : > { %982 = vrot.lane.b32.xlu0 %v2713_v24, %s2428_s16  ;;  %v2362_v51 = vpop.eup %2361  ;;  %v2742_v50 = vsel %vm787_vm0, 0.0, %v800_v44  ;;  %2373 = vrcp.f32 %v754_v45  ;;  %v568_v54 = vadd.f32 1.0, %v2360_v46 }
  0x49   : > { %v2364_v55 = vpop.eup %2363  ;;  %v2745_v58 = vsel %vm787_vm0, %v800_v44, %v801_v47  ;;  %v2748_v59 = vsel %vm787_vm0, %v801_v47, 0.0  ;;  %2375 = vrcp.f32 %v755_v48  ;;  %v737_v16 = vmul.f32 %v2362_v51, %v2604_v39 }
  0x4a   : > { %2377 = vrcp.f32 %v568_v54  ;;  %v569_v60 = vadd.f32 1.0, %v2364_v55 }
  0x4b   : > { %984 = vrot.lane.b32.xlu1 %v2723_v32, %s2428_s16  ;;  %v809_v2 = vrot.slane %v737_v16, 7 }
  0x4c   : > { %884 = vrot.lane.b32.xlu0 %v2727_v37, %s2427_s11  ;;  %2379 = vrcp.f32 %v569_v60 }
  0x4d   : > { %v2366_v61 = vpop.eup %2365  ;;  %2381 = vrcp.f32 %v682_v42  ;;  %v2773_v7 = vsel %vm787_vm0, 0.0, %v809_v2 }
  0x4e   : > { %v2368_v62 = vpop.eup %2367  ;;  %v691_v39 = vadd.f32 1.0, %v2366_v61 }
  0x4f   : > { %956 = vrot.lane.b32.xlu1 %v2739_v34, %s2428_s16  ;;  %v738_v3 = vmul.f32 %v2368_v62, %v2608_v43  ;;  %v2370_v5 = vpop.eup %2369 }
  0x50   : > { %886 = vrot.lane.b32.xlu0 %v2734_v49, %s2427_s11  ;;  %v2372_v6 = vpop.eup %2371  ;;  %2383 = vrcp.f32 %v691_v39  ;;  %v692_v13 = vadd.f32 1.0, %v2370_v5 }
  0x51   : > { %v810_v12 = vrot.slane %v738_v3, 7  ;;  %v729_v26 = vmul.f32 %v2372_v6, %v2652_v23  ;;  %v2878_v6 = vld [vmem:[%s3283_s5 + $0x28] sm:$0xf] }
  0x52   : > { %2385 = vrcp.f32 %v692_v13  ;;  %2233 = vmatprep.subr.msk.mxu0 %vm1181_vm1, %v2878_v6 }
  0x53   : > { %912 = vrot.lane.b32.xlu1 %v2689_v20, %s2427_s11  ;;  %v2794_v31 = vsel %vm787_vm0, %v809_v2, %v810_v12  ;;  %v2807_v42 = vsel %vm787_vm0, %v810_v12, 0.0 }
  0x54   : > { %958 = vrot.lane.b32.xlu0 %v2758_v0, %s2428_s16 }
  0x55   : > { %v2374_v11 = vpop.eup %2373 }
  0x56   : > { %v2376_v43 = vpop.eup %2375  ;;  %v760_v22 = vmul.f32 %v2374_v11, %v2628_v52 }
  0x57   : > { %960 = vrot.lane.b32.xlu1 %v2765_v63, %s2428_s16  ;;  %v2378_v19 = vpop.eup %2377  ;;  %v761_v27 = vmul.f32 %v2376_v43, %v2631_v53 }
  0x58   : > { %914 = vrot.lane.b32.xlu0 %v2713_v24, %s2427_s11  ;;  %v765_v30 = vsel %vm2775_vm2, %v760_v22, 0.0  ;;  %v574_v52 = vmul.f32 %v2378_v19, %v2646_v9  ;;  %v797_v9 = vrot.slane %v729_v26, 7 }
  0x59   : > { %v2380_v29 = vpop.eup %2379  ;;  %v766_v53 = vsel %vm2775_vm2, %v761_v27, 0.0  ;;  %v815_v23 = vrot.slane %v765_v30, 7 }
  0x5a   : > { %v2382_v33 = vpop.eup %2381  ;;  %v816_v35 = vrot.slane %v766_v53, 7  ;;  %v579_v36 = vsel %vm2784_vm3, %v574_v52, 0.0  ;;  %v575_v38 = vmul.f32 %v2380_v29, %v2649_v10  ;;  %v2828_v55 = vsel %vm787_vm0, 0.0, %v797_v9 }
  0x5b   : > { %986 = vrot.lane.b32.xlu1 %v2773_v7, %s2428_s16  ;;  %v855_v40 = vsel %vm787_vm0, 0.0, %v815_v23  ;;  %v788_v41 = vrot.slane %v579_v36, 7  ;;  %v730_v46 = vmul.f32 %v2382_v33, %v2655_v25  ;;  %v1078_v36 = vld [vmem:[%s3283_s5] sm:$0xff] }
  0x5c   : > { %916 = vrot.lane.b32.xlu0 %v2723_v32, %s2427_s11  ;;  %v817_v44 = vsel %vm787_vm0, %v815_v23, %v816_v35  ;;  %v865_v45 = vsel %vm787_vm0, %v816_v35, 0.0  ;;  %v580_v10 = vsel %vm2784_vm3, %v575_v38, 0.0 }
  0x5d   : > { %v2815_v47 = vsel %vm787_vm0, 0.0, %v788_v41  ;;  %v789_v48 = vrot.slane %v580_v10, 7  ;;  %v2384_v25 = vpop.eup %2383  ;;  %v798_v56 = vrot.slane %v730_v46, 7 }
  0x5e   : > { %v739_v60 = vmul.f32 %v2384_v25, %v2669_v57 }
  0x5f   : > { %888 = vrot.lane.b32.xlu1 %v2739_v34, %s2427_s11  ;;  %v2820_v51 = vsel %vm787_vm0, %v788_v41, %v789_v48  ;;  %v2823_v54 = vsel %vm787_vm0, %v789_v48, 0.0  ;;  %v2836_v16 = vsel %vm787_vm0, %v797_v9, %v798_v56  ;;  %v2386_v61 = vpop.eup %2385  ;;  %v2843_v62 = vsel %vm787_vm0, %v798_v56, 0.0 }
  0x60   : > { %988 = vrot.lane.b32.xlu0 %v2794_v31, %s2428_s16  ;;  %v812_v2 = vrot.slane %v739_v60, 7  ;;  %v740_v39 = vmul.f32 %v2386_v61, %v2684_v4 }
  0x62   : > { %v854_v57 = vsel %vm787_vm0, 0.0, %v812_v2  ;;  %v813_v3 = vrot.slane %v740_v39, 7  ;;  %v2099_v39 = vld [vmem:[%s3283_s5 + $0x20] sm:$0xff] }
  0x63   : > { %990 = vrot.lane.b32.xlu1 %v2807_v42, %s2428_s16 }
  0x64   : > { %890 = vrot.lane.b32.xlu0 %v2758_v0, %s2427_s11  ;;  %v814_v5 = vsel %vm787_vm0, %v812_v2, %v813_v3  ;;  %v864_v4 = vsel %vm787_vm0, %v813_v3, 0.0 }
  0x67   : > { %962 = vrot.lane.b32.xlu1 %v2828_v55, %s2428_s16 }
  0x68   : > { %892 = vrot.lane.b32.xlu0 %v2765_v63, %s2427_s11 }
  0x6b   : > { %918 = vrot.lane.b32.xlu1 %v2773_v7, %s2427_s11 }
  0x6c   : > { %964 = vrot.lane.b32.xlu0 %v2836_v16, %s2428_s16 }
  0x6f   : > { %966 = vrot.lane.b32.xlu1 %v2843_v62, %s2428_s16 }
  0x70   : > { %920 = vrot.lane.b32.xlu0 %v2794_v31, %s2427_s11 }
  0x73   : > { %992 = vrot.lane.b32.xlu1 %v854_v57, %s2428_s16 }
  0x74   : > { %922 = vrot.lane.b32.xlu0 %v2807_v42, %s2427_s11 }
  0x77   : > { %894 = vrot.lane.b32.xlu1 %v2828_v55, %s2427_s11 }
  0x78   : > { %994 = vrot.lane.b32.xlu0 %v814_v5, %s2428_s16 }
  0x7b   : > { %996 = vrot.lane.b32.xlu1 %v864_v4, %s2428_s16 }
  0x7c   : > { %896 = vrot.lane.b32.xlu0 %v2836_v16, %s2427_s11 }
  0x7f   : > { %968 = vrot.lane.b32.xlu1 %v2742_v50, %s2428_s16 }
  0x80   : > { %898 = vrot.lane.b32.xlu0 %v2843_v62, %s2427_s11 }
  0x83   : > { %924 = vrot.lane.b32.xlu1 %v854_v57, %s2427_s11 }
  0x84   : > { %970 = vrot.lane.b32.xlu0 %v2745_v58, %s2428_s16 }
  0x87   : > { %972 = vrot.lane.b32.xlu1 %v2748_v59, %s2428_s16 }
  0x88   : > { %926 = vrot.lane.b32.xlu0 %v814_v5, %s2427_s11 }
  0x8b   : > { %998 = vrot.lane.b32.xlu1 %v855_v40, %s2428_s16 }
  0x8c   : > { %928 = vrot.lane.b32.xlu0 %v864_v4, %s2427_s11 }
  0x8f   : > { %900 = vrot.lane.b32.xlu1 %v2742_v50, %s2427_s11 }
  0x90   : > { %1000 = vrot.lane.b32.xlu0 %v817_v44, %s2428_s16 }
  0x93   : > { %1002 = vrot.lane.b32.xlu1 %v865_v45, %s2428_s16 }
  0x94   : > { %902 = vrot.lane.b32.xlu0 %v2745_v58, %s2427_s11 }
  0x97   : > { %974 = vrot.lane.b32.xlu1 %v2681_v18, %s2428_s16 }
  0x98   : > { %904 = vrot.lane.b32.xlu0 %v2748_v59, %s2427_s11 }
  0x9b   : > { %978 = vrot.lane.b32.xlu1 %v2675_v17, %s2428_s16 }
  0x9c   : > { %976 = vrot.lane.b32.xlu0 %v2696_v8, %s2428_s16 }
  0xb1   : > { %v911_v1 = vpop.permute.xlu1 %910 }
  0xb2   : > { %v907_v11 = vpop.permute.xlu0 %906 }
  0xb3   : > { %v1041_v14 = vsel %vm1028_vm4, %v2742_v50, %v907_v11  ;;  %v1043_v50 = vsel %vm1028_vm4, %v2748_v59, %v911_v1 }
  0xb5   : > { %v981_v12 = vpop.permute.xlu1 %980 }
  0xb6   : > { %v909_v13 = vpop.permute.xlu0 %908  ;;  %v2902_v43 = vsel %vm1053_vm5, %v1041_v14, %v981_v12 }
  0xb7   : > { %v1042_v19 = vsel %vm1028_vm4, %v2745_v58, %v909_v13  ;;  %v1125_v28 = vrot.slane %v2902_v43, 1 }
  0xb9   : > { %v883_v22 = vpop.permute.xlu1 %882 }
  0xba   : > { %v983_v26 = vpop.permute.xlu0 %982  ;;  %v1029_v59 = vsel %vm1028_vm4, %v2815_v47, %v883_v22 }
  0xbb   : > { %v2907_v27 = vsel %vm1053_vm5, %v1042_v19, %v983_v26 }
  0xbc   : > { %v1126_v30 = vrot.slane %v2907_v27, 1 }
  0xbd   : > { %v985_v52 = vpop.permute.xlu1 %984 }
  0xbe   : > { %v2914_v29 = vsel %vm1053_vm5, %v1043_v50, %v985_v52  ;;  %v885_v53 = vpop.permute.xlu0 %884  ;;  %v1127_v58 = vsel %vm1104_vm6, %v1125_v28, %v1126_v30 }
  0xbf   : > { %v1128_v23 = vrot.slane %v2914_v29, 1  ;;  %2193 = vmatprep.mubr.msk.f32.mxu1 %vm1148_vm7, %v1127_v58  ;;  %v1030_v41 = vsel %vm1028_vm4, %v2820_v51, %v885_v53 }
  0xc1   : > { %v957_v33 = vpop.permute.xlu1 %956  ;;  %v1129_v35 = vsel %vm1104_vm6, %v1126_v30, %v1128_v23 }
  0xc2   : > { %v887_v38 = vpop.permute.xlu0 %886  ;;  %2194 = vmatmul.mubr.msk.f32.vlgmr.msra.gmra.mxu1 %vm1148_vm7, %v1129_v35  ;;  %v2928_v9 = vsel %vm1053_vm5, %v1029_v59, %v957_v33 }
  0xc3   : > { %2206 = vmatpush3.msk.msra.mxu1 %vm1181_vm1, %v1079_v21  ;;  %v1105_v10 = vrot.slane %v2928_v9, 1  ;;  %v1031_v47 = vsel %vm1028_vm4, %v2823_v54, %v887_v38 }
  0xc4   : > { %2207 = vmatprep.subr.mxu1 %v1078_v36 }
  0xc5   : > { %v913_v40 = vpop.permute.xlu1 %912  ;;  %2208 = vmatpush3.msra.mxu1 %v1078_v36 }
  0xc6   : > { %v959_v44 = vpop.permute.xlu0 %958  ;;  %v1044_v54 = vsel %vm1028_vm4, %v2681_v18, %v913_v40 }
  0xc7   : > { %v2933_v45 = vsel %vm1053_vm5, %v1030_v41, %v959_v44 }
  0xc8   : > { %v1106_v46 = vrot.slane %v2933_v45, 1 }
  0xc9   : > { %v961_v48 = vpop.permute.xlu1 %960 }
  0xca   : > { %v2940_v25 = vsel %vm1053_vm5, %v1031_v47, %v961_v48  ;;  %v915_v56 = vpop.permute.xlu0 %914  ;;  %v1107_v60 = vsel %vm1104_vm6, %v1105_v10, %v1106_v46 }
  0xcb   : > { %v1108_v51 = vrot.slane %v2940_v25, 1  ;;  %2181 = vmatprep.mubr.msk.f32.mxu0 %vm1148_vm7, %v1107_v60  ;;  %v1045_v4 = vsel %vm1028_vm4, %v2696_v8, %v915_v56 }
  0xcd   : > { %v987_v61 = vpop.permute.xlu1 %986  ;;  %v1109_v2 = vsel %vm1104_vm6, %v1106_v46, %v1108_v51 }
  0xce   : > { %v917_v57 = vpop.permute.xlu0 %916  ;;  %2182 = vmatmul.mubr.msk.f32.vlgmr.msra.gmra.mxu0 %vm1148_vm7, %v1109_v2  ;;  %v2955_v3 = vsel %vm1053_vm5, %v1044_v54, %v987_v61 }
  0xcf   : > { %2234 = vmatpush3.msk.msra.mxu0 %vm1181_vm1, %v2878_v6  ;;  %v1130_v11 = vrot.slane %v2955_v3, 1  ;;  %v1046_v18 = vsel %vm1028_vm4, %v2675_v17, %v917_v57 }
  0xd0   : > { %2235 = vmatprep.subr.mxu0 %v2099_v39 }
  0xd1   : > { %v889_v5 = vpop.permute.xlu1 %888  ;;  %2236 = vmatpush3.msra.mxu0 %v2099_v39 }
  0xd2   : > { %v989_v21 = vpop.permute.xlu0 %988  ;;  %v1032_v17 = vsel %vm1028_vm4, %v2708_v15, %v889_v5 }
  0xd3   : > { %v2960_v1 = vsel %vm1053_vm5, %v1045_v4, %v989_v21 }
  0xd4   : > { %v1131_v6 = vrot.slane %v2960_v1, 1 }
  0xd5   : > { %v991_v12 = vpop.permute.xlu1 %990 }
  0xd6   : > { %v2967_v13 = vsel %vm1053_vm5, %v1046_v18, %v991_v12  ;;  %v891_v14 = vpop.permute.xlu0 %890  ;;  %v1132_v22 = vsel %vm1104_vm6, %v1130_v11, %v1131_v6 }
  0xd7   : > { %v1133_v8 = vrot.slane %v2967_v13, 1  ;;  %2196 = vmatprep.mubr.msk.f32.mxu1 %vm1148_vm7, %v1132_v22  ;;  %v1033_v52 = vsel %vm1028_vm4, %v2727_v37, %v891_v14 }
  0xd9   : > { %v963_v19 = vpop.permute.xlu1 %962  ;;  %v1134_v26 = vsel %vm1104_vm6, %v1131_v6, %v1133_v8 }
  0xda   : > { %v893_v28 = vpop.permute.xlu0 %892  ;;  %2197 = vmatmul.mubr.msk.f32.gmra.mxu1 %vm1148_vm7, %v1134_v26  ;;  %v2977_v30 = vsel %vm1053_vm5, %v1032_v17, %v963_v19 }
  0xdb   : > { %v1110_v23 = vrot.slane %v2977_v30, 1  ;;  %v1034_v35 = vsel %vm1028_vm4, %v2734_v49, %v893_v28 }
  0xdd   : > { %v919_v50 = vpop.permute.xlu1 %918 }
  0xde   : > { %v965_v53 = vpop.permute.xlu0 %964  ;;  %v1047_v49 = vsel %vm1028_vm4, %v2689_v20, %v919_v50 }
  0xdf   : > { %v2982_v58 = vsel %vm1053_vm5, %v1033_v52, %v965_v53 }
  0xe0   : > { %v1111_v33 = vrot.slane %v2982_v58, 1 }
  0xe1   : > { %v967_v36 = vpop.permute.xlu1 %966 }
  0xe2   : > { %v2989_v15 = vsel %vm1053_vm5, %v1034_v35, %v967_v36  ;;  %v921_v38 = vpop.permute.xlu0 %920  ;;  %v1112_v59 = vsel %vm1104_vm6, %v1110_v23, %v1111_v33 }
  0xe3   : > { %v1113_v37 = vrot.slane %v2989_v15, 1  ;;  %2184 = vmatprep.mubr.msk.f32.mxu0 %vm1148_vm7, %v1112_v59  ;;  %v1048_v47 = vsel %vm1028_vm4, %v2713_v24, %v921_v38 }
  0xe5   : > { %v993_v40 = vpop.permute.xlu1 %992  ;;  %v1114_v41 = vsel %vm1104_vm6, %v1111_v33, %v1113_v37 }
  0xe6   : > { %v923_v44 = vpop.permute.xlu0 %922  ;;  %2185 = vmatmul.mubr.msk.f32.gmra.mxu0 %vm1148_vm7, %v1114_v41  ;;  %v2999_v10 = vsel %vm1053_vm5, %v1047_v49, %v993_v40 }
  0xe7   : > { %v1135_v60 = vrot.slane %v2999_v10, 1  ;;  %v1049_v61 = vsel %vm1028_vm4, %v2723_v32, %v923_v44 }
  0xe9   : > { %v895_v46 = vpop.permute.xlu1 %894 }
  0xea   : > { %v995_v48 = vpop.permute.xlu0 %994  ;;  %v1035_v32 = vsel %vm1028_vm4, %v2739_v34, %v895_v46 }
  0xeb   : > { %v3004_v56 = vsel %vm1053_vm5, %v1048_v47, %v995_v48 }
  0xec   : > { %v1136_v51 = vrot.slane %v3004_v56, 1 }
  0xed   : > { %v997_v2 = vpop.permute.xlu1 %996 }
  0xee   : > { %v3011_v20 = vsel %vm1053_vm5, %v1049_v61, %v997_v2  ;;  %v897_v39 = vpop.permute.xlu0 %896  ;;  %v1137_v57 = vsel %vm1104_vm6, %v1135_v60, %v1136_v51 }
  0xef   : > { %v1138_v24 = vrot.slane %v3011_v20, 1  ;;  %2199 = vmatprep.mubr.msk.f32.mxu1 %vm1148_vm7, %v1137_v57  ;;  %v1036_v6 = vsel %vm1028_vm4, %v2758_v0, %v897_v39 }
  0xf1   : > { %v969_v54 = vpop.permute.xlu1 %968  ;;  %v1139_v5 = vsel %vm1104_vm6, %v1136_v51, %v1138_v24 }
  0xf2   : > { %v899_v4 = vpop.permute.xlu0 %898  ;;  %2200 = vmatmul.mubr.msk.f32.gmra.mxu1 %vm1148_vm7, %v1139_v5  ;;  %v3021_v21 = vsel %vm1053_vm5, %v1035_v32, %v969_v54  ;;  %v1511_v5 = vrot.slane %v2928_v9, 2  ;;  %v1514_v32 = vrot.slane %v2940_v25, 2 }
  0xf3   : > { %v1115_v14 = vrot.slane %v3021_v21, 1  ;;  %v1037_v8 = vsel %vm1028_vm4, %v2765_v63, %v899_v4 }
  0xf5   : > { %v925_v11 = vpop.permute.xlu1 %924 }
  0xf6   : > { %v971_v18 = vpop.permute.xlu0 %970  ;;  %v1050_v63 = vsel %vm1028_vm4, %v2773_v7, %v925_v11  ;;  %v1516_v11 = vrot.slane %v2977_v30, 2 }
  0xf7   : > { %v3026_v12 = vsel %vm1053_vm5, %v1036_v6, %v971_v18  ;;  %v1519_v6 = vrot.slane %v2989_v15, 2 }
  0xf8   : > { %v1116_v22 = vrot.slane %v3026_v12, 1  ;;  %v1522_v18 = vrot.slane %v3026_v12, 2 }
  0xf9   : > { %v973_v19 = vpop.permute.xlu1 %972 }
  0xfa   : > { %v3033_v34 = vsel %vm1053_vm5, %v1037_v8, %v973_v19  ;;  %v927_v26 = vpop.permute.xlu0 %926  ;;  %v1117_v28 = vsel %vm1104_vm6, %v1115_v14, %v1116_v22  ;;  %v1521_v14 = vrot.slane %v3021_v21, 2 }
  0xfb   : > { %v1118_v0 = vrot.slane %v3033_v34, 1  ;;  %2187 = vmatprep.mubr.msk.f32.mxu0 %vm1148_vm7, %v1117_v28  ;;  %v1051_v33 = vsel %vm1028_vm4, %v2794_v31, %v927_v26  ;;  %v1531_v28 = vrot.slane %v2902_v43, 2 }
  0xfd   : > { %v999_v17 = vpop.permute.xlu1 %998  ;;  %v1119_v50 = vsel %vm1104_vm6, %v1116_v22, %v1118_v0  ;;  %v1534_v0 = vrot.slane %v2914_v29, 2  ;;  %v1539_v29 = vrot.slane %v2967_v13, 2  ;;  %v1544_v13 = vrot.slane %v3011_v20, 2 }
  0xfe   : > { %v929_v52 = vpop.permute.xlu0 %928  ;;  %2188 = vmatmul.mubr.msk.f32.gmra.mxu0 %vm1148_vm7, %v1119_v50  ;;  %v3043_v53 = vsel %vm1053_vm5, %v1050_v63, %v999_v17 }
  0xff   : > { %v1140_v38 = vrot.slane %v3043_v53, 1  ;;  %v1052_v37 = vsel %vm1028_vm4, %v2807_v42, %v929_v52 }
 0x101   : > { %v901_v23 = vpop.permute.xlu1 %900 }
 0x102   : > { %v1001_v35 = vpop.permute.xlu0 %1000  ;;  %v1038_v42 = vsel %vm1028_vm4, %v2828_v55, %v901_v23  ;;  %v1512_v55 = vrot.slane %v2933_v45, 2 }
 0x103   : > { %v3048_v36 = vsel %vm1053_vm5, %v1051_v33, %v1001_v35  ;;  %v1546_v35 = vrot.slane %v3043_v53, 2 }
 0x104   : > { %v1141_v59 = vrot.slane %v3048_v36, 1  ;;  %v1515_v25 = vsel %vm1510_vm8, %v1512_v55, %v1514_v32  ;;  %v1547_v33 = vrot.slane %v3048_v36, 2 }
 0x105   : > { %v1003_v40 = vpop.permute.xlu1 %1002 }
 0x106   : > { %v3055_v7 = vsel %vm1053_vm5, %v1052_v37, %v1003_v40  ;;  %v903_v41 = vpop.permute.xlu0 %902  ;;  %v1142_v44 = vsel %vm1104_vm6, %v1140_v38, %v1141_v59  ;;  %v1548_v20 = vsel %vm1510_vm8, %v1546_v35, %v1547_v33 }
 0x107   : > { %v1143_v31 = vrot.slane %v3055_v7, 1  ;;  %2202 = vmatprep.mubr.msk.f32.mxu1 %vm1148_vm7, %v1142_v44  ;;  %v1039_v61 = vsel %vm1028_vm4, %v2836_v16, %v903_v41  ;;  %v1549_v38 = vrot.slane %v3055_v7, 2 }
 0x109   : > { %v975_v49 = vpop.permute.xlu1 %974  ;;  %v1144_v46 = vsel %vm1104_vm6, %v1141_v59, %v1143_v31 }
 0x10a   : > { %v905_v47 = vpop.permute.xlu0 %904  ;;  %2203 = vmatmul.mubr.msk.f32.gmra.mxu1 %vm1148_vm7, %v1144_v46  ;;  %v1063_v48 = vsel %vm1053_vm5, %v1038_v42, %v975_v49 }
 0x10b   : > { %2209 = vmatprep.mubr.msk.f32.mxu1 %vm1148_vm7, %v2928_v9  ;;  %v1040_v60 = vsel %vm1028_vm4, %v2843_v62, %v905_v47  ;;  %v1120_v54 = vrot.slane %v1063_v48, 1  ;;  %v1513_v9 = vsel %vm1510_vm8, %v1511_v5, %v1512_v55  ;;  %v1526_v8 = vrot.slane %v1063_v48, 2  ;;  %v3183_v5 = vld [vmem:[%s3284_s6] ss:$0 sm:$0xff] }
 0x10d   : > { %v979_v51 = vpop.permute.xlu1 %978 }
 0x10e   : > { %v1065_v2 = vsel %vm1053_vm5, %v1040_v60, %v979_v51  ;;  %v977_v39 = vpop.permute.xlu0 %976  ;;  %2210 = vmatmul.mubr.msk.f32.vlgmr.msra.gmra.mxu1 %vm1148_vm7, %v2933_v45  ;;  %v1517_v45 = vrot.slane %v2982_v58, 2 }
 0x10f   : > { %v1123_v57 = vrot.slane %v1065_v2, 1  ;;  %v1064_v24 = vsel %vm1053_vm5, %v1039_v61, %v977_v39  ;;  %2212 = vmatprep.mubr.msk.f32.mxu1 %vm1148_vm7, %v2977_v30  ;;  %v1524_v30 = vrot.slane %v3033_v34, 2  ;;  %v1532_v34 = vrot.slane %v2907_v27, 2 }
 0x110   : > { %v1121_v62 = vrot.slane %v1064_v24, 1  ;;  %v1520_v15 = vsel %vm1510_vm8, %v1517_v45, %v1519_v6  ;;  %v1527_v22 = vrot.slane %v1064_v24, 2 }
 0x111   : > { %v1525_v19 = vsel %vm1510_vm8, %v1522_v18, %v1524_v30  ;;  %v1533_v50 = vsel %vm1510_vm8, %v1531_v28, %v1532_v34  ;;  %v1535_v52 = vsel %vm1510_vm8, %v1532_v34, %v1534_v0 }
 0x112   : > { %v1122_v16 = vsel %vm1104_vm6, %v1120_v54, %v1121_v62  ;;  %2213 = vmatmul.mubr.msk.f32.gmra.mxu1 %vm1148_vm7, %v2982_v58  ;;  %v1124_v4 = vsel %vm1104_vm6, %v1121_v62, %v1123_v57  ;;  %v1518_v58 = vsel %vm1510_vm8, %v1516_v11, %v1517_v45  ;;  %v1528_v26 = vsel %vm1510_vm8, %v1526_v8, %v1527_v22  ;;  %v1774_v45 = vld [vmem:[%s3178_s14 + $0x8] sm:$0xff] }
 0x113   : > { %2190 = vmatprep.mubr.msk.f32.mxu0 %vm1148_vm7, %v1122_v16  ;;  %2215 = vmatprep.mubr.msk.f32.mxu1 %vm1148_vm7, %v3021_v21  ;;  %v1529_v21 = vrot.slane %v1065_v2, 2 }
 0x114   : > { %2191 = vmatmul.mubr.msk.f32.gmra.mxu0 %vm1148_vm7, %v1124_v4 }
 0x115   : > { %2237 = vmatprep.mubr.msk.f32.mxu0 %vm1148_vm7, %v1513_v9  ;;  %v1530_v17 = vsel %vm1510_vm8, %v1527_v22, %v1529_v21  ;;  %v1776_v21 = vld [vmem:[%s3178_s14 + $0x18] sm:$0xff] }
 0x116   : > { %2216 = vmatmul.mubr.msk.f32.gmra.mxu1 %vm1148_vm7, %v3026_v12  ;;  %v1523_v12 = vsel %vm1510_vm8, %v1521_v14, %v1522_v18 }
 0x117   : > { %2218 = vmatprep.mubr.msk.f32.mxu1 %vm1148_vm7, %v1063_v48 }
 0x118   : > { %2238 = vmatmul.mubr.msk.f32.vlgmr.msra.gmra.mxu0 %vm1148_vm7, %v1515_v25 }
 0x119   : > { %2240 = vmatprep.mubr.msk.f32.mxu0 %vm1148_vm7, %v1518_v58  ;;  %v1773_v58 = vld [vmem:[%s3178_s14] sm:$0xff] }
 0x11a   : > { %2219 = vmatmul.mubr.msk.f32.gmra.mxu1 %vm1148_vm7, %v1064_v24 }
 0x11b   : > { %2221 = vmatprep.mubr.msk.f32.mxu1 %vm1148_vm7, %v2902_v43  ;;  %v1536_v43 = vrot.slane %v2955_v3, 2 }
 0x11c   : > { %2241 = vmatmul.mubr.msk.f32.gmra.mxu0 %vm1148_vm7, %v1520_v15 }
 0x11d   : > { %2243 = vmatprep.mubr.msk.f32.mxu0 %vm1148_vm7, %v1523_v12 }
 0x11e   : > { %2222 = vmatmul.mubr.msk.f32.gmra.mxu1 %vm1148_vm7, %v2907_v27  ;;  %v1537_v27 = vrot.slane %v2960_v1, 2 }
 0x11f   : > { %2224 = vmatprep.mubr.msk.f32.mxu1 %vm1148_vm7, %v2955_v3  ;;  %v1541_v3 = vrot.slane %v2999_v10, 2 }
 0x120   : > { %2244 = vmatmul.mubr.msk.f32.gmra.mxu0 %vm1148_vm7, %v1525_v19  ;;  %v1538_v63 = vsel %vm1510_vm8, %v1536_v43, %v1537_v27  ;;  %v1540_v23 = vsel %vm1510_vm8, %v1537_v27, %v1539_v29  ;;  %v1775_v27 = vld [vmem:[%s3178_s14 + $0x10] sm:$0xff] }
 0x121   : > { %2246 = vmatprep.mubr.msk.f32.mxu0 %vm1148_vm7, %v1528_v26 }
 0x122   : > { %2225 = vmatmul.mubr.msk.f32.gmra.mxu1 %vm1148_vm7, %v2960_v1  ;;  %v1542_v1 = vrot.slane %v3004_v56, 2 }
 0x123   : > { %2227 = vmatprep.mubr.msk.f32.mxu1 %vm1148_vm7, %v2999_v10 }
 0x124   : > { %2247 = vmatmul.mubr.msk.f32.gmra.mxu0 %vm1148_vm7, %v1530_v17  ;;  %v1545_v10 = vsel %vm1510_vm8, %v1542_v1, %v1544_v13 }
 0x125   : > { %2249 = vmatprep.mubr.msk.f32.mxu0 %vm1148_vm7, %v1533_v50 }
 0x126   : > { %2228 = vmatmul.mubr.msk.f32.gmra.mxu1 %vm1148_vm7, %v3004_v56  ;;  %v1543_v56 = vsel %vm1510_vm8, %v1541_v3, %v1542_v1  ;;  %v1778_v3 = vld [vmem:[%s3178_s14 + $0x28] sm:$0xff] }
 0x127   : > { %2230 = vmatprep.mubr.msk.f32.mxu1 %vm1148_vm7, %v3043_v53 }
 0x128   : > { %2250 = vmatmul.mubr.msk.f32.gmra.mxu0 %vm1148_vm7, %v1535_v52 }
 0x129   : > { %2252 = vmatprep.mubr.msk.f32.mxu0 %vm1148_vm7, %v1538_v63 }
 0x12a   : > { %2231 = vmatmul.mubr.msk.f32.gmra.mxu1 %vm1148_vm7, %v3048_v36  ;;  %v1550_v36 = vsel %vm1510_vm8, %v1547_v33, %v1549_v38 }
 0x12c   : > { %2253 = vmatmul.mubr.msk.f32.gmra.mxu0 %vm1148_vm7, %v1540_v23 }
 0x12d   : > { %2255 = vmatprep.mubr.msk.f32.mxu0 %vm1148_vm7, %v1543_v56 }
 0x130   : > { %2256 = vmatmul.mubr.msk.f32.gmra.mxu0 %vm1148_vm7, %v1545_v10  ;;  %v1777_v10 = vld [vmem:[%s3178_s14 + $0x20] sm:$0xff] }
 0x131   : > { %2258 = vmatprep.mubr.msk.f32.mxu0 %vm1148_vm7, %v1548_v20 }
 0x134   : > { %2259 = vmatmul.mubr.msk.f32.gmra.mxu0 %vm1148_vm7, %v1550_v36 }
 0x182   : > { %v3158_v59 = vpop.f32.mrf.mxu1 }
 0x184   : > { %v3160_v37 = vpop.f32.mrf.mxu1 }
 0x18e   : > { %v2183_v53 = vpop.f32.mrf.mxu0 }
 0x190   : > { %v1251_v44 = vpop.f32.mrf.mxu0 }
 0x19a   : > { %v3162_v40 = vpop.f32.mrf.mxu1 }
 0x19c   : > { %v3164_v7 = vpop.f32.mrf.mxu1 }
 0x1a6   : > { %v2186_v31 = vpop.f32.mrf.mxu0 }
 0x1a8   : > { %v1261_v47 = vpop.f32.mrf.mxu0 }
 0x1b2   : > { %v3166_v41 = vpop.f32.mrf.mxu1 }
 0x1b4   : > { %v3168_v49 = vpop.f32.mrf.mxu1 }
 0x1be   : > { %v2189_v48 = vpop.f32.mrf.mxu0 }
 0x1c0   : > { %v1271_v61 = vpop.f32.mrf.mxu0 }
 0x1ca   : > { %v3170_v46 = vpop.f32.mrf.mxu1 }
 0x1cc   : > { %v3172_v42 = vpop.f32.mrf.mxu1 }
 0x1ce   : > { %v2211_v60 = vpop.f32.mrf.mxu1 }
 0x1cf   : > { %v1437_v54 = vadd.f32 %v2211_v60, %v2183_v53 }
 0x1d0   : > { %v1431_v51 = vpop.f32.mrf.mxu1 }
 0x1d1   : > { %v1432_v4 = vadd.f32 %v1431_v51, %v1251_v44 }
 0x1d2   : > { %v2214_v2 = vpop.f32.mrf.mxu1 }
 0x1d3   : > { %v1447_v25 = vadd.f32 %v2214_v2, %v2186_v31 }
 0x1d4   : > { %v2192_v39 = vpop.f32.mrf.mxu0  ;;  %v1441_v57 = vpop.f32.mrf.mxu1 }
 0x1d5   : > { %v1442_v15 = vadd.f32 %v1441_v57, %v1261_v47 }
 0x1d6   : > { %v1281_v24 = vpop.f32.mrf.mxu0  ;;  %v2217_v55 = vpop.f32.mrf.mxu1 }
 0x1d7   : > { %v1457_v26 = vadd.f32 %v2217_v55, %v2189_v48  ;;  %v1780_v48 = vld [vmem:[%s3178_s14 + $0x38] sm:$0xff] }
 0x1d8   : > { %v2239_v62 = vpop.f32.mrf.mxu0  ;;  %v1451_v16 = vpop.f32.mrf.mxu1 }
 0x1d9   : > { %v1735_v32 = vadd.f32 %v2239_v62, %v1437_v54  ;;  %v1452_v29 = vadd.f32 %v1451_v16, %v1271_v61 }
 0x1da   : > { %v1655_v9 = vpop.f32.mrf.mxu0  ;;  %v2220_v11 = vpop.f32.mrf.mxu1 }
 0x1db   : > { %v1758_v6 = vadd.f32 %v3183_v5, %v1735_v32  ;;  %v1734_v18 = vadd.f32 %v1655_v9, %v1432_v4  ;;  %v1467_v33 = vadd.f32 %v2220_v11, %v2192_v39 }
 0x1dc   : > { %v2242_v14 = vpop.f32.mrf.mxu0  ;;  %v1461_v30 = vpop.f32.mrf.mxu1 }
 0x1dd   : > { %v1790_v22 = vadd.f32 %v1774_v45, %v1758_v6  ;;  %v1757_v12 = vadd.f32 %v3183_v5, %v1734_v18  ;;  %v1737_v8 = vadd.f32 %v2242_v14, %v1447_v25  ;;  %v1462_v53 = vadd.f32 %v1461_v30, %v1281_v24  ;;  %v1779_v24 = vld [vmem:[%s3178_s14 + $0x30] sm:$0xff]  ;;  %v1781_v6 = vld [vmem:[%s3178_s14 + $0x40] sm:$0xff] }
 0x1de   : > { %v1665_v19 = vpop.f32.mrf.mxu0  ;;  %v2223_v34 = vpop.f32.mrf.mxu1 }
 0x1df   : > { %1806 = vst.msk [vmem:[%s3191_s17 + $0x8] sm:$0xff] %vm1028_vm4, %v1790_v22  ;;  %v1789_v28 = vadd.f32 %v1773_v58, %v1757_v12  ;;  %v1760_v0 = vadd.f32 %v3183_v5, %v1737_v8  ;;  %v1736_v17 = vadd.f32 %v1665_v19, %v1442_v15  ;;  %v1477_v61 = vadd.f32 %v2223_v34, %v3158_v59  ;;  %v1782_v59 = vld [vmem:[%s3178_s14 + $0x48] sm:$0xff]  ;;  %v1784_v22 = vld [vmem:[%s3178_s14 + $0x58] sm:$0xff]  ;;  %v1783_v34 = vld [vmem:[%s3178_s14 + $0x50] sm:$0xff] }
 0x1e0   : > { %v2245_v50 = vpop.f32.mrf.mxu0  ;;  %v1471_v43 = vpop.f32.mrf.mxu1 }
 0x1e1   : > { %1805 = vst.msk [vmem:[%s3191_s17] sm:$0xff] %vm1028_vm4, %v1789_v28  ;;  %v1792_v52 = vadd.f32 %v1776_v21, %v1760_v0  ;;  %v1759_v1 = vadd.f32 %v3183_v5, %v1736_v17  ;;  %v1739_v63 = vadd.f32 %v2245_v50, %v1457_v26  ;;  %v1472_v54 = vadd.f32 %v1471_v43, %v3160_v37  ;;  %v1786_v50 = vld [vmem:[%s3178_s14 + $0x68] sm:$0xff] }
 0x1e2   : > { %v1675_v13 = vpop.f32.mrf.mxu0  ;;  %v2226_v23 = vpop.f32.mrf.mxu1 }
 0x1e3   : > { %1808 = vst.msk [vmem:[%s3191_s17 + $0x18] sm:$0xff] %vm1028_vm4, %v1792_v52  ;;  %v1791_v56 = vadd.f32 %v1775_v27, %v1759_v1  ;;  %v1762_v35 = vadd.f32 %v3183_v5, %v1739_v63  ;;  %v1738_v38 = vadd.f32 %v1675_v13, %v1452_v29  ;;  %v1487_v9 = vadd.f32 %v2226_v23, %v3162_v40  ;;  %v1785_v63 = vld [vmem:[%s3178_s14 + $0x60] sm:$0xff] }
 0x1e4   : > { %v2248_v20 = vpop.f32.mrf.mxu0  ;;  %v1481_v36 = vpop.f32.mrf.mxu1 }
 0x1e5   : > { %1807 = vst.msk [vmem:[%s3191_s17 + $0x10] sm:$0xff] %vm1028_vm4, %v1791_v56  ;;  %v1794_v44 = vadd.f32 %v1778_v3, %v1762_v35  ;;  %v1761_v31 = vadd.f32 %v3183_v5, %v1738_v38  ;;  %v1741_v47 = vadd.f32 %v2248_v20, %v1467_v33  ;;  %v1482_v58 = vadd.f32 %v1481_v36, %v3164_v7  ;;  %v1788_v56 = vld [vmem:[%s3178_s14 + $0x78] sm:$0xff]  ;;  %v1787_v36 = vld [vmem:[%s3178_s14 + $0x70] sm:$0xff] }
 0x1e6   : > { %v1685_v60 = vpop.f32.mrf.mxu0  ;;  %v2229_v51 = vpop.f32.mrf.mxu1 }
 0x1e7   : > { %1810 = vst.msk [vmem:[%s3191_s17 + $0x28] sm:$0xff] %vm1028_vm4, %v1794_v44  ;;  %v1793_v2 = vadd.f32 %v1777_v10, %v1761_v31  ;;  %v1764_v39 = vadd.f32 %v3183_v5, %v1741_v47  ;;  %v1740_v57 = vadd.f32 %v1685_v60, %v1462_v53  ;;  %v1497_v8 = vadd.f32 %v2229_v51, %v3166_v41 }
 0x1e8   : > { %v2251_v55 = vpop.f32.mrf.mxu0  ;;  %v1491_v32 = vpop.f32.mrf.mxu1 }
 0x1e9   : > { %1809 = vst.msk [vmem:[%s3191_s17 + $0x20] sm:$0xff] %vm1028_vm4, %v1793_v2  ;;  %v1796_v62 = vadd.f32 %v1780_v48, %v1764_v39  ;;  %v1763_v16 = vadd.f32 %v3183_v5, %v1740_v57  ;;  %v1743_v4 = vadd.f32 %v2251_v55, %v1477_v61  ;;  %v1492_v28 = vadd.f32 %v1491_v32, %v3168_v49 }
 0x1ea   : > { %v1695_v45 = vpop.f32.mrf.mxu0  ;;  %v2232_v40 = vpop.f32.mrf.mxu1 }
 0x1eb   : > { %1812 = vst.msk [vmem:[%s3191_s17 + $0x38] sm:$0xff] %vm1028_vm4, %v1796_v62  ;;  %v1795_v11 = vadd.f32 %v1779_v24, %v1763_v16  ;;  %v1766_v25 = vadd.f32 %v3183_v5, %v1743_v4  ;;  %v1742_v37 = vadd.f32 %v1695_v45, %v1472_v54  ;;  %v1507_v29 = vadd.f32 %v2232_v40, %v3170_v46 }
 0x1ec   : > { %v2254_v18 = vpop.f32.mrf.mxu0  ;;  %v1501_v41 = vpop.f32.mrf.mxu1 }
 0x1ed   : > { %1811 = vst.msk [vmem:[%s3191_s17 + $0x30] sm:$0xff] %vm1028_vm4, %v1795_v11  ;;  %v1798_v14 = vadd.f32 %v1782_v59, %v1766_v25  ;;  %v1765_v30 = vadd.f32 %v3183_v5, %v1742_v37  ;;  %v1745_v15 = vadd.f32 %v2254_v18, %v1487_v9  ;;  %v1502_v13 = vadd.f32 %v1501_v41, %v3172_v42 }
 0x1ee   : > { %v1705_v12 = vpop.f32.mrf.mxu0 }
 0x1ef   : > { %1814 = vst.msk [vmem:[%s3191_s17 + $0x48] sm:$0xff] %vm1028_vm4, %v1798_v14  ;;  %v1797_v21 = vadd.f32 %v1781_v6, %v1765_v30  ;;  %v1768_v19 = vadd.f32 %v3183_v5, %v1745_v15  ;;  %v1744_v7 = vadd.f32 %v1705_v12, %v1482_v58 }
 0x1f0   : > { %v2257_v26 = vpop.f32.mrf.mxu0 }
 0x1f1   : > { %1813 = vst.msk [vmem:[%s3191_s17 + $0x40] sm:$0xff] %vm1028_vm4, %v1797_v21  ;;  %v1800_v0 = vadd.f32 %v1784_v22, %v1768_v19  ;;  %v1767_v17 = vadd.f32 %v3183_v5, %v1744_v7  ;;  %v1747_v27 = vadd.f32 %v2257_v26, %v1497_v8 }
 0x1f2   : > { %v1715_v43 = vpop.f32.mrf.mxu0 }
 0x1f3   : > { %1816 = vst.msk [vmem:[%s3191_s17 + $0x58] sm:$0xff] %vm1028_vm4, %v1800_v0  ;;  %v1799_v52 = vadd.f32 %v1783_v34, %v1767_v17  ;;  %v1770_v49 = vadd.f32 %v3183_v5, %v1747_v27  ;;  %v1746_v1 = vadd.f32 %v1715_v43, %v1492_v28 }
 0x1f4   : > { %v2260_v3 = vpop.f32.mrf.mxu0 }
 0x1f5   : > { %1815 = vst.msk [vmem:[%s3191_s17 + $0x50] sm:$0xff] %vm1028_vm4, %v1799_v52  ;;  %v1802_v23 = vadd.f32 %v1786_v50, %v1770_v49  ;;  %v1769_v33 = vadd.f32 %v3183_v5, %v1746_v1  ;;  %v1749_v46 = vadd.f32 %v2260_v3, %v1507_v29 }
 0x1f6   : > { %v1725_v35 = vpop.f32.mrf.mxu0 }
 0x1f7   : > { %1818 = vst.msk [vmem:[%s3191_s17 + $0x68] sm:$0xff] %vm1028_vm4, %v1802_v23  ;;  %v1801_v38 = vadd.f32 %v1785_v63, %v1769_v33  ;;  %v1772_v10 = vadd.f32 %v3183_v5, %v1749_v46  ;;  %v1748_v20 = vadd.f32 %v1725_v35, %v1502_v13 }
 0x1f9   : > { %1817 = vst.msk [vmem:[%s3191_s17 + $0x60] sm:$0xff] %vm1028_vm4, %v1801_v38  ;;  %v1804_v53 = vadd.f32 %v1788_v56, %v1772_v10  ;;  %v1771_v42 = vadd.f32 %v3183_v5, %v1748_v20 }
 0x1fb   : > { %1820 = vst.msk [vmem:[%s3191_s17 + $0x78] sm:$0xff] %vm1028_vm4, %v1804_v53  ;;  %v1803_v44 = vadd.f32 %v1787_v36, %v1771_v42 }
 0x1fd   : > { %1819 = vst.msk [vmem:[%s3191_s17 + $0x70] sm:$0xff] %vm1028_vm4, %v1803_v44 }
 0x1fe PF: > { %s18_s9 = sadd.s32 1, %s2425_s9   ;;  %s3293_s23 = sld [smem:[#allocation2_spill]] }
 0x1ff   : > { %p15_p12 = scmp.ge.s32.totalorder %s18_s9, 6   ;;  %s3294_s27 = smov %s2417_s29 }
 0x200   : > { %s3295_s28 = smov %s2421_s30  ;;  %s3296_s29 = smov %s3299_s10 }
 0x201   :  { %17 = sbr.rel (!%p15_p12) target bundleno = 3 (0x3), region = 99 }
 0x204   : > { %s3297_s30 = smov %s3293_s23 }

// kernel: up_decoder_block_2d.11
= control target key start
LH: loop header
LB: loop body
LE: loop exit
PB: predicated region body
PF: predicated region fallthrough
CT: control target
= control target key end

     0   :  { %s3137_s18 = smov 0   ;;  %s3139_s19 = smov 0   ;;  %s4135_s0 = inlined_call_operand.vmem [shape: f32[2,16,16,4], index: 0, kind: input, shape index: {}, may-alias: {0,1,2}]   ;;  %s4136_s1 = inlined_call_operand.vmem [shape: f32[2,16,16,4], index: 1, kind: input, shape index: {}, may-alias: {0,1,2}]   ;;  %s4137_s2 = inlined_call_operand.vmem [shape: f32[2,16,16,4], index: 2, kind: input, shape index: {}, may-alias: {0,1,2}]   ;;  %s4138_s3 = inlined_call_operand.vmem [shape: f32[2,2,2,8,4], index: 3, kind: input, shape index: {}]   ;;  %s4139_s4 = inlined_call_operand.vmem [shape: f32[1,4], index: 4, kind: input, shape index: {}]   ;;  %s4140_s5 = inlined_call_operand.vmem [shape: f32[2,16,2,16,8], index: 5, kind: output, shape index: {}]  }
   0x1   :  { %s3141_s20 = smov 0   ;;  %s3143_s21 = smov 0  }
   0x2   :  { %s3145_s22 = smov 0  }
   0x3 LB: > { %s24_s23 = sadd.s32 1, %s3096_s20  ;;  %s27_s24 = sadd.s32 1, %s3100_s21  ;;  %s3104_s22 = sphi %s3145_s22, %s15_s22   ;;  %s3100_s21 = sphi %s3143_s21, %s4145_s21   ;;  %s3096_s20 = sphi %s3141_s20, %s4144_s20   ;;  %s3092_s19 = sphi %s3139_s19, %s4143_s19   ;;  %s3088_s18 = sphi %s3137_s18, %s4142_s18  }
   0x4   : > { %p25_p0 = scmp.ge.s32.totalorder %s24_s23, 2  ;;  %p2471_p1 = scmp.ge.s32.totalorder %s3104_s22, 1 }
   0x5   : > { %p273_p2 = scmp.lt.s32.totalorder %s3104_s22, 5 }
   0x6   : > { %s4147_s23 = smov (%p25_p0, %s24_s23), 0  ;;  %s4149_s24 = smov (!%p25_p0, %s27_s24), %s3100_s21 }
   0x7   : > { %p274_p3 = pnand %p2471_p1, %p273_p2  ;;  %p29_p4 = scmp.ge.s32.totalorder %s4149_s24, 2 }
   0x8   : > { %s3170_s25 = sshll.u32 (!%p274_p3), %s3088_s18, 3  ;;  %p341_p5 = scmp.lt.s32.totalorder (!%p274_p3), %s3092_s19, 1 }
   0x9   : > { %s4151_s24 = smov (%p29_p4, %s4149_s24), 0  ;;  %277 = sbr.rel (%p274_p3) target bundleno = 600 (0x258), region = 40 }
   0xa   : > { %p357_p6 = scmp.lt.s32.totalorder (!%p274_p3), %s3170_s25, 15  ;;  %s3106_s16 = smov (!%p274_p3), 4  }
   0xb   : > { %p417_p7 = scmp.lt.s32.totalorder (!%p274_p3), %s3088_s18, 1  ;;  %s366_s17 = sadd.s32 (!%p274_p3), 8, %s3170_s25 }
   0xc   : > { %p3225_p8 = scmp.lt.s32.totalorder (!%p274_p3), %s366_s17, 15  ;;  %s2473_s26 = sadd.s32 (!%p274_p3), 4294967295, %s3170_s25 }
   0xd   : > { %p393_p9 = scmp.gt.s32.totalorder (!%p274_p3), %s3088_s18, 0  ;;  %p339_p10 = scmp.gt.s32.totalorder (!%p274_p3), %s2473_s26, 0 }
   0xe   : > { %v639_v0 = vld [vmem:[%s4138_s3] sm:$0xff]  ;;  %s4153_s19 = smov (!%p341_p5, %s3092_s19), 1  ;;  %v2497_v1 = vld [vmem:[%s4138_s3 + $0x8] sm:$0xff]  ;;  %vm445_vm0 = vcmask 1040384   ;;  %v3238_v21 = vld [vmem:[%s4138_s3 + $0x18] sm:$0xff]  ;;  %s4155_s17 = smov (!%p3225_p8, %s366_s17), 15 }
   0xf   : > { %2831 = vmatprep.subr.mxu1 %v639_v0  ;;  %s358_s28 = scalar_select %p357_p6, %s3170_s25, 15  ;;  %2805 = vmatprep.subr.mxu0 %v2497_v1  ;;  %v3243_v22 = vld [vmem:[%s4138_s3 + $0x10] sm:$0xff]  ;;  %vm614_vm1 = vcmask 31744   ;;  %vm707_vm2 = vcmask 64512   ;;  %vm664_vm3 = vcmask 1046528   ;;  %vm1102_vm4 = vcmask 1045504  }
  0x10   : > { %2832 = vmatpush3.msra.mxu1 %v639_v0  ;;  %s3177_s29 = sshll.u32 %s4153_s19, 5  ;;  %s2495_s30 = sshll.u32 %s4153_s19, 6  ;;  %2806 = vmatpush3.msra.mxu0 %v2497_v1  ;;  %vm1547_vm5 = vcmask 64544  }
  0x11   : > { %s2483_s6 = sshll.u32 %s358_s28, 1  ;;  %s2494_s7 = sshll.u32 %s358_s28, 2  ;;  %2857 = vmatprep.subr.mxu0 %v3238_v21  ;;  %2883 = vmatprep.subr.mxu1 %v3243_v22 }
  0x12   : > { %s361_s8 = sadd.s32 %s2483_s6, %s3177_s29  ;;  %s3180_s9 = sadd.s32 %s2495_s30, %s2494_s7 }
  0x13   : > { %s2485_s12 = sshll.u32 %s361_s8, 3  ;;  %p2474_p11 = scmp.lt.s32.totalorder %s2473_s26, 15 }
  0x14   : > { %s3188_s15 = scalar_lea.vmem %s4136_s1, %s2485_s12  ;;  %s4157_s26 = smov (!%p339_p10, %s2473_s26), 0 }
  0x15   : > { %v402_v2 = vld [vmem:[%s3188_s15 + $0x8] sm:$0xff]  ;;  %v401_v3 = vld [vmem:[%s3188_s15] sm:$0xff]  ;;  %v403_v4 = vld [vmem:[%s3188_s15 + $0x10] sm:$0xff]  ;;  %s4159_s26 = smov (!%p2474_p11, %s4157_s26), 15  ;;  %s4161_s17 = smov (!%p3225_p8, %s4155_s17), 15 }
  0x16   : > { %v450_v5 = vrot.slane %v402_v2, 7  ;;  %v449_v6 = vrot.slane %v401_v3, 7  ;;  %v452_v7 = vrot.slane %v403_v4, 7  ;;  %v404_v8 = vld [vmem:[%s3188_s15 + $0x18] sm:$0xff]  ;;  %v405_v14 = vld [vmem:[%s3188_s15 + $0x20] sm:$0xff]  ;;  %v406_v15 = vld [vmem:[%s3188_s15 + $0x28] sm:$0xff] }
  0x17   : > { %v453_v13 = vrot.slane %v404_v8, 7  ;;  %v455_v18 = vrot.slane %v405_v14, 7  ;;  %v456_v19 = vrot.slane %v406_v15, 7  ;;  %v407_v20 = vld [vmem:[%s3188_s15 + $0x30] sm:$0xff]  ;;  %v408_v26 = vld [vmem:[%s3188_s15 + $0x38] sm:$0xff]  ;;  %v409_v30 = vld [vmem:[%s3188_s15 + $0x40] sm:$0xff] }
  0x18   : > { %v3195_v9 = vsel %vm445_vm0, %v450_v5, 0.0  ;;  %v3198_v10 = vsel %vm445_vm0, 0.0, %v449_v6  ;;  %v3206_v11 = vsel %vm445_vm0, 0.0, %v452_v7  ;;  %v3209_v12 = vsel %vm445_vm0, %v449_v6, %v450_v5  ;;  %v410_v31 = vld [vmem:[%s3188_s15 + $0x48] sm:$0xff]  ;;  %s3061_s25 = scalar_select %p393_p9, 255, 0 }
  0x19   : > { %546 = vrot.lane.b32.xlu1 %v3195_v9, %s3106_s16  ;;  %542 = vrot.lane.b32.xlu0 %v3198_v10, %s3106_s16  ;;  %v3219_v16 = vsel %vm445_vm0, %v453_v13, 0.0  ;;  %v3222_v17 = vsel %vm445_vm0, %v452_v7, %v453_v13  ;;  %v3246_v23 = vsel %vm445_vm0, %v455_v18, %v456_v19  ;;  %v3249_v24 = vsel %vm445_vm0, 0.0, %v455_v18  ;;  %s2479_s7 = sshll.u32 %s4159_s26, 1  ;;  %v411_v36 = vld [vmem:[%s3188_s15 + $0x50] sm:$0xff]  ;;  %v412_v41 = vld [vmem:[%s3188_s15 + $0x58] sm:$0xff]  ;;  %s2490_s14 = sshll.u32 %s4161_s17, 1 }
  0x1a   : > { %v458_v25 = vrot.slane %v407_v20, 7  ;;  %v3266_v28 = vsel %vm445_vm0, %v456_v19, 0.0  ;;  %v459_v29 = vrot.slane %v408_v26, 7  ;;  %v461_v34 = vrot.slane %v409_v30, 7  ;;  %s347_s8 = sadd.s32 %s3177_s29, %s2479_s7  ;;  %v413_v49 = vld [vmem:[%s3188_s15 + $0x60] sm:$0xff]  ;;  %v414_v50 = vld [vmem:[%s3188_s15 + $0x68] sm:$0xff]  ;;  %s375_s17 = sadd.s32 %s2490_s14, %s3177_s29 }
  0x1b   : > { %v462_v35 = vrot.slane %v410_v31, 7  ;;  %s2481_s10 = sshll.u32 %s347_s8, 3  ;;  %v464_v39 = vrot.slane %v411_v36, 7  ;;  %v465_v48 = vrot.slane %v412_v41, 7  ;;  %v467_v55 = vrot.slane %v413_v49, 7  ;;  %v415_v57 = vld [vmem:[%s3188_s15 + $0x70] sm:$0xff] }
  0x1c   : > { %v3263_v27 = vsel %vm445_vm0, 0.0, %v458_v25  ;;  %v3277_v32 = vsel %vm445_vm0, %v459_v29, 0.0  ;;  %v3280_v33 = vsel %vm445_vm0, %v458_v25, %v459_v29  ;;  %s349_s13 = scalar_lea.vmem %s4135_s0, %s2481_s10  ;;  %v3295_v38 = vsel %vm445_vm0, 0.0, %v461_v34  ;;  %s2492_s19 = sshll.u32 %s375_s17, 3  ;;  %v416_v61 = vld [vmem:[%s3188_s15 + $0x78] sm:$0xff]  ;;  %v3417_v49 = vld [vmem:[%s4138_s3 + $0x28] sm:$0xff] }
  0x1d   : > { %548 = vrot.lane.b32.xlu1 %v3206_v11, %s3106_s16  ;;  %544 = vrot.lane.b32.xlu0 %v3209_v12, %s3106_s16  ;;  %v3292_v37 = vsel %vm445_vm0, %v461_v34, %v462_v35  ;;  %v3062_v40 = vld [vmem:[%s349_s13 + $0x8] sm:%s3061_s25]  ;;  %v3307_v46 = vsel %vm445_vm0, 0.0, %v464_v39  ;;  %v3310_v47 = vsel %vm445_vm0, %v462_v35, 0.0  ;;  %v3321_v53 = vsel %vm445_vm0, %v465_v48, 0.0  ;;  %s3055_s26 = scalar_select %p417_p7, 255, 0 }
  0x1e   : > { %v447_v42 = vrot.slane %v3062_v40, 7  ;;  %v3065_v43 = vld [vmem:[%s349_s13] sm:%s3061_s25]  ;;  %v3324_v54 = vsel %vm445_vm0, %v464_v39, %v465_v48  ;;  %v468_v56 = vrot.slane %v414_v50, 7  ;;  %v3336_v59 = vsel %vm445_vm0, 0.0, %v467_v55  ;;  %s377_s28 = scalar_lea.vmem %s4137_s2, %s2492_s19  ;;  %s2496_s11 = sshll.u32 %s3180_s9, 3 }
  0x1f   : > { %v446_v45 = vrot.slane %v3065_v43, 7  ;;  %v470_v60 = vrot.slane %v415_v57, 7  ;;  %v471_v0 = vrot.slane %v416_v61, 7  ;;  %v3056_v1 = vld [vmem:[%s377_s28] sm:%s3055_s26]  ;;  %v3059_v2 = vld [vmem:[%s377_s28 + $0x8] sm:%s3055_s26]  ;;  %s3894_s19 = scalar_lea.vmem %s4140_s5, %s2496_s11 }
  0x20   : > { %v515_v44 = vsel %vm445_vm0, %v447_v42, 0.0  ;;  %v3333_v58 = vsel %vm445_vm0, %v467_v55, %v468_v56  ;;  %v3352_v63 = vsel %vm445_vm0, %v468_v56, 0.0  ;;  %v473_v5 = vrot.slane %v3056_v1, 7  ;;  %v3385_v34 = vld [vmem:[%s4138_s3 + $0x20] sm:$0xff] }
  0x21   : > { %552 = vrot.lane.b32.xlu1 %v3219_v16, %s3106_s16  ;;  %550 = vrot.lane.b32.xlu0 %v3222_v17, %s3106_s16  ;;  %v505_v51 = vsel %vm445_vm0, 0.0, %v446_v45  ;;  %v448_v52 = vsel %vm445_vm0, %v446_v45, %v447_v42  ;;  %v3349_v62 = vsel %vm445_vm0, 0.0, %v470_v60  ;;  %v3359_v3 = vsel %vm445_vm0, %v471_v0, 0.0 }
  0x22   : > { %v3362_v4 = vsel %vm445_vm0, %v470_v60, %v471_v0  ;;  %v474_v6 = vrot.slane %v3059_v2, 7  ;;  %v514_v7 = vsel %vm445_vm0, 0.0, %v473_v5 }
  0x24   : > { %v475_v8 = vsel %vm445_vm0, %v473_v5, %v474_v6  ;;  %v524_v13 = vsel %vm445_vm0, %v474_v6, 0.0 }
  0x25   : > { %556 = vrot.lane.b32.xlu1 %v3246_v23, %s3106_s16  ;;  %554 = vrot.lane.b32.xlu0 %v3249_v24, %s3106_s16 }
  0x29   : > { %560 = vrot.lane.b32.xlu1 %v3263_v27, %s3106_s16  ;;  %558 = vrot.lane.b32.xlu0 %v3266_v28, %s3106_s16 }
  0x2d   : > { %564 = vrot.lane.b32.xlu1 %v3277_v32, %s3106_s16  ;;  %562 = vrot.lane.b32.xlu0 %v3280_v33, %s3106_s16 }
  0x31   : > { %568 = vrot.lane.b32.xlu1 %v3292_v37, %s3106_s16  ;;  %566 = vrot.lane.b32.xlu0 %v3295_v38, %s3106_s16 }
  0x35   : > { %572 = vrot.lane.b32.xlu1 %v3307_v46, %s3106_s16  ;;  %570 = vrot.lane.b32.xlu0 %v3310_v47, %s3106_s16 }
  0x39   : > { %576 = vrot.lane.b32.xlu1 %v3321_v53, %s3106_s16  ;;  %574 = vrot.lane.b32.xlu0 %v3324_v54, %s3106_s16 }
  0x3d   : > { %580 = vrot.lane.b32.xlu1 %v3333_v58, %s3106_s16  ;;  %578 = vrot.lane.b32.xlu0 %v3336_v59, %s3106_s16 }
  0x41   : > { %584 = vrot.lane.b32.xlu1 %v3349_v62, %s3106_s16  ;;  %582 = vrot.lane.b32.xlu0 %v3352_v63, %s3106_s16 }
  0x45   : > { %588 = vrot.lane.b32.xlu1 %v3359_v3, %s3106_s16  ;;  %586 = vrot.lane.b32.xlu0 %v3362_v4, %s3106_s16 }
  0x49   : > { %1566 = vrot.lane.b32.xlu0 %v514_v7, %s3106_s16  ;;  %1568 = vrot.lane.b32.xlu1 %v475_v8, %s3106_s16 }
  0x4d   : > { %1570 = vrot.lane.b32.xlu0 %v524_v13, %s3106_s16 }
  0x8b   : > { %v547_v14 = vpop.permute.xlu1 %546  ;;  %v543_v15 = vpop.permute.xlu0 %542 }
  0x8c   : > { %v615_v18 = vsel %vm614_vm1, %v505_v51, %v543_v15  ;;  %v617_v19 = vsel %vm614_vm1, %v515_v44, %v547_v14 }
  0x8d   : > { %2833 = vmatprep.mubr.msk.f32.mxu1 %vm707_vm2, %v615_v18  ;;  %v668_v26 = vrot.slane %v617_v19, 1  ;;  %v1106_v29 = vrot.slane %v617_v19, 2  ;;  %v665_v35 = vrot.slane %v615_v18, 1  ;;  %v1103_v36 = vrot.slane %v615_v18, 2 }
  0x8f   : > { %v549_v20 = vpop.permute.xlu1 %548  ;;  %v545_v25 = vpop.permute.xlu0 %544 }
  0x90   : > { %v3379_v30 = vsel %vm614_vm1, %v3198_v10, %v549_v20  ;;  %v616_v31 = vsel %vm614_vm1, %v448_v52, %v545_v25 }
  0x91   : > { %v666_v39 = vrot.slane %v616_v31, 1  ;;  %v1104_v40 = vrot.slane %v616_v31, 2  ;;  %2834 = vmatmul.mubr.msk.f32.vlgmr.msra.gmra.mxu1 %vm707_vm2, %v616_v31  ;;  %v670_v50 = vrot.slane %v3379_v30, 1 }
  0x92   : > { %2836 = vmatprep.mubr.msk.f32.mxu1 %vm707_vm2, %v3379_v30  ;;  %2884 = vmatpush3.msra.mxu1 %v3243_v22 }
  0x93   : > { %v553_v10 = vpop.permute.xlu1 %552  ;;  %v551_v41 = vpop.permute.xlu0 %550  ;;  %v3392_v42 = vsel %vm664_vm3, %v665_v35, %v666_v39  ;;  %v3395_v43 = vsel %vm664_vm3, %v666_v39, %v668_v26  ;;  %v3398_v44 = vsel %vm1102_vm4, %v1103_v36, %v1104_v40  ;;  %2935 = vmatprep.subr.mxu1 %v3385_v34  ;;  %v3402_v45 = vsel %vm1102_vm4, %v1104_v40, %v1106_v29 }
  0x94   : > { %v3406_v48 = vsel %vm614_vm1, %v3195_v9, %v553_v10  ;;  %v3410_v22 = vsel %vm614_vm1, %v3209_v12, %v551_v41  ;;  %2807 = vmatprep.mubr.msk.f32.mxu0 %vm707_vm2, %v3392_v42 }
  0x95   : > { %v673_v51 = vrot.slane %v3406_v48, 1  ;;  %v671_v52 = vrot.slane %v3410_v22, 1  ;;  %2808 = vmatmul.mubr.msk.f32.vlgmr.msra.gmra.mxu0 %vm707_vm2, %v3395_v43  ;;  %2837 = vmatmul.mubr.msk.f32.gmra.mxu1 %vm707_vm2, %v3410_v22 }
  0x96   : > { %2858 = vmatpush3.msra.mxu0 %v3238_v21 }
  0x97   : > { %v557_v9 = vpop.permute.xlu1 %556  ;;  %v555_v12 = vpop.permute.xlu0 %554  ;;  %v3428_v55 = vsel %vm664_vm3, %v670_v50, %v671_v52  ;;  %v3431_v56 = vsel %vm664_vm3, %v671_v52, %v673_v51  ;;  %2909 = vmatprep.subr.mxu0 %v3417_v49 }
  0x98   : > { %v3436_v57 = vsel %vm614_vm1, %v3222_v17, %v557_v9  ;;  %v3440_v60 = vsel %vm614_vm1, %v3206_v11, %v555_v12  ;;  %2810 = vmatprep.mubr.msk.f32.mxu0 %vm707_vm2, %v3428_v55 }
  0x99   : > { %v676_v21 = vrot.slane %v3436_v57, 1  ;;  %v675_v61 = vrot.slane %v3440_v60, 1  ;;  %2811 = vmatmul.mubr.msk.f32.gmra.mxu0 %vm707_vm2, %v3431_v56  ;;  %2839 = vmatprep.mubr.msk.f32.mxu1 %vm707_vm2, %v3440_v60 }
  0x9a   : > { %2840 = vmatmul.mubr.msk.f32.gmra.mxu1 %vm707_vm2, %v3436_v57 }
  0x9b   : > { %v561_v17 = vpop.permute.xlu1 %560  ;;  %v559_v0 = vpop.permute.xlu0 %558  ;;  %v3453_v11 = vsel %vm664_vm3, %v675_v61, %v676_v21 }
  0x9c   : > { %v3457_v1 = vsel %vm614_vm1, %v3249_v24, %v561_v17  ;;  %v3461_v2 = vsel %vm614_vm1, %v3219_v16, %v559_v0  ;;  %2813 = vmatprep.mubr.msk.f32.mxu0 %vm707_vm2, %v3453_v11 }
  0x9d   : > { %v678_v5 = vrot.slane %v3461_v2, 1  ;;  %2842 = vmatprep.mubr.msk.f32.mxu1 %vm707_vm2, %v3457_v1  ;;  %v680_v13 = vrot.slane %v3457_v1, 1 }
  0x9f   : > { %v565_v6 = vpop.permute.xlu1 %564  ;;  %v563_v7 = vpop.permute.xlu0 %562  ;;  %v3469_v8 = vsel %vm664_vm3, %v676_v21, %v678_v5 }
  0xa0   : > { %v3473_v24 = vsel %vm614_vm1, %v3266_v28, %v565_v6  ;;  %v3477_v16 = vsel %vm614_vm1, %v3246_v23, %v563_v7  ;;  %2814 = vmatmul.mubr.msk.f32.gmra.mxu0 %vm707_vm2, %v3469_v8 }
  0xa1   : > { %v683_v14 = vrot.slane %v3473_v24, 1  ;;  %v681_v15 = vrot.slane %v3477_v16, 1  ;;  %2843 = vmatmul.mubr.msk.f32.gmra.mxu1 %vm707_vm2, %v3477_v16 }
  0xa3   : > { %v569_v18 = vpop.permute.xlu1 %568  ;;  %v567_v19 = vpop.permute.xlu0 %566  ;;  %v3487_v28 = vsel %vm664_vm3, %v680_v13, %v681_v15  ;;  %v3490_v23 = vsel %vm664_vm3, %v681_v15, %v683_v14 }
  0xa4   : > { %v3494_v20 = vsel %vm614_vm1, %v3280_v33, %v569_v18  ;;  %v3498_v25 = vsel %vm614_vm1, %v3263_v27, %v567_v19  ;;  %2816 = vmatprep.mubr.msk.f32.mxu0 %vm707_vm2, %v3487_v28 }
  0xa5   : > { %v686_v26 = vrot.slane %v3494_v20, 1  ;;  %v685_v29 = vrot.slane %v3498_v25, 1  ;;  %2817 = vmatmul.mubr.msk.f32.gmra.mxu0 %vm707_vm2, %v3490_v23  ;;  %2845 = vmatprep.mubr.msk.f32.mxu1 %vm707_vm2, %v3498_v25 }
  0xa6   : > { %2846 = vmatmul.mubr.msk.f32.gmra.mxu1 %vm707_vm2, %v3494_v20 }
  0xa7   : > { %v573_v33 = vpop.permute.xlu1 %572  ;;  %v571_v31 = vpop.permute.xlu0 %570  ;;  %v3511_v27 = vsel %vm664_vm3, %v685_v29, %v686_v26 }
  0xa8   : > { %v3515_v35 = vsel %vm614_vm1, %v3295_v38, %v573_v33  ;;  %v3519_v36 = vsel %vm614_vm1, %v3277_v32, %v571_v31  ;;  %2819 = vmatprep.mubr.msk.f32.mxu0 %vm707_vm2, %v3511_v27  ;;  %v1109_v33 = vrot.slane %v3410_v22, 2  ;;  %v1108_v31 = vrot.slane %v3379_v30, 2 }
  0xa9   : > { %v688_v39 = vrot.slane %v3519_v36, 1  ;;  %2848 = vmatprep.mubr.msk.f32.mxu1 %vm707_vm2, %v3515_v35  ;;  %v690_v50 = vrot.slane %v3515_v35, 1 }
  0xab   : > { %v577_v40 = vpop.permute.xlu1 %576  ;;  %v575_v10 = vpop.permute.xlu0 %574  ;;  %v3527_v41 = vsel %vm664_vm3, %v686_v26, %v688_v39  ;;  %v1111_v39 = vrot.slane %v3406_v48, 2  ;;  %v1116_v48 = vrot.slane %v3461_v2, 2  ;;  %v1118_v2 = vrot.slane %v3457_v1, 2 }
  0xac   : > { %v3531_v38 = vsel %vm614_vm1, %v3310_v47, %v577_v40  ;;  %v3535_v32 = vsel %vm614_vm1, %v3292_v37, %v575_v10  ;;  %2820 = vmatmul.mubr.msk.f32.gmra.mxu0 %vm707_vm2, %v3527_v41  ;;  %v1114_v40 = vrot.slane %v3436_v57, 2  ;;  %v1119_v10 = vrot.slane %v3477_v16, 2 }
  0xad   : > { %v693_v51 = vrot.slane %v3531_v38, 1  ;;  %v691_v52 = vrot.slane %v3535_v32, 1  ;;  %2849 = vmatmul.mubr.msk.f32.gmra.mxu1 %vm707_vm2, %v3535_v32 }
  0xaf   : > { %v581_v9 = vpop.permute.xlu1 %580  ;;  %v579_v12 = vpop.permute.xlu0 %578  ;;  %v3545_v47 = vsel %vm664_vm3, %v690_v50, %v691_v52  ;;  %v3548_v37 = vsel %vm664_vm3, %v691_v52, %v693_v51  ;;  %v1121_v50 = vrot.slane %v3473_v24, 2  ;;  %v3669_v51 = vsel %vm1102_vm4, %v1114_v40, %v1116_v48 }
  0xb0   : > { %v3552_v21 = vsel %vm614_vm1, %v3324_v54, %v581_v9  ;;  %v3556_v61 = vsel %vm614_vm1, %v3307_v46, %v579_v12  ;;  %2822 = vmatprep.mubr.msk.f32.mxu0 %vm707_vm2, %v3545_v47  ;;  %v1124_v52 = vrot.slane %v3494_v20, 2  ;;  %v1123_v9 = vrot.slane %v3498_v25, 2 }
  0xb1   : > { %v696_v17 = vrot.slane %v3552_v21, 1  ;;  %v695_v0 = vrot.slane %v3556_v61, 1  ;;  %2823 = vmatmul.mubr.msk.f32.gmra.mxu0 %vm707_vm2, %v3548_v37  ;;  %2851 = vmatprep.mubr.msk.f32.mxu1 %vm707_vm2, %v3556_v61  ;;  %v3678_v12 = vsel %vm1102_vm4, %v1118_v2, %v1119_v10  ;;  %v1126_v24 = vrot.slane %v3519_v36, 2 }
  0xb2   : > { %2852 = vmatmul.mubr.msk.f32.gmra.mxu1 %vm707_vm2, %v3552_v21  ;;  %v1128_v36 = vrot.slane %v3515_v35, 2 }
  0xb3   : > { %v585_v54 = vpop.permute.xlu1 %584  ;;  %v583_v5 = vpop.permute.xlu0 %582  ;;  %v3569_v46 = vsel %vm664_vm3, %v695_v0, %v696_v17  ;;  %v1129_v0 = vrot.slane %v3535_v32, 2 }
  0xb4   : > { %v3573_v6 = vsel %vm614_vm1, %v3336_v59, %v585_v54  ;;  %v3577_v7 = vsel %vm614_vm1, %v3321_v53, %v583_v5  ;;  %2825 = vmatprep.mubr.msk.f32.mxu0 %vm707_vm2, %v3569_v46  ;;  %v3694_v54 = vsel %vm1102_vm4, %v1123_v9, %v1124_v52  ;;  %v1131_v5 = vrot.slane %v3531_v38, 2 }
  0xb5   : > { %v698_v13 = vrot.slane %v3577_v7, 1  ;;  %2854 = vmatprep.mubr.msk.f32.mxu1 %vm707_vm2, %v3573_v6  ;;  %v700_v19 = vrot.slane %v3573_v6, 1  ;;  %v1136_v38 = vrot.slane %v3577_v7, 2  ;;  %v1138_v7 = vrot.slane %v3573_v6, 2 }
  0xb7   : > { %v589_v14 = vpop.permute.xlu1 %588  ;;  %v587_v15 = vpop.permute.xlu0 %586  ;;  %v3585_v18 = vsel %vm664_vm3, %v696_v17, %v698_v13  ;;  %v3686_v17 = vsel %vm1102_vm4, %v1119_v10, %v1121_v50  ;;  %v3703_v13 = vsel %vm1102_vm4, %v1124_v52, %v1126_v24 }
  0xb8   : > { %v3589_v59 = vsel %vm614_vm1, %v3352_v63, %v589_v14  ;;  %v3593_v53 = vsel %vm614_vm1, %v3333_v58, %v587_v15  ;;  %2826 = vmatmul.mubr.msk.f32.gmra.mxu0 %vm707_vm2, %v3585_v18  ;;  %v1134_v14 = vrot.slane %v3552_v21, 2  ;;  %v1133_v15 = vrot.slane %v3556_v61, 2 }
  0xb9   : > { %v703_v26 = vrot.slane %v3589_v59, 1  ;;  %v701_v29 = vrot.slane %v3593_v53, 1  ;;  %2855 = vmatmul.mubr.msk.f32.gmra.mxu1 %vm707_vm2, %v3593_v53 }
  0xba   : > { %2885 = vmatprep.mubr.msk.f32.mxu1 %vm707_vm2, %v3392_v42  ;;  %v3620_v42 = vld [vmem:[%s4138_s3 + $0x30] sm:$0xff] }
  0xbb   : > { %v3605_v63 = vsel %vm664_vm3, %v700_v19, %v701_v29  ;;  %v3608_v58 = vsel %vm664_vm3, %v701_v29, %v703_v26  ;;  %v3712_v19 = vsel %vm1102_vm4, %v1128_v36, %v1129_v0  ;;  %v3720_v26 = vsel %vm1102_vm4, %v1129_v0, %v1131_v5 }
  0xbc   : > { %2828 = vmatprep.mubr.msk.f32.mxu0 %vm707_vm2, %v3605_v63  ;;  %v1139_v29 = vrot.slane %v3593_v53, 2 }
  0xbd   : > { %2829 = vmatmul.mubr.msk.f32.gmra.mxu0 %vm707_vm2, %v3608_v58  ;;  %2886 = vmatmul.mubr.msk.f32.vlgmr.msra.gmra.mxu1 %vm707_vm2, %v3395_v43  ;;  %v3632_v43 = vld [vmem:[%s4138_s3 + $0x38] sm:$0xff] }
  0xbe   : > { %2859 = vmatprep.mubr.msk.f32.mxu0 %vm707_vm2, %v3398_v44  ;;  %2888 = vmatprep.mubr.msk.f32.mxu1 %vm707_vm2, %v3428_v55  ;;  %v1113_v44 = vrot.slane %v3440_v60, 2 }
  0xbf   : > { %2936 = vmatpush3.msra.mxu1 %v3385_v34  ;;  %v3642_v34 = vsel %vm1102_vm4, %v1108_v31, %v1109_v33  ;;  %v1141_v31 = vrot.slane %v3589_v59, 2 }
  0xc0   : > { %2987 = vmatprep.subr.mxu1 %v3620_v42 }
  0xc1   : > { %2860 = vmatmul.mubr.msk.f32.vlgmr.msra.gmra.mxu0 %vm707_vm2, %v3402_v45  ;;  %2889 = vmatmul.mubr.msk.f32.gmra.mxu1 %vm707_vm2, %v3431_v56  ;;  %v3652_v45 = vsel %vm1102_vm4, %v1109_v33, %v1111_v39  ;;  %v3728_v33 = vsel %vm1102_vm4, %v1133_v15, %v1134_v14  ;;  %v3737_v39 = vsel %vm1102_vm4, %v1134_v14, %v1136_v38 }
  0xc2   : > { %2910 = vmatpush3.msra.mxu0 %v3417_v49  ;;  %2862 = vmatprep.mubr.msk.f32.mxu0 %vm707_vm2, %v3642_v34  ;;  %v3660_v49 = vsel %vm1102_vm4, %v1113_v44, %v1114_v40  ;;  %v3744_v40 = vsel %vm1102_vm4, %v1138_v7, %v1139_v29  ;;  %v3751_v59 = vsel %vm1102_vm4, %v1139_v29, %v1141_v31 }
  0xc3   : > { %2891 = vmatprep.mubr.msk.f32.mxu1 %vm707_vm2, %v3453_v11  ;;  %2961 = vmatprep.subr.mxu0 %v3632_v43 }
  0xc5   : > { %2863 = vmatmul.mubr.msk.f32.gmra.mxu0 %vm707_vm2, %v3652_v45  ;;  %2892 = vmatmul.mubr.msk.f32.gmra.mxu1 %vm707_vm2, %v3469_v8 }
  0xc6   : > { %2865 = vmatprep.mubr.msk.f32.mxu0 %vm707_vm2, %v3660_v49  ;;  %2894 = vmatprep.mubr.msk.f32.mxu1 %vm707_vm2, %v3487_v28 }
  0xc9   : > { %2866 = vmatmul.mubr.msk.f32.gmra.mxu0 %vm707_vm2, %v3669_v51  ;;  %2895 = vmatmul.mubr.msk.f32.gmra.mxu1 %vm707_vm2, %v3490_v23 }
  0xca   : > { %2868 = vmatprep.mubr.msk.f32.mxu0 %vm707_vm2, %v3678_v12  ;;  %2897 = vmatprep.mubr.msk.f32.mxu1 %vm707_vm2, %v3511_v27 }
  0xcd   : > { %2869 = vmatmul.mubr.msk.f32.gmra.mxu0 %vm707_vm2, %v3686_v17  ;;  %2898 = vmatmul.mubr.msk.f32.gmra.mxu1 %vm707_vm2, %v3527_v41 }
  0xce   : > { %2871 = vmatprep.mubr.msk.f32.mxu0 %vm707_vm2, %v3694_v54  ;;  %2900 = vmatprep.mubr.msk.f32.mxu1 %vm707_vm2, %v3545_v47 }
  0xd1   : > { %2872 = vmatmul.mubr.msk.f32.gmra.mxu0 %vm707_vm2, %v3703_v13  ;;  %2901 = vmatmul.mubr.msk.f32.gmra.mxu1 %vm707_vm2, %v3548_v37 }
  0xd2   : > { %2874 = vmatprep.mubr.msk.f32.mxu0 %vm707_vm2, %v3712_v19  ;;  %2903 = vmatprep.mubr.msk.f32.mxu1 %vm707_vm2, %v3569_v46 }
  0xd5   : > { %2875 = vmatmul.mubr.msk.f32.gmra.mxu0 %vm707_vm2, %v3720_v26  ;;  %2904 = vmatmul.mubr.msk.f32.gmra.mxu1 %vm707_vm2, %v3585_v18 }
  0xd6   : > { %2877 = vmatprep.mubr.msk.f32.mxu0 %vm707_vm2, %v3728_v33  ;;  %2906 = vmatprep.mubr.msk.f32.mxu1 %vm707_vm2, %v3605_v63 }
  0xd9   : > { %2878 = vmatmul.mubr.msk.f32.gmra.mxu0 %vm707_vm2, %v3737_v39  ;;  %2907 = vmatmul.mubr.msk.f32.gmra.mxu1 %vm707_vm2, %v3608_v58 }
  0xda   : > { %2880 = vmatprep.mubr.msk.f32.mxu0 %vm707_vm2, %v3744_v40  ;;  %2937 = vmatprep.mubr.msk.f32.mxu1 %vm707_vm2, %v3379_v30  ;;  %v1567_v30 = vpop.permute.xlu0 %1566 }
  0xdd   : > { %2881 = vmatmul.mubr.msk.f32.gmra.mxu0 %vm707_vm2, %v3751_v59  ;;  %2938 = vmatmul.mubr.msk.f32.vlgmr.msra.gmra.mxu1 %vm707_vm2, %v3410_v22  ;;  %v1569_v22 = vpop.permute.xlu1 %1568 }
  0xde   : > { %2911 = vmatprep.mubr.msk.f32.mxu0 %vm707_vm2, %v3428_v55  ;;  %2940 = vmatprep.mubr.msk.f32.mxu1 %vm707_vm2, %v3440_v60  ;;  %v1576_v60 = vsel %vm614_vm1, %v3362_v4, %v1569_v22 }
  0xdf   : > { %2988 = vmatpush3.msra.mxu1 %v3620_v42 }
  0xe1   : > { %2912 = vmatmul.mubr.msk.f32.vlgmr.msra.gmra.mxu0 %vm707_vm2, %v3431_v56  ;;  %2941 = vmatmul.mubr.msk.f32.gmra.mxu1 %vm707_vm2, %v3436_v57  ;;  %v1575_v57 = vsel %vm614_vm1, %v3349_v62, %v1567_v30 }
  0xe2   : > { %2962 = vmatpush3.msra.mxu0 %v3632_v43  ;;  %2914 = vmatprep.mubr.msk.f32.mxu0 %vm707_vm2, %v3453_v11 }
  0xe3   : > { %2943 = vmatprep.mubr.msk.f32.mxu1 %vm707_vm2, %v3457_v1  ;;  %v1571_v1 = vpop.permute.xlu0 %1570 }
  0xe4   : > { %v1577_v62 = vsel %vm614_vm1, %v3359_v3, %v1571_v1 }
  0xe5   : > { %2915 = vmatmul.mubr.msk.f32.gmra.mxu0 %vm707_vm2, %v3469_v8  ;;  %2944 = vmatmul.mubr.msk.f32.gmra.mxu1 %vm707_vm2, %v3477_v16  ;;  %v1583_v16 = vrot.slane %v1575_v57, 1  ;;  %v1586_v4 = vrot.slane %v1577_v62, 1 }
  0xe6   : > { %2917 = vmatprep.mubr.msk.f32.mxu0 %vm707_vm2, %v3487_v28  ;;  %2946 = vmatprep.mubr.msk.f32.mxu1 %vm707_vm2, %v3498_v25 }
  0xe9   : > { %2918 = vmatmul.mubr.msk.f32.gmra.mxu0 %vm707_vm2, %v3490_v23  ;;  %2947 = vmatmul.mubr.msk.f32.gmra.mxu1 %vm707_vm2, %v3494_v20  ;;  %v1584_v20 = vrot.slane %v1576_v60, 1 }
  0xea   : > { %2920 = vmatprep.mubr.msk.f32.mxu0 %vm707_vm2, %v3511_v27  ;;  %2949 = vmatprep.mubr.msk.f32.mxu1 %vm707_vm2, %v3515_v35  ;;  %v3889_v35 = vld [vmem:[%s4139_s4] ss:$0 sm:$0xff] }
  0xeb   : > { %v1585_v25 = vsel %vm664_vm3, %v1583_v16, %v1584_v20  ;;  %v1587_v3 = vsel %vm664_vm3, %v1584_v20, %v1586_v4 }
  0xed   : > { %2921 = vmatmul.mubr.msk.f32.gmra.mxu0 %vm707_vm2, %v3527_v41  ;;  %2950 = vmatmul.mubr.msk.f32.gmra.mxu1 %vm707_vm2, %v3535_v32 }
  0xee   : > { %2923 = vmatprep.mubr.msk.f32.mxu0 %vm707_vm2, %v3545_v47  ;;  %2952 = vmatprep.mubr.msk.f32.mxu1 %vm707_vm2, %v3556_v61 }
  0xf1   : > { %2924 = vmatmul.mubr.msk.f32.gmra.mxu0 %vm707_vm2, %v3548_v37  ;;  %2953 = vmatmul.mubr.msk.f32.gmra.mxu1 %vm707_vm2, %v3552_v21 }
  0xf2   : > { %2926 = vmatprep.mubr.msk.f32.mxu0 %vm707_vm2, %v3569_v46  ;;  %2955 = vmatprep.mubr.msk.f32.mxu1 %vm707_vm2, %v3573_v6 }
  0xf5   : > { %2927 = vmatmul.mubr.msk.f32.gmra.mxu0 %vm707_vm2, %v3585_v18  ;;  %2956 = vmatmul.mubr.msk.f32.gmra.mxu1 %vm707_vm2, %v3593_v53 }
  0xf6   : > { %2929 = vmatprep.mubr.msk.f32.mxu0 %vm707_vm2, %v3605_v63  ;;  %2958 = vmatprep.mubr.msk.f32.mxu1 %vm707_vm2, %v1575_v57 }
  0xf9   : > { %2930 = vmatmul.mubr.msk.f32.gmra.mxu0 %vm707_vm2, %v3608_v58  ;;  %2959 = vmatmul.mubr.msk.f32.gmra.mxu1 %vm707_vm2, %v1576_v60 }
  0xfa   : > { %2932 = vmatprep.mubr.msk.f32.mxu0 %vm707_vm2, %v1585_v25  ;;  %2989 = vmatprep.mubr.msk.f32.mxu1 %vm707_vm2, %v3428_v55  ;;  %v1923_v55 = vrot.slane %v1575_v57, 2 }
  0xfd   : > { %2933 = vmatmul.mubr.msk.f32.gmra.mxu0 %vm707_vm2, %v1587_v3  ;;  %2990 = vmatmul.mubr.msk.f32.vlgmr.msra.gmra.mxu1 %vm707_vm2, %v3431_v56  ;;  %v1924_v56 = vrot.slane %v1576_v60, 2 }
  0xfe   : > { %2963 = vmatprep.mubr.msk.f32.mxu0 %vm707_vm2, %v3642_v34  ;;  %2992 = vmatprep.mubr.msk.f32.mxu1 %vm707_vm2, %v3453_v11  ;;  %v1926_v11 = vrot.slane %v1577_v62, 2 }
 0x101   : > { %2964 = vmatmul.mubr.msk.f32.vlgmr.msra.gmra.mxu0 %vm707_vm2, %v3652_v45  ;;  %2993 = vmatmul.mubr.msk.f32.gmra.mxu1 %vm707_vm2, %v3469_v8  ;;  %v1925_v8 = vsel %vm1102_vm4, %v1923_v55, %v1924_v56 }
 0x102   : > { %2966 = vmatprep.mubr.msk.f32.mxu0 %vm707_vm2, %v3660_v49  ;;  %2995 = vmatprep.mubr.msk.f32.mxu1 %vm707_vm2, %v3487_v28  ;;  %v1927_v28 = vsel %vm1102_vm4, %v1924_v56, %v1926_v11 }
 0x105   : > { %2967 = vmatmul.mubr.msk.f32.gmra.mxu0 %vm707_vm2, %v3669_v51  ;;  %2996 = vmatmul.mubr.msk.f32.gmra.mxu1 %vm707_vm2, %v3490_v23 }
 0x106   : > { %2969 = vmatprep.mubr.msk.f32.mxu0 %vm707_vm2, %v3678_v12  ;;  %2998 = vmatprep.mubr.msk.f32.mxu1 %vm707_vm2, %v3511_v27 }
 0x109   : > { %2970 = vmatmul.mubr.msk.f32.gmra.mxu0 %vm707_vm2, %v3686_v17  ;;  %2999 = vmatmul.mubr.msk.f32.gmra.mxu1 %vm707_vm2, %v3527_v41 }
 0x10a   : > { %2972 = vmatprep.mubr.msk.f32.mxu0 %vm707_vm2, %v3694_v54  ;;  %3001 = vmatprep.mubr.msk.f32.mxu1 %vm707_vm2, %v3545_v47 }
 0x10d   : > { %2973 = vmatmul.mubr.msk.f32.gmra.mxu0 %vm707_vm2, %v3703_v13  ;;  %3002 = vmatmul.mubr.msk.f32.gmra.mxu1 %vm707_vm2, %v3548_v37 }
 0x10e   : > { %2975 = vmatprep.mubr.msk.f32.mxu0 %vm707_vm2, %v3712_v19  ;;  %3004 = vmatprep.mubr.msk.f32.mxu1 %vm707_vm2, %v3569_v46 }
 0x111   : > { %2976 = vmatmul.mubr.msk.f32.gmra.mxu0 %vm707_vm2, %v3720_v26  ;;  %3005 = vmatmul.mubr.msk.f32.gmra.mxu1 %vm707_vm2, %v3585_v18 }
 0x112   : > { %2978 = vmatprep.mubr.msk.f32.mxu0 %vm707_vm2, %v3728_v33  ;;  %3007 = vmatprep.mubr.msk.f32.mxu1 %vm707_vm2, %v3605_v63 }
 0x115   : > { %2979 = vmatmul.mubr.msk.f32.gmra.mxu0 %vm707_vm2, %v3737_v39  ;;  %3008 = vmatmul.mubr.msk.f32.gmra.mxu1 %vm707_vm2, %v3608_v58 }
 0x116   : > { %2981 = vmatprep.mubr.msk.f32.mxu0 %vm707_vm2, %v3744_v40  ;;  %3010 = vmatprep.mubr.msk.f32.mxu1 %vm707_vm2, %v1585_v25 }
 0x119   : > { %2982 = vmatmul.mubr.msk.f32.gmra.mxu0 %vm707_vm2, %v3751_v59  ;;  %3011 = vmatmul.mubr.msk.f32.gmra.mxu1 %vm707_vm2, %v1587_v3 }
 0x11a   : > { %2984 = vmatprep.mubr.msk.f32.mxu0 %vm707_vm2, %v1925_v8 }
 0x11d   : > { %2985 = vmatmul.mubr.msk.f32.gmra.mxu0 %vm707_vm2, %v1927_v28 }
 0x151   : > { %v2835_v23 = vpop.f32.mrf.mxu1 }
 0x153   : > { %v983_v27 = vpop.f32.mrf.mxu1 }
 0x155   : > { %v2809_v41 = vpop.f32.mrf.mxu0  ;;  %v2838_v32 = vpop.f32.mrf.mxu1 }
 0x156   : > { %v989_v47 = vadd.f32 %v2835_v23, %v2809_v41 }
 0x157   : > { %v806_v37 = vpop.f32.mrf.mxu0  ;;  %v993_v21 = vpop.f32.mrf.mxu1 }
 0x158   : > { %v1069_v61 = vadd.f32 %v3889_v35, %v989_v47  ;;  %v984_v46 = vadd.f32 %v983_v27, %v806_v37 }
 0x159   : > { %v2812_v6 = vpop.f32.mrf.mxu0 }
 0x15a   : > { %1085 = vst.msk [vmem:[%s3894_s19 + $0x8] sm:$0xff] %vm614_vm1, %v1069_v61  ;;  %v1068_v18 = vadd.f32 %v3889_v35, %v984_v46  ;;  %v999_v53 = vadd.f32 %v2838_v32, %v2812_v6  ;;  %v2841_v63 = vpop.f32.mrf.mxu1 }
 0x15b   : > { %v816_v58 = vpop.f32.mrf.mxu0 }
 0x15c   : > { %1084 = vst.msk [vmem:[%s3894_s19] sm:$0xff] %vm614_vm1, %v1068_v18  ;;  %v1071_v42 = vadd.f32 %v3889_v35, %v999_v53  ;;  %v994_v43 = vadd.f32 %v993_v21, %v816_v58  ;;  %v1003_v34 = vpop.f32.mrf.mxu1 }
 0x15e   : > { %1087 = vst.msk [vmem:[%s3894_s19 + $0x28] sm:$0xff] %vm614_vm1, %v1071_v42  ;;  %v1070_v44 = vadd.f32 %v3889_v35, %v994_v43 }
 0x160   : > { %1086 = vst.msk [vmem:[%s3894_s19 + $0x20] sm:$0xff] %vm614_vm1, %v1070_v44  ;;  %v2815_v48 = vpop.f32.mrf.mxu0 }
 0x161   : > { %v1009_v45 = vadd.f32 %v2841_v63, %v2815_v48  ;;  %v2844_v10 = vpop.f32.mrf.mxu1 }
 0x162   : > { %v826_v49 = vpop.f32.mrf.mxu0 }
 0x163   : > { %v1073_v2 = vadd.f32 %v3889_v35, %v1009_v45  ;;  %v1004_v50 = vadd.f32 %v1003_v34, %v826_v49  ;;  %v1013_v51 = vpop.f32.mrf.mxu1 }
 0x165   : > { %1089 = vst.msk [vmem:[%s3894_s19 + $0x48] sm:$0xff] %vm614_vm1, %v1073_v2  ;;  %v1072_v52 = vadd.f32 %v3889_v35, %v1004_v50  ;;  %v2818_v9 = vpop.f32.mrf.mxu0 }
 0x166   : > { %v1019_v12 = vadd.f32 %v2844_v10, %v2818_v9  ;;  %v2847_v24 = vpop.f32.mrf.mxu1 }
 0x167   : > { %1088 = vst.msk [vmem:[%s3894_s19 + $0x40] sm:$0xff] %vm614_vm1, %v1072_v52  ;;  %v836_v17 = vpop.f32.mrf.mxu0 }
 0x168   : > { %v1075_v0 = vadd.f32 %v3889_v35, %v1019_v12  ;;  %v1014_v54 = vadd.f32 %v1013_v51, %v836_v17  ;;  %v1023_v5 = vpop.f32.mrf.mxu1 }
 0x16a   : > { %1091 = vst.msk [vmem:[%s3894_s19 + $0x68] sm:$0xff] %vm614_vm1, %v1075_v0  ;;  %v1074_v36 = vadd.f32 %v3889_v35, %v1014_v54 }
 0x16c   : > { %1090 = vst.msk [vmem:[%s3894_s19 + $0x60] sm:$0xff] %vm614_vm1, %v1074_v36  ;;  %v2821_v13 = vpop.f32.mrf.mxu0 }
 0x16d   : > { %v1029_v14 = vadd.f32 %v2847_v24, %v2821_v13  ;;  %v2850_v15 = vpop.f32.mrf.mxu1 }
 0x16e   : > { %v846_v19 = vpop.f32.mrf.mxu0 }
 0x16f   : > { %v1077_v38 = vadd.f32 %v3889_v35, %v1029_v14  ;;  %v1024_v26 = vadd.f32 %v1023_v5, %v846_v19  ;;  %v1033_v29 = vpop.f32.mrf.mxu1 }
 0x171   : > { %1093 = vst.msk [vmem:[%s3894_s19 + $0x88] sm:$0xff] %vm614_vm1, %v1077_v38  ;;  %v1076_v33 = vadd.f32 %v3889_v35, %v1024_v26  ;;  %v2824_v7 = vpop.f32.mrf.mxu0 }
 0x172   : > { %v1039_v31 = vadd.f32 %v2850_v15, %v2824_v7  ;;  %v2853_v39 = vpop.f32.mrf.mxu1 }
 0x173   : > { %1092 = vst.msk [vmem:[%s3894_s19 + $0x80] sm:$0xff] %vm614_vm1, %v1076_v33  ;;  %v856_v40 = vpop.f32.mrf.mxu0 }
 0x174   : > { %v1079_v59 = vadd.f32 %v3889_v35, %v1039_v31  ;;  %v1034_v30 = vadd.f32 %v1033_v29, %v856_v40  ;;  %v1043_v57 = vpop.f32.mrf.mxu1 }
 0x176   : > { %1095 = vst.msk [vmem:[%s3894_s19 + $0xa8] sm:$0xff] %vm614_vm1, %v1079_v59  ;;  %v1078_v22 = vadd.f32 %v3889_v35, %v1034_v30 }
 0x178   : > { %1094 = vst.msk [vmem:[%s3894_s19 + $0xa0] sm:$0xff] %vm614_vm1, %v1078_v22  ;;  %v2827_v60 = vpop.f32.mrf.mxu0 }
 0x179   : > { %v1049_v1 = vadd.f32 %v2853_v39, %v2827_v60  ;;  %v2856_v16 = vpop.f32.mrf.mxu1 }
 0x17a   : > { %v866_v20 = vpop.f32.mrf.mxu0 }
 0x17b   : > { %v1081_v62 = vadd.f32 %v3889_v35, %v1049_v1  ;;  %v1044_v4 = vadd.f32 %v1043_v57, %v866_v20  ;;  %v1053_v25 = vpop.f32.mrf.mxu1 }
 0x17d   : > { %1097 = vst.msk [vmem:[%s3894_s19 + $0xc8] sm:$0xff] %vm614_vm1, %v1081_v62  ;;  %v1080_v3 = vadd.f32 %v3889_v35, %v1044_v4  ;;  %v2830_v55 = vpop.f32.mrf.mxu0  ;;  %v2887_v56 = vpop.f32.mrf.mxu1 }
 0x17e   : > { %v1059_v11 = vadd.f32 %v2856_v16, %v2830_v55 }
 0x17f   : > { %1096 = vst.msk [vmem:[%s3894_s19 + $0xc0] sm:$0xff] %vm614_vm1, %v1080_v3  ;;  %v876_v8 = vpop.f32.mrf.mxu0  ;;  %v1388_v28 = vpop.f32.mrf.mxu1 }
 0x180   : > { %v1083_v23 = vadd.f32 %v3889_v35, %v1059_v11  ;;  %v1054_v27 = vadd.f32 %v1053_v25, %v876_v8 }
 0x181   : > { %v2861_v41 = vpop.f32.mrf.mxu0  ;;  %v2890_v32 = vpop.f32.mrf.mxu1 }
 0x182   : > { %1099 = vst.msk [vmem:[%s3894_s19 + $0xe8] sm:$0xff] %vm614_vm1, %v1083_v23  ;;  %v1082_v47 = vadd.f32 %v3889_v35, %v1054_v27  ;;  %v1394_v37 = vadd.f32 %v2887_v56, %v2861_v41 }
 0x183   : > { %v1243_v21 = vpop.f32.mrf.mxu0  ;;  %v1398_v61 = vpop.f32.mrf.mxu1 }
 0x184   : > { %1098 = vst.msk [vmem:[%s3894_s19 + $0xe0] sm:$0xff] %vm614_vm1, %v1082_v47  ;;  %v1468_v46 = vadd.f32 %v3889_v35, %v1394_v37  ;;  %v1389_v6 = vadd.f32 %v1388_v28, %v1243_v21 }
 0x185   : > { %v2864_v18 = vpop.f32.mrf.mxu0  ;;  %v2893_v53 = vpop.f32.mrf.mxu1 }
 0x186   : > { %v1467_v63 = vadd.f32 %v3889_v35, %v1389_v6  ;;  %v1404_v58 = vadd.f32 %v2890_v32, %v2864_v18  ;;  %1501 = vrot.lane.b32.xlu0 %v1468_v46, %s3106_s16 }
 0x187   : > { %v1253_v42 = vpop.f32.mrf.mxu0  ;;  %v1408_v43 = vpop.f32.mrf.mxu1 }
 0x188   : > { %v1470_v44 = vadd.f32 %v3889_v35, %v1404_v58  ;;  %v1399_v34 = vadd.f32 %v1398_v61, %v1253_v42  ;;  %1499 = vrot.lane.b32.xlu1 %v1467_v63, %s3106_s16 }
 0x189   : > { %v2867_v48 = vpop.f32.mrf.mxu0  ;;  %v2896_v45 = vpop.f32.mrf.mxu1 }
 0x18a   : > { %v1469_v10 = vadd.f32 %v3889_v35, %v1399_v34  ;;  %v1414_v49 = vadd.f32 %v2893_v53, %v2867_v48  ;;  %1505 = vrot.lane.b32.xlu0 %v1470_v44, %s3106_s16 }
 0x18b   : > { %v1263_v2 = vpop.f32.mrf.mxu0  ;;  %v1418_v50 = vpop.f32.mrf.mxu1 }
 0x18c   : > { %v1472_v51 = vadd.f32 %v3889_v35, %v1414_v49  ;;  %v1409_v52 = vadd.f32 %v1408_v43, %v1263_v2  ;;  %1503 = vrot.lane.b32.xlu1 %v1469_v10, %s3106_s16 }
 0x18d   : > { %v2870_v9 = vpop.f32.mrf.mxu0  ;;  %v2899_v12 = vpop.f32.mrf.mxu1 }
 0x18e   : > { %v1471_v24 = vadd.f32 %v3889_v35, %v1409_v52  ;;  %v1424_v17 = vadd.f32 %v2896_v45, %v2870_v9  ;;  %1509 = vrot.lane.b32.xlu0 %v1472_v51, %s3106_s16 }
 0x18f   : > { %v1273_v0 = vpop.f32.mrf.mxu0  ;;  %v1428_v54 = vpop.f32.mrf.mxu1 }
 0x190   : > { %v1474_v36 = vadd.f32 %v3889_v35, %v1424_v17  ;;  %v1419_v5 = vadd.f32 %v1418_v50, %v1273_v0  ;;  %1507 = vrot.lane.b32.xlu1 %v1471_v24, %s3106_s16 }
 0x191   : > { %v2873_v13 = vpop.f32.mrf.mxu0  ;;  %v2902_v14 = vpop.f32.mrf.mxu1 }
 0x192   : > { %v1473_v15 = vadd.f32 %v3889_v35, %v1419_v5  ;;  %v1434_v19 = vadd.f32 %v2899_v12, %v2873_v13  ;;  %1513 = vrot.lane.b32.xlu0 %v1474_v36, %s3106_s16 }
 0x193   : > { %v1283_v38 = vpop.f32.mrf.mxu0  ;;  %v1438_v26 = vpop.f32.mrf.mxu1 }
 0x194   : > { %v1476_v29 = vadd.f32 %v3889_v35, %v1434_v19  ;;  %v1429_v33 = vadd.f32 %v1428_v54, %v1283_v38  ;;  %1511 = vrot.lane.b32.xlu1 %v1473_v15, %s3106_s16 }
 0x195   : > { %v2876_v7 = vpop.f32.mrf.mxu0  ;;  %v2905_v31 = vpop.f32.mrf.mxu1 }
 0x196   : > { %v1475_v39 = vadd.f32 %v3889_v35, %v1429_v33  ;;  %v1444_v40 = vadd.f32 %v2902_v14, %v2876_v7  ;;  %1517 = vrot.lane.b32.xlu0 %v1476_v29, %s3106_s16 }
 0x197   : > { %v1293_v59 = vpop.f32.mrf.mxu0  ;;  %v1448_v30 = vpop.f32.mrf.mxu1 }
 0x198   : > { %v1478_v22 = vadd.f32 %v3889_v35, %v1444_v40  ;;  %v1439_v57 = vadd.f32 %v1438_v26, %v1293_v59  ;;  %1515 = vrot.lane.b32.xlu1 %v1475_v39, %s3106_s16 }
 0x199   : > { %v2879_v60 = vpop.f32.mrf.mxu0  ;;  %v2908_v1 = vpop.f32.mrf.mxu1 }
 0x19a   : > { %v1477_v16 = vadd.f32 %v3889_v35, %v1439_v57  ;;  %v1454_v20 = vadd.f32 %v2905_v31, %v2879_v60  ;;  %1521 = vrot.lane.b32.xlu0 %v1478_v22, %s3106_s16 }
 0x19b   : > { %v1303_v62 = vpop.f32.mrf.mxu0  ;;  %v1458_v4 = vpop.f32.mrf.mxu1 }
 0x19c   : > { %v1480_v25 = vadd.f32 %v3889_v35, %v1454_v20  ;;  %v1449_v3 = vadd.f32 %v1448_v30, %v1303_v62  ;;  %1519 = vrot.lane.b32.xlu1 %v1477_v16, %s3106_s16 }
 0x19d   : > { %v2882_v55 = vpop.f32.mrf.mxu0  ;;  %v2939_v56 = vpop.f32.mrf.mxu1 }
 0x19e   : > { %v1479_v11 = vadd.f32 %v3889_v35, %v1449_v3  ;;  %v1464_v8 = vadd.f32 %v2908_v1, %v2882_v55  ;;  %1525 = vrot.lane.b32.xlu0 %v1480_v25, %s3106_s16 }
 0x19f   : > { %v1313_v28 = vpop.f32.mrf.mxu0  ;;  %v1809_v23 = vpop.f32.mrf.mxu1 }
 0x1a0   : > { %v1482_v27 = vadd.f32 %v3889_v35, %v1464_v8  ;;  %v1459_v41 = vadd.f32 %v1458_v4, %v1313_v28  ;;  %1523 = vrot.lane.b32.xlu1 %v1479_v11, %s3106_s16 }
 0x1a1   : > { %v2913_v32 = vpop.f32.mrf.mxu0  ;;  %v2942_v47 = vpop.f32.mrf.mxu1 }
 0x1a2   : > { %v1481_v37 = vadd.f32 %v3889_v35, %v1459_v41  ;;  %v1815_v21 = vadd.f32 %v2939_v56, %v2913_v32  ;;  %1529 = vrot.lane.b32.xlu0 %v1482_v27, %s3106_s16 }
 0x1a3   : > { %v1660_v61 = vpop.f32.mrf.mxu0  ;;  %v1819_v46 = vpop.f32.mrf.mxu1 }
 0x1a4   : > { %v1889_v6 = vadd.f32 %v3889_v35, %v1815_v21  ;;  %v1810_v18 = vadd.f32 %v1809_v23, %v1660_v61  ;;  %1527 = vrot.lane.b32.xlu1 %v1481_v37, %s3106_s16 }
 0x1a5   : > { %v2916_v53 = vpop.f32.mrf.mxu0  ;;  %v2945_v63 = vpop.f32.mrf.mxu1 }
 0x1a6   : > { %2600 = vst.msk [vmem:[%s3894_s19 + $0x18] sm:$0xff] %vm614_vm1, %v1889_v6  ;;  %v1888_v58 = vadd.f32 %v3889_v35, %v1810_v18  ;;  %v1825_v42 = vadd.f32 %v2942_v47, %v2916_v53 }
 0x1a7   : > { %v1670_v43 = vpop.f32.mrf.mxu0  ;;  %v1829_v44 = vpop.f32.mrf.mxu1 }
 0x1a8   : > { %2599 = vst.msk [vmem:[%s3894_s19 + $0x10] sm:$0xff] %vm614_vm1, %v1888_v58  ;;  %v1891_v34 = vadd.f32 %v3889_v35, %v1825_v42  ;;  %v1820_v48 = vadd.f32 %v1819_v46, %v1670_v43 }
 0x1a9   : > { %v2919_v45 = vpop.f32.mrf.mxu0  ;;  %v2948_v10 = vpop.f32.mrf.mxu1 }
 0x1aa   : > { %2602 = vst.msk [vmem:[%s3894_s19 + $0x38] sm:$0xff] %vm614_vm1, %v1891_v34  ;;  %v1890_v49 = vadd.f32 %v3889_v35, %v1820_v48  ;;  %v1835_v2 = vadd.f32 %v2945_v63, %v2919_v45 }
 0x1ab   : > { %v1680_v50 = vpop.f32.mrf.mxu0  ;;  %v1839_v51 = vpop.f32.mrf.mxu1 }
 0x1ac   : > { %2601 = vst.msk [vmem:[%s3894_s19 + $0x30] sm:$0xff] %vm614_vm1, %v1890_v49  ;;  %v1893_v52 = vadd.f32 %v3889_v35, %v1835_v2  ;;  %v1830_v9 = vadd.f32 %v1829_v44, %v1680_v50 }
 0x1ad   : > { %v2922_v12 = vpop.f32.mrf.mxu0  ;;  %v2951_v24 = vpop.f32.mrf.mxu1 }
 0x1ae   : > { %2604 = vst.msk [vmem:[%s3894_s19 + $0x58] sm:$0xff] %vm614_vm1, %v1893_v52  ;;  %v1892_v17 = vadd.f32 %v3889_v35, %v1830_v9  ;;  %v1845_v0 = vadd.f32 %v2948_v10, %v2922_v12 }
 0x1af   : > { %v1690_v54 = vpop.f32.mrf.mxu0  ;;  %v1849_v36 = vpop.f32.mrf.mxu1 }
 0x1b0   : > { %2603 = vst.msk [vmem:[%s3894_s19 + $0x50] sm:$0xff] %vm614_vm1, %v1892_v17  ;;  %v1895_v5 = vadd.f32 %v3889_v35, %v1845_v0  ;;  %v1840_v13 = vadd.f32 %v1839_v51, %v1690_v54 }
 0x1b1   : > { %v2925_v14 = vpop.f32.mrf.mxu0  ;;  %v2954_v15 = vpop.f32.mrf.mxu1 }
 0x1b2   : > { %2606 = vst.msk [vmem:[%s3894_s19 + $0x78] sm:$0xff] %vm614_vm1, %v1895_v5  ;;  %v1894_v19 = vadd.f32 %v3889_v35, %v1840_v13  ;;  %v1855_v38 = vadd.f32 %v2951_v24, %v2925_v14 }
 0x1b3   : > { %v1700_v26 = vpop.f32.mrf.mxu0  ;;  %v1859_v29 = vpop.f32.mrf.mxu1 }
 0x1b4   : > { %2605 = vst.msk [vmem:[%s3894_s19 + $0x70] sm:$0xff] %vm614_vm1, %v1894_v19  ;;  %v1897_v33 = vadd.f32 %v3889_v35, %v1855_v38  ;;  %v1850_v7 = vadd.f32 %v1849_v36, %v1700_v26 }
 0x1b5   : > { %v2928_v31 = vpop.f32.mrf.mxu0  ;;  %v2957_v39 = vpop.f32.mrf.mxu1 }
 0x1b6   : > { %2608 = vst.msk [vmem:[%s3894_s19 + $0x98] sm:$0xff] %vm614_vm1, %v1897_v33  ;;  %v1896_v40 = vadd.f32 %v3889_v35, %v1850_v7  ;;  %v1865_v59 = vadd.f32 %v2954_v15, %v2928_v31 }
 0x1b7   : > { %v1710_v30 = vpop.f32.mrf.mxu0  ;;  %v1869_v22 = vpop.f32.mrf.mxu1 }
 0x1b8   : > { %2607 = vst.msk [vmem:[%s3894_s19 + $0x90] sm:$0xff] %vm614_vm1, %v1896_v40  ;;  %v1899_v57 = vadd.f32 %v3889_v35, %v1865_v59  ;;  %v1860_v60 = vadd.f32 %v1859_v29, %v1710_v30 }
 0x1b9   : > { %v2931_v1 = vpop.f32.mrf.mxu0  ;;  %v2960_v16 = vpop.f32.mrf.mxu1 }
 0x1ba   : > { %2610 = vst.msk [vmem:[%s3894_s19 + $0xb8] sm:$0xff] %vm614_vm1, %v1899_v57  ;;  %v1898_v20 = vadd.f32 %v3889_v35, %v1860_v60  ;;  %v1875_v62 = vadd.f32 %v2957_v39, %v2931_v1 }
 0x1bb   : > { %v1720_v4 = vpop.f32.mrf.mxu0  ;;  %v1879_v25 = vpop.f32.mrf.mxu1 }
 0x1bc   : > { %2609 = vst.msk [vmem:[%s3894_s19 + $0xb0] sm:$0xff] %vm614_vm1, %v1898_v20  ;;  %v1901_v3 = vadd.f32 %v3889_v35, %v1875_v62  ;;  %v1870_v55 = vadd.f32 %v1869_v22, %v1720_v4 }
 0x1bd   : > { %v2934_v56 = vpop.f32.mrf.mxu0  ;;  %v2991_v11 = vpop.f32.mrf.mxu1 }
 0x1be   : > { %2612 = vst.msk [vmem:[%s3894_s19 + $0xd8] sm:$0xff] %vm614_vm1, %v1901_v3  ;;  %v1900_v8 = vadd.f32 %v3889_v35, %v1870_v55  ;;  %v1885_v28 = vadd.f32 %v2960_v16, %v2934_v56 }
 0x1bf   : > { %v1730_v23 = vpop.f32.mrf.mxu0  ;;  %v2145_v27 = vpop.f32.mrf.mxu1 }
 0x1c0   : > { %2611 = vst.msk [vmem:[%s3894_s19 + $0xd0] sm:$0xff] %vm614_vm1, %v1900_v8  ;;  %v1903_v41 = vadd.f32 %v3889_v35, %v1885_v28  ;;  %v1880_v32 = vadd.f32 %v1879_v25, %v1730_v23 }
 0x1c1   : > { %v2965_v47 = vpop.f32.mrf.mxu0  ;;  %v2994_v37 = vpop.f32.mrf.mxu1 }
 0x1c2   : > { %2614 = vst.msk [vmem:[%s3894_s19 + $0xf8] sm:$0xff] %vm614_vm1, %v1903_v41  ;;  %v1902_v21 = vadd.f32 %v3889_v35, %v1880_v32  ;;  %v2151_v61 = vadd.f32 %v2991_v11, %v2965_v47 }
 0x1c3   : > { %v2000_v46 = vpop.f32.mrf.mxu0  ;;  %v2155_v6 = vpop.f32.mrf.mxu1 }
 0x1c4   : > { %2613 = vst.msk [vmem:[%s3894_s19 + $0xf0] sm:$0xff] %vm614_vm1, %v1902_v21  ;;  %v2225_v18 = vadd.f32 %v3889_v35, %v2151_v61  ;;  %v2146_v53 = vadd.f32 %v2145_v27, %v2000_v46 }
 0x1c5   : > { %v2968_v63 = vpop.f32.mrf.mxu0  ;;  %v2997_v58 = vpop.f32.mrf.mxu1 }
 0x1c6   : > { %v2224_v42 = vadd.f32 %v3889_v35, %v2146_v53  ;;  %v2161_v43 = vadd.f32 %v2994_v37, %v2968_v63  ;;  %2258 = vrot.lane.b32.xlu0 %v2225_v18, %s3106_s16 }
 0x1c7   : > { %v2010_v44 = vpop.f32.mrf.mxu0  ;;  %v2165_v34 = vpop.f32.mrf.mxu1 }
 0x1c8   : > { %v2227_v48 = vadd.f32 %v3889_v35, %v2161_v43  ;;  %v2156_v45 = vadd.f32 %v2155_v6, %v2010_v44  ;;  %2256 = vrot.lane.b32.xlu1 %v2224_v42, %s3106_s16 }
 0x1c9   : > { %v2971_v10 = vpop.f32.mrf.mxu0  ;;  %v3000_v49 = vpop.f32.mrf.mxu1 }
 0x1ca   : > { %v2226_v2 = vadd.f32 %v3889_v35, %v2156_v45  ;;  %v2171_v50 = vadd.f32 %v2997_v58, %v2971_v10  ;;  %2262 = vrot.lane.b32.xlu0 %v2227_v48, %s3106_s16 }
 0x1cb   : > { %v2020_v51 = vpop.f32.mrf.mxu0  ;;  %v2175_v52 = vpop.f32.mrf.mxu1 }
 0x1cc   : > { %v2229_v9 = vadd.f32 %v3889_v35, %v2171_v50  ;;  %v2166_v12 = vadd.f32 %v2165_v34, %v2020_v51  ;;  %2260 = vrot.lane.b32.xlu1 %v2226_v2, %s3106_s16 }
 0x1cd   : > { %v2974_v24 = vpop.f32.mrf.mxu0  ;;  %v3003_v17 = vpop.f32.mrf.mxu1 }
 0x1ce   : > { %v2228_v0 = vadd.f32 %v3889_v35, %v2166_v12  ;;  %v2181_v54 = vadd.f32 %v3000_v49, %v2974_v24  ;;  %2266 = vrot.lane.b32.xlu0 %v2229_v9, %s3106_s16 }
 0x1cf   : > { %v2030_v36 = vpop.f32.mrf.mxu0  ;;  %v2185_v5 = vpop.f32.mrf.mxu1 }
 0x1d0   : > { %v2231_v13 = vadd.f32 %v3889_v35, %v2181_v54  ;;  %v2176_v14 = vadd.f32 %v2175_v52, %v2030_v36  ;;  %2264 = vrot.lane.b32.xlu1 %v2228_v0, %s3106_s16 }
 0x1d1   : > { %v2977_v15 = vpop.f32.mrf.mxu0  ;;  %v3006_v19 = vpop.f32.mrf.mxu1 }
 0x1d2   : > { %v2230_v38 = vadd.f32 %v3889_v35, %v2176_v14  ;;  %v2191_v26 = vadd.f32 %v3003_v17, %v2977_v15  ;;  %2270 = vrot.lane.b32.xlu0 %v2231_v13, %s3106_s16 }
 0x1d3   : > { %v2040_v29 = vpop.f32.mrf.mxu0  ;;  %v2195_v33 = vpop.f32.mrf.mxu1 }
 0x1d4   : > { %v2233_v7 = vadd.f32 %v3889_v35, %v2191_v26  ;;  %v2186_v31 = vadd.f32 %v2185_v5, %v2040_v29  ;;  %2268 = vrot.lane.b32.xlu1 %v2230_v38, %s3106_s16 }
 0x1d5   : > { %v2980_v39 = vpop.f32.mrf.mxu0  ;;  %v3009_v40 = vpop.f32.mrf.mxu1 }
 0x1d6   : > { %v2232_v59 = vadd.f32 %v3889_v35, %v2186_v31  ;;  %v2201_v30 = vadd.f32 %v3006_v19, %v2980_v39  ;;  %2274 = vrot.lane.b32.xlu0 %v2233_v7, %s3106_s16 }
 0x1d7   : > { %v2050_v22 = vpop.f32.mrf.mxu0  ;;  %v2205_v57 = vpop.f32.mrf.mxu1 }
 0x1d8   : > { %v2235_v60 = vadd.f32 %v3889_v35, %v2201_v30  ;;  %v2196_v1 = vadd.f32 %v2195_v33, %v2050_v22  ;;  %2272 = vrot.lane.b32.xlu1 %v2232_v59, %s3106_s16 }
 0x1d9   : > { %v2983_v16 = vpop.f32.mrf.mxu0  ;;  %v3012_v4 = vpop.f32.mrf.mxu1 }
 0x1da   : > { %v2234_v20 = vadd.f32 %v3889_v35, %v2196_v1  ;;  %v2211_v62 = vadd.f32 %v3009_v40, %v2983_v16  ;;  %2278 = vrot.lane.b32.xlu0 %v2235_v60, %s3106_s16 }
 0x1db   : > { %v2060_v25 = vpop.f32.mrf.mxu0  ;;  %v2215_v28 = vpop.f32.mrf.mxu1 }
 0x1dc   : > { %v2237_v3 = vadd.f32 %v3889_v35, %v2211_v62  ;;  %v2206_v55 = vadd.f32 %v2205_v57, %v2060_v25  ;;  %2276 = vrot.lane.b32.xlu1 %v2234_v20, %s3106_s16 }
 0x1dd   : > { %v2986_v56 = vpop.f32.mrf.mxu0 }
 0x1de   : > { %v2236_v11 = vadd.f32 %v3889_v35, %v2206_v55  ;;  %v2221_v8 = vadd.f32 %v3012_v4, %v2986_v56  ;;  %2282 = vrot.lane.b32.xlu0 %v2237_v3, %s3106_s16 }
 0x1df   : > { %v2070_v23 = vpop.f32.mrf.mxu0 }
 0x1e0   : > { %v2239_v27 = vadd.f32 %v3889_v35, %v2221_v8  ;;  %v2216_v41 = vadd.f32 %v2215_v28, %v2070_v23  ;;  %2280 = vrot.lane.b32.xlu1 %v2236_v11, %s3106_s16 }
 0x1e2   : > { %v2238_v32 = vadd.f32 %v3889_v35, %v2216_v41  ;;  %2286 = vrot.lane.b32.xlu0 %v2239_v27, %s3106_s16 }
 0x1e4   : > { %2284 = vrot.lane.b32.xlu1 %v2238_v32, %s3106_s16 }
 0x1f8   : > { %v1502_v47 = vpop.permute.xlu0 %1501 }
 0x1f9   : > { %1549 = vst.msk [vmem:[%s3894_s19 + $0x8] sm:$0xff] %vm1547_vm5, %v1502_v47 }
 0x1fa   : > { %v1500_v37 = vpop.permute.xlu1 %1499 }
 0x1fb   : > { %1548 = vst.msk [vmem:[%s3894_s19] sm:$0xff] %vm1547_vm5, %v1500_v37 }
 0x1fc   : > { %v1506_v21 = vpop.permute.xlu0 %1505 }
 0x1fd   : > { %1551 = vst.msk [vmem:[%s3894_s19 + $0x28] sm:$0xff] %vm1547_vm5, %v1506_v21 }
 0x1fe   : > { %v1504_v35 = vpop.permute.xlu1 %1503 }
 0x1ff   : > { %1550 = vst.msk [vmem:[%s3894_s19 + $0x20] sm:$0xff] %vm1547_vm5, %v1504_v35 }
 0x200   : > { %v1510_v61 = vpop.permute.xlu0 %1509 }
 0x201   : > { %1553 = vst.msk [vmem:[%s3894_s19 + $0x48] sm:$0xff] %vm1547_vm5, %v1510_v61 }
 0x202   : > { %v1508_v46 = vpop.permute.xlu1 %1507 }
 0x203   : > { %1552 = vst.msk [vmem:[%s3894_s19 + $0x40] sm:$0xff] %vm1547_vm5, %v1508_v46 }
 0x204   : > { %v1514_v6 = vpop.permute.xlu0 %1513 }
 0x205   : > { %1555 = vst.msk [vmem:[%s3894_s19 + $0x68] sm:$0xff] %vm1547_vm5, %v1514_v6 }
 0x206   : > { %v1512_v18 = vpop.permute.xlu1 %1511 }
 0x207   : > { %1554 = vst.msk [vmem:[%s3894_s19 + $0x60] sm:$0xff] %vm1547_vm5, %v1512_v18 }
 0x208   : > { %v1518_v53 = vpop.permute.xlu0 %1517 }
 0x209   : > { %1557 = vst.msk [vmem:[%s3894_s19 + $0x88] sm:$0xff] %vm1547_vm5, %v1518_v53 }
 0x20a   : > { %v1516_v63 = vpop.permute.xlu1 %1515 }
 0x20b   : > { %1556 = vst.msk [vmem:[%s3894_s19 + $0x80] sm:$0xff] %vm1547_vm5, %v1516_v63 }
 0x20c   : > { %v1522_v58 = vpop.permute.xlu0 %1521 }
 0x20d   : > { %1559 = vst.msk [vmem:[%s3894_s19 + $0xa8] sm:$0xff] %vm1547_vm5, %v1522_v58 }
 0x20e   : > { %v1520_v42 = vpop.permute.xlu1 %1519 }
 0x20f   : > { %1558 = vst.msk [vmem:[%s3894_s19 + $0xa0] sm:$0xff] %vm1547_vm5, %v1520_v42 }
 0x210   : > { %v1526_v43 = vpop.permute.xlu0 %1525 }
 0x211   : > { %1561 = vst.msk [vmem:[%s3894_s19 + $0xc8] sm:$0xff] %vm1547_vm5, %v1526_v43 }
 0x212   : > { %v1524_v44 = vpop.permute.xlu1 %1523 }
 0x213   : > { %1560 = vst.msk [vmem:[%s3894_s19 + $0xc0] sm:$0xff] %vm1547_vm5, %v1524_v44 }
 0x214   : > { %v1530_v34 = vpop.permute.xlu0 %1529 }
 0x215   : > { %1563 = vst.msk [vmem:[%s3894_s19 + $0xe8] sm:$0xff] %vm1547_vm5, %v1530_v34 }
 0x216   : > { %v1528_v48 = vpop.permute.xlu1 %1527 }
 0x217   : > { %1562 = vst.msk [vmem:[%s3894_s19 + $0xe0] sm:$0xff] %vm1547_vm5, %v1528_v48 }
 0x238   : > { %v2259_v45 = vpop.permute.xlu0 %2258 }
 0x239   : > { %2650 = vst.msk [vmem:[%s3894_s19 + $0x18] sm:$0xff] %vm1547_vm5, %v2259_v45 }
 0x23a   : > { %v2257_v10 = vpop.permute.xlu1 %2256 }
 0x23b   : > { %2649 = vst.msk [vmem:[%s3894_s19 + $0x10] sm:$0xff] %vm1547_vm5, %v2257_v10 }
 0x23c   : > { %v2263_v49 = vpop.permute.xlu0 %2262 }
 0x23d   : > { %2652 = vst.msk [vmem:[%s3894_s19 + $0x38] sm:$0xff] %vm1547_vm5, %v2263_v49 }
 0x23e   : > { %v2261_v2 = vpop.permute.xlu1 %2260 }
 0x23f   : > { %2651 = vst.msk [vmem:[%s3894_s19 + $0x30] sm:$0xff] %vm1547_vm5, %v2261_v2 }
 0x240   : > { %v2267_v50 = vpop.permute.xlu0 %2266 }
 0x241   : > { %2654 = vst.msk [vmem:[%s3894_s19 + $0x58] sm:$0xff] %vm1547_vm5, %v2267_v50 }
 0x242   : > { %v2265_v51 = vpop.permute.xlu1 %2264 }
 0x243   : > { %2653 = vst.msk [vmem:[%s3894_s19 + $0x50] sm:$0xff] %vm1547_vm5, %v2265_v51 }
 0x244   : > { %v2271_v52 = vpop.permute.xlu0 %2270 }
 0x245   : > { %2656 = vst.msk [vmem:[%s3894_s19 + $0x78] sm:$0xff] %vm1547_vm5, %v2271_v52 }
 0x246   : > { %v2269_v9 = vpop.permute.xlu1 %2268 }
 0x247   : > { %2655 = vst.msk [vmem:[%s3894_s19 + $0x70] sm:$0xff] %vm1547_vm5, %v2269_v9 }
 0x248   : > { %v2275_v12 = vpop.permute.xlu0 %2274 }
 0x249   : > { %2658 = vst.msk [vmem:[%s3894_s19 + $0x98] sm:$0xff] %vm1547_vm5, %v2275_v12 }
 0x24a   : > { %v2273_v24 = vpop.permute.xlu1 %2272 }
 0x24b   : > { %2657 = vst.msk [vmem:[%s3894_s19 + $0x90] sm:$0xff] %vm1547_vm5, %v2273_v24 }
 0x24c   : > { %v2279_v17 = vpop.permute.xlu0 %2278 }
 0x24d   : > { %2660 = vst.msk [vmem:[%s3894_s19 + $0xb8] sm:$0xff] %vm1547_vm5, %v2279_v17 }
 0x24e   : > { %v2277_v0 = vpop.permute.xlu1 %2276 }
 0x24f   : > { %2659 = vst.msk [vmem:[%s3894_s19 + $0xb0] sm:$0xff] %vm1547_vm5, %v2277_v0 }
 0x250   : > { %v2283_v54 = vpop.permute.xlu0 %2282 }
 0x251   : > { %2662 = vst.msk [vmem:[%s3894_s19 + $0xd8] sm:$0xff] %vm1547_vm5, %v2283_v54 }
 0x252   : > { %v2281_v36 = vpop.permute.xlu1 %2280 }
 0x253   : > { %2661 = vst.msk [vmem:[%s3894_s19 + $0xd0] sm:$0xff] %vm1547_vm5, %v2281_v36 }
 0x254   : > { %v2287_v5 = vpop.permute.xlu0 %2286 }
 0x255   : > { %2664 = vst.msk [vmem:[%s3894_s19 + $0xf8] sm:$0xff] %vm1547_vm5, %v2287_v5 }
 0x256   : > { %v2285_v13 = vpop.permute.xlu1 %2284 }
 0x257   : > { %2663 = vst.msk [vmem:[%s3894_s19 + $0xf0] sm:$0xff] %vm1547_vm5, %v2285_v13 }
 0x258 PF: > { %s15_s22 = sadd.s32 1, %s3104_s22   ;;  %s4142_s18 = smov %s3096_s20 }
 0x259   : > { %p12_p12 = scmp.ge.s32.totalorder %s15_s22, 6   ;;  %s4143_s19 = smov %s3100_s21 }
 0x25a   : > { %s4144_s20 = smov %s4147_s23  ;;  %s4145_s21 = smov %s4151_s24 }
 0x25b   :  { %14 = sbr.rel (!%p12_p12) target bundleno = 3 (0x3), region = 84 }

</bundles_post_ra>
